<compile_context>
chip_gen: v6e
topology: v6e:2x2x1
jax: 0.10.0
libtpu: 0.0.40
codegen_flags: <defaults>
</compile_context>

<pallas_src>
import functools

import jax
import jax.numpy as jnp
import numpy as np
from jax.experimental import pallas as pl
from jax.experimental.pallas import tpu as pltpu

EPS_LN = 1e-5
EPS_BN = 1e-5
NUM_HEADS = 8


# ----------------------------- in-kernel helpers ----------------------------
def _layernorm(x, g, b):
    mean = jnp.mean(x, axis=-1, keepdims=True)
    xc = x - mean
    var = jnp.mean(xc * xc, axis=-1, keepdims=True)
    return xc * jax.lax.rsqrt(var + EPS_LN) * g + b


def _erf_approx(x):
    # Abramowitz & Stegun 7.1.26 (max abs err ~1.5e-7) — VPU/EUP ops only, so
    # the exact-erf GELU of nn.GELU() is reproduced to f32 noise level.
    a1, a2, a3, a4, a5 = (0.254829592, -0.284496736, 1.421413741,
                          -1.453152027, 1.061405429)
    p = 0.3275911
    s = jnp.where(x >= 0.0, 1.0, -1.0)
    ax = jnp.abs(x)
    t = 1.0 / (1.0 + p * ax)
    poly = ((((a5 * t + a4) * t + a3) * t + a2) * t + a1) * t
    return s * (1.0 - poly * jnp.exp(-ax * ax))


def _gelu_exact(x):
    return 0.5 * x * (1.0 + _erf_approx(x * 0.7071067811865476))


def _dwconv3x3(x_flat, shift_ref, w9, b):
    """Depthwise 3x3 (padding=1) on a VMEM-resident (N=H*W, C) slab.

    The 9 spatial taps are applied as 9 tiny MXU matmuls with constant (N, N)
    shift/zero-pad matrices (built once in the wrapper): tap t output is
    (S_t @ x) * w9[t] summed over taps, plus bias.  Only aligned loads, dots
    and elementwise ops — no unaligned sublane slicing or halo scratch.
    """
    acc = None
    for t in range(9):
        tap = jnp.dot(shift_ref[t], x_flat, preferred_element_type=jnp.float32)
        tap = tap * w9[t:t + 1, :]                 # (1, C) broadcast over rows
        acc = tap if acc is None else acc + tap
    return acc + b


# ------------------------------- fused kernel -------------------------------
def _mhsa_cglu_kernel(x_ref, shift_ref,
                      ln1g_ref, ln1b_ref, wqkv_ref, bqkv_ref,
                      wpe_ref, bpe_ref, wproj_ref, bproj_ref,
                      ln2g_ref, ln2b_ref, fc1w_ref, fc1b_ref,
                      dww_ref, dwb_ref, fc2w_ref, fc2b_ref,
                      o_ref,
                      *, num_heads, key_dim, head_dim, hidden):
    # One image (batch element) per grid step; all intermediates stay on-chip.
    nh_kd = num_heads * key_dim
    x = x_ref[0].astype(jnp.float32)                               # (N, C)

    # -------- PSA attention branch: x1 = proj(attn + pe(v)) + x -------------
    y = _layernorm(x, ln1g_ref[...], ln1b_ref[...])
    # qkv 1x1 conv: BN folded, columns permuted head-major [q | k | v], and
    # the attention scale pre-folded into the q columns (wrapper-side).
    qkv = (jnp.dot(y, wqkv_ref[...], preferred_element_type=jnp.float32)
           + bqkv_ref[...])                                        # (N, 2*nh_kd+C)
    v_all = qkv[:, 2 * nh_kd:]                                     # (N, C)

    col = jax.lax.broadcasted_iota(jnp.int32, (1, v_all.shape[-1]), 1)
    attn_out = jnp.zeros_like(v_all)                               # (N, C)
    for h in range(num_heads):                                     # static unroll
        qh = qkv[:, h * key_dim:(h + 1) * key_dim]                 # (N, kd) pre-scaled
        kh = qkv[:, nh_kd + h * key_dim:nh_kd + (h + 1) * key_dim]
        s = jax.lax.dot_general(qh, kh, (((1,), (1,)), ((), ())),
                                preferred_element_type=jnp.float32)  # (N, N)
        s = s - jnp.max(s, axis=-1, keepdims=True)
        p = jnp.exp(s)
        inv_l = 1.0 / jnp.sum(p, axis=-1, keepdims=True)
        # Mask V to this head's channels: P@V then lands directly in the
        # head's final (head-major) channel slots — no lane concat needed.
        head_mask = (col >= h * head_dim) & (col < (h + 1) * head_dim)
        vh = jnp.where(head_mask, v_all, 0.0)
        attn_out = attn_out + jnp.dot(
            p, vh, preferred_element_type=jnp.float32) * inv_l

    pe = _dwconv3x3(v_all, shift_ref, wpe_ref[...], bpe_ref[...])
    a = attn_out + pe
    x1 = (jnp.dot(a, wproj_ref[...], preferred_element_type=jnp.float32)
          + bproj_ref[...] + x)

    # -------- ConvolutionalGLU branch: out = fc2(gelu(dw(xg))*vg) + y2 + x1 --
    y2 = _layernorm(x1, ln2g_ref[...], ln2b_ref[...])
    z = (jnp.dot(y2, fc1w_ref[...], preferred_element_type=jnp.float32)
         + fc1b_ref[...])                                          # (N, 2*hidden)
    xg = z[:, :hidden]
    vg = z[:, hidden:]
    g = _dwconv3x3(xg, shift_ref, dww_ref[...], dwb_ref[...])
    glu = _gelu_exact(g) * vg
    out = (jnp.dot(glu, fc2w_ref[...], preferred_element_type=jnp.float32)
           + fc2b_ref[...] + y2 + x1)

    # TODO(synk): final store last dim C=48 (<128) -> masked vst; a lane-dense
    # re-layout is not worth an in-kernel relayout at this size.
    o_ref[0] = out.astype(o_ref.dtype)


# ------------------------------ pallas_call wrapper --------------------------
def _make_shift_mats(H, W):
    """(9, N, N) constant 0/1 matrices: tap t = 3*dh + dw gathers, for each
    flat position n=(h, w), its (h+dh-1, w+dw-1) neighbour (0 outside)."""
    N = H * W
    S = np.zeros((9, N, N), np.float32)
    for dh in range(3):
        for dw in range(3):
            t = dh * 3 + dw
            for h in range(H):
                hh = h + dh - 1
                if not 0 <= hh < H:
                    continue
                for w in range(W):
                    ww = w + dw - 1
                    if 0 <= ww < W:
                        S[t, h * W + w, hh * W + ww] = 1.0
    return S


def mhsa_cglu_forward(x, fp):
    """x: (B, H, W, C) NHWC float32 (PyTorch module is NCHW); fp: prepared params."""
    B, H, W, C = x.shape
    N = H * W
    hd = C // NUM_HEADS
    kd = hd // 2
    hq = C + 2 * kd * NUM_HEADS
    hidden = int(2 * C / 3)
    shift = jnp.asarray(_make_shift_mats(H, W))      # trace-time constant

    kernel = functools.partial(_mhsa_cglu_kernel, num_heads=NUM_HEADS,
                               key_dim=kd, head_dim=hd, hidden=hidden)

    def rep(shape):  # grid-invariant (weight) block: full array, fetched once
        return pl.BlockSpec(shape, lambda b: (0,) * len(shape))

    out = pl.pallas_call(
        kernel,
        out_shape=jax.ShapeDtypeStruct((B, N, C), jnp.float32),
        grid=(B,),
        in_specs=[
            pl.BlockSpec((1, N, C), lambda b: (b, 0, 0)),          # x
            rep((9, N, N)),                                        # dwconv shift mats
            rep((1, C)), rep((1, C)),                              # ln1 gamma/beta
            rep((C, hq)), rep((1, hq)),                            # qkv (folded)
            rep((9, C)), rep((1, C)),                              # pe  (folded)
            rep((C, C)), rep((1, C)),                              # proj (folded)
            rep((1, C)), rep((1, C)),                              # ln2 gamma/beta
            rep((C, 2 * hidden)), rep((1, 2 * hidden)),            # fc1
            rep((9, hidden)), rep((1, hidden)),                    # dwconv
            rep((hidden, C)), rep((1, C)),                         # fc2
        ],
        out_specs=pl.BlockSpec((1, N, C), lambda b: (b, 0, 0)),
        # One image per grid step; "parallel" lets a 2-TC chip place one image
        # per TensorCore (the grid is a cheap sequential loop on 1-TC chips).
        compiler_params=pltpu.CompilerParams(
            dimension_semantics=("parallel",)),
    )(x.reshape(B, N, C), shift,
      fp['ln1_g'], fp['ln1_b'], fp['wqkv'], fp['bqkv'],
      fp['wpe'], fp['bpe'], fp['wproj'], fp['bproj'],
      fp['ln2_g'], fp['ln2_b'], fp['fc1_w'], fp['fc1_b'],
      fp['dw_w'], fp['dw_b'], fp['fc2_w'], fp['fc2_b'])
    return out.reshape(B, H, W, C)


# ------------------------------ parameters ----------------------------------
def _bn_init(key, c):
    k1, k2, k3, k4 = jax.random.split(key, 4)
    return dict(gamma=1.0 + 0.1 * jax.random.normal(k1, (c,), jnp.float32),
                beta=0.05 * jax.random.normal(k2, (c,), jnp.float32),
                mean=0.05 * jax.random.normal(k3, (c,), jnp.float32),
                var=0.5 + jax.random.uniform(k4, (c,), dtype=jnp.float32))


def init_params(key, inc):
    hidden = int(2 * inc / 3)
    head_dim = inc // NUM_HEADS
    key_dim = head_dim // 2
    h = inc + 2 * key_dim * NUM_HEADS
    ks = jax.random.split(key, 16)
    n = lambda k, shape, s=0.05: s * jax.random.normal(k, shape, jnp.float32)
    return dict(
        ln1_g=1.0 + n(ks[0], (inc,)), ln1_b=n(ks[1], (inc,)),
        ln2_g=1.0 + n(ks[2], (inc,)), ln2_b=n(ks[3], (inc,)),
        qkv_w=n(ks[4], (inc, h)), qkv_bn=_bn_init(ks[5], h),
        proj_w=n(ks[6], (inc, inc)), proj_bn=_bn_init(ks[7], inc),
        pe_w=n(ks[8], (9, inc)), pe_bn=_bn_init(ks[9], inc),
        fc1_w=n(ks[10], (inc, 2 * hidden)), fc1_b=n(ks[11], (2 * hidden,)),
        dw_w=n(ks[12], (9, hidden)), dw_b=n(ks[13], (hidden,)),
        fc2_w=n(ks[14], (hidden, inc)), fc2_b=n(ks[15], (inc,)),
    )


def fold_bn(w, bn):
    # eval-mode BatchNorm folded into the preceding bias-free conv
    # (per-output-channel scale lives on the last weight axis for both the
    #  (Cin, Cout) 1x1 weights and the (9, C) depthwise weights).
    s = bn['gamma'] / jnp.sqrt(bn['var'] + EPS_BN)
    return w * s[None, :], bn['beta'] - bn['mean'] * s


def prepare_params(p, inc):
    """One-time param prep (outside the hot path): fold eval-mode BN, permute
    qkv columns head-major ([q heads | k heads | v heads]) so the kernel works
    on lane-contiguous slabs, and fold the attention scale into the q cols."""
    nh = NUM_HEADS
    hd = inc // nh
    kd = hd // 2
    scale = float(kd) ** -0.5
    blk = 2 * kd + hd

    wqkv, bqkv = fold_bn(p['qkv_w'], p['qkv_bn'])
    perm = ([h * blk + i for h in range(nh) for i in range(kd)]              # q
            + [h * blk + kd + i for h in range(nh) for i in range(kd)]       # k
            + [h * blk + 2 * kd + i for h in range(nh) for i in range(hd)])  # v
    perm = jnp.asarray(perm, jnp.int32)
    wqkv = wqkv[:, perm]
    bqkv = bqkv[perm]
    colscale = jnp.concatenate([jnp.full((nh * kd,), scale, jnp.float32),
                                jnp.ones((nh * kd + nh * hd,), jnp.float32)])
    wqkv = wqkv * colscale[None, :]
    bqkv = bqkv * colscale

    wpe, bpe = fold_bn(p['pe_w'], p['pe_bn'])
    wproj, bproj = fold_bn(p['proj_w'], p['proj_bn'])
    r = lambda v: v.reshape(1, -1)
    return dict(
        ln1_g=r(p['ln1_g']), ln1_b=r(p['ln1_b']),
        ln2_g=r(p['ln2_g']), ln2_b=r(p['ln2_b']),
        wqkv=wqkv, bqkv=r(bqkv),
        wpe=wpe, bpe=r(bpe),
        wproj=wproj, bproj=r(bproj),
        fc1_w=p['fc1_w'], fc1_b=r(p['fc1_b']),
        dw_w=p['dw_w'], dw_b=r(p['dw_b']),
        fc2_w=p['fc2_w'], fc2_b=r(p['fc2_b']),
    )


# ------------------------------ pure-JAX reference ---------------------------
def reference_forward(x, p):
    B, H, W, C = x.shape
    N = H * W
    hd = C // NUM_HEADS
    kd = hd // 2
    scale = float(kd) ** -0.5
    hidden = int(2 * C / 3)
    hi = jax.lax.Precision.HIGHEST

    def ln(z, g, b):
        m = z.mean(-1, keepdims=True)
        v = ((z - m) ** 2).mean(-1, keepdims=True)
        return (z - m) / jnp.sqrt(v + EPS_LN) * g + b

    def dwconv(img, w9, b):
        xp = jnp.pad(img, ((0, 0), (1, 1), (1, 1), (0, 0)))
        acc = 0.0
        for dh in range(3):
            for dwc in range(3):
                acc = acc + xp[:, dh:dh + H, dwc:dwc + W, :] * w9[dh * 3 + dwc]
        return acc + b

    x2d = x.reshape(B * N, C)
    y = ln(x2d, p['ln1_g'], p['ln1_b'])
    wqkv, bqkv = fold_bn(p['qkv_w'], p['qkv_bn'])
    qkv = jnp.dot(y, wqkv, precision=hi) + bqkv
    qkv = qkv.reshape(B, N, NUM_HEADS, 2 * kd + hd).transpose(0, 2, 1, 3)
    q, k, v = qkv[..., :kd], qkv[..., kd:2 * kd], qkv[..., 2 * kd:]
    attn = jnp.einsum('bhnd,bhmd->bhnm', q, k, precision=hi) * scale
    attn = jax.nn.softmax(attn, axis=-1)
    ao = jnp.einsum('bhnm,bhmd->bhnd', attn, v, precision=hi)
    ao = ao.transpose(0, 2, 1, 3).reshape(B, H, W, C)
    v_img = v.transpose(0, 2, 1, 3).reshape(B, H, W, C)
    wpe, bpe = fold_bn(p['pe_w'], p['pe_bn'])
    a = ao + dwconv(v_img, wpe, bpe)
    wproj, bproj = fold_bn(p['proj_w'], p['proj_bn'])
    x1 = jnp.dot(a.reshape(B * N, C), wproj, precision=hi) + bproj + x2d
    y2 = ln(x1, p['ln2_g'], p['ln2_b'])
    z = jnp.dot(y2, p['fc1_w'], precision=hi) + p['fc1_b']
    xg = z[:, :hidden].reshape(B, H, W, hidden)
    vg = z[:, hidden:].reshape(B, H, W, hidden)
    glu = jax.nn.gelu(dwconv(xg, p['dw_w'], p['dw_b']), approximate=False) * vg
    out = (jnp.dot(glu.reshape(B * N, hidden), p['fc2_w'], precision=hi)
           + p['fc2_b'] + y2 + x1)
    return out.reshape(B, H, W, C)


if __name__ == "__main__":
    # PyTorch equivalent input: (B, C, H, W) = (2, 48, 8, 8); kernel uses NHWC.
    B, H, W, C = 2, 8, 8, 48
    key = jax.random.PRNGKey(0)
    kx, kp = jax.random.split(key)
    x = jax.random.normal(kx, (B, H, W, C), jnp.float32)
    params = init_params(kp, C)
    prepped = prepare_params(params, C)     # one-time BN fold / permute / scale

    fwd = jax.jit(mhsa_cglu_forward)
    out = jax.block_until_ready(fwd(x, prepped))
    ref = jax.block_until_ready(reference_forward(x, params))

    assert out.shape == (B, H, W, C)
    err = float(jnp.max(jnp.abs(out - ref)))
    assert err < 2e-3, f"max abs error too large: {err}"
    print("KERNEL_OK")
</pallas_src>

<mosaic_0001>
module attributes {stable_mosaic.version = 11 : i64} {
  func.func @_mhsa_cglu_kernel(%arg0: i32, %arg1: memref<1x64x48xf32, #tpu.memory_space<vmem>>, %arg2: memref<9x64x64xf32, #tpu.memory_space<vmem>>, %arg3: memref<1x48xf32, #tpu.memory_space<vmem>>, %arg4: memref<1x48xf32, #tpu.memory_space<vmem>>, %arg5: memref<48x96xf32, #tpu.memory_space<vmem>>, %arg6: memref<1x96xf32, #tpu.memory_space<vmem>>, %arg7: memref<9x48xf32, #tpu.memory_space<vmem>>, %arg8: memref<1x48xf32, #tpu.memory_space<vmem>>, %arg9: memref<48x48xf32, #tpu.memory_space<vmem>>, %arg10: memref<1x48xf32, #tpu.memory_space<vmem>>, %arg11: memref<1x48xf32, #tpu.memory_space<vmem>>, %arg12: memref<1x48xf32, #tpu.memory_space<vmem>>, %arg13: memref<48x64xf32, #tpu.memory_space<vmem>>, %arg14: memref<1x64xf32, #tpu.memory_space<vmem>>, %arg15: memref<9x32xf32, #tpu.memory_space<vmem>>, %arg16: memref<1x32xf32, #tpu.memory_space<vmem>>, %arg17: memref<32x48xf32, #tpu.memory_space<vmem>>, %arg18: memref<1x48xf32, #tpu.memory_space<vmem>>, %arg19: memref<1x64x48xf32, #tpu.memory_space<vmem>>) attributes {dimension_semantics = [#tpu.dimension_semantics<parallel>], iteration_bounds = array<i64: 2>, scalar_prefetch = 0 : i64, scratch_operands = 0 : i64, tpu.core_type = #tpu.core_type<tc>, window_params = [{transform_indices = @transform_0, window_bounds = array<i64: 1, 64, 48>}, {pipeline_mode = #tpu.pipeline_mode<synchronous>, transform_indices = @transform_1, window_bounds = array<i64: 9, 64, 64>}, {pipeline_mode = #tpu.pipeline_mode<synchronous>, transform_indices = @transform_2, window_bounds = array<i64: 1, 48>}, {pipeline_mode = #tpu.pipeline_mode<synchronous>, transform_indices = @transform_3, window_bounds = array<i64: 1, 48>}, {pipeline_mode = #tpu.pipeline_mode<synchronous>, transform_indices = @transform_4, window_bounds = array<i64: 48, 96>}, {pipeline_mode = #tpu.pipeline_mode<synchronous>, transform_indices = @transform_5, window_bounds = array<i64: 1, 96>}, {pipeline_mode = #tpu.pipeline_mode<synchronous>, transform_indices = @transform_6, window_bounds = array<i64: 9, 48>}, {pipeline_mode = #tpu.pipeline_mode<synchronous>, transform_indices = @transform_7, window_bounds = array<i64: 1, 48>}, {pipeline_mode = #tpu.pipeline_mode<synchronous>, transform_indices = @transform_8, window_bounds = array<i64: 48, 48>}, {pipeline_mode = #tpu.pipeline_mode<synchronous>, transform_indices = @transform_9, window_bounds = array<i64: 1, 48>}, {pipeline_mode = #tpu.pipeline_mode<synchronous>, transform_indices = @transform_10, window_bounds = array<i64: 1, 48>}, {pipeline_mode = #tpu.pipeline_mode<synchronous>, transform_indices = @transform_11, window_bounds = array<i64: 1, 48>}, {pipeline_mode = #tpu.pipeline_mode<synchronous>, transform_indices = @transform_12, window_bounds = array<i64: 48, 64>}, {pipeline_mode = #tpu.pipeline_mode<synchronous>, transform_indices = @transform_13, window_bounds = array<i64: 1, 64>}, {pipeline_mode = #tpu.pipeline_mode<synchronous>, transform_indices = @transform_14, window_bounds = array<i64: 9, 32>}, {pipeline_mode = #tpu.pipeline_mode<synchronous>, transform_indices = @transform_15, window_bounds = array<i64: 1, 32>}, {pipeline_mode = #tpu.pipeline_mode<synchronous>, transform_indices = @transform_16, window_bounds = array<i64: 32, 48>}, {pipeline_mode = #tpu.pipeline_mode<synchronous>, transform_indices = @transform_17, window_bounds = array<i64: 1, 48>}, {transform_indices = @transform_18, window_bounds = array<i64: 1, 64, 48>}]} {
    %c0 = arith.constant 0 : index
    %c0_0 = arith.constant 0 : index
    %c0_1 = arith.constant 0 : index
    %0 = vector.load %arg1[%c0, %c0_0, %c0_1] : memref<1x64x48xf32, #tpu.memory_space<vmem>>, vector<1x64x48xf32>
    %1 = vector.shape_cast %0 : vector<1x64x48xf32> to vector<64x48xf32>
    %c0_2 = arith.constant 0 : index
    %c0_3 = arith.constant 0 : index
    %2 = vector.load %arg3[%c0_2, %c0_3] : memref<1x48xf32, #tpu.memory_space<vmem>>, vector<1x48xf32>
    %c0_4 = arith.constant 0 : index
    %c0_5 = arith.constant 0 : index
    %3 = vector.load %arg4[%c0_4, %c0_5] : memref<1x48xf32, #tpu.memory_space<vmem>>, vector<1x48xf32>
    %cst = arith.constant dense<0.000000e+00> : vector<64xf32>
    %4 = vector.multi_reduction <add>, %1, %cst [1] : vector<64x48xf32> to vector<64xf32>
    %5 = vector.shape_cast %4 : vector<64xf32> to vector<64x1xf32>
    %cst_6 = arith.constant 4.800000e+01 : f32
    %6 = vector.broadcast %cst_6 : f32 to vector<64x1xf32>
    %7 = arith.divf %5, %6 : vector<64x1xf32>
    %8 = vector.broadcast %7 : vector<64x1xf32> to vector<64x48xf32>
    %9 = arith.subf %1, %8 : vector<64x48xf32>
    %10 = arith.mulf %9, %9 : vector<64x48xf32>
    %cst_7 = arith.constant dense<0.000000e+00> : vector<64xf32>
    %11 = vector.multi_reduction <add>, %10, %cst_7 [1] : vector<64x48xf32> to vector<64xf32>
    %12 = vector.shape_cast %11 : vector<64xf32> to vector<64x1xf32>
    %cst_8 = arith.constant 4.800000e+01 : f32
    %13 = vector.broadcast %cst_8 : f32 to vector<64x1xf32>
    %14 = arith.divf %12, %13 : vector<64x1xf32>
    %cst_9 = arith.constant 9.99999974E-6 : f32
    %15 = vector.broadcast %cst_9 : f32 to vector<64x1xf32>
    %16 = arith.addf %14, %15 : vector<64x1xf32>
    %17 = math.rsqrt %16 : vector<64x1xf32>
    %18 = vector.broadcast %17 : vector<64x1xf32> to vector<64x48xf32>
    %19 = arith.mulf %9, %18 : vector<64x48xf32>
    %20 = vector.broadcast %2 : vector<1x48xf32> to vector<64x48xf32>
    %21 = arith.mulf %19, %20 : vector<64x48xf32>
    %22 = vector.broadcast %3 : vector<1x48xf32> to vector<64x48xf32>
    %23 = arith.addf %21, %22 : vector<64x48xf32>
    %c0_10 = arith.constant 0 : index
    %c0_11 = arith.constant 0 : index
    %24 = vector.load %arg5[%c0_10, %c0_11] : memref<48x96xf32, #tpu.memory_space<vmem>>, vector<48x96xf32>
    %cst_12 = arith.constant dense<0.000000e+00> : vector<64x96xf32>
    %25 = tpu.matmul %23, %24, %cst_12 {dimension_numbers = #tpu.dot_dimension_numbers<[1], [0], [0], [1], [0, 0, 1, 1], [], []>} : vector<64x48xf32>, vector<48x96xf32>, vector<64x96xf32> -> vector<64x96xf32>
    %c0_13 = arith.constant 0 : index
    %c0_14 = arith.constant 0 : index
    %26 = vector.load %arg6[%c0_13, %c0_14] : memref<1x96xf32, #tpu.memory_space<vmem>>, vector<1x96xf32>
    %27 = vector.broadcast %26 : vector<1x96xf32> to vector<64x96xf32>
    %28 = arith.addf %25, %27 : vector<64x96xf32>
    %29 = vector.extract_strided_slice %28 {offsets = [0, 48], sizes = [64, 48], strides = [1, 1]} : vector<64x96xf32> to vector<64x48xf32>
    %30 = tpu.iota {dimensions = array<i32: 1>} : vector<1x48xi32>
    %cst_15 = arith.constant 0.000000e+00 : f32
    %31 = vector.broadcast %cst_15 : f32 to vector<64x48xf32>
    %32 = vector.extract_strided_slice %28 {offsets = [0, 0], sizes = [64, 3], strides = [1, 1]} : vector<64x96xf32> to vector<64x3xf32>
    %33 = vector.extract_strided_slice %28 {offsets = [0, 24], sizes = [64, 3], strides = [1, 1]} : vector<64x96xf32> to vector<64x3xf32>
    %cst_16 = arith.constant dense<0.000000e+00> : vector<64x64xf32>
    %34 = tpu.matmul %32, %33, %cst_16 {dimension_numbers = #tpu.dot_dimension_numbers<[1], [1], [0], [0], [0, 0, 1, 0], [], []>} : vector<64x3xf32>, vector<64x3xf32>, vector<64x64xf32> -> vector<64x64xf32>
    %cst_17 = arith.constant dense<0xFF800000> : vector<64xf32>
    %35 = vector.multi_reduction <maximumf>, %34, %cst_17 [1] : vector<64x64xf32> to vector<64xf32>
    %36 = vector.shape_cast %35 : vector<64xf32> to vector<64x1xf32>
    %37 = vector.broadcast %36 : vector<64x1xf32> to vector<64x64xf32>
    %38 = arith.subf %34, %37 : vector<64x64xf32>
    %39 = math.exp %38 : vector<64x64xf32>
    %cst_18 = arith.constant dense<0.000000e+00> : vector<64xf32>
    %40 = vector.multi_reduction <add>, %39, %cst_18 [1] : vector<64x64xf32> to vector<64xf32>
    %41 = vector.shape_cast %40 : vector<64xf32> to vector<64x1xf32>
    %cst_19 = arith.constant 1.000000e+00 : f32
    %42 = vector.broadcast %cst_19 : f32 to vector<64x1xf32>
    %43 = arith.divf %42, %41 : vector<64x1xf32>
    %c0_i32 = arith.constant 0 : i32
    %44 = vector.broadcast %c0_i32 : i32 to vector<1x48xi32>
    %45 = arith.cmpi sge, %30, %44 : vector<1x48xi32>
    %c6_i32 = arith.constant 6 : i32
    %46 = vector.broadcast %c6_i32 : i32 to vector<1x48xi32>
    %47 = arith.cmpi slt, %30, %46 : vector<1x48xi32>
    %48 = arith.andi %45, %47 : vector<1x48xi1>
    %cst_20 = arith.constant 0.000000e+00 : f32
    %49 = vector.shape_cast %48 : vector<1x48xi1> to vector<1x48xi1>
    %50 = vector.broadcast %49 : vector<1x48xi1> to vector<64x48xi1>
    %51 = vector.broadcast %cst_20 : f32 to vector<64x48xf32>
    %52 = arith.select %50, %29, %51 : vector<64x48xi1>, vector<64x48xf32>
    %cst_21 = arith.constant dense<0.000000e+00> : vector<64x48xf32>
    %53 = tpu.matmul %39, %52, %cst_21 {dimension_numbers = #tpu.dot_dimension_numbers<[1], [0], [0], [1], [0, 0, 1, 1], [], []>} : vector<64x64xf32>, vector<64x48xf32>, vector<64x48xf32> -> vector<64x48xf32>
    %54 = vector.broadcast %43 : vector<64x1xf32> to vector<64x48xf32>
    %55 = arith.mulf %53, %54 : vector<64x48xf32>
    %56 = arith.addf %31, %55 : vector<64x48xf32>
    %57 = vector.extract_strided_slice %28 {offsets = [0, 3], sizes = [64, 3], strides = [1, 1]} : vector<64x96xf32> to vector<64x3xf32>
    %58 = vector.extract_strided_slice %28 {offsets = [0, 27], sizes = [64, 3], strides = [1, 1]} : vector<64x96xf32> to vector<64x3xf32>
    %cst_22 = arith.constant dense<0.000000e+00> : vector<64x64xf32>
    %59 = tpu.matmul %57, %58, %cst_22 {dimension_numbers = #tpu.dot_dimension_numbers<[1], [1], [0], [0], [0, 0, 1, 0], [], []>} : vector<64x3xf32>, vector<64x3xf32>, vector<64x64xf32> -> vector<64x64xf32>
    %cst_23 = arith.constant dense<0xFF800000> : vector<64xf32>
    %60 = vector.multi_reduction <maximumf>, %59, %cst_23 [1] : vector<64x64xf32> to vector<64xf32>
    %61 = vector.shape_cast %60 : vector<64xf32> to vector<64x1xf32>
    %62 = vector.broadcast %61 : vector<64x1xf32> to vector<64x64xf32>
    %63 = arith.subf %59, %62 : vector<64x64xf32>
    %64 = math.exp %63 : vector<64x64xf32>
    %cst_24 = arith.constant dense<0.000000e+00> : vector<64xf32>
    %65 = vector.multi_reduction <add>, %64, %cst_24 [1] : vector<64x64xf32> to vector<64xf32>
    %66 = vector.shape_cast %65 : vector<64xf32> to vector<64x1xf32>
    %cst_25 = arith.constant 1.000000e+00 : f32
    %67 = vector.broadcast %cst_25 : f32 to vector<64x1xf32>
    %68 = arith.divf %67, %66 : vector<64x1xf32>
    %c6_i32_26 = arith.constant 6 : i32
    %69 = vector.broadcast %c6_i32_26 : i32 to vector<1x48xi32>
    %70 = arith.cmpi sge, %30, %69 : vector<1x48xi32>
    %c12_i32 = arith.constant 12 : i32
    %71 = vector.broadcast %c12_i32 : i32 to vector<1x48xi32>
    %72 = arith.cmpi slt, %30, %71 : vector<1x48xi32>
    %73 = arith.andi %70, %72 : vector<1x48xi1>
    %cst_27 = arith.constant 0.000000e+00 : f32
    %74 = vector.shape_cast %73 : vector<1x48xi1> to vector<1x48xi1>
    %75 = vector.broadcast %74 : vector<1x48xi1> to vector<64x48xi1>
    %76 = vector.broadcast %cst_27 : f32 to vector<64x48xf32>
    %77 = arith.select %75, %29, %76 : vector<64x48xi1>, vector<64x48xf32>
    %cst_28 = arith.constant dense<0.000000e+00> : vector<64x48xf32>
    %78 = tpu.matmul %64, %77, %cst_28 {dimension_numbers = #tpu.dot_dimension_numbers<[1], [0], [0], [1], [0, 0, 1, 1], [], []>} : vector<64x64xf32>, vector<64x48xf32>, vector<64x48xf32> -> vector<64x48xf32>
    %79 = vector.broadcast %68 : vector<64x1xf32> to vector<64x48xf32>
    %80 = arith.mulf %78, %79 : vector<64x48xf32>
    %81 = arith.addf %56, %80 : vector<64x48xf32>
    %82 = vector.extract_strided_slice %28 {offsets = [0, 6], sizes = [64, 3], strides = [1, 1]} : vector<64x96xf32> to vector<64x3xf32>
    %83 = vector.extract_strided_slice %28 {offsets = [0, 30], sizes = [64, 3], strides = [1, 1]} : vector<64x96xf32> to vector<64x3xf32>
    %cst_29 = arith.constant dense<0.000000e+00> : vector<64x64xf32>
    %84 = tpu.matmul %82, %83, %cst_29 {dimension_numbers = #tpu.dot_dimension_numbers<[1], [1], [0], [0], [0, 0, 1, 0], [], []>} : vector<64x3xf32>, vector<64x3xf32>, vector<64x64xf32> -> vector<64x64xf32>
    %cst_30 = arith.constant dense<0xFF800000> : vector<64xf32>
    %85 = vector.multi_reduction <maximumf>, %84, %cst_30 [1] : vector<64x64xf32> to vector<64xf32>
    %86 = vector.shape_cast %85 : vector<64xf32> to vector<64x1xf32>
    %87 = vector.broadcast %86 : vector<64x1xf32> to vector<64x64xf32>
    %88 = arith.subf %84, %87 : vector<64x64xf32>
    %89 = math.exp %88 : vector<64x64xf32>
    %cst_31 = arith.constant dense<0.000000e+00> : vector<64xf32>
    %90 = vector.multi_reduction <add>, %89, %cst_31 [1] : vector<64x64xf32> to vector<64xf32>
    %91 = vector.shape_cast %90 : vector<64xf32> to vector<64x1xf32>
    %cst_32 = arith.constant 1.000000e+00 : f32
    %92 = vector.broadcast %cst_32 : f32 to vector<64x1xf32>
    %93 = arith.divf %92, %91 : vector<64x1xf32>
    %c12_i32_33 = arith.constant 12 : i32
    %94 = vector.broadcast %c12_i32_33 : i32 to vector<1x48xi32>
    %95 = arith.cmpi sge, %30, %94 : vector<1x48xi32>
    %c18_i32 = arith.constant 18 : i32
    %96 = vector.broadcast %c18_i32 : i32 to vector<1x48xi32>
    %97 = arith.cmpi slt, %30, %96 : vector<1x48xi32>
    %98 = arith.andi %95, %97 : vector<1x48xi1>
    %cst_34 = arith.constant 0.000000e+00 : f32
    %99 = vector.shape_cast %98 : vector<1x48xi1> to vector<1x48xi1>
    %100 = vector.broadcast %99 : vector<1x48xi1> to vector<64x48xi1>
    %101 = vector.broadcast %cst_34 : f32 to vector<64x48xf32>
    %102 = arith.select %100, %29, %101 : vector<64x48xi1>, vector<64x48xf32>
    %cst_35 = arith.constant dense<0.000000e+00> : vector<64x48xf32>
    %103 = tpu.matmul %89, %102, %cst_35 {dimension_numbers = #tpu.dot_dimension_numbers<[1], [0], [0], [1], [0, 0, 1, 1], [], []>} : vector<64x64xf32>, vector<64x48xf32>, vector<64x48xf32> -> vector<64x48xf32>
    %104 = vector.broadcast %93 : vector<64x1xf32> to vector<64x48xf32>
    %105 = arith.mulf %103, %104 : vector<64x48xf32>
    %106 = arith.addf %81, %105 : vector<64x48xf32>
    %107 = vector.extract_strided_slice %28 {offsets = [0, 9], sizes = [64, 3], strides = [1, 1]} : vector<64x96xf32> to vector<64x3xf32>
    %108 = vector.extract_strided_slice %28 {offsets = [0, 33], sizes = [64, 3], strides = [1, 1]} : vector<64x96xf32> to vector<64x3xf32>
    %cst_36 = arith.constant dense<0.000000e+00> : vector<64x64xf32>
    %109 = tpu.matmul %107, %108, %cst_36 {dimension_numbers = #tpu.dot_dimension_numbers<[1], [1], [0], [0], [0, 0, 1, 0], [], []>} : vector<64x3xf32>, vector<64x3xf32>, vector<64x64xf32> -> vector<64x64xf32>
    %cst_37 = arith.constant dense<0xFF800000> : vector<64xf32>
    %110 = vector.multi_reduction <maximumf>, %109, %cst_37 [1] : vector<64x64xf32> to vector<64xf32>
    %111 = vector.shape_cast %110 : vector<64xf32> to vector<64x1xf32>
    %112 = vector.broadcast %111 : vector<64x1xf32> to vector<64x64xf32>
    %113 = arith.subf %109, %112 : vector<64x64xf32>
    %114 = math.exp %113 : vector<64x64xf32>
    %cst_38 = arith.constant dense<0.000000e+00> : vector<64xf32>
    %115 = vector.multi_reduction <add>, %114, %cst_38 [1] : vector<64x64xf32> to vector<64xf32>
    %116 = vector.shape_cast %115 : vector<64xf32> to vector<64x1xf32>
    %cst_39 = arith.constant 1.000000e+00 : f32
    %117 = vector.broadcast %cst_39 : f32 to vector<64x1xf32>
    %118 = arith.divf %117, %116 : vector<64x1xf32>
    %c18_i32_40 = arith.constant 18 : i32
    %119 = vector.broadcast %c18_i32_40 : i32 to vector<1x48xi32>
    %120 = arith.cmpi sge, %30, %119 : vector<1x48xi32>
    %c24_i32 = arith.constant 24 : i32
    %121 = vector.broadcast %c24_i32 : i32 to vector<1x48xi32>
    %122 = arith.cmpi slt, %30, %121 : vector<1x48xi32>
    %123 = arith.andi %120, %122 : vector<1x48xi1>
    %cst_41 = arith.constant 0.000000e+00 : f32
    %124 = vector.shape_cast %123 : vector<1x48xi1> to vector<1x48xi1>
    %125 = vector.broadcast %124 : vector<1x48xi1> to vector<64x48xi1>
    %126 = vector.broadcast %cst_41 : f32 to vector<64x48xf32>
    %127 = arith.select %125, %29, %126 : vector<64x48xi1>, vector<64x48xf32>
    %cst_42 = arith.constant dense<0.000000e+00> : vector<64x48xf32>
    %128 = tpu.matmul %114, %127, %cst_42 {dimension_numbers = #tpu.dot_dimension_numbers<[1], [0], [0], [1], [0, 0, 1, 1], [], []>} : vector<64x64xf32>, vector<64x48xf32>, vector<64x48xf32> -> vector<64x48xf32>
    %129 = vector.broadcast %118 : vector<64x1xf32> to vector<64x48xf32>
    %130 = arith.mulf %128, %129 : vector<64x48xf32>
    %131 = arith.addf %106, %130 : vector<64x48xf32>
    %132 = vector.extract_strided_slice %28 {offsets = [0, 12], sizes = [64, 3], strides = [1, 1]} : vector<64x96xf32> to vector<64x3xf32>
    %133 = vector.extract_strided_slice %28 {offsets = [0, 36], sizes = [64, 3], strides = [1, 1]} : vector<64x96xf32> to vector<64x3xf32>
    %cst_43 = arith.constant dense<0.000000e+00> : vector<64x64xf32>
    %134 = tpu.matmul %132, %133, %cst_43 {dimension_numbers = #tpu.dot_dimension_numbers<[1], [1], [0], [0], [0, 0, 1, 0], [], []>} : vector<64x3xf32>, vector<64x3xf32>, vector<64x64xf32> -> vector<64x64xf32>
    %cst_44 = arith.constant dense<0xFF800000> : vector<64xf32>
    %135 = vector.multi_reduction <maximumf>, %134, %cst_44 [1] : vector<64x64xf32> to vector<64xf32>
    %136 = vector.shape_cast %135 : vector<64xf32> to vector<64x1xf32>
    %137 = vector.broadcast %136 : vector<64x1xf32> to vector<64x64xf32>
    %138 = arith.subf %134, %137 : vector<64x64xf32>
    %139 = math.exp %138 : vector<64x64xf32>
    %cst_45 = arith.constant dense<0.000000e+00> : vector<64xf32>
    %140 = vector.multi_reduction <add>, %139, %cst_45 [1] : vector<64x64xf32> to vector<64xf32>
    %141 = vector.shape_cast %140 : vector<64xf32> to vector<64x1xf32>
    %cst_46 = arith.constant 1.000000e+00 : f32
    %142 = vector.broadcast %cst_46 : f32 to vector<64x1xf32>
    %143 = arith.divf %142, %141 : vector<64x1xf32>
    %c24_i32_47 = arith.constant 24 : i32
    %144 = vector.broadcast %c24_i32_47 : i32 to vector<1x48xi32>
    %145 = arith.cmpi sge, %30, %144 : vector<1x48xi32>
    %c30_i32 = arith.constant 30 : i32
    %146 = vector.broadcast %c30_i32 : i32 to vector<1x48xi32>
    %147 = arith.cmpi slt, %30, %146 : vector<1x48xi32>
    %148 = arith.andi %145, %147 : vector<1x48xi1>
    %cst_48 = arith.constant 0.000000e+00 : f32
    %149 = vector.shape_cast %148 : vector<1x48xi1> to vector<1x48xi1>
    %150 = vector.broadcast %149 : vector<1x48xi1> to vector<64x48xi1>
    %151 = vector.broadcast %cst_48 : f32 to vector<64x48xf32>
    %152 = arith.select %150, %29, %151 : vector<64x48xi1>, vector<64x48xf32>
    %cst_49 = arith.constant dense<0.000000e+00> : vector<64x48xf32>
    %153 = tpu.matmul %139, %152, %cst_49 {dimension_numbers = #tpu.dot_dimension_numbers<[1], [0], [0], [1], [0, 0, 1, 1], [], []>} : vector<64x64xf32>, vector<64x48xf32>, vector<64x48xf32> -> vector<64x48xf32>
    %154 = vector.broadcast %143 : vector<64x1xf32> to vector<64x48xf32>
    %155 = arith.mulf %153, %154 : vector<64x48xf32>
    %156 = arith.addf %131, %155 : vector<64x48xf32>
    %157 = vector.extract_strided_slice %28 {offsets = [0, 15], sizes = [64, 3], strides = [1, 1]} : vector<64x96xf32> to vector<64x3xf32>
    %158 = vector.extract_strided_slice %28 {offsets = [0, 39], sizes = [64, 3], strides = [1, 1]} : vector<64x96xf32> to vector<64x3xf32>
    %cst_50 = arith.constant dense<0.000000e+00> : vector<64x64xf32>
    %159 = tpu.matmul %157, %158, %cst_50 {dimension_numbers = #tpu.dot_dimension_numbers<[1], [1], [0], [0], [0, 0, 1, 0], [], []>} : vector<64x3xf32>, vector<64x3xf32>, vector<64x64xf32> -> vector<64x64xf32>
    %cst_51 = arith.constant dense<0xFF800000> : vector<64xf32>
    %160 = vector.multi_reduction <maximumf>, %159, %cst_51 [1] : vector<64x64xf32> to vector<64xf32>
    %161 = vector.shape_cast %160 : vector<64xf32> to vector<64x1xf32>
    %162 = vector.broadcast %161 : vector<64x1xf32> to vector<64x64xf32>
    %163 = arith.subf %159, %162 : vector<64x64xf32>
    %164 = math.exp %163 : vector<64x64xf32>
    %cst_52 = arith.constant dense<0.000000e+00> : vector<64xf32>
    %165 = vector.multi_reduction <add>, %164, %cst_52 [1] : vector<64x64xf32> to vector<64xf32>
    %166 = vector.shape_cast %165 : vector<64xf32> to vector<64x1xf32>
    %cst_53 = arith.constant 1.000000e+00 : f32
    %167 = vector.broadcast %cst_53 : f32 to vector<64x1xf32>
    %168 = arith.divf %167, %166 : vector<64x1xf32>
    %c30_i32_54 = arith.constant 30 : i32
    %169 = vector.broadcast %c30_i32_54 : i32 to vector<1x48xi32>
    %170 = arith.cmpi sge, %30, %169 : vector<1x48xi32>
    %c36_i32 = arith.constant 36 : i32
    %171 = vector.broadcast %c36_i32 : i32 to vector<1x48xi32>
    %172 = arith.cmpi slt, %30, %171 : vector<1x48xi32>
    %173 = arith.andi %170, %172 : vector<1x48xi1>
    %cst_55 = arith.constant 0.000000e+00 : f32
    %174 = vector.shape_cast %173 : vector<1x48xi1> to vector<1x48xi1>
    %175 = vector.broadcast %174 : vector<1x48xi1> to vector<64x48xi1>
    %176 = vector.broadcast %cst_55 : f32 to vector<64x48xf32>
    %177 = arith.select %175, %29, %176 : vector<64x48xi1>, vector<64x48xf32>
    %cst_56 = arith.constant dense<0.000000e+00> : vector<64x48xf32>
    %178 = tpu.matmul %164, %177, %cst_56 {dimension_numbers = #tpu.dot_dimension_numbers<[1], [0], [0], [1], [0, 0, 1, 1], [], []>} : vector<64x64xf32>, vector<64x48xf32>, vector<64x48xf32> -> vector<64x48xf32>
    %179 = vector.broadcast %168 : vector<64x1xf32> to vector<64x48xf32>
    %180 = arith.mulf %178, %179 : vector<64x48xf32>
    %181 = arith.addf %156, %180 : vector<64x48xf32>
    %182 = vector.extract_strided_slice %28 {offsets = [0, 18], sizes = [64, 3], strides = [1, 1]} : vector<64x96xf32> to vector<64x3xf32>
    %183 = vector.extract_strided_slice %28 {offsets = [0, 42], sizes = [64, 3], strides = [1, 1]} : vector<64x96xf32> to vector<64x3xf32>
    %cst_57 = arith.constant dense<0.000000e+00> : vector<64x64xf32>
    %184 = tpu.matmul %182, %183, %cst_57 {dimension_numbers = #tpu.dot_dimension_numbers<[1], [1], [0], [0], [0, 0, 1, 0], [], []>} : vector<64x3xf32>, vector<64x3xf32>, vector<64x64xf32> -> vector<64x64xf32>
    %cst_58 = arith.constant dense<0xFF800000> : vector<64xf32>
    %185 = vector.multi_reduction <maximumf>, %184, %cst_58 [1] : vector<64x64xf32> to vector<64xf32>
    %186 = vector.shape_cast %185 : vector<64xf32> to vector<64x1xf32>
    %187 = vector.broadcast %186 : vector<64x1xf32> to vector<64x64xf32>
    %188 = arith.subf %184, %187 : vector<64x64xf32>
    %189 = math.exp %188 : vector<64x64xf32>
    %cst_59 = arith.constant dense<0.000000e+00> : vector<64xf32>
    %190 = vector.multi_reduction <add>, %189, %cst_59 [1] : vector<64x64xf32> to vector<64xf32>
    %191 = vector.shape_cast %190 : vector<64xf32> to vector<64x1xf32>
    %cst_60 = arith.constant 1.000000e+00 : f32
    %192 = vector.broadcast %cst_60 : f32 to vector<64x1xf32>
    %193 = arith.divf %192, %191 : vector<64x1xf32>
    %c36_i32_61 = arith.constant 36 : i32
    %194 = vector.broadcast %c36_i32_61 : i32 to vector<1x48xi32>
    %195 = arith.cmpi sge, %30, %194 : vector<1x48xi32>
    %c42_i32 = arith.constant 42 : i32
    %196 = vector.broadcast %c42_i32 : i32 to vector<1x48xi32>
    %197 = arith.cmpi slt, %30, %196 : vector<1x48xi32>
    %198 = arith.andi %195, %197 : vector<1x48xi1>
    %cst_62 = arith.constant 0.000000e+00 : f32
    %199 = vector.shape_cast %198 : vector<1x48xi1> to vector<1x48xi1>
    %200 = vector.broadcast %199 : vector<1x48xi1> to vector<64x48xi1>
    %201 = vector.broadcast %cst_62 : f32 to vector<64x48xf32>
    %202 = arith.select %200, %29, %201 : vector<64x48xi1>, vector<64x48xf32>
    %cst_63 = arith.constant dense<0.000000e+00> : vector<64x48xf32>
    %203 = tpu.matmul %189, %202, %cst_63 {dimension_numbers = #tpu.dot_dimension_numbers<[1], [0], [0], [1], [0, 0, 1, 1], [], []>} : vector<64x64xf32>, vector<64x48xf32>, vector<64x48xf32> -> vector<64x48xf32>
    %204 = vector.broadcast %193 : vector<64x1xf32> to vector<64x48xf32>
    %205 = arith.mulf %203, %204 : vector<64x48xf32>
    %206 = arith.addf %181, %205 : vector<64x48xf32>
    %207 = vector.extract_strided_slice %28 {offsets = [0, 21], sizes = [64, 3], strides = [1, 1]} : vector<64x96xf32> to vector<64x3xf32>
    %208 = vector.extract_strided_slice %28 {offsets = [0, 45], sizes = [64, 3], strides = [1, 1]} : vector<64x96xf32> to vector<64x3xf32>
    %cst_64 = arith.constant dense<0.000000e+00> : vector<64x64xf32>
    %209 = tpu.matmul %207, %208, %cst_64 {dimension_numbers = #tpu.dot_dimension_numbers<[1], [1], [0], [0], [0, 0, 1, 0], [], []>} : vector<64x3xf32>, vector<64x3xf32>, vector<64x64xf32> -> vector<64x64xf32>
    %cst_65 = arith.constant dense<0xFF800000> : vector<64xf32>
    %210 = vector.multi_reduction <maximumf>, %209, %cst_65 [1] : vector<64x64xf32> to vector<64xf32>
    %211 = vector.shape_cast %210 : vector<64xf32> to vector<64x1xf32>
    %212 = vector.broadcast %211 : vector<64x1xf32> to vector<64x64xf32>
    %213 = arith.subf %209, %212 : vector<64x64xf32>
    %214 = math.exp %213 : vector<64x64xf32>
    %cst_66 = arith.constant dense<0.000000e+00> : vector<64xf32>
    %215 = vector.multi_reduction <add>, %214, %cst_66 [1] : vector<64x64xf32> to vector<64xf32>
    %216 = vector.shape_cast %215 : vector<64xf32> to vector<64x1xf32>
    %cst_67 = arith.constant 1.000000e+00 : f32
    %217 = vector.broadcast %cst_67 : f32 to vector<64x1xf32>
    %218 = arith.divf %217, %216 : vector<64x1xf32>
    %c42_i32_68 = arith.constant 42 : i32
    %219 = vector.broadcast %c42_i32_68 : i32 to vector<1x48xi32>
    %220 = arith.cmpi sge, %30, %219 : vector<1x48xi32>
    %c48_i32 = arith.constant 48 : i32
    %221 = vector.broadcast %c48_i32 : i32 to vector<1x48xi32>
    %222 = arith.cmpi slt, %30, %221 : vector<1x48xi32>
    %223 = arith.andi %220, %222 : vector<1x48xi1>
    %cst_69 = arith.constant 0.000000e+00 : f32
    %224 = vector.shape_cast %223 : vector<1x48xi1> to vector<1x48xi1>
    %225 = vector.broadcast %224 : vector<1x48xi1> to vector<64x48xi1>
    %226 = vector.broadcast %cst_69 : f32 to vector<64x48xf32>
    %227 = arith.select %225, %29, %226 : vector<64x48xi1>, vector<64x48xf32>
    %cst_70 = arith.constant dense<0.000000e+00> : vector<64x48xf32>
    %228 = tpu.matmul %214, %227, %cst_70 {dimension_numbers = #tpu.dot_dimension_numbers<[1], [0], [0], [1], [0, 0, 1, 1], [], []>} : vector<64x64xf32>, vector<64x48xf32>, vector<64x48xf32> -> vector<64x48xf32>
    %229 = vector.broadcast %218 : vector<64x1xf32> to vector<64x48xf32>
    %230 = arith.mulf %228, %229 : vector<64x48xf32>
    %231 = arith.addf %206, %230 : vector<64x48xf32>
    %c0_71 = arith.constant 0 : index
    %c0_72 = arith.constant 0 : index
    %232 = vector.load %arg7[%c0_71, %c0_72] : memref<9x48xf32, #tpu.memory_space<vmem>>, vector<9x48xf32>
    %c0_73 = arith.constant 0 : index
    %c0_74 = arith.constant 0 : index
    %233 = vector.load %arg8[%c0_73, %c0_74] : memref<1x48xf32, #tpu.memory_space<vmem>>, vector<1x48xf32>
    %c0_75 = arith.constant 0 : index
    %c0_76 = arith.constant 0 : index
    %c0_77 = arith.constant 0 : index
    %234 = vector.load %arg2[%c0_75, %c0_76, %c0_77] : memref<9x64x64xf32, #tpu.memory_space<vmem>>, vector<1x64x64xf32>
    %235 = vector.shape_cast %234 : vector<1x64x64xf32> to vector<64x64xf32>
    %cst_78 = arith.constant dense<0.000000e+00> : vector<64x48xf32>
    %236 = tpu.matmul %235, %29, %cst_78 {dimension_numbers = #tpu.dot_dimension_numbers<[1], [0], [0], [1], [0, 0, 1, 1], [], []>} : vector<64x64xf32>, vector<64x48xf32>, vector<64x48xf32> -> vector<64x48xf32>
    %237 = vector.extract_strided_slice %232 {offsets = [0, 0], sizes = [1, 48], strides = [1, 1]} : vector<9x48xf32> to vector<1x48xf32>
    %238 = vector.broadcast %237 : vector<1x48xf32> to vector<64x48xf32>
    %239 = arith.mulf %236, %238 : vector<64x48xf32>
    %c1 = arith.constant 1 : index
    %c0_79 = arith.constant 0 : index
    %c0_80 = arith.constant 0 : index
    %240 = vector.load %arg2[%c1, %c0_79, %c0_80] : memref<9x64x64xf32, #tpu.memory_space<vmem>>, vector<1x64x64xf32>
    %241 = vector.shape_cast %240 : vector<1x64x64xf32> to vector<64x64xf32>
    %cst_81 = arith.constant dense<0.000000e+00> : vector<64x48xf32>
    %242 = tpu.matmul %241, %29, %cst_81 {dimension_numbers = #tpu.dot_dimension_numbers<[1], [0], [0], [1], [0, 0, 1, 1], [], []>} : vector<64x64xf32>, vector<64x48xf32>, vector<64x48xf32> -> vector<64x48xf32>
    %243 = vector.extract_strided_slice %232 {offsets = [1, 0], sizes = [1, 48], strides = [1, 1]} : vector<9x48xf32> to vector<1x48xf32>
    %244 = vector.broadcast %243 : vector<1x48xf32> to vector<64x48xf32>
    %245 = arith.mulf %242, %244 : vector<64x48xf32>
    %246 = arith.addf %239, %245 : vector<64x48xf32>
    %c2 = arith.constant 2 : index
    %c0_82 = arith.constant 0 : index
    %c0_83 = arith.constant 0 : index
    %247 = vector.load %arg2[%c2, %c0_82, %c0_83] : memref<9x64x64xf32, #tpu.memory_space<vmem>>, vector<1x64x64xf32>
    %248 = vector.shape_cast %247 : vector<1x64x64xf32> to vector<64x64xf32>
    %cst_84 = arith.constant dense<0.000000e+00> : vector<64x48xf32>
    %249 = tpu.matmul %248, %29, %cst_84 {dimension_numbers = #tpu.dot_dimension_numbers<[1], [0], [0], [1], [0, 0, 1, 1], [], []>} : vector<64x64xf32>, vector<64x48xf32>, vector<64x48xf32> -> vector<64x48xf32>
    %250 = vector.extract_strided_slice %232 {offsets = [2, 0], sizes = [1, 48], strides = [1, 1]} : vector<9x48xf32> to vector<1x48xf32>
    %251 = vector.broadcast %250 : vector<1x48xf32> to vector<64x48xf32>
    %252 = arith.mulf %249, %251 : vector<64x48xf32>
    %253 = arith.addf %246, %252 : vector<64x48xf32>
    %c3 = arith.constant 3 : index
    %c0_85 = arith.constant 0 : index
    %c0_86 = arith.constant 0 : index
    %254 = vector.load %arg2[%c3, %c0_85, %c0_86] : memref<9x64x64xf32, #tpu.memory_space<vmem>>, vector<1x64x64xf32>
    %255 = vector.shape_cast %254 : vector<1x64x64xf32> to vector<64x64xf32>
    %cst_87 = arith.constant dense<0.000000e+00> : vector<64x48xf32>
    %256 = tpu.matmul %255, %29, %cst_87 {dimension_numbers = #tpu.dot_dimension_numbers<[1], [0], [0], [1], [0, 0, 1, 1], [], []>} : vector<64x64xf32>, vector<64x48xf32>, vector<64x48xf32> -> vector<64x48xf32>
    %257 = vector.extract_strided_slice %232 {offsets = [3, 0], sizes = [1, 48], strides = [1, 1]} : vector<9x48xf32> to vector<1x48xf32>
    %258 = vector.broadcast %257 : vector<1x48xf32> to vector<64x48xf32>
    %259 = arith.mulf %256, %258 : vector<64x48xf32>
    %260 = arith.addf %253, %259 : vector<64x48xf32>
    %c4 = arith.constant 4 : index
    %c0_88 = arith.constant 0 : index
    %c0_89 = arith.constant 0 : index
    %261 = vector.load %arg2[%c4, %c0_88, %c0_89] : memref<9x64x64xf32, #tpu.memory_space<vmem>>, vector<1x64x64xf32>
    %262 = vector.shape_cast %261 : vector<1x64x64xf32> to vector<64x64xf32>
    %cst_90 = arith.constant dense<0.000000e+00> : vector<64x48xf32>
    %263 = tpu.matmul %262, %29, %cst_90 {dimension_numbers = #tpu.dot_dimension_numbers<[1], [0], [0], [1], [0, 0, 1, 1], [], []>} : vector<64x64xf32>, vector<64x48xf32>, vector<64x48xf32> -> vector<64x48xf32>
    %264 = vector.extract_strided_slice %232 {offsets = [4, 0], sizes = [1, 48], strides = [1, 1]} : vector<9x48xf32> to vector<1x48xf32>
    %265 = vector.broadcast %264 : vector<1x48xf32> to vector<64x48xf32>
    %266 = arith.mulf %263, %265 : vector<64x48xf32>
    %267 = arith.addf %260, %266 : vector<64x48xf32>
    %c5 = arith.constant 5 : index
    %c0_91 = arith.constant 0 : index
    %c0_92 = arith.constant 0 : index
    %268 = vector.load %arg2[%c5, %c0_91, %c0_92] : memref<9x64x64xf32, #tpu.memory_space<vmem>>, vector<1x64x64xf32>
    %269 = vector.shape_cast %268 : vector<1x64x64xf32> to vector<64x64xf32>
    %cst_93 = arith.constant dense<0.000000e+00> : vector<64x48xf32>
    %270 = tpu.matmul %269, %29, %cst_93 {dimension_numbers = #tpu.dot_dimension_numbers<[1], [0], [0], [1], [0, 0, 1, 1], [], []>} : vector<64x64xf32>, vector<64x48xf32>, vector<64x48xf32> -> vector<64x48xf32>
    %271 = vector.extract_strided_slice %232 {offsets = [5, 0], sizes = [1, 48], strides = [1, 1]} : vector<9x48xf32> to vector<1x48xf32>
    %272 = vector.broadcast %271 : vector<1x48xf32> to vector<64x48xf32>
    %273 = arith.mulf %270, %272 : vector<64x48xf32>
    %274 = arith.addf %267, %273 : vector<64x48xf32>
    %c6 = arith.constant 6 : index
    %c0_94 = arith.constant 0 : index
    %c0_95 = arith.constant 0 : index
    %275 = vector.load %arg2[%c6, %c0_94, %c0_95] : memref<9x64x64xf32, #tpu.memory_space<vmem>>, vector<1x64x64xf32>
    %276 = vector.shape_cast %275 : vector<1x64x64xf32> to vector<64x64xf32>
    %cst_96 = arith.constant dense<0.000000e+00> : vector<64x48xf32>
    %277 = tpu.matmul %276, %29, %cst_96 {dimension_numbers = #tpu.dot_dimension_numbers<[1], [0], [0], [1], [0, 0, 1, 1], [], []>} : vector<64x64xf32>, vector<64x48xf32>, vector<64x48xf32> -> vector<64x48xf32>
    %278 = vector.extract_strided_slice %232 {offsets = [6, 0], sizes = [1, 48], strides = [1, 1]} : vector<9x48xf32> to vector<1x48xf32>
    %279 = vector.broadcast %278 : vector<1x48xf32> to vector<64x48xf32>
    %280 = arith.mulf %277, %279 : vector<64x48xf32>
    %281 = arith.addf %274, %280 : vector<64x48xf32>
    %c7 = arith.constant 7 : index
    %c0_97 = arith.constant 0 : index
    %c0_98 = arith.constant 0 : index
    %282 = vector.load %arg2[%c7, %c0_97, %c0_98] : memref<9x64x64xf32, #tpu.memory_space<vmem>>, vector<1x64x64xf32>
    %283 = vector.shape_cast %282 : vector<1x64x64xf32> to vector<64x64xf32>
    %cst_99 = arith.constant dense<0.000000e+00> : vector<64x48xf32>
    %284 = tpu.matmul %283, %29, %cst_99 {dimension_numbers = #tpu.dot_dimension_numbers<[1], [0], [0], [1], [0, 0, 1, 1], [], []>} : vector<64x64xf32>, vector<64x48xf32>, vector<64x48xf32> -> vector<64x48xf32>
    %285 = vector.extract_strided_slice %232 {offsets = [7, 0], sizes = [1, 48], strides = [1, 1]} : vector<9x48xf32> to vector<1x48xf32>
    %286 = vector.broadcast %285 : vector<1x48xf32> to vector<64x48xf32>
    %287 = arith.mulf %284, %286 : vector<64x48xf32>
    %288 = arith.addf %281, %287 : vector<64x48xf32>
    %c8 = arith.constant 8 : index
    %c0_100 = arith.constant 0 : index
    %c0_101 = arith.constant 0 : index
    %289 = vector.load %arg2[%c8, %c0_100, %c0_101] : memref<9x64x64xf32, #tpu.memory_space<vmem>>, vector<1x64x64xf32>
    %290 = vector.shape_cast %289 : vector<1x64x64xf32> to vector<64x64xf32>
    %cst_102 = arith.constant dense<0.000000e+00> : vector<64x48xf32>
    %291 = tpu.matmul %290, %29, %cst_102 {dimension_numbers = #tpu.dot_dimension_numbers<[1], [0], [0], [1], [0, 0, 1, 1], [], []>} : vector<64x64xf32>, vector<64x48xf32>, vector<64x48xf32> -> vector<64x48xf32>
    %292 = vector.extract_strided_slice %232 {offsets = [8, 0], sizes = [1, 48], strides = [1, 1]} : vector<9x48xf32> to vector<1x48xf32>
    %293 = vector.broadcast %292 : vector<1x48xf32> to vector<64x48xf32>
    %294 = arith.mulf %291, %293 : vector<64x48xf32>
    %295 = arith.addf %288, %294 : vector<64x48xf32>
    %296 = vector.broadcast %233 : vector<1x48xf32> to vector<64x48xf32>
    %297 = arith.addf %295, %296 : vector<64x48xf32>
    %298 = arith.addf %231, %297 : vector<64x48xf32>
    %c0_103 = arith.constant 0 : index
    %c0_104 = arith.constant 0 : index
    %299 = vector.load %arg9[%c0_103, %c0_104] : memref<48x48xf32, #tpu.memory_space<vmem>>, vector<48x48xf32>
    %cst_105 = arith.constant dense<0.000000e+00> : vector<64x48xf32>
    %300 = tpu.matmul %298, %299, %cst_105 {dimension_numbers = #tpu.dot_dimension_numbers<[1], [0], [0], [1], [0, 0, 1, 1], [], []>} : vector<64x48xf32>, vector<48x48xf32>, vector<64x48xf32> -> vector<64x48xf32>
    %c0_106 = arith.constant 0 : index
    %c0_107 = arith.constant 0 : index
    %301 = vector.load %arg10[%c0_106, %c0_107] : memref<1x48xf32, #tpu.memory_space<vmem>>, vector<1x48xf32>
    %302 = vector.broadcast %301 : vector<1x48xf32> to vector<64x48xf32>
    %303 = arith.addf %300, %302 : vector<64x48xf32>
    %304 = arith.addf %303, %1 : vector<64x48xf32>
    %c0_108 = arith.constant 0 : index
    %c0_109 = arith.constant 0 : index
    %305 = vector.load %arg11[%c0_108, %c0_109] : memref<1x48xf32, #tpu.memory_space<vmem>>, vector<1x48xf32>
    %c0_110 = arith.constant 0 : index
    %c0_111 = arith.constant 0 : index
    %306 = vector.load %arg12[%c0_110, %c0_111] : memref<1x48xf32, #tpu.memory_space<vmem>>, vector<1x48xf32>
    %cst_112 = arith.constant dense<0.000000e+00> : vector<64xf32>
    %307 = vector.multi_reduction <add>, %304, %cst_112 [1] : vector<64x48xf32> to vector<64xf32>
    %308 = vector.shape_cast %307 : vector<64xf32> to vector<64x1xf32>
    %cst_113 = arith.constant 4.800000e+01 : f32
    %309 = vector.broadcast %cst_113 : f32 to vector<64x1xf32>
    %310 = arith.divf %308, %309 : vector<64x1xf32>
    %311 = vector.broadcast %310 : vector<64x1xf32> to vector<64x48xf32>
    %312 = arith.subf %304, %311 : vector<64x48xf32>
    %313 = arith.mulf %312, %312 : vector<64x48xf32>
    %cst_114 = arith.constant dense<0.000000e+00> : vector<64xf32>
    %314 = vector.multi_reduction <add>, %313, %cst_114 [1] : vector<64x48xf32> to vector<64xf32>
    %315 = vector.shape_cast %314 : vector<64xf32> to vector<64x1xf32>
    %cst_115 = arith.constant 4.800000e+01 : f32
    %316 = vector.broadcast %cst_115 : f32 to vector<64x1xf32>
    %317 = arith.divf %315, %316 : vector<64x1xf32>
    %cst_116 = arith.constant 9.99999974E-6 : f32
    %318 = vector.broadcast %cst_116 : f32 to vector<64x1xf32>
    %319 = arith.addf %317, %318 : vector<64x1xf32>
    %320 = math.rsqrt %319 : vector<64x1xf32>
    %321 = vector.broadcast %320 : vector<64x1xf32> to vector<64x48xf32>
    %322 = arith.mulf %312, %321 : vector<64x48xf32>
    %323 = vector.broadcast %305 : vector<1x48xf32> to vector<64x48xf32>
    %324 = arith.mulf %322, %323 : vector<64x48xf32>
    %325 = vector.broadcast %306 : vector<1x48xf32> to vector<64x48xf32>
    %326 = arith.addf %324, %325 : vector<64x48xf32>
    %c0_117 = arith.constant 0 : index
    %c0_118 = arith.constant 0 : index
    %327 = vector.load %arg13[%c0_117, %c0_118] : memref<48x64xf32, #tpu.memory_space<vmem>>, vector<48x64xf32>
    %cst_119 = arith.constant dense<0.000000e+00> : vector<64x64xf32>
    %328 = tpu.matmul %326, %327, %cst_119 {dimension_numbers = #tpu.dot_dimension_numbers<[1], [0], [0], [1], [0, 0, 1, 1], [], []>} : vector<64x48xf32>, vector<48x64xf32>, vector<64x64xf32> -> vector<64x64xf32>
    %c0_120 = arith.constant 0 : index
    %c0_121 = arith.constant 0 : index
    %329 = vector.load %arg14[%c0_120, %c0_121] : memref<1x64xf32, #tpu.memory_space<vmem>>, vector<1x64xf32>
    %330 = vector.broadcast %329 : vector<1x64xf32> to vector<64x64xf32>
    %331 = arith.addf %328, %330 : vector<64x64xf32>
    %332 = vector.extract_strided_slice %331 {offsets = [0, 0], sizes = [64, 32], strides = [1, 1]} : vector<64x64xf32> to vector<64x32xf32>
    %333 = vector.extract_strided_slice %331 {offsets = [0, 32], sizes = [64, 32], strides = [1, 1]} : vector<64x64xf32> to vector<64x32xf32>
    %c0_122 = arith.constant 0 : index
    %c0_123 = arith.constant 0 : index
    %334 = vector.load %arg15[%c0_122, %c0_123] : memref<9x32xf32, #tpu.memory_space<vmem>>, vector<9x32xf32>
    %c0_124 = arith.constant 0 : index
    %c0_125 = arith.constant 0 : index
    %335 = vector.load %arg16[%c0_124, %c0_125] : memref<1x32xf32, #tpu.memory_space<vmem>>, vector<1x32xf32>
    %c0_126 = arith.constant 0 : index
    %c0_127 = arith.constant 0 : index
    %c0_128 = arith.constant 0 : index
    %336 = vector.load %arg2[%c0_126, %c0_127, %c0_128] : memref<9x64x64xf32, #tpu.memory_space<vmem>>, vector<1x64x64xf32>
    %337 = vector.shape_cast %336 : vector<1x64x64xf32> to vector<64x64xf32>
    %cst_129 = arith.constant dense<0.000000e+00> : vector<64x32xf32>
    %338 = tpu.matmul %337, %332, %cst_129 {dimension_numbers = #tpu.dot_dimension_numbers<[1], [0], [0], [1], [0, 0, 1, 1], [], []>} : vector<64x64xf32>, vector<64x32xf32>, vector<64x32xf32> -> vector<64x32xf32>
    %339 = vector.extract_strided_slice %334 {offsets = [0, 0], sizes = [1, 32], strides = [1, 1]} : vector<9x32xf32> to vector<1x32xf32>
    %340 = vector.broadcast %339 : vector<1x32xf32> to vector<64x32xf32>
    %341 = arith.mulf %338, %340 : vector<64x32xf32>
    %c1_130 = arith.constant 1 : index
    %c0_131 = arith.constant 0 : index
    %c0_132 = arith.constant 0 : index
    %342 = vector.load %arg2[%c1_130, %c0_131, %c0_132] : memref<9x64x64xf32, #tpu.memory_space<vmem>>, vector<1x64x64xf32>
    %343 = vector.shape_cast %342 : vector<1x64x64xf32> to vector<64x64xf32>
    %cst_133 = arith.constant dense<0.000000e+00> : vector<64x32xf32>
    %344 = tpu.matmul %343, %332, %cst_133 {dimension_numbers = #tpu.dot_dimension_numbers<[1], [0], [0], [1], [0, 0, 1, 1], [], []>} : vector<64x64xf32>, vector<64x32xf32>, vector<64x32xf32> -> vector<64x32xf32>
    %345 = vector.extract_strided_slice %334 {offsets = [1, 0], sizes = [1, 32], strides = [1, 1]} : vector<9x32xf32> to vector<1x32xf32>
    %346 = vector.broadcast %345 : vector<1x32xf32> to vector<64x32xf32>
    %347 = arith.mulf %344, %346 : vector<64x32xf32>
    %348 = arith.addf %341, %347 : vector<64x32xf32>
    %c2_134 = arith.constant 2 : index
    %c0_135 = arith.constant 0 : index
    %c0_136 = arith.constant 0 : index
    %349 = vector.load %arg2[%c2_134, %c0_135, %c0_136] : memref<9x64x64xf32, #tpu.memory_space<vmem>>, vector<1x64x64xf32>
    %350 = vector.shape_cast %349 : vector<1x64x64xf32> to vector<64x64xf32>
    %cst_137 = arith.constant dense<0.000000e+00> : vector<64x32xf32>
    %351 = tpu.matmul %350, %332, %cst_137 {dimension_numbers = #tpu.dot_dimension_numbers<[1], [0], [0], [1], [0, 0, 1, 1], [], []>} : vector<64x64xf32>, vector<64x32xf32>, vector<64x32xf32> -> vector<64x32xf32>
    %352 = vector.extract_strided_slice %334 {offsets = [2, 0], sizes = [1, 32], strides = [1, 1]} : vector<9x32xf32> to vector<1x32xf32>
    %353 = vector.broadcast %352 : vector<1x32xf32> to vector<64x32xf32>
    %354 = arith.mulf %351, %353 : vector<64x32xf32>
    %355 = arith.addf %348, %354 : vector<64x32xf32>
    %c3_138 = arith.constant 3 : index
    %c0_139 = arith.constant 0 : index
    %c0_140 = arith.constant 0 : index
    %356 = vector.load %arg2[%c3_138, %c0_139, %c0_140] : memref<9x64x64xf32, #tpu.memory_space<vmem>>, vector<1x64x64xf32>
    %357 = vector.shape_cast %356 : vector<1x64x64xf32> to vector<64x64xf32>
    %cst_141 = arith.constant dense<0.000000e+00> : vector<64x32xf32>
    %358 = tpu.matmul %357, %332, %cst_141 {dimension_numbers = #tpu.dot_dimension_numbers<[1], [0], [0], [1], [0, 0, 1, 1], [], []>} : vector<64x64xf32>, vector<64x32xf32>, vector<64x32xf32> -> vector<64x32xf32>
    %359 = vector.extract_strided_slice %334 {offsets = [3, 0], sizes = [1, 32], strides = [1, 1]} : vector<9x32xf32> to vector<1x32xf32>
    %360 = vector.broadcast %359 : vector<1x32xf32> to vector<64x32xf32>
    %361 = arith.mulf %358, %360 : vector<64x32xf32>
    %362 = arith.addf %355, %361 : vector<64x32xf32>
    %c4_142 = arith.constant 4 : index
    %c0_143 = arith.constant 0 : index
    %c0_144 = arith.constant 0 : index
    %363 = vector.load %arg2[%c4_142, %c0_143, %c0_144] : memref<9x64x64xf32, #tpu.memory_space<vmem>>, vector<1x64x64xf32>
    %364 = vector.shape_cast %363 : vector<1x64x64xf32> to vector<64x64xf32>
    %cst_145 = arith.constant dense<0.000000e+00> : vector<64x32xf32>
    %365 = tpu.matmul %364, %332, %cst_145 {dimension_numbers = #tpu.dot_dimension_numbers<[1], [0], [0], [1], [0, 0, 1, 1], [], []>} : vector<64x64xf32>, vector<64x32xf32>, vector<64x32xf32> -> vector<64x32xf32>
    %366 = vector.extract_strided_slice %334 {offsets = [4, 0], sizes = [1, 32], strides = [1, 1]} : vector<9x32xf32> to vector<1x32xf32>
    %367 = vector.broadcast %366 : vector<1x32xf32> to vector<64x32xf32>
    %368 = arith.mulf %365, %367 : vector<64x32xf32>
    %369 = arith.addf %362, %368 : vector<64x32xf32>
    %c5_146 = arith.constant 5 : index
    %c0_147 = arith.constant 0 : index
    %c0_148 = arith.constant 0 : index
    %370 = vector.load %arg2[%c5_146, %c0_147, %c0_148] : memref<9x64x64xf32, #tpu.memory_space<vmem>>, vector<1x64x64xf32>
    %371 = vector.shape_cast %370 : vector<1x64x64xf32> to vector<64x64xf32>
    %cst_149 = arith.constant dense<0.000000e+00> : vector<64x32xf32>
    %372 = tpu.matmul %371, %332, %cst_149 {dimension_numbers = #tpu.dot_dimension_numbers<[1], [0], [0], [1], [0, 0, 1, 1], [], []>} : vector<64x64xf32>, vector<64x32xf32>, vector<64x32xf32> -> vector<64x32xf32>
    %373 = vector.extract_strided_slice %334 {offsets = [5, 0], sizes = [1, 32], strides = [1, 1]} : vector<9x32xf32> to vector<1x32xf32>
    %374 = vector.broadcast %373 : vector<1x32xf32> to vector<64x32xf32>
    %375 = arith.mulf %372, %374 : vector<64x32xf32>
    %376 = arith.addf %369, %375 : vector<64x32xf32>
    %c6_150 = arith.constant 6 : index
    %c0_151 = arith.constant 0 : index
    %c0_152 = arith.constant 0 : index
    %377 = vector.load %arg2[%c6_150, %c0_151, %c0_152] : memref<9x64x64xf32, #tpu.memory_space<vmem>>, vector<1x64x64xf32>
    %378 = vector.shape_cast %377 : vector<1x64x64xf32> to vector<64x64xf32>
    %cst_153 = arith.constant dense<0.000000e+00> : vector<64x32xf32>
    %379 = tpu.matmul %378, %332, %cst_153 {dimension_numbers = #tpu.dot_dimension_numbers<[1], [0], [0], [1], [0, 0, 1, 1], [], []>} : vector<64x64xf32>, vector<64x32xf32>, vector<64x32xf32> -> vector<64x32xf32>
    %380 = vector.extract_strided_slice %334 {offsets = [6, 0], sizes = [1, 32], strides = [1, 1]} : vector<9x32xf32> to vector<1x32xf32>
    %381 = vector.broadcast %380 : vector<1x32xf32> to vector<64x32xf32>
    %382 = arith.mulf %379, %381 : vector<64x32xf32>
    %383 = arith.addf %376, %382 : vector<64x32xf32>
    %c7_154 = arith.constant 7 : index
    %c0_155 = arith.constant 0 : index
    %c0_156 = arith.constant 0 : index
    %384 = vector.load %arg2[%c7_154, %c0_155, %c0_156] : memref<9x64x64xf32, #tpu.memory_space<vmem>>, vector<1x64x64xf32>
    %385 = vector.shape_cast %384 : vector<1x64x64xf32> to vector<64x64xf32>
    %cst_157 = arith.constant dense<0.000000e+00> : vector<64x32xf32>
    %386 = tpu.matmul %385, %332, %cst_157 {dimension_numbers = #tpu.dot_dimension_numbers<[1], [0], [0], [1], [0, 0, 1, 1], [], []>} : vector<64x64xf32>, vector<64x32xf32>, vector<64x32xf32> -> vector<64x32xf32>
    %387 = vector.extract_strided_slice %334 {offsets = [7, 0], sizes = [1, 32], strides = [1, 1]} : vector<9x32xf32> to vector<1x32xf32>
    %388 = vector.broadcast %387 : vector<1x32xf32> to vector<64x32xf32>
    %389 = arith.mulf %386, %388 : vector<64x32xf32>
    %390 = arith.addf %383, %389 : vector<64x32xf32>
    %c8_158 = arith.constant 8 : index
    %c0_159 = arith.constant 0 : index
    %c0_160 = arith.constant 0 : index
    %391 = vector.load %arg2[%c8_158, %c0_159, %c0_160] : memref<9x64x64xf32, #tpu.memory_space<vmem>>, vector<1x64x64xf32>
    %392 = vector.shape_cast %391 : vector<1x64x64xf32> to vector<64x64xf32>
    %cst_161 = arith.constant dense<0.000000e+00> : vector<64x32xf32>
    %393 = tpu.matmul %392, %332, %cst_161 {dimension_numbers = #tpu.dot_dimension_numbers<[1], [0], [0], [1], [0, 0, 1, 1], [], []>} : vector<64x64xf32>, vector<64x32xf32>, vector<64x32xf32> -> vector<64x32xf32>
    %394 = vector.extract_strided_slice %334 {offsets = [8, 0], sizes = [1, 32], strides = [1, 1]} : vector<9x32xf32> to vector<1x32xf32>
    %395 = vector.broadcast %394 : vector<1x32xf32> to vector<64x32xf32>
    %396 = arith.mulf %393, %395 : vector<64x32xf32>
    %397 = arith.addf %390, %396 : vector<64x32xf32>
    %398 = vector.broadcast %335 : vector<1x32xf32> to vector<64x32xf32>
    %399 = arith.addf %397, %398 : vector<64x32xf32>
    %cst_162 = arith.constant 5.000000e-01 : f32
    %400 = vector.broadcast %cst_162 : f32 to vector<64x32xf32>
    %401 = arith.mulf %400, %399 : vector<64x32xf32>
    %cst_163 = arith.constant 0.707106769 : f32
    %402 = vector.broadcast %cst_163 : f32 to vector<64x32xf32>
    %403 = arith.mulf %399, %402 : vector<64x32xf32>
    %cst_164 = arith.constant 0.000000e+00 : f32
    %404 = vector.broadcast %cst_164 : f32 to vector<64x32xf32>
    %405 = arith.cmpf oge, %403, %404 : vector<64x32xf32>
    %cst_165 = arith.constant 1.000000e+00 : f32
    %cst_166 = arith.constant -1.000000e+00 : f32
    %406 = vector.broadcast %cst_165 : f32 to vector<64x32xf32>
    %407 = vector.broadcast %cst_166 : f32 to vector<64x32xf32>
    %408 = arith.select %405, %406, %407 : vector<64x32xi1>, vector<64x32xf32>
    %409 = math.absf %403 : vector<64x32xf32>
    %cst_167 = arith.constant 0.327591091 : f32
    %410 = vector.broadcast %cst_167 : f32 to vector<64x32xf32>
    %411 = arith.mulf %410, %409 : vector<64x32xf32>
    %cst_168 = arith.constant 1.000000e+00 : f32
    %412 = vector.broadcast %cst_168 : f32 to vector<64x32xf32>
    %413 = arith.addf %412, %411 : vector<64x32xf32>
    %cst_169 = arith.constant 1.000000e+00 : f32
    %414 = vector.broadcast %cst_169 : f32 to vector<64x32xf32>
    %415 = arith.divf %414, %413 : vector<64x32xf32>
    %cst_170 = arith.constant 1.06140542 : f32
    %416 = vector.broadcast %cst_170 : f32 to vector<64x32xf32>
    %417 = arith.mulf %416, %415 : vector<64x32xf32>
    %cst_171 = arith.constant -1.45315206 : f32
    %418 = vector.broadcast %cst_171 : f32 to vector<64x32xf32>
    %419 = arith.addf %417, %418 : vector<64x32xf32>
    %420 = arith.mulf %419, %415 : vector<64x32xf32>
    %cst_172 = arith.constant 1.42141378 : f32
    %421 = vector.broadcast %cst_172 : f32 to vector<64x32xf32>
    %422 = arith.addf %420, %421 : vector<64x32xf32>
    %423 = arith.mulf %422, %415 : vector<64x32xf32>
    %cst_173 = arith.constant -0.284496725 : f32
    %424 = vector.broadcast %cst_173 : f32 to vector<64x32xf32>
    %425 = arith.addf %423, %424 : vector<64x32xf32>
    %426 = arith.mulf %425, %415 : vector<64x32xf32>
    %cst_174 = arith.constant 0.254829586 : f32
    %427 = vector.broadcast %cst_174 : f32 to vector<64x32xf32>
    %428 = arith.addf %426, %427 : vector<64x32xf32>
    %429 = arith.mulf %428, %415 : vector<64x32xf32>
    %cst_175 = arith.constant 0.000000e+00 : f32
    %430 = vector.broadcast %cst_175 : f32 to vector<64x32xf32>
    %431 = arith.subf %430, %409 : vector<64x32xf32>
    %432 = arith.mulf %431, %409 : vector<64x32xf32>
    %433 = math.exp %432 : vector<64x32xf32>
    %434 = arith.mulf %429, %433 : vector<64x32xf32>
    %cst_176 = arith.constant 1.000000e+00 : f32
    %435 = vector.broadcast %cst_176 : f32 to vector<64x32xf32>
    %436 = arith.subf %435, %434 : vector<64x32xf32>
    %437 = arith.mulf %408, %436 : vector<64x32xf32>
    %cst_177 = arith.constant 1.000000e+00 : f32
    %438 = vector.broadcast %cst_177 : f32 to vector<64x32xf32>
    %439 = arith.addf %438, %437 : vector<64x32xf32>
    %440 = arith.mulf %401, %439 : vector<64x32xf32>
    %441 = arith.mulf %440, %333 : vector<64x32xf32>
    %c0_178 = arith.constant 0 : index
    %c0_179 = arith.constant 0 : index
    %442 = vector.load %arg17[%c0_178, %c0_179] : memref<32x48xf32, #tpu.memory_space<vmem>>, vector<32x48xf32>
    %cst_180 = arith.constant dense<0.000000e+00> : vector<64x48xf32>
    %443 = tpu.matmul %441, %442, %cst_180 {dimension_numbers = #tpu.dot_dimension_numbers<[1], [0], [0], [1], [0, 0, 1, 1], [], []>} : vector<64x32xf32>, vector<32x48xf32>, vector<64x48xf32> -> vector<64x48xf32>
    %c0_181 = arith.constant 0 : index
    %c0_182 = arith.constant 0 : index
    %444 = vector.load %arg18[%c0_181, %c0_182] : memref<1x48xf32, #tpu.memory_space<vmem>>, vector<1x48xf32>
    %445 = vector.broadcast %444 : vector<1x48xf32> to vector<64x48xf32>
    %446 = arith.addf %443, %445 : vector<64x48xf32>
    %447 = arith.addf %446, %326 : vector<64x48xf32>
    %448 = arith.addf %447, %304 : vector<64x48xf32>
    %c0_183 = arith.constant 0 : index
    %c0_184 = arith.constant 0 : index
    %c0_185 = arith.constant 0 : index
    %449 = vector.load %arg19[%c0_183, %c0_184, %c0_185] : memref<1x64x48xf32, #tpu.memory_space<vmem>>, vector<1x64x48xf32>
    %450 = vector.shape_cast %449 : vector<1x64x48xf32> to vector<64x48xf32>
    %451 = vector.shape_cast %448 : vector<64x48xf32> to vector<1x64x48xf32>
    tpu.vector_store %arg19[%c0_183, %c0_184, %c0_185], %451 {strides = array<i32>} : memref<1x64x48xf32, #tpu.memory_space<vmem>>, vector<1x64x48xf32>,
    return
  }
  func.func @transform_0(%arg0: i32) -> (i32, i32, i32) {
    %c0_i32 = arith.constant 0 : i32
    %c0_i32_0 = arith.constant 0 : i32
    %c0_i32_1 = arith.constant 0 : i32
    return %arg0, %c0_i32, %c0_i32_0 : i32, i32, i32
  }
  func.func @transform_1(%arg0: i32) -> (i32, i32, i32) {
    %c0_i32 = arith.constant 0 : i32
    %c0_i32_0 = arith.constant 0 : i32
    %c0_i32_1 = arith.constant 0 : i32
    %c0_i32_2 = arith.constant 0 : i32
    return %c0_i32, %c0_i32_0, %c0_i32_1 : i32, i32, i32
  }
  func.func @transform_2(%arg0: i32) -> (i32, i32) {
    %c0_i32 = arith.constant 0 : i32
    %c0_i32_0 = arith.constant 0 : i32
    %c0_i32_1 = arith.constant 0 : i32
    return %c0_i32, %c0_i32_0 : i32, i32
  }
  func.func @transform_3(%arg0: i32) -> (i32, i32) {
    %c0_i32 = arith.constant 0 : i32
    %c0_i32_0 = arith.constant 0 : i32
    %c0_i32_1 = arith.constant 0 : i32
    return %c0_i32, %c0_i32_0 : i32, i32
  }
  func.func @transform_4(%arg0: i32) -> (i32, i32) {
    %c0_i32 = arith.constant 0 : i32
    %c0_i32_0 = arith.constant 0 : i32
    %c0_i32_1 = arith.constant 0 : i32
    return %c0_i32, %c0_i32_0 : i32, i32
  }
  func.func @transform_5(%arg0: i32) -> (i32, i32) {
    %c0_i32 = arith.constant 0 : i32
    %c0_i32_0 = arith.constant 0 : i32
    %c0_i32_1 = arith.constant 0 : i32
    return %c0_i32, %c0_i32_0 : i32, i32
  }
  func.func @transform_6(%arg0: i32) -> (i32, i32) {
    %c0_i32 = arith.constant 0 : i32
    %c0_i32_0 = arith.constant 0 : i32
    %c0_i32_1 = arith.constant 0 : i32
    return %c0_i32, %c0_i32_0 : i32, i32
  }
  func.func @transform_7(%arg0: i32) -> (i32, i32) {
    %c0_i32 = arith.constant 0 : i32
    %c0_i32_0 = arith.constant 0 : i32
    %c0_i32_1 = arith.constant 0 : i32
    return %c0_i32, %c0_i32_0 : i32, i32
  }
  func.func @transform_8(%arg0: i32) -> (i32, i32) {
    %c0_i32 = arith.constant 0 : i32
    %c0_i32_0 = arith.constant 0 : i32
    %c0_i32_1 = arith.constant 0 : i32
    return %c0_i32, %c0_i32_0 : i32, i32
  }
  func.func @transform_9(%arg0: i32) -> (i32, i32) {
    %c0_i32 = arith.constant 0 : i32
    %c0_i32_0 = arith.constant 0 : i32
    %c0_i32_1 = arith.constant 0 : i32
    return %c0_i32, %c0_i32_0 : i32, i32
  }
  func.func @transform_10(%arg0: i32) -> (i32, i32) {
    %c0_i32 = arith.constant 0 : i32
    %c0_i32_0 = arith.constant 0 : i32
    %c0_i32_1 = arith.constant 0 : i32
    return %c0_i32, %c0_i32_0 : i32, i32
  }
  func.func @transform_11(%arg0: i32) -> (i32, i32) {
    %c0_i32 = arith.constant 0 : i32
    %c0_i32_0 = arith.constant 0 : i32
    %c0_i32_1 = arith.constant 0 : i32
    return %c0_i32, %c0_i32_0 : i32, i32
  }
  func.func @transform_12(%arg0: i32) -> (i32, i32) {
    %c0_i32 = arith.constant 0 : i32
    %c0_i32_0 = arith.constant 0 : i32
    %c0_i32_1 = arith.constant 0 : i32
    return %c0_i32, %c0_i32_0 : i32, i32
  }
  func.func @transform_13(%arg0: i32) -> (i32, i32) {
    %c0_i32 = arith.constant 0 : i32
    %c0_i32_0 = arith.constant 0 : i32
    %c0_i32_1 = arith.constant 0 : i32
    return %c0_i32, %c0_i32_0 : i32, i32
  }
  func.func @transform_14(%arg0: i32) -> (i32, i32) {
    %c0_i32 = arith.constant 0 : i32
    %c0_i32_0 = arith.constant 0 : i32
    %c0_i32_1 = arith.constant 0 : i32
    return %c0_i32, %c0_i32_0 : i32, i32
  }
  func.func @transform_15(%arg0: i32) -> (i32, i32) {
    %c0_i32 = arith.constant 0 : i32
    %c0_i32_0 = arith.constant 0 : i32
    %c0_i32_1 = arith.constant 0 : i32
    return %c0_i32, %c0_i32_0 : i32, i32
  }
  func.func @transform_16(%arg0: i32) -> (i32, i32) {
    %c0_i32 = arith.constant 0 : i32
    %c0_i32_0 = arith.constant 0 : i32
    %c0_i32_1 = arith.constant 0 : i32
    return %c0_i32, %c0_i32_0 : i32, i32
  }
  func.func @transform_17(%arg0: i32) -> (i32, i32) {
    %c0_i32 = arith.constant 0 : i32
    %c0_i32_0 = arith.constant 0 : i32
    %c0_i32_1 = arith.constant 0 : i32
    return %c0_i32, %c0_i32_0 : i32, i32
  }
  func.func @transform_18(%arg0: i32) -> (i32, i32, i32) {
    %c0_i32 = arith.constant 0 : i32
    %c0_i32_0 = arith.constant 0 : i32
    %c0_i32_1 = arith.constant 0 : i32
    return %arg0, %c0_i32, %c0_i32_0 : i32, i32, i32
  }
}

</mosaic_0001>

<bundles_post_ra>
// kernel: mhsa_cglu_forward.1
= control target key start
LH: loop header
LB: loop body
LE: loop exit
PB: predicated region body
PF: predicated region fallthrough
CT: control target
= control target key end

     0   :  { %s14471_s0 = inlined_call_operand.hbm [shape: f32[2,64,48], index: 0, kind: input, shape index: {}]   ;;  %s14472_s1 = inlined_call_operand.hbm [shape: f32[9,64,64], index: 1, kind: input, shape index: {}]   ;;  %s14473_s2 = inlined_call_operand.vmem [shape: f32[1,48], index: 2, kind: input, shape index: {}]   ;;  %s14474_s3 = inlined_call_operand.vmem [shape: f32[1,48], index: 3, kind: input, shape index: {}]   ;;  %s14475_s4 = inlined_call_operand.hbm [shape: f32[48,96], index: 4, kind: input, shape index: {}]   ;;  %s14476_s5 = inlined_call_operand.vmem [shape: f32[1,96], index: 5, kind: input, shape index: {}]   ;;  %s14477_s6 = inlined_call_operand.vmem [shape: f32[9,48], index: 6, kind: input, shape index: {}]   ;;  %s14478_s7 = inlined_call_operand.hbm [shape: f32[1,48], index: 7, kind: input, shape index: {}]   ;;  %s14479_s8 = inlined_call_operand.hbm [shape: f32[48,48], index: 8, kind: input, shape index: {}]   ;;  %s14480_s9 = inlined_call_operand.vmem [shape: f32[1,48], index: 9, kind: input, shape index: {}]   ;;  %s14481_s10 = inlined_call_operand.vmem [shape: f32[1,48], index: 10, kind: input, shape index: {}]   ;;  %s14482_s11 = inlined_call_operand.vmem [shape: f32[1,48], index: 11, kind: input, shape index: {}]   ;;  %s14483_s12 = inlined_call_operand.hbm [shape: f32[48,64], index: 12, kind: input, shape index: {}]   ;;  %s14484_s13 = inlined_call_operand.vmem [shape: f32[1,64], index: 13, kind: input, shape index: {}]   ;;  %s14485_s14 = inlined_call_operand.hbm [shape: f32[9,32], index: 14, kind: input, shape index: {}]   ;;  %s14486_s15 = inlined_call_operand.vmem [shape: f32[1,32], index: 15, kind: input, shape index: {}]   ;;  %s14487_s16 = inlined_call_operand.hbm [shape: f32[32,48], index: 16, kind: input, shape index: {}]   ;;  %s14488_s17 = inlined_call_operand.vmem [shape: f32[1,48], index: 17, kind: input, shape index: {}]   ;;  %s14489_s18 = inlined_call_operand.hbm [shape: f32[2,64,48], index: 18, kind: output, shape index: {}]  }
   0x1   :  { %14538 = sst [smem:[#allocation93_spill]] %s14471_s0 }
   0x2   :  { %14539 = sst [smem:[#allocation94_spill]] %s14472_s1 }
   0x3   :  { %14540 = sst [smem:[#allocation95_spill]] %s14473_s2 }
   0x4   :  { %14541 = sst [smem:[#allocation96_spill]] %s14475_s4 }
   0x5   :  { %14542 = sst [smem:[#allocation97_spill]] %s14478_s7 }
   0x6   :  { %14543 = sst [smem:[#allocation98_spill]] %s14479_s8 }
   0x7   :  { %14544 = sst [smem:[#allocation99_spill]] %s14482_s11 }
   0x8   :  { %14545 = sst [smem:[#allocation100_spill]] %s14483_s12 }
   0x9   :  { %14546 = sst [smem:[#allocation101_spill]] %s14484_s13 }
   0xa   :  { %14547 = sst [smem:[#allocation102_spill]] %s14485_s14 }
   0xb   :  { %14548 = sst [smem:[#allocation103_spill]] %s14486_s15 }
   0xc   :  { %14549 = sst [smem:[#allocation104_spill]] %s14488_s17 }
   0xd   :  { %14550 = sst [smem:[#allocation105_spill]] %s14489_s18 }
   0xe   :  { %23 = vsyncpa [#allocation3], 0 }
   0xf   :  { %25 = vsyncpa [#allocation3 + $0x1], 0 }
  0x10   :  { %26 = vsyncpa [#allocation6], 0 }
  0x11   :  { %27 = vsyncpa [#allocation9], 0 }
  0x12   :  { %28 = vsyncpa [#allocation12], 0 }
  0x13   :  { %29 = vsyncpa [#allocation15], 0 }
  0x14   :  { %30 = vsyncpa [#allocation4], 0 }
  0x15   :  { %32 = vsyncpa [#allocation4 + $0x1], 0  ;;  %s10966_s27 = smov 0   ;;  %s10968_s28 = smov 0  }
  0x16   :  { %s10970_s29 = smov 0   ;;  %s10972_s30 = smov 0  }
  0x17 LB: > { %s10840_s0 = smov [#allocation5]   ;;  %s10987_s1 = sadd.s32 4294967295, %s10838_s30   ;;  %s10838_s30 = sphi %s10972_s30, %s14831_s30   ;;  %s10834_s29 = sphi %s10970_s29, %s14830_s29   ;;  %s10830_s28 = sphi %s10968_s28, %s14829_s28   ;;  %s10826_s27 = sphi %s10966_s27, %s14828_s27  }
  0x18   : > { %s464_s19 = sshll.u32 %s10840_s0, 4  ;;  %p7894_p0 = scmp.ge.s32.totalorder %s10838_s30, 1  ;;  %s465_s19 = int_to_ptr.vmem [resolvable:$true] %s464_s19 }
  0x19   : > { %p14494_p1 = scmp.eq.s32.totalorder %s10987_s1, 0  ;;  %p452_p2 = scmp.lt.s32.totalorder %s10838_s30, 3 }
  0x1a   : > { %s10841_s21 = smov [#allocation8]   ;;  %s10842_s23 = smov [#allocation11]  }
  0x1b   : > { %p10992_p3 = pnand %p7894_p0, %p452_p2  ;;  %s503_s22 = sshll.u32 %s10841_s21, 4  ;;  %s504_s22 = int_to_ptr.vmem [resolvable:$true] %s503_s22 }
  0x1c   : > { %s535_s24 = sshll.u32 %s10842_s23, 4  ;;  %s10559_s26 = scalar_lea.vmem %s465_s19, 9216  ;;  %s11005_s24 = int_to_ptr.vmem [resolvable:$true] %s535_s24 }
  0x1d   : > { %s14551_s20 = scalar_select %p10992_p3, 1, 0 }
  0x1e   : > { %p10041_p5 = pneg %p10992_p3  ;;  %p10560_p8 = scmp.ne.s32.totalorder %s465_s19, %s10559_s26 }
  0x1f   : > { %p10567_p11 = scmp.lt.s32.totalorder %s465_s19, %s465_s19  ;;  %p10568_p12 = scmp.lt.s32.totalorder %s10559_s26, %s10559_s26 }
  0x20   : > { %p11001_p6 = pnand %p10041_p5, %p14494_p1 }
  0x21   : > { %p10569_p13 = por %p10568_p12, %p10567_p11 }
  0x22   : > { %p11009_p7 = pneg %p11001_p6 }
  0x24   : > { %p10562_p9 = pnand %p10560_p8, %p11009_p7 }
  0x26   : > { %p10563_p10 = pneg %p10562_p9 }
  0x28   : > { %p10570_p0 = pnand %p10569_p13, %p10563_p10 }
  0x2a   : > { %10573 = shalt.err (!%p10570_p0)
}
  0x2b   : > { %s14492_s0 = smov 128   ;;  %s14493_s21 = smov 8  }
  0x2c   : > { %s14554_s17 = sld [smem:[#allocation94_spill]]  ;;  %s10585_s15 = scalar_lea.vmem %s504_s22, 16 }
  0x2d   : > { %p10586_p2 = scmp.ne.s32.totalorder %s504_s22, %s10585_s15  ;;  %s10592_s26 = scalar_lea.vmem %s504_s22, 32 }
  0x2e   : > { %p10593_p9 = scmp.lt.s32.totalorder %s504_s22, %s504_s22  ;;  %p10594_p10 = scmp.lt.s32.totalorder %s10592_s26, %s10585_s15 }
  0x2f   : > { %p10588_p5 = pnand %p10586_p2, %p11009_p7 }
  0x30   : > { %p10595_p11 = por %p10594_p10, %p10593_p9 }
  0x31   : > { %p10589_p8 = pneg %p10588_p5 }
  0x32   : > { %10044 = dma.hbm_to_vmem [thread:$0]  (!%p11001_p6), %s14554_s17, 9216, %s465_s19, [#allocation6], %s14492_s0, %s14492_s0, %s14493_s21  }
  0x33   : > { %p10596_p12 = pnand %p10595_p11, %p10589_p8 }
  0x35   : > { %10599 = shalt.err (!%p10596_p12)
}
  0x36   : > { %s14555_s7 = sld [smem:[#allocation97_spill]]  ;;  %s10611_s17 = scalar_lea.vmem %s11005_s24, 768 }
  0x37   : > { %p10612_p13 = scmp.ne.s32.totalorder %s11005_s24, %s10611_s17  ;;  %p10619_p5 = scmp.lt.s32.totalorder %s11005_s24, %s11005_s24 }
  0x38   : > { %p10620_p9 = scmp.lt.s32.totalorder %s10611_s17, %s10611_s17 }
  0x39   : > { %p10614_p0 = pnand %p10612_p13, %p11009_p7 }
  0x3a   : > { %p10621_p8 = por %p10620_p9, %p10619_p5 }
  0x3b   : > { %p10615_p2 = pneg %p10614_p0 }
  0x3c   : > { %10050 = dma.hbm_to_vmem [thread:$0]  (!%p11001_p6), %s14555_s7, 16, %s504_s22, [#allocation9]  }
  0x3d   : > { %p10622_p10 = pnand %p10621_p8, %p10615_p2 }
  0x3f   : > { %10625 = shalt.err (!%p10622_p10)
}
  0x40   : > { %s14556_s12 = sld [smem:[#allocation100_spill]]  ;;  %s10845_s15 = smov [#allocation7]  }
  0x41   : > { %s483_s18 = sshll.u32 %s10845_s15, 4  ;;  %s10846_s19 = smov [#allocation10]   ;;  %s484_s18 = int_to_ptr.vmem [resolvable:$true] %s483_s18 }
  0x42   : > { %s513_s22 = sshll.u32 %s10846_s19, 4  ;;  %s10637_s23 = scalar_lea.vmem %s484_s18, 768  ;;  %s514_s22 = int_to_ptr.vmem [resolvable:$true] %s513_s22 }
  0x43   : > { %p10638_p11 = scmp.ne.s32.totalorder %s484_s18, %s10637_s23  ;;  %p10645_p0 = scmp.lt.s32.totalorder %s484_s18, %s484_s18 }
  0x44   : > { %p10646_p2 = scmp.lt.s32.totalorder %s10637_s23, %s10637_s23 }
  0x45   : > { %p10640_p12 = pnand %p10638_p11, %p11009_p7 }
  0x46   : > { %10056 = dma.hbm_to_vmem [thread:$0]  (!%p11001_p6), %s14556_s12, 768, %s11005_s24, [#allocation12], %s14492_s0, %s14492_s0, %s14493_s21  }
  0x47   : > { %p10641_p13 = pneg %p10640_p12  ;;  %p10647_p5 = por %p10646_p2, %p10645_p0 }
  0x49   : > { %p10648_p9 = pnand %p10647_p5, %p10641_p13 }
  0x4b   : > { %10651 = shalt.err (!%p10648_p9)
}
  0x4c   : > { %s14557_s4 = sld [smem:[#allocation96_spill]]  ;;  %s10663_s17 = scalar_lea.vmem %s514_s22, 768 }
  0x4d   : > { %p10664_p8 = scmp.ne.s32.totalorder %s514_s22, %s10663_s17  ;;  %p10671_p12 = scmp.lt.s32.totalorder %s514_s22, %s514_s22 }
  0x4e   : > { %p10672_p0 = scmp.lt.s32.totalorder %s10663_s17, %s10663_s17 }
  0x4f   : > { %p10666_p10 = pnand %p10664_p8, %p11009_p7 }
  0x50   : > { %p10673_p13 = por %p10672_p0, %p10671_p12 }
  0x51   : > { %p10667_p11 = pneg %p10666_p10 }
  0x52   : > { %10047 = dma.hbm_to_vmem [thread:$0]  (!%p11001_p6), %s14557_s4, 768, %s484_s18, [#allocation6], %s14492_s0, %s14492_s0, %s14493_s21  }
  0x53   : > { %p10674_p2 = pnand %p10673_p13, %p10667_p11 }
  0x55   : > { %10677 = shalt.err (!%p10674_p2)
}
  0x56   : > { %s14558_s8 = sld [smem:[#allocation98_spill]]  ;;  %s10847_s15 = smov [#allocation13]  }
  0x57   : > { %s551_s18 = sshll.u32 %s10847_s15, 4  ;;  %s10848_s19 = smov [#allocation14]   ;;  %s552_s18 = int_to_ptr.vmem [resolvable:$true] %s551_s18 }
  0x58   : > { %s567_s23 = sshll.u32 %s10848_s19, 4  ;;  %s10689_s24 = scalar_lea.vmem %s552_s18, 256  ;;  %s568_s23 = int_to_ptr.vmem [resolvable:$true] %s567_s23 }
  0x59   : > { %p10690_p5 = scmp.ne.s32.totalorder %s552_s18, %s10689_s24  ;;  %p10697_p10 = scmp.lt.s32.totalorder %s552_s18, %s552_s18 }
  0x5a   : > { %p10698_p11 = scmp.lt.s32.totalorder %s10689_s24, %s10689_s24 }
  0x5b   : > { %p10692_p9 = pnand %p10690_p5, %p11009_p7 }
  0x5c   : > { %10053 = dma.hbm_to_vmem [thread:$0]  (!%p11001_p6), %s14558_s8, 768, %s514_s22, [#allocation9], %s14492_s0, %s14492_s0, %s14493_s21  }
  0x5d   : > { %p10693_p8 = pneg %p10692_p9  ;;  %p10699_p12 = por %p10698_p11, %p10697_p10 }
  0x5f   : > { %p10700_p0 = pnand %p10699_p12, %p10693_p8 }
  0x61   : > { %10703 = shalt.err (!%p10700_p0)
}
  0x62   : > { %s14559_s14 = sld [smem:[#allocation102_spill]]  ;;  %s10715_s17 = scalar_lea.vmem %s568_s23, 512 }
  0x63   : > { %p10716_p13 = scmp.ne.s32.totalorder %s568_s23, %s10715_s17  ;;  %p10723_p9 = scmp.lt.s32.totalorder %s568_s23, %s568_s23 }
  0x64   : > { %p10724_p10 = scmp.lt.s32.totalorder %s10715_s17, %s10715_s17 }
  0x65   : > { %p10718_p2 = pnand %p10716_p13, %p11009_p7 }
  0x66   : > { %p10725_p8 = por %p10724_p10, %p10723_p9 }
  0x67   : > { %p10719_p5 = pneg %p10718_p2 }
  0x68   : > { %10059 = dma.hbm_to_vmem [thread:$0]  (!%p11001_p6), %s14559_s14, 256, %s552_s18, [#allocation12], %s14492_s0, %s14492_s0, %s14493_s21  }
  0x69   : > { %p10726_p11 = pnand %p10725_p8, %p10719_p5 }
  0x6b   : > { %10729 = shalt.err (!%p10726_p11)
}
  0x6c   : > { %10062 = dma.hbm_to_vmem [thread:$0]  (!%p11001_p6), %s14487_s16, 512, %s568_s23, [#allocation15], %s14492_s0, %s14492_s0, %s14493_s21  }
  0x6d   : > { %s7893_s2 = sadd.s32 4294967294, %s10838_s30   ;;  %s11087_s25 = sadd.s32 1, %s10838_s30  }
  0x6e   : > { %s45_s15 = sadd.s32 1, %s10834_s29  ;;  %s42_s18 = ssub.s32 %s10838_s30, %s11087_s25 }
  0x6f   : > { %p52_p7 = scmp.ne.s32.totalorder %s10834_s29, %s10830_s28  ;;  %p43_p12 = scmp.eq.s32.totalorder %s42_s18, 0 }
  0x70   : > { %p53_p0 = scmp.eq.s32.totalorder %s10838_s30, 0  ;;  %p58_p13 = scmp.ne.s32.totalorder %s10830_s28, %s10826_s27 }
  0x71   : > { %p439_p2 = scmp.eq.s32.totalorder %s10987_s1, 1  ;;  %p445_p10 = scmp.eq.s32.totalorder %s7893_s2, 1 }
  0x72   : > { %s11099_s19 = scalar_select %p43_p12, %s10834_s29, %s45_s15  }
  0x73   : > { %p54_p5 = por %p53_p0, %p52_p7  ;;  %p11103_p9 = por %p14494_p1, %p58_p13 }
  0x74   : > { %p11107_p6 = por %p439_p2, %p52_p7  ;;  %p10078_p8 = scmp.lt.s32.totalorder %s10838_s30, 2 }
  0x75   : > { %s14560_s24 = scalar_select %p11103_p9, 1, 0 }
  0x76   : > { %s14561_s23 = scalar_select %p11107_p6, 1, 0 }
  0x77   : > { %s584_s22 = sand.u32 1, %s10834_s29   ;;  %p11113_p11 = por %p445_p10, %p58_p13 }
  0x78   : > { %s7903_s17 = sshll.u32 %s584_s22, 6  ;;  %s8365_s11 = sshll.u32 %s10838_s30, 10 }
  0x79   : > { %s14562_s26 = scalar_select %p11113_p11, 1, 0 }
  0x7a   : > { %s14563_s18 = sld [smem:[#allocation93_spill]]  ;;  %s588_s21 = scalar_lea.vmem [#allocation2], %s7903_s17 }
  0x7b   : > { %s595_s4 = sshll.u32 %s588_s21, 4  ;;  %p11123_p7 = pnand %p10078_p8, %p54_p5  ;;  %s11127_s4 = int_to_ptr.vmem [resolvable:$true] %s595_s4 }
  0x7c   : > { %s11129_s7 = scalar_lea.sflag [#allocation3], %s584_s22 }
  0x7d   : > { %p10732_p0 = pneg %p11123_p7 }
  0x80   : > { %s11121_s0 = scalar_lea.hbm %s14563_s18, %s8365_s11  ;;  %s10735_s17 = scalar_lea.hbm %s14563_s18, 2048 }
  0x81   : > { %s10730_s8 = scalar_lea.hbm %s11121_s0, 1024  ;;  %p10736_p5 = scmp.lt.s32.totalorder %s11121_s0, %s14563_s18 }
  0x82   : > { %p10731_p12 = scmp.ne.s32.totalorder %s11121_s0, %s10730_s8  ;;  %p10737_p10 = scmp.lt.s32.totalorder %s10735_s17, %s10730_s8 }
  0x84   : > { %p10733_p13 = pnand %p10732_p0, %p10731_p12  ;;  %p10738_p8 = por %p10737_p10, %p10736_p5 }
  0x86   : > { %p10734_p2 = pneg %p10733_p13 }
  0x88   : > { %p10739_p4 = pnand %p10738_p8, %p10734_p2 }
  0x8a   : > { %10742 = shalt.err (!%p10739_p4)
}
  0x8b   : > { %s10743_s22 = scalar_lea.vmem %s11127_s4, 1024  ;;  %s10849_s12 = smov [#allocation2]  }
  0x8c   : > { %p10744_p1 = scmp.ne.s32.totalorder %s11127_s4, %s10743_s22  ;;  %s10748_s14 = sshll.u32 %s10849_s12, 4  ;;  %s10749_s14 = int_to_ptr.vmem [resolvable:$false] %s10748_s14 }
  0x8d   : > { %s10750_s11 = scalar_lea.vmem %s10749_s14, 2048  ;;  %p10751_p13 = scmp.lt.s32.totalorder %s11127_s4, %s10749_s14 }
  0x8e   : > { %p10746_p11 = pnand %p10744_p1, %p10732_p0  ;;  %p10752_p6 = scmp.lt.s32.totalorder %s10750_s11, %s10743_s22 }
  0x90   : > { %p10747_p12 = pneg %p10746_p11  ;;  %p10753_p9 = por %p10752_p6, %p10751_p13 }
  0x92   : > { %p10754_p3 = pnand %p10753_p9, %p10747_p12 }
  0x94   : > { %10757 = shalt.err (!%p10754_p3)
}
  0x95   : > { %s14565_s8 = smov 8   ;;  %s14566_s13 = smov 128  }
  0x96   : > { %10066 = dma.hbm_to_vmem [thread:$0]  (!%p11123_p7), %s11121_s0, 1024, %s11127_s4, %s11129_s7, %s14566_s13, %s14566_s13, %s14565_s8  }
  0x97   : > { %p14567_p1 = scmp.ne.s32.totalorder %s14551_s20, 0 }
  0x99   : > { %607 = sbr.rel (%p14567_p1) target bundleno = 5790 (0x169e), region = 92 }
  0x9e   : > { %s11156_s12 = sand.u32 1, %s10830_s28   ;;  %p14568_p3 = scmp.ne.s32.totalorder %s14560_s24, 0 }
  0x9f   : > { %s7907_s14 = sshll.u32 %s11156_s12, 6  ;;  %s610_s17 = scalar_lea.sflag [#allocation3], %s11156_s12 }
  0xa0   : > { %s11162_s2 = scalar_lea.vmem [#allocation2], %s7907_s14 }
  0xa1   : > { %10801 = dma.done.wait (%p14568_p3), %s610_s17, 1024  }
  0xa2   : > { %10803 = vsyncadd (%p14568_p3), %s610_s17, 4294966272  ;;  %p14569_p4 = scmp.eq.s32.totalorder %s10987_s1, 0 }
  0xa4   : > { %10805 = dma.done.wait (%p14569_p4), [#allocation6], 9984   ;;  %p14570_p9 = pmov %p14569_p4 }
  0xa5   : > { %p14571_p6 = pmov %p14569_p4 }
  0xa6   : > { %10807 = vsyncadd (%p14570_p9), [#allocation6], 4294957312 }
  0xa7   : > { %10809 = dma.done.wait (%p14571_p6), [#allocation9], 784   ;;  %p14572_p11 = pmov %p14569_p4 }
  0xa8   : > { %p14573_p7 = pmov %p14569_p4 }
  0xa9   : > { %10811 = vsyncadd (%p14572_p11), [#allocation9], 4294966512 }
  0xaa   : > { %10813 = dma.done.wait (%p14573_p7), [#allocation12], 1024   ;;  %p14574_p0 = pmov %p14569_p4 }
  0xac   : > { %10815 = vsyncadd (%p14574_p0), [#allocation12], 4294966272  ;;  %p14575_p2 = pmov %p14574_p0 }
  0xad   : > { %p14576_p5 = pmov %p14574_p0 }
  0xae   : > { %10817 = dma.done.wait (%p14575_p2), [#allocation15], 512  }
  0xaf   : > { %10819 = vsyncadd (%p14576_p5), [#allocation15], 4294966784  ;;  %vm704_vm0 = vcmask 392192   ;;  %v694_v0 = vld [vmem:[%s11162_s2] sm:$0xff]  ;;  %v696_v1 = vld [vmem:[%s11162_s2 + $0x10] sm:$0xff]  ;;  %s14577_s20 = sld [smem:[#allocation95_spill]] }
  0xb0   : > { %v695_v2 = vld [vmem:[%s11162_s2 + $0x8] sm:$0xff]  ;;  %v705_v3 = vsel %vm704_vm0, %v694_v0, 0.0  ;;  %v711_v4 = vsel %vm704_vm0, %v696_v1, 0.0  ;;  %v697_v5 = vld [vmem:[%s11162_s2 + $0x18] sm:$0xff]  ;;  %v698_v8 = vld [vmem:[%s11162_s2 + $0x20] sm:$0xff]  ;;  %vm1006_vm1 = vcmask 23552  }
  0xb1   : > { %706 = vadd.xlane.f32.xlu0 %v705_v3  ;;  %712 = vadd.xlane.f32.xlu1 %v711_v4  ;;  %v708_v6 = vsel %vm704_vm0, %v695_v2, 0.0  ;;  %v714_v7 = vsel %vm704_vm0, %v697_v5, 0.0  ;;  %v699_v9 = vld [vmem:[%s11162_s2 + $0x28] sm:$0xff]  ;;  %v717_v10 = vsel %vm704_vm0, %v698_v8, 0.0  ;;  %v700_v12 = vld [vmem:[%s11162_s2 + $0x30] sm:$0xff]  ;;  %v701_v13 = vld [vmem:[%s11162_s2 + $0x38] sm:$0xff] }
  0xb2   : > { %v720_v11 = vsel %vm704_vm0, %v699_v9, 0.0  ;;  %v723_v14 = vsel %vm704_vm0, %v700_v12, 0.0  ;;  %v726_v15 = vsel %vm704_vm0, %v701_v13, 0.0  ;;  %v843_v56 = vld [vmem:[#allocation7 + $0x28] sm:$0xff]  ;;  %v842_v57 = vld [vmem:[#allocation7 + $0x20] sm:$0xff]  ;;  %v841_v58 = vld [vmem:[#allocation7 + $0x18] sm:$0xff] }
  0xb3   : > { %8965 = vmatprep.subr.mxu0 %v843_v56  ;;  %v840_v59 = vld [vmem:[#allocation7 + $0x10] sm:$0xff]  ;;  %v839_v60 = vld [vmem:[#allocation7 + $0x8] sm:$0xff]  ;;  %v838_v61 = vld [vmem:[#allocation7] sm:$0xff]  ;;  %s10850_s22 = smov 104   ;;  %s10851_s11 = smov 80   ;;  %vm1144_vm6 = vcmask 523264  }
  0xb4   : > { %8966 = vmatpush3.msra.mxu0 %v843_v56  ;;  %s10852_s8 = smov 101   ;;  %s10853_s13 = smov 125  }
  0xb5   : > { %709 = vadd.xlane.f32.xlu0 %v708_v6  ;;  %715 = vadd.xlane.f32.xlu1 %v714_v7  ;;  %s10854_s17 = smov 98   ;;  %s10855_s4 = smov 122  }
  0xb6   : > { %8967 = vmatprep.subr.mxu0 %v842_v57  ;;  %s10856_s7 = smov 95   ;;  %s10858_s0 = smov 92  }
  0xb7   : > { %8968 = vmatpush3.msra.mxu0 %v842_v57  ;;  %s10859_s24 = smov 116   ;;  %s10860_s21 = smov 89  }
  0xb8   : > { %8969 = vmatprep.subr.mxu0 %v841_v58  ;;  %s10861_s15 = smov 113   ;;  %p14825_p8 = scmp.ne.s32.totalorder %s14561_s23, 0 }
  0xb9   : > { %718 = vadd.xlane.f32.xlu0 %v717_v10  ;;  %721 = vadd.xlane.f32.xlu1 %v720_v11 }
  0xba   : > { %8970 = vmatpush3.msra.mxu0 %v841_v58  ;;  %v7918_v58 = vld [vmem:[%s14476_s5] ss:$0 sm:$0xff] }
  0xbb   : > { %8971 = vmatprep.subr.mxu0 %v840_v59 }
  0xbc   : > { %8972 = vmatpush3.msra.mxu0 %v840_v59 }
  0xbd   : > { %724 = vadd.xlane.f32.xlu0 %v723_v14  ;;  %727 = vadd.xlane.f32.xlu1 %v726_v15 }
  0xbe   : > { %8973 = vmatprep.subr.mxu0 %v839_v60 }
  0xbf   : > { %8974 = vmatpush3.msra.mxu0 %v839_v60 }
  0xc0   : > { %8975 = vmatprep.subr.mxu0 %v838_v61 }
  0xc1   : > { %8976 = vmatpush3.msra.mxu0 %v838_v61 }
 0x13a   : > { %v707_v16 = vpop.xlane.xlu0 %706  ;;  %v713_v17 = vpop.xlane.xlu1 %712 }
 0x13b   : > { %v730_v18 = vmul.f32 0.020833334, %v707_v16  ;;  %v732_v19 = vmul.f32 0.020833334, %v713_v17 }
 0x13d   : > { %v11200_v20 = vsub.f32 %v694_v0, %v730_v18  ;;  %v11202_v21 = vsub.f32 %v696_v1, %v732_v19 }
 0x13e   : > { %v710_v22 = vpop.xlane.xlu0 %709  ;;  %v716_v23 = vpop.xlane.xlu1 %715 }
 0x13f   : > { %v731_v24 = vmul.f32 0.020833334, %v710_v22  ;;  %v733_v25 = vmul.f32 0.020833334, %v716_v23  ;;  %v746_v26 = vmul.f32 %v11200_v20, %v11200_v20  ;;  %v748_v27 = vmul.f32 %v11202_v21, %v11202_v21 }
 0x141   : > { %v11208_v28 = vsub.f32 %v695_v2, %v731_v24  ;;  %v11210_v29 = vsub.f32 %v697_v5, %v733_v25  ;;  %v754_v30 = vsel %vm704_vm0, %v746_v26, 0.0  ;;  %v760_v33 = vsel %vm704_vm0, %v748_v27, 0.0  ;;  %v7916_v24 = vld [vmem:[%s14577_s20] ss:$0 sm:$0xff]  ;;  %s10857_s20 = smov 119  }
 0x142   : > { %755 = vadd.xlane.f32.xlu0 %v754_v30  ;;  %v719_v31 = vpop.xlane.xlu0 %718  ;;  %v722_v32 = vpop.xlane.xlu1 %721  ;;  %v7917_v27 = vld [vmem:[%s14474_s3] ss:$0 sm:$0xff] }
 0x143   : > { %v734_v34 = vmul.f32 0.020833334, %v719_v31  ;;  %v735_v35 = vmul.f32 0.020833334, %v722_v32  ;;  %v747_v36 = vmul.f32 %v11208_v28, %v11208_v28  ;;  %v749_v37 = vmul.f32 %v11210_v29, %v11210_v29 }
 0x145   : > { %v11218_v38 = vsub.f32 %v698_v8, %v734_v34  ;;  %v11220_v39 = vsub.f32 %v699_v9, %v735_v35  ;;  %v757_v40 = vsel %vm704_vm0, %v747_v36, 0.0  ;;  %v763_v43 = vsel %vm704_vm0, %v749_v37, 0.0 }
 0x146   : > { %761 = vadd.xlane.f32.xlu0 %v760_v33  ;;  %758 = vadd.xlane.f32.xlu1 %v757_v40  ;;  %v725_v41 = vpop.xlane.xlu0 %724  ;;  %v728_v42 = vpop.xlane.xlu1 %727 }
 0x147   : > { %v736_v44 = vmul.f32 0.020833334, %v725_v41  ;;  %v737_v45 = vmul.f32 0.020833334, %v728_v42  ;;  %v750_v46 = vmul.f32 %v11218_v38, %v11218_v38  ;;  %v751_v47 = vmul.f32 %v11220_v39, %v11220_v39 }
 0x149   : > { %v11228_v48 = vsub.f32 %v700_v12, %v736_v44  ;;  %v11230_v49 = vsub.f32 %v701_v13, %v737_v45  ;;  %v766_v50 = vsel %vm704_vm0, %v750_v46, 0.0  ;;  %v769_v51 = vsel %vm704_vm0, %v751_v47, 0.0 }
 0x14a   : > { %764 = vadd.xlane.f32.xlu1 %v763_v43  ;;  %767 = vadd.xlane.f32.xlu0 %v766_v50 }
 0x14b   : > { %v752_v52 = vmul.f32 %v11228_v48, %v11228_v48  ;;  %v753_v53 = vmul.f32 %v11230_v49, %v11230_v49 }
 0x14d   : > { %v772_v54 = vsel %vm704_vm0, %v752_v52, 0.0  ;;  %v775_v55 = vsel %vm704_vm0, %v753_v53, 0.0 }
 0x14e   : > { %770 = vadd.xlane.f32.xlu1 %v769_v51  ;;  %773 = vadd.xlane.f32.xlu0 %v772_v54 }
 0x152   : > { %776 = vadd.xlane.f32.xlu1 %v775_v55 }
 0x1cb   : > { %v756_v62 = vpop.xlane.xlu0 %755 }
 0x1cc   : > { %v778_v63 = vmul.f32 0.020833334, %v756_v62 }
 0x1ce   : > { %v786_v0 = vadd.f32 1e-05, %v778_v63 }
 0x1cf   : > { %v759_v1 = vpop.xlane.xlu1 %758  ;;  %v762_v2 = vpop.xlane.xlu0 %761 }
 0x1d0   : > { %10148 = vrsqrt.f32 %v786_v0  ;;  %v779_v3 = vmul.f32 0.020833334, %v759_v1  ;;  %v780_v4 = vmul.f32 0.020833334, %v762_v2 }
 0x1d2   : > { %v787_v5 = vadd.f32 1e-05, %v779_v3  ;;  %v788_v6 = vadd.f32 1e-05, %v780_v4 }
 0x1d3   : > { %v765_v7 = vpop.xlane.xlu1 %764  ;;  %v768_v8 = vpop.xlane.xlu0 %767 }
 0x1d4   : > { %10150 = vrsqrt.f32 %v787_v5  ;;  %v781_v9 = vmul.f32 0.020833334, %v765_v7  ;;  %v782_v10 = vmul.f32 0.020833334, %v768_v8 }
 0x1d5   : > { %10152 = vrsqrt.f32 %v788_v6 }
 0x1d6   : > { %v789_v11 = vadd.f32 1e-05, %v781_v9  ;;  %v790_v12 = vadd.f32 1e-05, %v782_v10 }
 0x1d7   : > { %v771_v13 = vpop.xlane.xlu1 %770  ;;  %v774_v14 = vpop.xlane.xlu0 %773 }
 0x1d8   : > { %10154 = vrsqrt.f32 %v789_v11  ;;  %v783_v15 = vmul.f32 0.020833334, %v771_v13  ;;  %v784_v16 = vmul.f32 0.020833334, %v774_v14  ;;  %v14498_v11 = vlaneseq }
 0x1d9   : > { %10156 = vrsqrt.f32 %v790_v12 }
 0x1da   : > { %v791_v17 = vadd.f32 1e-05, %v783_v15  ;;  %v792_v18 = vadd.f32 1e-05, %v784_v16  ;;  %v11312_v14 = vand.u32 127, %v14498_v11 }
 0x1db   : > { %v777_v19 = vpop.xlane.xlu1 %776 }
 0x1dc   : > { %10158 = vrsqrt.f32 %v791_v17  ;;  %v785_v22 = vmul.f32 0.020833334, %v777_v19  ;;  %vm1234_vm2 = vcmp.lt.s32.totalorder %v11312_v14, 6  ;;  %vm1672_vm3 = vcmp.ge.s32.totalorder %v11312_v14, 6 }
 0x1dd   : > { %v10149_v23 = vpop.eup %10148  ;;  %10160 = vrsqrt.f32 %v792_v18  ;;  %vm1673_vm4 = vcmp.lt.s32.totalorder %v11312_v14, 12  ;;  %vm2087_vm7 = vcmp.ge.s32.totalorder %v11312_v14, 12  ;;  %vm2088_vm8 = vcmp.lt.s32.totalorder %v11312_v14, 18 }
 0x1de   : > { %v793_v25 = vadd.f32 1e-05, %v785_v22  ;;  %v802_v26 = vmul.f32 %v10149_v23, %v11200_v20  ;;  %vm11340_vm5 = vmand %vm1672_vm3, %vm1673_vm4  ;;  %vm2502_vm10 = vcmp.ge.s32.totalorder %v11312_v14, 18  ;;  %vm2503_vm11 = vcmp.lt.s32.totalorder %v11312_v14, 24 }
 0x1df   : > { %vm11548_vm9 = vmand %vm2087_vm7, %vm2088_vm8  ;;  %vm2917_vm13 = vcmp.ge.s32.totalorder %v11312_v14, 24  ;;  %vm2918_vm14 = vcmp.lt.s32.totalorder %v11312_v14, 30  ;;  %vm3333_vm3 = vcmp.lt.s32.totalorder %v11312_v14, 36  ;;  %vm3748_vm7 = vcmp.lt.s32.totalorder %v11312_v14, 42 }
 0x1e0   : > { %10162 = vrsqrt.f32 %v793_v25  ;;  %v816_v30 = vmul.f32 %v7916_v24, %v802_v26  ;;  %vm11734_vm12 = vmand %vm2502_vm10, %vm2503_vm11  ;;  %vm4163_vm10 = vcmp.lt.s32.totalorder %v11312_v14, 48 }
 0x1e1   : > { %v10151_v31 = vpop.eup %10150  ;;  %vm11920_vm15 = vmand %vm2917_vm13, %vm2918_vm14  ;;  %vm7585_vm14 = vcmask 261120  }
 0x1e2   : > { %v10153_v32 = vpop.eup %10152  ;;  %v830_v33 = vadd.f32 %v7917_v27, %v816_v30  ;;  %v803_v34 = vmul.f32 %v10151_v31, %v11208_v28 }
 0x1e3   : > { %v804_v35 = vmul.f32 %v10153_v32, %v11202_v21 }
 0x1e4   : > { %8977 = vmatprep.mubr.msk.f32.mxu0 %vm704_vm0, %v830_v33  ;;  %v817_v36 = vmul.f32 %v7916_v24, %v803_v34 }
 0x1e5   : > { %v10155_v37 = vpop.eup %10154  ;;  %v818_v40 = vmul.f32 %v7916_v24, %v804_v35 }
 0x1e6   : > { %v10157_v41 = vpop.eup %10156  ;;  %v831_v20 = vadd.f32 %v7917_v27, %v817_v36  ;;  %v805_v42 = vmul.f32 %v10155_v37, %v11210_v29 }
 0x1e7   : > { %v832_v43 = vadd.f32 %v7917_v27, %v818_v40  ;;  %v806_v44 = vmul.f32 %v10157_v41, %v11218_v38 }
 0x1e8   : > { %8978 = vmatmul.mubr.msk.f32.vlgmr.msra.gmra.mxu0 %vm704_vm0, %v831_v20  ;;  %v819_v45 = vmul.f32 %v7916_v24, %v805_v42 }
 0x1e9   : > { %v10159_v46 = vpop.eup %10158  ;;  %8980 = vmatprep.mubr.msk.f32.mxu0 %vm704_vm0, %v832_v43  ;;  %v820_v28 = vmul.f32 %v7916_v24, %v806_v44 }
 0x1ea   : > { %v10161_v21 = vpop.eup %10160  ;;  %v833_v47 = vadd.f32 %v7917_v27, %v819_v45  ;;  %v807_v50 = vmul.f32 %v10159_v46, %v11220_v39 }
 0x1eb   : > { %v834_v51 = vadd.f32 %v7917_v27, %v820_v28  ;;  %v808_v52 = vmul.f32 %v10161_v21, %v11228_v48 }
 0x1ec   : > { %8981 = vmatmul.mubr.msk.f32.gmra.mxu0 %vm704_vm0, %v833_v47  ;;  %v821_v29 = vmul.f32 %v7916_v24, %v807_v50 }
 0x1ed   : > { %v10163_v53 = vpop.eup %10162  ;;  %8983 = vmatprep.mubr.msk.f32.mxu0 %vm704_vm0, %v834_v51  ;;  %v822_v38 = vmul.f32 %v7916_v24, %v808_v52 }
 0x1ee   : > { %v835_v54 = vadd.f32 %v7917_v27, %v821_v29  ;;  %v809_v55 = vmul.f32 %v10163_v53, %v11230_v49 }
 0x1ef   : > { %v836_v56 = vadd.f32 %v7917_v27, %v822_v38 }
 0x1f0   : > { %8984 = vmatmul.mubr.msk.f32.gmra.mxu0 %vm704_vm0, %v835_v54  ;;  %v823_v57 = vmul.f32 %v7916_v24, %v809_v55 }
 0x1f1   : > { %8986 = vmatprep.mubr.msk.f32.mxu0 %vm704_vm0, %v836_v56 }
 0x1f2   : > { %v837_v39 = vadd.f32 %v7917_v27, %v823_v57 }
 0x1f4   : > { %8987 = vmatmul.mubr.msk.f32.gmra.mxu0 %vm704_vm0, %v837_v39 }
 0x2a8   : > { %v8979_v48 = vpop.f32.mrf.mxu0 }
 0x2a9   : > { %v11280_v6 = vadd.f32 %v8979_v48, %v7918_v58 }
 0x2aa   : > { %v941_v59 = vpop.f32.mrf.mxu0 }
 0x2ab   : > { %v11265_v60 = vadd.f32 %v7918_v58, %v941_v59 }
 0x2ac   : > { %v8982_v61 = vpop.f32.mrf.mxu0 }
 0x2ad   : > { %9005 = vmatprep.mubr.msk.f32.mxu1 %vm1006_vm1, %v11265_v60  ;;  %v11274_v4 = vadd.f32 %v8982_v61, %v7918_v58 }
 0x2ae   : > { %v951_v49 = vpop.f32.mrf.mxu0 }
 0x2af   : > { %v11287_v8 = vadd.f32 %v7918_v58, %v951_v49 }
 0x2b0   : > { %v8985_v62 = vpop.f32.mrf.mxu0 }
 0x2b1   : > { %v11277_v5 = vadd.f32 %v8985_v62, %v7918_v58 }
 0x2b2   : > { %v961_v63 = vpop.f32.mrf.mxu0 }
 0x2b3   : > { %v11283_v7 = vadd.f32 %v7918_v58, %v961_v63 }
 0x2b4   : > { %v8988_v0 = vpop.f32.mrf.mxu0 }
 0x2b5   : > { %v11269_v1 = vadd.f32 %v8988_v0, %v7918_v58 }
 0x2b6   : > { %v971_v2 = vpop.f32.mrf.mxu0 }
 0x2b7   : > { %v11271_v3 = vadd.f32 %v7918_v58, %v971_v2  ;;  %1004 = vrot.lane.b32.xlu0 %v11269_v1, %s10850_s22 }
 0x2b9   : > { %1002 = vrot.lane.b32.xlu1 %v11271_v3, %s10850_s22 }
 0x2bb   : > { %996 = vrot.lane.b32.xlu0 %v11274_v4, %s10850_s22 }
 0x2bd   : > { %1000 = vrot.lane.b32.xlu1 %v11277_v5, %s10850_s22 }
 0x2bf   : > { %992 = vrot.lane.b32.xlu0 %v11280_v6, %s10850_s22 }
 0x2c1   : > { %998 = vrot.lane.b32.xlu1 %v11283_v7, %s10850_s22 }
 0x2c3   : > { %1252 = vrot.lane.b32.xlu0 %v11269_v1, %s10851_s11 }
 0x2c5   : > { %994 = vrot.lane.b32.xlu1 %v11287_v8, %s10850_s22 }
 0x2c7   : > { %1248 = vrot.lane.b32.xlu0 %v11277_v5, %s10851_s11 }
 0x2c9   : > { %990 = vrot.lane.b32.xlu1 %v11265_v60, %s10850_s22  ;;  %s10862_s22 = smov 86  }
 0x2cb   : > { %1246 = vrot.lane.b32.xlu0 %v11283_v7, %s10851_s11 }
 0x2cd   : > { %1244 = vrot.lane.b32.xlu1 %v11274_v4, %s10851_s11 }
 0x2cf   : > { %1242 = vrot.lane.b32.xlu0 %v11287_v8, %s10851_s11 }
 0x2d1   : > { %1240 = vrot.lane.b32.xlu1 %v11280_v6, %s10851_s11 }
 0x2d3   : > { %1238 = vrot.lane.b32.xlu0 %v11265_v60, %s10851_s11 }
 0x2d5   : > { %1445 = vrot.lane.b32.xlu1 %v11269_v1, %s10852_s8 }
 0x2d7   : > { %1441 = vrot.lane.b32.xlu0 %v11277_v5, %s10852_s8 }
 0x2d9   : > { %1439 = vrot.lane.b32.xlu1 %v11283_v7, %s10852_s8 }
 0x2dd   : > { %1250 = vrot.lane.b32.xlu1 %v11271_v3, %s10851_s11  ;;  %s10863_s11 = smov 110  }
 0x2e1   : > { %1443 = vrot.lane.b32.xlu1 %v11271_v3, %s10852_s8 }
 0x329   : > { %v1005_v9 = vpop.permute.xlu0 %1004 }
 0x32a   : > { %8989 = vmatprep.subr.msk.mxu1 %vm1006_vm1, %v1005_v9 }
 0x32b   : > { %8990 = vmatpush3.xpose.msk.msra.mxu1 %vm1006_vm1, %v1005_v9  ;;  %v1003_v10 = vpop.permute.xlu1 %1002 }
 0x32c   : > { %8991 = vmatprep.subr.msk.mxu1 %vm1006_vm1, %v1003_v10 }
 0x32d   : > { %v997_v12 = vpop.permute.xlu0 %996 }
 0x32f   : > { %8992 = vmatpush3.xpose.msk.msra.mxu1 %vm1006_vm1, %v1003_v10  ;;  %v1001_v13 = vpop.permute.xlu1 %1000 }
 0x330   : > { %8993 = vmatprep.subr.msk.mxu1 %vm1006_vm1, %v1001_v13 }
 0x331   : > { %v993_v15 = vpop.permute.xlu0 %992 }
 0x333   : > { %8994 = vmatpush3.xpose.msk.msra.mxu1 %vm1006_vm1, %v1001_v13  ;;  %v999_v16 = vpop.permute.xlu1 %998 }
 0x334   : > { %8995 = vmatprep.subr.msk.mxu1 %vm1006_vm1, %v999_v16 }
 0x335   : > { %v11318_v17 = vpop.permute.xlu0 %1252 }
 0x336   : > { %9017 = vmatprep.subr.msk.mxu0 %vm1234_vm2, %v11318_v17 }
 0x337   : > { %8996 = vmatpush3.xpose.msk.msra.mxu1 %vm1006_vm1, %v999_v16  ;;  %9018 = vmatpush3.msk.msra.mxu0 %vm1234_vm2, %v11318_v17  ;;  %v995_v18 = vpop.permute.xlu1 %994 }
 0x338   : > { %8997 = vmatprep.subr.msk.mxu1 %vm1006_vm1, %v997_v12 }
 0x339   : > { %v11350_v26 = vpop.permute.xlu0 %1248 }
 0x33b   : > { %8998 = vmatpush3.xpose.msk.msra.mxu1 %vm1006_vm1, %v997_v12  ;;  %v991_v19 = vpop.permute.xlu1 %990 }
 0x33c   : > { %8999 = vmatprep.subr.msk.mxu1 %vm1006_vm1, %v995_v18 }
 0x33d   : > { %v11367_v31 = vpop.permute.xlu0 %1246 }
 0x33f   : > { %9000 = vmatpush3.xpose.msk.msra.mxu1 %vm1006_vm1, %v995_v18  ;;  %v11331_v22 = vpop.permute.xlu1 %1244 }
 0x340   : > { %9001 = vmatprep.subr.msk.mxu1 %vm1006_vm1, %v993_v15 }
 0x341   : > { %v11403_v32 = vpop.permute.xlu0 %1242 }
 0x343   : > { %9002 = vmatpush3.xpose.msk.msra.mxu1 %vm1006_vm1, %v993_v15  ;;  %v11337_v23 = vpop.permute.xlu1 %1240 }
 0x344   : > { %9003 = vmatprep.subr.msk.mxu1 %vm1006_vm1, %v991_v19 }
 0x345   : > { %v11440_v33 = vpop.permute.xlu0 %1238 }
 0x347   : > { %9004 = vmatpush3.xpose.msk.msra.mxu1 %vm1006_vm1, %v991_v19  ;;  %v11345_v25 = vpop.permute.xlu1 %1445 }
 0x348   : > { %9073 = vmatprep.subr.msk.mxu1 %vm11340_vm5, %v11318_v17 }
 0x349   : > { %v1442_v52 = vpop.permute.xlu0 %1441 }
 0x34a   : > { %9006 = vmatmul.mubr.msk.f32.vlgmr.msra.gmra.mxu1 %vm1006_vm1, %v11280_v6 }
 0x34b   : > { %9008 = vmatprep.mubr.msk.f32.mxu1 %vm1006_vm1, %v11287_v8  ;;  %9074 = vmatpush3.msk.msra.mxu1 %vm11340_vm5, %v11318_v17  ;;  %v11359_v27 = vpop.permute.xlu1 %1439 }
 0x34e   : > { %9009 = vmatmul.mubr.msk.f32.gmra.mxu1 %vm1006_vm1, %v11274_v4 }
 0x34f   : > { %9011 = vmatprep.mubr.msk.f32.mxu1 %vm1006_vm1, %v11283_v7  ;;  %v11365_v30 = vpop.permute.xlu1 %1250 }
 0x350   : > { %9019 = vmatprep.subr.msk.mxu0 %vm1234_vm2, %v11365_v30  ;;  %9075 = vmatprep.subr.msk.mxu1 %vm11340_vm5, %v11365_v30 }
 0x351   : > { %9020 = vmatpush3.msk.msra.mxu0 %vm1234_vm2, %v11365_v30  ;;  %9076 = vmatpush3.msk.msra.mxu1 %vm11340_vm5, %v11365_v30 }
 0x352   : > { %9012 = vmatmul.mubr.msk.f32.gmra.mxu1 %vm1006_vm1, %v11277_v5  ;;  %9021 = vmatprep.subr.msk.mxu0 %vm1234_vm2, %v11350_v26 }
 0x353   : > { %9077 = vmatprep.subr.msk.mxu1 %vm11340_vm5, %v11350_v26  ;;  %9014 = vmatprep.mubr.msk.f32.mxu1 %vm1006_vm1, %v11271_v3  ;;  %v1444_v51 = vpop.permute.xlu1 %1443 }
 0x354   : > { %9022 = vmatpush3.msk.msra.mxu0 %vm1234_vm2, %v11350_v26  ;;  %9078 = vmatpush3.msk.msra.mxu1 %vm11340_vm5, %v11350_v26 }
 0x355   : > { %9023 = vmatprep.subr.msk.mxu0 %vm1234_vm2, %v11367_v31  ;;  %9079 = vmatprep.subr.msk.mxu1 %vm11340_vm5, %v11367_v31 }
 0x356   : > { %9024 = vmatpush3.msk.msra.mxu0 %vm1234_vm2, %v11367_v31  ;;  %9080 = vmatpush3.msk.msra.mxu1 %vm11340_vm5, %v11367_v31 }
 0x357   : > { %9015 = vmatmul.mubr.msk.f32.gmra.mxu1 %vm1006_vm1, %v11269_v1  ;;  %9025 = vmatprep.subr.msk.mxu0 %vm1234_vm2, %v11331_v22 }
 0x358   : > { %9081 = vmatprep.subr.msk.mxu1 %vm11340_vm5, %v11331_v22  ;;  %9026 = vmatpush3.msk.msra.mxu0 %vm1234_vm2, %v11331_v22 }
 0x359   : > { %9082 = vmatpush3.msk.msra.mxu1 %vm11340_vm5, %v11331_v22  ;;  %9027 = vmatprep.subr.msk.mxu0 %vm1234_vm2, %v11403_v32 }
 0x35a   : > { %9083 = vmatprep.subr.msk.mxu1 %vm11340_vm5, %v11403_v32  ;;  %9028 = vmatpush3.msk.msra.mxu0 %vm1234_vm2, %v11403_v32 }
 0x35b   : > { %9084 = vmatpush3.msk.msra.mxu1 %vm11340_vm5, %v11403_v32  ;;  %9029 = vmatprep.subr.msk.mxu0 %vm1234_vm2, %v11337_v23 }
 0x35c   : > { %9085 = vmatprep.subr.msk.mxu1 %vm11340_vm5, %v11337_v23  ;;  %9030 = vmatpush3.msk.msra.mxu0 %vm1234_vm2, %v11337_v23 }
 0x35d   : > { %9086 = vmatpush3.msk.msra.mxu1 %vm11340_vm5, %v11337_v23  ;;  %9031 = vmatprep.subr.msk.mxu0 %vm1234_vm2, %v11440_v33 }
 0x35e   : > { %9087 = vmatprep.subr.msk.mxu1 %vm11340_vm5, %v11440_v33  ;;  %9032 = vmatpush3.msk.msra.mxu0 %vm1234_vm2, %v11440_v33  ;;  %vm3332_vm2 = vcmp.ge.s32.totalorder %v11312_v14, 30 }
 0x35f   : > { %9088 = vmatpush3.msk.msra.mxu1 %vm11340_vm5, %v11440_v33  ;;  %9045 = vmatprep.subr.msk.mxu0 %vm1006_vm1, %v11345_v25  ;;  %vm12106_vm4 = vmand %vm3332_vm2, %vm3333_vm3  ;;  %vm3747_vm5 = vcmp.ge.s32.totalorder %v11312_v14, 36 }
 0x360   : > { %vm12292_vm8 = vmand %vm3747_vm5, %vm3748_vm7 }
 0x40a   : > { %v9007_v34 = vpop.f32.mrf.mxu1 }
 0x40b   : > { %v1148_v35 = vsel %vm1144_vm6, %v9007_v34, -inf }
 0x40c   : > { %1149 = vmax.xlane.f32.xlu1 %v1148_v35  ;;  %v1105_v36 = vpop.f32.mrf.mxu1 }
 0x40d   : > { %v1145_v37 = vsel %vm1144_vm6, %v1105_v36, -inf }
 0x40e   : > { %1146 = vmax.xlane.f32.xlu0 %v1145_v37  ;;  %v11471_v40 = vpop.f32.mrf.mxu1 }
 0x40f   : > { %v1154_v44 = vsel %vm1144_vm6, %v11471_v40, -inf }
 0x410   : > { %v11473_v41 = vpop.f32.mrf.mxu1 }
 0x411   : > { %v1151_v42 = vsel %vm1144_vm6, %v11473_v41, -inf }
 0x412   : > { %v11475_v20 = vpop.f32.mrf.mxu1 }
 0x413   : > { %v1160_v46 = vsel %vm1144_vm6, %v11475_v20, -inf }
 0x414   : > { %v11479_v43 = vpop.f32.mrf.mxu1 }
 0x415   : > { %v1157_v45 = vsel %vm1144_vm6, %v11479_v43, -inf }
 0x417   : > { %v11487_v28 = vpop.f32.mrf.mxu1 }
 0x418   : > { %v1166_v21 = vsel %vm1144_vm6, %v11487_v28, -inf }
 0x419   : > { %v11501_v47 = vpop.f32.mrf.mxu1 }
 0x41a   : > { %v1163_v50 = vsel %vm1144_vm6, %v11501_v47, -inf }
 0x41d   : > { %1435 = vrot.lane.b32.xlu1 %v11287_v8, %s10852_s8 }
 0x424   : > { %1437 = vrot.lane.b32.xlu0 %v11274_v4, %s10852_s8 }
 0x441   : > { %1152 = vmax.xlane.f32.xlu1 %v1151_v42 }
 0x443   : > { %1155 = vmax.xlane.f32.xlu0 %v1154_v44 }
 0x445   : > { %1158 = vmax.xlane.f32.xlu1 %v1157_v45 }
 0x447   : > { %1161 = vmax.xlane.f32.xlu0 %v1160_v46 }
 0x44b   : > { %1167 = vmax.xlane.f32.xlu0 %v1166_v21 }
 0x456   : > { %1431 = vrot.lane.b32.xlu1 %v11265_v60, %s10852_s8 }
 0x461   : > { %1433 = vrot.lane.b32.xlu0 %v11280_v6, %s10852_s8  ;;  %s10864_s8 = smov 83  }
 0x465   : > { %1415 = vrot.lane.b32.xlu0 %v11265_v60, %s10853_s13 }
 0x469   : > { %1419 = vrot.lane.b32.xlu0 %v11287_v8, %s10853_s13 }
 0x46d   : > { %1423 = vrot.lane.b32.xlu0 %v11283_v7, %s10853_s13 }
 0x471   : > { %1427 = vrot.lane.b32.xlu0 %v11271_v3, %s10853_s13 }
 0x475   : > { %1860 = vrot.lane.b32.xlu0 %v11269_v1, %s10854_s17 }
 0x47a   : > { %1164 = vmax.xlane.f32.xlu1 %v1163_v50 }
 0x48b   : > { %1417 = vrot.lane.b32.xlu1 %v11280_v6, %s10853_s13 }
 0x48f   : > { %1421 = vrot.lane.b32.xlu1 %v11274_v4, %s10853_s13 }
 0x493   : > { %1425 = vrot.lane.b32.xlu1 %v11277_v5, %s10853_s13 }
 0x495   : > { %v1150_v29 = vpop.xlane.xlu1 %1149 }
 0x496   : > { %v1170_v53 = vsub.f32 %v9007_v34, %v1150_v29 }
 0x497   : > { %v1147_v38 = vpop.xlane.xlu0 %1146  ;;  %1429 = vrot.lane.b32.xlu1 %v11269_v1, %s10853_s13  ;;  %s10865_s13 = smov 107  }
 0x498   : > { %v1169_v54 = vsub.f32 %v1105_v36, %v1147_v38  ;;  %v1179_v55 = vmul.f32 1.442695, %v1170_v53 }
 0x499   : > { %v1436_v58 = vpop.permute.xlu1 %1435 }
 0x49a   : > { %v1177_v56 = vmul.f32 1.442695, %v1169_v54 }
 0x49b   : > { %1858 = vrot.lane.b32.xlu1 %v11271_v3, %s10854_s17  ;;  %v1438_v48 = vpop.permute.xlu0 %1437 }
 0x49c   : > { %10164 = vpow2.f32 %v1177_v56 }
 0x49d   : > { %10166 = vpow2.f32 %v1179_v55 }
 0x49f   : > { %1856 = vrot.lane.b32.xlu1 %v11277_v5, %s10854_s17 }
 0x4a3   : > { %1854 = vrot.lane.b32.xlu1 %v11283_v7, %s10854_s17 }
 0x4a9   : > { %v11515_v57 = vpop.eup %10164 }
 0x4aa   : > { %v11517_v39 = vpop.eup %10166  ;;  %9033 = vmatprep.mubr.msk.f32.mxu0 %vm1144_vm6, %v11515_v57 }
 0x4ab   : > { %9034 = vmatmul.mubr.msk.f32.vlgmr.msra.gmra.mxu0 %vm1144_vm6, %v11517_v39 }
 0x4ac   : > { %9046 = vmatpush3.xpose.msk.msra.mxu0 %vm1006_vm1, %v11345_v25 }
 0x4ad   : > { %9047 = vmatprep.subr.msk.mxu0 %vm1006_vm1, %v1444_v51 }
 0x4b0   : > { %9048 = vmatpush3.xpose.msk.msra.mxu0 %vm1006_vm1, %v1444_v51 }
 0x4b1   : > { %9049 = vmatprep.subr.msk.mxu0 %vm1006_vm1, %v1442_v52 }
 0x4b4   : > { %9050 = vmatpush3.xpose.msk.msra.mxu0 %vm1006_vm1, %v1442_v52 }
 0x4b5   : > { %9051 = vmatprep.subr.msk.mxu0 %vm1006_vm1, %v11359_v27 }
 0x4b8   : > { %9052 = vmatpush3.xpose.msk.msra.mxu0 %vm1006_vm1, %v11359_v27 }
 0x4b9   : > { %9053 = vmatprep.subr.msk.mxu0 %vm1006_vm1, %v1438_v48 }
 0x4bc   : > { %9054 = vmatpush3.xpose.msk.msra.mxu0 %vm1006_vm1, %v1438_v48 }
 0x4bd   : > { %9055 = vmatprep.subr.msk.mxu0 %vm1006_vm1, %v1436_v58 }
 0x4c0   : > { %9056 = vmatpush3.xpose.msk.msra.mxu0 %vm1006_vm1, %v1436_v58 }
 0x4ca   : > { %v1153_v59 = vpop.xlane.xlu1 %1152 }
 0x4cb   : > { %v1171_v61 = vsub.f32 %v11473_v41, %v1153_v59 }
 0x4cc   : > { %v1156_v49 = vpop.xlane.xlu0 %1155 }
 0x4cd   : > { %v1181_v62 = vmul.f32 1.442695, %v1171_v61  ;;  %v1172_v63 = vsub.f32 %v11471_v40, %v1156_v49 }
 0x4ce   : > { %v1159_v0 = vpop.xlane.xlu1 %1158 }
 0x4cf   : > { %10168 = vpow2.f32 %v1181_v62  ;;  %v1183_v2 = vmul.f32 1.442695, %v1172_v63  ;;  %v1173_v9 = vsub.f32 %v11479_v43, %v1159_v0 }
 0x4d0   : > { %v1162_v10 = vpop.xlane.xlu0 %1161 }
 0x4d1   : > { %10170 = vpow2.f32 %v1183_v2  ;;  %v1185_v12 = vmul.f32 1.442695, %v1173_v9  ;;  %v1174_v13 = vsub.f32 %v11475_v20, %v1162_v10 }
 0x4d2   : > { %v1432_v19 = vpop.permute.xlu1 %1431 }
 0x4d3   : > { %10172 = vpow2.f32 %v1185_v12  ;;  %v1187_v15 = vmul.f32 1.442695, %v1174_v13 }
 0x4d4   : > { %v1168_v16 = vpop.xlane.xlu0 %1167 }
 0x4d5   : > { %10174 = vpow2.f32 %v1187_v15  ;;  %v1176_v42 = vsub.f32 %v11487_v28, %v1168_v16 }
 0x4d7   : > { %v1191_v45 = vmul.f32 1.442695, %v1176_v42 }
 0x4d8   : > { %v1434_v18 = vpop.permute.xlu0 %1433 }
 0x4d9   : > { %9057 = vmatprep.subr.msk.mxu0 %vm1006_vm1, %v1434_v18 }
 0x4da   : > { %9058 = vmatpush3.xpose.msk.msra.mxu0 %vm1006_vm1, %v1434_v18 }
 0x4db   : > { %9059 = vmatprep.subr.msk.mxu0 %vm1006_vm1, %v1432_v19 }
 0x4dc   : > { %v11546_v24 = vpop.eup %10168  ;;  %v1416_v25 = vpop.permute.xlu0 %1415 }
 0x4dd   : > { %9036 = vmatprep.mubr.msk.f32.mxu0 %vm1144_vm6, %v11546_v24 }
 0x4de   : > { %v11554_v34 = vpop.eup %10170  ;;  %9060 = vmatpush3.xpose.msk.msra.mxu0 %vm1006_vm1, %v1432_v19 }
 0x4df   : > { %9037 = vmatmul.mubr.msk.f32.gmra.mxu0 %vm1144_vm6, %v11554_v34  ;;  %9129 = vmatprep.subr.msk.mxu0 %vm11548_vm9, %v11318_v17 }
 0x4e0   : > { %v11562_v35 = vpop.eup %10172  ;;  %v1420_v36 = vpop.permute.xlu0 %1419 }
 0x4e1   : > { %9039 = vmatprep.mubr.msk.f32.mxu0 %vm1144_vm6, %v11562_v35 }
 0x4e2   : > { %v11566_v37 = vpop.eup %10174 }
 0x4e3   : > { %9040 = vmatmul.mubr.msk.f32.gmra.mxu0 %vm1144_vm6, %v11566_v37 }
 0x4e4   : > { %v1424_v40 = vpop.permute.xlu0 %1423 }
 0x4e8   : > { %v1428_v41 = vpop.permute.xlu0 %1427 }
 0x4ec   : > { %v11570_v20 = vpop.permute.xlu0 %1860 }
 0x4ed   : > { %9101 = vmatprep.subr.msk.mxu1 %vm1006_vm1, %v11570_v20 }
 0x503   : > { %v1165_v43 = vpop.xlane.xlu1 %1164 }
 0x504   : > { %v1175_v44 = vsub.f32 %v11501_v47, %v1165_v43 }
 0x506   : > { %v1189_v46 = vmul.f32 1.442695, %v1175_v44 }
 0x507   : > { %v1418_v21 = vpop.permute.xlu1 %1417 }
 0x508   : > { %10176 = vpow2.f32 %v1189_v46 }
 0x509   : > { %10178 = vpow2.f32 %v1191_v45 }
 0x50b   : > { %v1422_v28 = vpop.permute.xlu1 %1421 }
 0x50f   : > { %v1426_v47 = vpop.permute.xlu1 %1425 }
 0x513   : > { %v1430_v52 = vpop.permute.xlu1 %1429 }
 0x515   : > { %v11576_v50 = vpop.eup %10176 }
 0x516   : > { %14582 = vst [vmem:[#allocation23_spill] sm:$0xff] %v11576_v50  ;;  %v11578_v51 = vpop.eup %10178  ;;  %9042 = vmatprep.mubr.msk.f32.mxu0 %vm1144_vm6, %v11576_v50 }
 0x517   : > { %14583 = vst [vmem:[#allocation24_spill] sm:$0xff] %v11578_v51  ;;  %9043 = vmatmul.mubr.msk.f32.gmra.mxu0 %vm1144_vm6, %v11578_v51  ;;  %v1859_v27 = vpop.permute.xlu1 %1858 }
 0x518   : > { %9061 = vmatprep.mubr.msk.f32.mxu0 %vm1006_vm1, %v1416_v25 }
 0x51b   : > { %9062 = vmatmul.mubr.msk.f32.vlgmr.msra.gmra.mxu0 %vm1006_vm1, %v1418_v21 }
 0x51c   : > { %9130 = vmatpush3.msk.msra.mxu0 %vm11548_vm9, %v11318_v17  ;;  %9064 = vmatprep.mubr.msk.f32.mxu0 %vm1006_vm1, %v1420_v36  ;;  %v1857_v36 = vpop.permute.xlu1 %1856 }
 0x51d   : > { %9131 = vmatprep.subr.msk.mxu0 %vm11548_vm9, %v11365_v30 }
 0x51e   : > { %9132 = vmatpush3.msk.msra.mxu0 %vm11548_vm9, %v11365_v30 }
 0x51f   : > { %9133 = vmatprep.subr.msk.mxu0 %vm11548_vm9, %v11350_v26  ;;  %9065 = vmatmul.mubr.msk.f32.gmra.mxu0 %vm1006_vm1, %v1422_v28 }
 0x520   : > { %9134 = vmatpush3.msk.msra.mxu0 %vm11548_vm9, %v11350_v26  ;;  %9067 = vmatprep.mubr.msk.f32.mxu0 %vm1006_vm1, %v1424_v40  ;;  %v1855_v40 = vpop.permute.xlu1 %1854 }
 0x521   : > { %9135 = vmatprep.subr.msk.mxu0 %vm11548_vm9, %v11367_v31 }
 0x522   : > { %9136 = vmatpush3.msk.msra.mxu0 %vm11548_vm9, %v11367_v31 }
 0x523   : > { %9137 = vmatprep.subr.msk.mxu0 %vm11548_vm9, %v11331_v22  ;;  %9068 = vmatmul.mubr.msk.f32.gmra.mxu0 %vm1006_vm1, %v1426_v47 }
 0x524   : > { %9138 = vmatpush3.msk.msra.mxu0 %vm11548_vm9, %v11331_v22  ;;  %9070 = vmatprep.mubr.msk.f32.mxu0 %vm1006_vm1, %v1428_v41 }
 0x525   : > { %9139 = vmatprep.subr.msk.mxu0 %vm11548_vm9, %v11403_v32 }
 0x526   : > { %9140 = vmatpush3.msk.msra.mxu0 %vm11548_vm9, %v11403_v32 }
 0x527   : > { %9141 = vmatprep.subr.msk.mxu0 %vm11548_vm9, %v11337_v23  ;;  %9071 = vmatmul.mubr.msk.f32.gmra.mxu0 %vm1006_vm1, %v1430_v52 }
 0x528   : > { %9142 = vmatpush3.msk.msra.mxu0 %vm11548_vm9, %v11337_v23 }
 0x529   : > { %9143 = vmatprep.subr.msk.mxu0 %vm11548_vm9, %v11440_v33 }
 0x52a   : > { %9144 = vmatpush3.msk.msra.mxu0 %vm11548_vm9, %v11440_v33  ;;  %vm4162_vm9 = vcmp.ge.s32.totalorder %v11312_v14, 42 }
 0x52b   : > { %vm12478_vm11 = vmand %vm4162_vm9, %vm4163_vm10 }
 0x56b   : > { %v11637_v29 = vpop.f32.mrf.mxu0 }
 0x56c   : > { %14584 = vst [vmem:[#allocation25_spill] sm:$0xff] %v11637_v29 }
 0x56d   : > { %v11639_v53 = vpop.f32.mrf.mxu0 }
 0x56e   : > { %14585 = vst [vmem:[#allocation26_spill] sm:$0xff] %v11639_v53 }
 0x59f   : > { %v11641_v38 = vpop.f32.mrf.mxu0 }
 0x5a0   : > { %14586 = vst [vmem:[#allocation27_spill] sm:$0xff] %v11641_v38 }
 0x5a1   : > { %v11643_v54 = vpop.f32.mrf.mxu0 }
 0x5a2   : > { %14587 = vst [vmem:[#allocation28_spill] sm:$0xff] %v11643_v54 }
 0x5a3   : > { %v11645_v55 = vpop.f32.mrf.mxu0 }
 0x5a4   : > { %14588 = vst [vmem:[#allocation29_spill] sm:$0xff] %v11645_v55 }
 0x5a5   : > { %v11647_v56 = vpop.f32.mrf.mxu0 }
 0x5a6   : > { %14589 = vst [vmem:[#allocation30_spill] sm:$0xff] %v11647_v56 }
 0x5d7   : > { %v11649_v48 = vpop.f32.mrf.mxu0 }
 0x5d8   : > { %14590 = vst [vmem:[#allocation31_spill] sm:$0xff] %v11649_v48 }
 0x5d9   : > { %v11651_v58 = vpop.f32.mrf.mxu0 }
 0x5da   : > { %14591 = vst [vmem:[#allocation32_spill] sm:$0xff] %v11651_v58 }
 0x5db   : > { %v9063_v59 = vpop.f32.mrf.mxu0 }
 0x5dc   : > { %v1587_v61 = vsel %vm1144_vm6, %v9063_v59, -inf }
 0x5dd   : > { %1588 = vmax.xlane.f32.xlu1 %v1587_v61  ;;  %v1545_v49 = vpop.f32.mrf.mxu0 }
 0x5de   : > { %v1584_v62 = vsel %vm1144_vm6, %v1545_v49, -inf }
 0x5df   : > { %1585 = vmax.xlane.f32.xlu0 %v1584_v62  ;;  %v11659_v63 = vpop.f32.mrf.mxu0 }
 0x5e0   : > { %v1593_v13 = vsel %vm1144_vm6, %v11659_v63, -inf }
 0x5e1   : > { %v11661_v0 = vpop.f32.mrf.mxu0 }
 0x5e2   : > { %v1590_v16 = vsel %vm1144_vm6, %v11661_v0, -inf }
 0x5e3   : > { %v11663_v2 = vpop.f32.mrf.mxu0 }
 0x5e4   : > { %v1599_v10 = vsel %vm1144_vm6, %v11663_v2, -inf }
 0x5e5   : > { %v11665_v9 = vpop.f32.mrf.mxu0 }
 0x5e6   : > { %v1596_v18 = vsel %vm1144_vm6, %v11665_v9, -inf }
 0x5e7   : > { %v11669_v12 = vpop.f32.mrf.mxu0 }
 0x5e8   : > { %v1605_v15 = vsel %vm1144_vm6, %v11669_v12, -inf }
 0x5e9   : > { %v11679_v19 = vpop.f32.mrf.mxu0 }
 0x5ea   : > { %v1602_v25 = vsel %vm1144_vm6, %v11679_v19, -inf }
 0x5ee   : > { %1850 = vrot.lane.b32.xlu1 %v11287_v8, %s10854_s17 }
 0x5f5   : > { %1852 = vrot.lane.b32.xlu0 %v11274_v4, %s10854_s17 }
 0x612   : > { %1600 = vmax.xlane.f32.xlu1 %v1599_v10 }
 0x614   : > { %1594 = vmax.xlane.f32.xlu0 %v1593_v13 }
 0x616   : > { %1606 = vmax.xlane.f32.xlu1 %v1605_v15 }
 0x618   : > { %1591 = vmax.xlane.f32.xlu0 %v1590_v16 }
 0x61c   : > { %1597 = vmax.xlane.f32.xlu0 %v1596_v18 }
 0x620   : > { %1603 = vmax.xlane.f32.xlu0 %v1602_v25 }
 0x627   : > { %1846 = vrot.lane.b32.xlu1 %v11265_v60, %s10854_s17 }
 0x62b   : > { %1832 = vrot.lane.b32.xlu1 %v11280_v6, %s10855_s4 }
 0x62f   : > { %1836 = vrot.lane.b32.xlu1 %v11274_v4, %s10855_s4 }
 0x633   : > { %1840 = vrot.lane.b32.xlu1 %v11277_v5, %s10855_s4 }
 0x636   : > { %1848 = vrot.lane.b32.xlu0 %v11280_v6, %s10854_s17  ;;  %s14786_s17 = sld [smem:[#allocation101_spill]] }
 0x637   : > { %1844 = vrot.lane.b32.xlu1 %v11269_v1, %s10855_s4 }
 0x63a   : > { %1830 = vrot.lane.b32.xlu0 %v11265_v60, %s10855_s4 }
 0x63b   : > { %2273 = vrot.lane.b32.xlu1 %v11271_v3, %s10856_s7 }
 0x63e   : > { %1834 = vrot.lane.b32.xlu0 %v11287_v8, %s10855_s4 }
 0x63f   : > { %2271 = vrot.lane.b32.xlu1 %v11277_v5, %s10856_s7 }
 0x642   : > { %1838 = vrot.lane.b32.xlu0 %v11283_v7, %s10855_s4 }
 0x643   : > { %2269 = vrot.lane.b32.xlu1 %v11283_v7, %s10856_s7 }
 0x646   : > { %1842 = vrot.lane.b32.xlu0 %v11271_v3, %s10855_s4  ;;  %s10866_s4 = smov 96  }
 0x64a   : > { %2275 = vrot.lane.b32.xlu0 %v11269_v1, %s10856_s7 }
 0x666   : > { %v1589_v41 = vpop.xlane.xlu1 %1588 }
 0x667   : > { %v1609_v42 = vsub.f32 %v9063_v59, %v1589_v41 }
 0x668   : > { %v1586_v43 = vpop.xlane.xlu0 %1585 }
 0x669   : > { %v1608_v44 = vsub.f32 %v1545_v49, %v1586_v43  ;;  %v1618_v45 = vmul.f32 1.442695, %v1609_v42 }
 0x66a   : > { %v1851_v52 = vpop.permute.xlu1 %1850 }
 0x66b   : > { %v1616_v46 = vmul.f32 1.442695, %v1608_v44 }
 0x66c   : > { %v1853_v47 = vpop.permute.xlu0 %1852 }
 0x66d   : > { %10180 = vpow2.f32 %v1616_v46 }
 0x66e   : > { %10182 = vpow2.f32 %v1618_v45 }
 0x67a   : > { %v11703_v21 = vpop.eup %10180 }
 0x67b   : > { %v11705_v28 = vpop.eup %10182  ;;  %9089 = vmatprep.mubr.msk.f32.mxu1 %vm1144_vm6, %v11703_v21 }
 0x67c   : > { %9090 = vmatmul.mubr.msk.f32.vlgmr.msra.gmra.mxu1 %vm1144_vm6, %v11705_v28 }
 0x67d   : > { %9102 = vmatpush3.xpose.msk.msra.mxu1 %vm1006_vm1, %v11570_v20 }
 0x67e   : > { %9103 = vmatprep.subr.msk.mxu1 %vm1006_vm1, %v1859_v27 }
 0x681   : > { %9104 = vmatpush3.xpose.msk.msra.mxu1 %vm1006_vm1, %v1859_v27 }
 0x682   : > { %9105 = vmatprep.subr.msk.mxu1 %vm1006_vm1, %v1857_v36 }
 0x685   : > { %9106 = vmatpush3.xpose.msk.msra.mxu1 %vm1006_vm1, %v1857_v36 }
 0x686   : > { %9107 = vmatprep.subr.msk.mxu1 %vm1006_vm1, %v1855_v40 }
 0x689   : > { %9108 = vmatpush3.xpose.msk.msra.mxu1 %vm1006_vm1, %v1855_v40 }
 0x68a   : > { %9109 = vmatprep.subr.msk.mxu1 %vm1006_vm1, %v1853_v47 }
 0x68d   : > { %9110 = vmatpush3.xpose.msk.msra.mxu1 %vm1006_vm1, %v1853_v47 }
 0x68e   : > { %9111 = vmatprep.subr.msk.mxu1 %vm1006_vm1, %v1851_v52 }
 0x691   : > { %9112 = vmatpush3.xpose.msk.msra.mxu1 %vm1006_vm1, %v1851_v52 }
 0x69b   : > { %v1601_v59 = vpop.xlane.xlu1 %1600 }
 0x69c   : > { %v1613_v10 = vsub.f32 %v11663_v2, %v1601_v59 }
 0x69d   : > { %v1595_v20 = vpop.xlane.xlu0 %1594 }
 0x69e   : > { %v1611_v61 = vsub.f32 %v11659_v63, %v1595_v20  ;;  %v1626_v27 = vmul.f32 1.442695, %v1613_v10 }
 0x69f   : > { %v1607_v15 = vpop.xlane.xlu1 %1606 }
 0x6a0   : > { %v1622_v13 = vmul.f32 1.442695, %v1611_v61  ;;  %v1615_v36 = vsub.f32 %v11669_v12, %v1607_v15 }
 0x6a1   : > { %v1592_v49 = vpop.xlane.xlu0 %1591 }
 0x6a2   : > { %v1610_v62 = vsub.f32 %v11661_v0, %v1592_v49  ;;  %v1630_v0 = vmul.f32 1.442695, %v1615_v36 }
 0x6a4   : > { %v1620_v16 = vmul.f32 1.442695, %v1610_v62 }
 0x6a5   : > { %v1598_v18 = vpop.xlane.xlu0 %1597 }
 0x6a6   : > { %10184 = vpow2.f32 %v1620_v16  ;;  %v1612_v25 = vsub.f32 %v11665_v9, %v1598_v18  ;;  %v1847_v9 = vpop.permute.xlu1 %1846 }
 0x6a7   : > { %10186 = vpow2.f32 %v1622_v13 }
 0x6a8   : > { %v1624_v40 = vmul.f32 1.442695, %v1612_v25 }
 0x6a9   : > { %v1604_v41 = vpop.xlane.xlu0 %1603 }
 0x6aa   : > { %10188 = vpow2.f32 %v1624_v40  ;;  %v1614_v63 = vsub.f32 %v11679_v19, %v1604_v41  ;;  %v1833_v20 = vpop.permute.xlu1 %1832 }
 0x6ab   : > { %10190 = vpow2.f32 %v1626_v27 }
 0x6ac   : > { %v1628_v42 = vmul.f32 1.442695, %v1614_v63 }
 0x6ad   : > { %v1849_v2 = vpop.permute.xlu0 %1848 }
 0x6ae   : > { %10192 = vpow2.f32 %v1628_v42  ;;  %9113 = vmatprep.subr.msk.mxu1 %vm1006_vm1, %v1849_v2  ;;  %v1837_v62 = vpop.permute.xlu1 %1836 }
 0x6af   : > { %10194 = vpow2.f32 %v1630_v0  ;;  %9114 = vmatpush3.xpose.msk.msra.mxu1 %vm1006_vm1, %v1849_v2 }
 0x6b0   : > { %9115 = vmatprep.subr.msk.mxu1 %vm1006_vm1, %v1847_v9 }
 0x6b1   : > { %v1831_v12 = vpop.permute.xlu0 %1830 }
 0x6b2   : > { %v1841_v13 = vpop.permute.xlu1 %1840 }
 0x6b3   : > { %v11738_v43 = vpop.eup %10184  ;;  %9116 = vmatpush3.xpose.msk.msra.mxu1 %vm1006_vm1, %v1847_v9 }
 0x6b4   : > { %v11741_v44 = vpop.eup %10186  ;;  %9092 = vmatprep.mubr.msk.f32.mxu1 %vm1144_vm6, %v11738_v43  ;;  %9185 = vmatprep.subr.msk.mxu1 %vm11734_vm12, %v11318_v17 }
 0x6b5   : > { %v1835_v45 = vpop.permute.xlu0 %1834  ;;  %9093 = vmatmul.mubr.msk.f32.gmra.mxu1 %vm1144_vm6, %v11741_v44 }
 0x6b6   : > { %v1845_v15 = vpop.permute.xlu1 %1844 }
 0x6b7   : > { %v11750_v46 = vpop.eup %10188 }
 0x6b8   : > { %v11752_v47 = vpop.eup %10190  ;;  %9095 = vmatprep.mubr.msk.f32.mxu1 %vm1144_vm6, %v11750_v46 }
 0x6b9   : > { %v1839_v52 = vpop.permute.xlu0 %1838  ;;  %9096 = vmatmul.mubr.msk.f32.gmra.mxu1 %vm1144_vm6, %v11752_v47 }
 0x6bb   : > { %v11758_v59 = vpop.eup %10192 }
 0x6bc   : > { %14594 = vst [vmem:[#allocation33_spill] sm:$0xff] %v11758_v59  ;;  %v11760_v61 = vpop.eup %10194  ;;  %9098 = vmatprep.mubr.msk.f32.mxu1 %vm1144_vm6, %v11758_v59 }
 0x6bd   : > { %14595 = vst [vmem:[#allocation34_spill] sm:$0xff] %v11760_v61  ;;  %v1843_v49 = vpop.permute.xlu0 %1842  ;;  %9099 = vmatmul.mubr.msk.f32.gmra.mxu1 %vm1144_vm6, %v11760_v61 }
 0x6be   : > { %9117 = vmatprep.mubr.msk.f32.mxu1 %vm1006_vm1, %v1831_v12 }
 0x6c1   : > { %v11767_v10 = vpop.permute.xlu0 %2275  ;;  %9118 = vmatmul.mubr.msk.f32.vlgmr.msra.gmra.mxu1 %vm1006_vm1, %v1833_v20 }
 0x6c2   : > { %9186 = vmatpush3.msk.msra.mxu1 %vm11734_vm12, %v11318_v17  ;;  %9120 = vmatprep.mubr.msk.f32.mxu1 %vm1006_vm1, %v1835_v45 }
 0x6c3   : > { %9157 = vmatprep.subr.msk.mxu0 %vm1006_vm1, %v11767_v10  ;;  %9187 = vmatprep.subr.msk.mxu1 %vm11734_vm12, %v11365_v30 }
 0x6c4   : > { %9188 = vmatpush3.msk.msra.mxu1 %vm11734_vm12, %v11365_v30 }
 0x6c5   : > { %9189 = vmatprep.subr.msk.mxu1 %vm11734_vm12, %v11350_v26  ;;  %9121 = vmatmul.mubr.msk.f32.gmra.mxu1 %vm1006_vm1, %v1837_v62 }
 0x6c6   : > { %9190 = vmatpush3.msk.msra.mxu1 %vm11734_vm12, %v11350_v26  ;;  %9123 = vmatprep.mubr.msk.f32.mxu1 %vm1006_vm1, %v1839_v52 }
 0x6c7   : > { %9191 = vmatprep.subr.msk.mxu1 %vm11734_vm12, %v11367_v31 }
 0x6c8   : > { %9192 = vmatpush3.msk.msra.mxu1 %vm11734_vm12, %v11367_v31 }
 0x6c9   : > { %9193 = vmatprep.subr.msk.mxu1 %vm11734_vm12, %v11331_v22  ;;  %9124 = vmatmul.mubr.msk.f32.gmra.mxu1 %vm1006_vm1, %v1841_v13 }
 0x6ca   : > { %9194 = vmatpush3.msk.msra.mxu1 %vm11734_vm12, %v11331_v22  ;;  %9126 = vmatprep.mubr.msk.f32.mxu1 %vm1006_vm1, %v1843_v49 }
 0x6cb   : > { %9195 = vmatprep.subr.msk.mxu1 %vm11734_vm12, %v11403_v32 }
 0x6cc   : > { %9196 = vmatpush3.msk.msra.mxu1 %vm11734_vm12, %v11403_v32 }
 0x6cd   : > { %9197 = vmatprep.subr.msk.mxu1 %vm11734_vm12, %v11337_v23  ;;  %9127 = vmatmul.mubr.msk.f32.gmra.mxu1 %vm1006_vm1, %v1845_v15 }
 0x6ce   : > { %9198 = vmatpush3.msk.msra.mxu1 %vm11734_vm12, %v11337_v23 }
 0x6cf   : > { %9199 = vmatprep.subr.msk.mxu1 %vm11734_vm12, %v11440_v33 }
 0x6d0   : > { %9200 = vmatpush3.msk.msra.mxu1 %vm11734_vm12, %v11440_v33 }
 0x73c   : > { %v11823_v16 = vpop.f32.mrf.mxu1 }
 0x73d   : > { %14596 = vst [vmem:[#allocation35_spill] sm:$0xff] %v11823_v16 }
 0x73e   : > { %v11825_v18 = vpop.f32.mrf.mxu1 }
 0x73f   : > { %14597 = vst [vmem:[#allocation36_spill] sm:$0xff] %v11825_v18 }
 0x775   : > { %v11827_v25 = vpop.f32.mrf.mxu1 }
 0x776   : > { %14598 = vst [vmem:[#allocation37_spill] sm:$0xff] %v11827_v25 }
 0x777   : > { %v11829_v27 = vpop.f32.mrf.mxu1 }
 0x778   : > { %14599 = vst [vmem:[#allocation38_spill] sm:$0xff] %v11829_v27 }
 0x779   : > { %v11831_v36 = vpop.f32.mrf.mxu1 }
 0x77a   : > { %14600 = vst [vmem:[#allocation39_spill] sm:$0xff] %v11831_v36 }
 0x77b   : > { %v11833_v40 = vpop.f32.mrf.mxu1 }
 0x77c   : > { %14601 = vst [vmem:[#allocation40_spill] sm:$0xff] %v11833_v40 }
 0x77d   : > { %v11835_v41 = vpop.f32.mrf.mxu1 }
 0x77e   : > { %14602 = vst [vmem:[#allocation41_spill] sm:$0xff] %v11835_v41 }
 0x77f   : > { %v11837_v63 = vpop.f32.mrf.mxu1 }
 0x780   : > { %14603 = vst [vmem:[#allocation42_spill] sm:$0xff] %v11837_v63 }
 0x781   : > { %v9119_v0 = vpop.f32.mrf.mxu1 }
 0x782   : > { %v2002_v42 = vsel %vm1144_vm6, %v9119_v0, -inf }
 0x783   : > { %2003 = vmax.xlane.f32.xlu1 %v2002_v42  ;;  %v1960_v2 = vpop.f32.mrf.mxu1 }
 0x784   : > { %v1999_v9 = vsel %vm1144_vm6, %v1960_v2, -inf }
 0x785   : > { %2000 = vmax.xlane.f32.xlu0 %v1999_v9  ;;  %v11845_v12 = vpop.f32.mrf.mxu1 }
 0x786   : > { %v2008_v62 = vsel %vm1144_vm6, %v11845_v12, -inf }
 0x787   : > { %v11847_v19 = vpop.f32.mrf.mxu1 }
 0x788   : > { %v2005_v15 = vsel %vm1144_vm6, %v11847_v19, -inf }
 0x789   : > { %v11849_v45 = vpop.f32.mrf.mxu1 }
 0x78a   : > { %v2014_v20 = vsel %vm1144_vm6, %v11849_v45, -inf }
 0x78b   : > { %v11851_v52 = vpop.f32.mrf.mxu1 }
 0x78c   : > { %v2011_v42 = vsel %vm1144_vm6, %v11851_v52, -inf }
 0x78d   : > { %v11855_v49 = vpop.f32.mrf.mxu1 }
 0x78e   : > { %v2020_v13 = vsel %vm1144_vm6, %v11855_v49, -inf }
 0x78f   : > { %v11865_v9 = vpop.f32.mrf.mxu1 }
 0x794   : > { %2265 = vrot.lane.b32.xlu1 %v11287_v8, %s10856_s7 }
 0x79b   : > { %2267 = vrot.lane.b32.xlu0 %v11274_v4, %s10856_s7 }
 0x7b8   : > { %2015 = vmax.xlane.f32.xlu1 %v2014_v20  ;;  %v2017_v20 = vsel %vm1144_vm6, %v11865_v9, -inf }
 0x7ba   : > { %2009 = vmax.xlane.f32.xlu0 %v2008_v62  ;;  %v2274_v62 = vpop.permute.xlu1 %2273 }
 0x7bc   : > { %2021 = vmax.xlane.f32.xlu1 %v2020_v13 }
 0x7be   : > { %2006 = vmax.xlane.f32.xlu0 %v2005_v15  ;;  %v2272_v13 = vpop.permute.xlu1 %2271 }
 0x7c2   : > { %2012 = vmax.xlane.f32.xlu0 %v2011_v42  ;;  %v2270_v15 = vpop.permute.xlu1 %2269 }
 0x7c6   : > { %2018 = vmax.xlane.f32.xlu0 %v2017_v20 }
 0x7cd   : > { %2261 = vrot.lane.b32.xlu1 %v11265_v60, %s10856_s7 }
 0x7d1   : > { %2247 = vrot.lane.b32.xlu1 %v11280_v6, %s10857_s20 }
 0x7d5   : > { %2251 = vrot.lane.b32.xlu1 %v11274_v4, %s10857_s20 }
 0x7d9   : > { %2255 = vrot.lane.b32.xlu1 %v11277_v5, %s10857_s20 }
 0x7dc   : > { %2263 = vrot.lane.b32.xlu0 %v11280_v6, %s10856_s7  ;;  %s10868_s7 = smov [#allocation16]  }
 0x7dd   : > { %2259 = vrot.lane.b32.xlu1 %v11269_v1, %s10857_s20 }
 0x7e0   : > { %2245 = vrot.lane.b32.xlu0 %v11265_v60, %s10857_s20 }
 0x7e1   : > { %2688 = vrot.lane.b32.xlu1 %v11271_v3, %s10858_s0 }
 0x7e4   : > { %2249 = vrot.lane.b32.xlu0 %v11287_v8, %s10857_s20 }
 0x7e5   : > { %2686 = vrot.lane.b32.xlu1 %v11277_v5, %s10858_s0 }
 0x7e8   : > { %2253 = vrot.lane.b32.xlu0 %v11283_v7, %s10857_s20 }
 0x7e9   : > { %2684 = vrot.lane.b32.xlu1 %v11283_v7, %s10858_s0 }
 0x7ec   : > { %2257 = vrot.lane.b32.xlu0 %v11271_v3, %s10857_s20  ;;  %s10762_s20 = sshll.u32 %s10868_s7, 4  ;;  %s10763_s20 = int_to_ptr.vmem [resolvable:$false] %s10762_s20 }
 0x7f0   : > { %2690 = vrot.lane.b32.xlu0 %v11269_v1, %s10858_s0 }
 0x80c   : > { %v2004_v42 = vpop.xlane.xlu1 %2003 }
 0x80d   : > { %v2024_v20 = vsub.f32 %v9119_v0, %v2004_v42 }
 0x80e   : > { %v2001_v11 = vpop.xlane.xlu0 %2000 }
 0x80f   : > { %v2023_v63 = vsub.f32 %v1960_v2, %v2001_v11  ;;  %v2033_v48 = vmul.f32 1.442695, %v2024_v20 }
 0x811   : > { %v2031_v58 = vmul.f32 1.442695, %v2023_v63 }
 0x812   : > { %v2268_v11 = vpop.permute.xlu0 %2267 }
 0x813   : > { %10196 = vpow2.f32 %v2031_v58 }
 0x814   : > { %10198 = vpow2.f32 %v2033_v48  ;;  %v2266_v48 = vpop.permute.xlu1 %2265 }
 0x820   : > { %v11889_v41 = vpop.eup %10196 }
 0x821   : > { %v11891_v55 = vpop.eup %10198  ;;  %9145 = vmatprep.mubr.msk.f32.mxu0 %vm1144_vm6, %v11889_v41 }
 0x822   : > { %9146 = vmatmul.mubr.msk.f32.vlgmr.msra.gmra.mxu0 %vm1144_vm6, %v11891_v55 }
 0x823   : > { %9158 = vmatpush3.xpose.msk.msra.mxu0 %vm1006_vm1, %v11767_v10 }
 0x824   : > { %9159 = vmatprep.subr.msk.mxu0 %vm1006_vm1, %v2274_v62 }
 0x827   : > { %9160 = vmatpush3.xpose.msk.msra.mxu0 %vm1006_vm1, %v2274_v62 }
 0x828   : > { %9161 = vmatprep.subr.msk.mxu0 %vm1006_vm1, %v2272_v13 }
 0x82b   : > { %9162 = vmatpush3.xpose.msk.msra.mxu0 %vm1006_vm1, %v2272_v13 }
 0x82c   : > { %9163 = vmatprep.subr.msk.mxu0 %vm1006_vm1, %v2270_v15 }
 0x82f   : > { %9164 = vmatpush3.xpose.msk.msra.mxu0 %vm1006_vm1, %v2270_v15 }
 0x830   : > { %9165 = vmatprep.subr.msk.mxu0 %vm1006_vm1, %v2268_v11 }
 0x833   : > { %9166 = vmatpush3.xpose.msk.msra.mxu0 %vm1006_vm1, %v2268_v11 }
 0x834   : > { %9167 = vmatprep.subr.msk.mxu0 %vm1006_vm1, %v2266_v48 }
 0x837   : > { %9168 = vmatpush3.xpose.msk.msra.mxu0 %vm1006_vm1, %v2266_v48 }
 0x841   : > { %v2016_v10 = vpop.xlane.xlu1 %2015 }
 0x842   : > { %v2028_v62 = vsub.f32 %v11849_v45, %v2016_v10 }
 0x843   : > { %v2010_v58 = vpop.xlane.xlu0 %2009 }
 0x844   : > { %v2026_v63 = vsub.f32 %v11845_v12, %v2010_v58  ;;  %v2041_v36 = vmul.f32 1.442695, %v2028_v62 }
 0x845   : > { %v2022_v15 = vpop.xlane.xlu1 %2021 }
 0x846   : > { %v2037_v13 = vmul.f32 1.442695, %v2026_v63  ;;  %v2030_v48 = vsub.f32 %v11855_v49, %v2022_v15 }
 0x847   : > { %v2007_v0 = vpop.xlane.xlu0 %2006 }
 0x848   : > { %v2025_v2 = vsub.f32 %v11847_v19, %v2007_v0  ;;  %v2045_v19 = vmul.f32 1.442695, %v2030_v48 }
 0x84a   : > { %v2035_v42 = vmul.f32 1.442695, %v2025_v2 }
 0x84b   : > { %v2013_v20 = vpop.xlane.xlu0 %2012 }
 0x84c   : > { %10200 = vpow2.f32 %v2035_v42  ;;  %v2027_v11 = vsub.f32 %v11851_v52, %v2013_v20  ;;  %v2262_v52 = vpop.permute.xlu1 %2261 }
 0x84d   : > { %10202 = vpow2.f32 %v2037_v13 }
 0x84e   : > { %v2039_v56 = vmul.f32 1.442695, %v2027_v11 }
 0x84f   : > { %v2019_v40 = vpop.xlane.xlu0 %2018 }
 0x850   : > { %10204 = vpow2.f32 %v2039_v56  ;;  %v2029_v12 = vsub.f32 %v11865_v9, %v2019_v40  ;;  %v2248_v2 = vpop.permute.xlu1 %2247 }
 0x851   : > { %10206 = vpow2.f32 %v2041_v36 }
 0x852   : > { %v2043_v58 = vmul.f32 1.442695, %v2029_v12 }
 0x853   : > { %v2264_v45 = vpop.permute.xlu0 %2263 }
 0x854   : > { %10208 = vpow2.f32 %v2043_v58  ;;  %9169 = vmatprep.subr.msk.mxu0 %vm1006_vm1, %v2264_v45  ;;  %v2252_v42 = vpop.permute.xlu1 %2251 }
 0x855   : > { %10210 = vpow2.f32 %v2045_v19  ;;  %9170 = vmatpush3.xpose.msk.msra.mxu0 %vm1006_vm1, %v2264_v45 }
 0x856   : > { %9171 = vmatprep.subr.msk.mxu0 %vm1006_vm1, %v2262_v52 }
 0x857   : > { %v2246_v56 = vpop.permute.xlu0 %2245 }
 0x858   : > { %v2256_v11 = vpop.permute.xlu1 %2255 }
 0x859   : > { %v11924_v36 = vpop.eup %10200  ;;  %9172 = vmatpush3.xpose.msk.msra.mxu0 %vm1006_vm1, %v2262_v52 }
 0x85a   : > { %v11927_v49 = vpop.eup %10202  ;;  %9148 = vmatprep.mubr.msk.f32.mxu0 %vm1144_vm6, %v11924_v36  ;;  %9241 = vmatprep.subr.msk.mxu0 %vm11920_vm15, %v11318_v17 }
 0x85b   : > { %v2250_v9 = vpop.permute.xlu0 %2249  ;;  %9149 = vmatmul.mubr.msk.f32.gmra.mxu0 %vm1144_vm6, %v11927_v49 }
 0x85c   : > { %v2260_v48 = vpop.permute.xlu1 %2259 }
 0x85d   : > { %v11936_v10 = vpop.eup %10204 }
 0x85e   : > { %14606 = vst [vmem:[#allocation43_spill] sm:$0xff] %v11936_v10  ;;  %v11938_v63 = vpop.eup %10206  ;;  %9151 = vmatprep.mubr.msk.f32.mxu0 %vm1144_vm6, %v11936_v10 }
 0x85f   : > { %v2254_v0 = vpop.permute.xlu0 %2253  ;;  %9152 = vmatmul.mubr.msk.f32.gmra.mxu0 %vm1144_vm6, %v11938_v63 }
 0x861   : > { %v11944_v62 = vpop.eup %10208 }
 0x862   : > { %14607 = vst [vmem:[#allocation44_spill] sm:$0xff] %v11944_v62  ;;  %v11946_v13 = vpop.eup %10210  ;;  %9154 = vmatprep.mubr.msk.f32.mxu0 %vm1144_vm6, %v11944_v62 }
 0x863   : > { %14608 = vst [vmem:[#allocation45_spill] sm:$0xff] %v11946_v13  ;;  %v2258_v15 = vpop.permute.xlu0 %2257  ;;  %9155 = vmatmul.mubr.msk.f32.gmra.mxu0 %vm1144_vm6, %v11946_v13 }
 0x864   : > { %9173 = vmatprep.mubr.msk.f32.mxu0 %vm1006_vm1, %v2246_v56 }
 0x867   : > { %v11953_v20 = vpop.permute.xlu0 %2690  ;;  %9174 = vmatmul.mubr.msk.f32.vlgmr.msra.gmra.mxu0 %vm1006_vm1, %v2248_v2 }
 0x868   : > { %9242 = vmatpush3.msk.msra.mxu0 %vm11920_vm15, %v11318_v17  ;;  %9176 = vmatprep.mubr.msk.f32.mxu0 %vm1006_vm1, %v2250_v9 }
 0x869   : > { %9213 = vmatprep.subr.msk.mxu1 %vm1006_vm1, %v11953_v20  ;;  %9243 = vmatprep.subr.msk.mxu0 %vm11920_vm15, %v11365_v30 }
 0x86a   : > { %9244 = vmatpush3.msk.msra.mxu0 %vm11920_vm15, %v11365_v30 }
 0x86b   : > { %9245 = vmatprep.subr.msk.mxu0 %vm11920_vm15, %v11350_v26  ;;  %9177 = vmatmul.mubr.msk.f32.gmra.mxu0 %vm1006_vm1, %v2252_v42 }
 0x86c   : > { %9246 = vmatpush3.msk.msra.mxu0 %vm11920_vm15, %v11350_v26  ;;  %9179 = vmatprep.mubr.msk.f32.mxu0 %vm1006_vm1, %v2254_v0 }
 0x86d   : > { %9247 = vmatprep.subr.msk.mxu0 %vm11920_vm15, %v11367_v31 }
 0x86e   : > { %9248 = vmatpush3.msk.msra.mxu0 %vm11920_vm15, %v11367_v31 }
 0x86f   : > { %9249 = vmatprep.subr.msk.mxu0 %vm11920_vm15, %v11331_v22  ;;  %9180 = vmatmul.mubr.msk.f32.gmra.mxu0 %vm1006_vm1, %v2256_v11 }
 0x870   : > { %9250 = vmatpush3.msk.msra.mxu0 %vm11920_vm15, %v11331_v22  ;;  %9182 = vmatprep.mubr.msk.f32.mxu0 %vm1006_vm1, %v2258_v15 }
 0x871   : > { %9251 = vmatprep.subr.msk.mxu0 %vm11920_vm15, %v11403_v32 }
 0x872   : > { %9252 = vmatpush3.msk.msra.mxu0 %vm11920_vm15, %v11403_v32 }
 0x873   : > { %9253 = vmatprep.subr.msk.mxu0 %vm11920_vm15, %v11337_v23  ;;  %9183 = vmatmul.mubr.msk.f32.gmra.mxu0 %vm1006_vm1, %v2260_v48 }
 0x874   : > { %9254 = vmatpush3.msk.msra.mxu0 %vm11920_vm15, %v11337_v23 }
 0x875   : > { %9255 = vmatprep.subr.msk.mxu0 %vm11920_vm15, %v11440_v33 }
 0x876   : > { %9256 = vmatpush3.msk.msra.mxu0 %vm11920_vm15, %v11440_v33 }
 0x8e2   : > { %v12009_v12 = vpop.f32.mrf.mxu0 }
 0x8e3   : > { %14609 = vst [vmem:[#allocation46_spill] sm:$0xff] %v12009_v12 }
 0x8e4   : > { %v12011_v19 = vpop.f32.mrf.mxu0 }
 0x8e5   : > { %14610 = vst [vmem:[#allocation47_spill] sm:$0xff] %v12011_v19 }
 0x91b   : > { %v12013_v58 = vpop.f32.mrf.mxu0 }
 0x91c   : > { %14611 = vst [vmem:[#allocation48_spill] sm:$0xff] %v12013_v58 }
 0x91d   : > { %v12015_v45 = vpop.f32.mrf.mxu0 }
 0x91e   : > { %14612 = vst [vmem:[#allocation49_spill] sm:$0xff] %v12015_v45 }
 0x91f   : > { %v12017_v52 = vpop.f32.mrf.mxu0 }
 0x920   : > { %14613 = vst [vmem:[#allocation50_spill] sm:$0xff] %v12017_v52 }
 0x921   : > { %v12019_v56 = vpop.f32.mrf.mxu0 }
 0x922   : > { %14614 = vst [vmem:[#allocation51_spill] sm:$0xff] %v12019_v56 }
 0x923   : > { %v12021_v9 = vpop.f32.mrf.mxu0 }
 0x924   : > { %14615 = vst [vmem:[#allocation52_spill] sm:$0xff] %v12021_v9 }
 0x925   : > { %v12023_v0 = vpop.f32.mrf.mxu0 }
 0x926   : > { %14616 = vst [vmem:[#allocation53_spill] sm:$0xff] %v12023_v0 }
 0x927   : > { %v9175_v2 = vpop.f32.mrf.mxu0 }
 0x928   : > { %v2417_v40 = vsel %vm1144_vm6, %v9175_v2, -inf }
 0x929   : > { %2418 = vmax.xlane.f32.xlu1 %v2417_v40  ;;  %v2375_v15 = vpop.f32.mrf.mxu0 }
 0x92a   : > { %v2414_v42 = vsel %vm1144_vm6, %v2375_v15, -inf }
 0x92b   : > { %2415 = vmax.xlane.f32.xlu0 %v2414_v42  ;;  %v12031_v11 = vpop.f32.mrf.mxu0 }
 0x92c   : > { %v2423_v42 = vsel %vm1144_vm6, %v12031_v11, -inf }
 0x92d   : > { %v12033_v48 = vpop.f32.mrf.mxu0 }
 0x92e   : > { %v2420_v58 = vsel %vm1144_vm6, %v12033_v48, -inf }
 0x92f   : > { %v12035_v9 = vpop.f32.mrf.mxu0 }
 0x930   : > { %v2429_v40 = vsel %vm1144_vm6, %v12035_v9, -inf }
 0x931   : > { %v12037_v0 = vpop.f32.mrf.mxu0 }
 0x932   : > { %v2426_v45 = vsel %vm1144_vm6, %v12037_v0, -inf }
 0x933   : > { %v12041_v56 = vpop.f32.mrf.mxu0 }
 0x934   : > { %v2435_v52 = vsel %vm1144_vm6, %v12041_v56, -inf }
 0x935   : > { %v12051_v25 = vpop.f32.mrf.mxu0 }
 0x93a   : > { %2680 = vrot.lane.b32.xlu1 %v11287_v8, %s10858_s0 }
 0x941   : > { %2682 = vrot.lane.b32.xlu0 %v11274_v4, %s10858_s0 }
 0x95e   : > { %2430 = vmax.xlane.f32.xlu1 %v2429_v40  ;;  %v2432_v40 = vsel %vm1144_vm6, %v12051_v25, -inf }
 0x960   : > { %2424 = vmax.xlane.f32.xlu0 %v2423_v42 }
 0x962   : > { %2436 = vmax.xlane.f32.xlu1 %v2435_v52 }
 0x964   : > { %2421 = vmax.xlane.f32.xlu0 %v2420_v58  ;;  %v2689_v58 = vpop.permute.xlu1 %2688 }
 0x968   : > { %2427 = vmax.xlane.f32.xlu0 %v2426_v45  ;;  %v2687_v45 = vpop.permute.xlu1 %2686 }
 0x96c   : > { %2433 = vmax.xlane.f32.xlu0 %v2432_v40  ;;  %v2685_v52 = vpop.permute.xlu1 %2684 }
 0x973   : > { %2676 = vrot.lane.b32.xlu1 %v11265_v60, %s10858_s0 }
 0x977   : > { %2662 = vrot.lane.b32.xlu1 %v11280_v6, %s10859_s24 }
 0x97b   : > { %2666 = vrot.lane.b32.xlu1 %v11274_v4, %s10859_s24 }
 0x97f   : > { %2670 = vrot.lane.b32.xlu1 %v11277_v5, %s10859_s24 }
 0x982   : > { %2678 = vrot.lane.b32.xlu0 %v11280_v6, %s10858_s0  ;;  %s14802_s0 = sld [smem:[#allocation103_spill]] }
 0x983   : > { %2674 = vrot.lane.b32.xlu1 %v11269_v1, %s10859_s24 }
 0x986   : > { %2660 = vrot.lane.b32.xlu0 %v11265_v60, %s10859_s24 }
 0x987   : > { %3103 = vrot.lane.b32.xlu1 %v11271_v3, %s10860_s21 }
 0x98a   : > { %2664 = vrot.lane.b32.xlu0 %v11287_v8, %s10859_s24 }
 0x98b   : > { %3101 = vrot.lane.b32.xlu1 %v11277_v5, %s10860_s21 }
 0x98e   : > { %2668 = vrot.lane.b32.xlu0 %v11283_v7, %s10859_s24 }
 0x98f   : > { %3099 = vrot.lane.b32.xlu1 %v11283_v7, %s10860_s21 }
 0x992   : > { %2672 = vrot.lane.b32.xlu0 %v11271_v3, %s10859_s24 }
 0x996   : > { %3105 = vrot.lane.b32.xlu0 %v11269_v1, %s10860_s21 }
 0x9b2   : > { %v2419_v42 = vpop.xlane.xlu1 %2418 }
 0x9b3   : > { %v2439_v40 = vsub.f32 %v9175_v2, %v2419_v42 }
 0x9b4   : > { %v2416_v38 = vpop.xlane.xlu0 %2415 }
 0x9b5   : > { %v2438_v54 = vsub.f32 %v2375_v15, %v2416_v38  ;;  %v2448_v27 = vmul.f32 1.442695, %v2439_v40 }
 0x9b7   : > { %v2446_v19 = vmul.f32 1.442695, %v2438_v54  ;;  %v2681_v54 = vpop.permute.xlu1 %2680 }
 0x9b8   : > { %v2683_v38 = vpop.permute.xlu0 %2682 }
 0x9b9   : > { %10212 = vpow2.f32 %v2446_v19 }
 0x9ba   : > { %10214 = vpow2.f32 %v2448_v27 }
 0x9c6   : > { %v12075_v12 = vpop.eup %10212 }
 0x9c7   : > { %v12077_v29 = vpop.eup %10214  ;;  %9201 = vmatprep.mubr.msk.f32.mxu1 %vm1144_vm6, %v12075_v12 }
 0x9c8   : > { %9202 = vmatmul.mubr.msk.f32.vlgmr.msra.gmra.mxu1 %vm1144_vm6, %v12077_v29 }
 0x9c9   : > { %9214 = vmatpush3.xpose.msk.msra.mxu1 %vm1006_vm1, %v11953_v20 }
 0x9ca   : > { %9215 = vmatprep.subr.msk.mxu1 %vm1006_vm1, %v2689_v58 }
 0x9cd   : > { %9216 = vmatpush3.xpose.msk.msra.mxu1 %vm1006_vm1, %v2689_v58 }
 0x9ce   : > { %9217 = vmatprep.subr.msk.mxu1 %vm1006_vm1, %v2687_v45 }
 0x9d1   : > { %9218 = vmatpush3.xpose.msk.msra.mxu1 %vm1006_vm1, %v2687_v45 }
 0x9d2   : > { %9219 = vmatprep.subr.msk.mxu1 %vm1006_vm1, %v2685_v52 }
 0x9d5   : > { %9220 = vmatpush3.xpose.msk.msra.mxu1 %vm1006_vm1, %v2685_v52 }
 0x9d6   : > { %9221 = vmatprep.subr.msk.mxu1 %vm1006_vm1, %v2683_v38 }
 0x9d9   : > { %9222 = vmatpush3.xpose.msk.msra.mxu1 %vm1006_vm1, %v2683_v38 }
 0x9da   : > { %9223 = vmatprep.subr.msk.mxu1 %vm1006_vm1, %v2681_v54 }
 0x9dd   : > { %9224 = vmatpush3.xpose.msk.msra.mxu1 %vm1006_vm1, %v2681_v54 }
 0x9e7   : > { %v2431_v20 = vpop.xlane.xlu1 %2430 }
 0x9e8   : > { %v2443_v58 = vsub.f32 %v12035_v9, %v2431_v20 }
 0x9e9   : > { %v2425_v27 = vpop.xlane.xlu0 %2424 }
 0x9ea   : > { %v2441_v19 = vsub.f32 %v12031_v11, %v2425_v27  ;;  %v2456_v16 = vmul.f32 1.442695, %v2443_v58 }
 0x9eb   : > { %v2437_v52 = vpop.xlane.xlu1 %2436 }
 0x9ec   : > { %v2452_v45 = vmul.f32 1.442695, %v2441_v19  ;;  %v2445_v54 = vsub.f32 %v12041_v56, %v2437_v52 }
 0x9ed   : > { %v2422_v2 = vpop.xlane.xlu0 %2421 }
 0x9ee   : > { %v2440_v15 = vsub.f32 %v12033_v48, %v2422_v2  ;;  %v2460_v48 = vmul.f32 1.442695, %v2445_v54 }
 0x9f0   : > { %v2450_v42 = vmul.f32 1.442695, %v2440_v15 }
 0x9f1   : > { %v2428_v40 = vpop.xlane.xlu0 %2427 }
 0x9f2   : > { %10216 = vpow2.f32 %v2450_v42  ;;  %v2442_v38 = vsub.f32 %v12037_v0, %v2428_v40  ;;  %v2677_v0 = vpop.permute.xlu1 %2676 }
 0x9f3   : > { %10218 = vpow2.f32 %v2452_v45 }
 0x9f4   : > { %v2454_v53 = vmul.f32 1.442695, %v2442_v38 }
 0x9f5   : > { %v2434_v18 = vpop.xlane.xlu0 %2433 }
 0x9f6   : > { %10220 = vpow2.f32 %v2454_v53  ;;  %v2444_v11 = vsub.f32 %v12051_v25, %v2434_v18  ;;  %v2663_v15 = vpop.permute.xlu1 %2662 }
 0x9f7   : > { %10222 = vpow2.f32 %v2456_v16 }
 0x9f8   : > { %v2458_v27 = vmul.f32 1.442695, %v2444_v11 }
 0x9f9   : > { %v2679_v9 = vpop.permute.xlu0 %2678 }
 0x9fa   : > { %10224 = vpow2.f32 %v2458_v27  ;;  %9225 = vmatprep.subr.msk.mxu1 %vm1006_vm1, %v2679_v9  ;;  %v2667_v42 = vpop.permute.xlu1 %2666 }
 0x9fb   : > { %10226 = vpow2.f32 %v2460_v48  ;;  %9226 = vmatpush3.xpose.msk.msra.mxu1 %vm1006_vm1, %v2679_v9 }
 0x9fc   : > { %9227 = vmatprep.subr.msk.mxu1 %vm1006_vm1, %v2677_v0 }
 0x9fd   : > { %v2661_v53 = vpop.permute.xlu0 %2660 }
 0x9fe   : > { %v2671_v38 = vpop.permute.xlu1 %2670 }
 0x9ff   : > { %v12110_v16 = vpop.eup %10216  ;;  %9228 = vmatpush3.xpose.msk.msra.mxu1 %vm1006_vm1, %v2677_v0 }
 0xa00   : > { %v12113_v25 = vpop.eup %10218  ;;  %9204 = vmatprep.mubr.msk.f32.mxu1 %vm1144_vm6, %v12110_v16  ;;  %9297 = vmatprep.subr.msk.mxu1 %vm12106_vm4, %v11318_v17 }
 0xa01   : > { %v2665_v56 = vpop.permute.xlu0 %2664  ;;  %9205 = vmatmul.mubr.msk.f32.gmra.mxu1 %vm1144_vm6, %v12113_v25 }
 0xa02   : > { %v2675_v54 = vpop.permute.xlu1 %2674 }
 0xa03   : > { %v12122_v20 = vpop.eup %10220 }
 0xa04   : > { %14619 = vst [vmem:[#allocation54_spill] sm:$0xff] %v12122_v20  ;;  %v12124_v19 = vpop.eup %10222  ;;  %9207 = vmatprep.mubr.msk.f32.mxu1 %vm1144_vm6, %v12122_v20 }
 0xa05   : > { %14620 = vst [vmem:[#allocation55_spill] sm:$0xff] %v12124_v19  ;;  %v2669_v2 = vpop.permute.xlu0 %2668  ;;  %9208 = vmatmul.mubr.msk.f32.gmra.mxu1 %vm1144_vm6, %v12124_v19 }
 0xa07   : > { %v12130_v58 = vpop.eup %10224 }
 0xa08   : > { %14621 = vst [vmem:[#allocation56_spill] sm:$0xff] %v12130_v58  ;;  %v12132_v45 = vpop.eup %10226  ;;  %9210 = vmatprep.mubr.msk.f32.mxu1 %vm1144_vm6, %v12130_v58 }
 0xa09   : > { %14622 = vst [vmem:[#allocation57_spill] sm:$0xff] %v12132_v45  ;;  %v2673_v52 = vpop.permute.xlu0 %2672  ;;  %9211 = vmatmul.mubr.msk.f32.gmra.mxu1 %vm1144_vm6, %v12132_v45 }
 0xa0a   : > { %9229 = vmatprep.mubr.msk.f32.mxu1 %vm1006_vm1, %v2661_v53 }
 0xa0d   : > { %v12139_v40 = vpop.permute.xlu0 %3105  ;;  %9230 = vmatmul.mubr.msk.f32.vlgmr.msra.gmra.mxu1 %vm1006_vm1, %v2663_v15 }
 0xa0e   : > { %9298 = vmatpush3.msk.msra.mxu1 %vm12106_vm4, %v11318_v17  ;;  %9232 = vmatprep.mubr.msk.f32.mxu1 %vm1006_vm1, %v2665_v56 }
 0xa0f   : > { %9269 = vmatprep.subr.msk.mxu0 %vm1006_vm1, %v12139_v40  ;;  %9299 = vmatprep.subr.msk.mxu1 %vm12106_vm4, %v11365_v30 }
 0xa10   : > { %9300 = vmatpush3.msk.msra.mxu1 %vm12106_vm4, %v11365_v30 }
 0xa11   : > { %9301 = vmatprep.subr.msk.mxu1 %vm12106_vm4, %v11350_v26  ;;  %9233 = vmatmul.mubr.msk.f32.gmra.mxu1 %vm1006_vm1, %v2667_v42 }
 0xa12   : > { %9302 = vmatpush3.msk.msra.mxu1 %vm12106_vm4, %v11350_v26  ;;  %9235 = vmatprep.mubr.msk.f32.mxu1 %vm1006_vm1, %v2669_v2 }
 0xa13   : > { %9303 = vmatprep.subr.msk.mxu1 %vm12106_vm4, %v11367_v31 }
 0xa14   : > { %9304 = vmatpush3.msk.msra.mxu1 %vm12106_vm4, %v11367_v31 }
 0xa15   : > { %9305 = vmatprep.subr.msk.mxu1 %vm12106_vm4, %v11331_v22  ;;  %9236 = vmatmul.mubr.msk.f32.gmra.mxu1 %vm1006_vm1, %v2671_v38 }
 0xa16   : > { %9306 = vmatpush3.msk.msra.mxu1 %vm12106_vm4, %v11331_v22  ;;  %9238 = vmatprep.mubr.msk.f32.mxu1 %vm1006_vm1, %v2673_v52 }
 0xa17   : > { %9307 = vmatprep.subr.msk.mxu1 %vm12106_vm4, %v11403_v32 }
 0xa18   : > { %9308 = vmatpush3.msk.msra.mxu1 %vm12106_vm4, %v11403_v32 }
 0xa19   : > { %9309 = vmatprep.subr.msk.mxu1 %vm12106_vm4, %v11337_v23  ;;  %9239 = vmatmul.mubr.msk.f32.gmra.mxu1 %vm1006_vm1, %v2675_v54 }
 0xa1a   : > { %9310 = vmatpush3.msk.msra.mxu1 %vm12106_vm4, %v11337_v23 }
 0xa1b   : > { %9311 = vmatprep.subr.msk.mxu1 %vm12106_vm4, %v11440_v33 }
 0xa1c   : > { %9312 = vmatpush3.msk.msra.mxu1 %vm12106_vm4, %v11440_v33 }
 0xa88   : > { %v12195_v11 = vpop.f32.mrf.mxu1 }
 0xa89   : > { %14623 = vst [vmem:[#allocation58_spill] sm:$0xff] %v12195_v11 }
 0xa8a   : > { %v12197_v48 = vpop.f32.mrf.mxu1 }
 0xa8b   : > { %14624 = vst [vmem:[#allocation59_spill] sm:$0xff] %v12197_v48 }
 0xac1   : > { %v12199_v27 = vpop.f32.mrf.mxu1 }
 0xac2   : > { %14625 = vst [vmem:[#allocation60_spill] sm:$0xff] %v12199_v27 }
 0xac3   : > { %v12201_v9 = vpop.f32.mrf.mxu1 }
 0xac4   : > { %14626 = vst [vmem:[#allocation61_spill] sm:$0xff] %v12201_v9 }
 0xac5   : > { %v12203_v0 = vpop.f32.mrf.mxu1 }
 0xac6   : > { %14627 = vst [vmem:[#allocation62_spill] sm:$0xff] %v12203_v0 }
 0xac7   : > { %v12205_v53 = vpop.f32.mrf.mxu1 }
 0xac8   : > { %14628 = vst [vmem:[#allocation63_spill] sm:$0xff] %v12205_v53 }
 0xac9   : > { %v12207_v56 = vpop.f32.mrf.mxu1 }
 0xaca   : > { %14629 = vst [vmem:[#allocation64_spill] sm:$0xff] %v12207_v56 }
 0xacb   : > { %v12209_v2 = vpop.f32.mrf.mxu1 }
 0xacc   : > { %14630 = vst [vmem:[#allocation65_spill] sm:$0xff] %v12209_v2 }
 0xacd   : > { %v9231_v15 = vpop.f32.mrf.mxu1 }
 0xace   : > { %v2832_v18 = vsel %vm1144_vm6, %v9231_v15, -inf }
 0xacf   : > { %2833 = vmax.xlane.f32.xlu1 %v2832_v18  ;;  %v2790_v52 = vpop.f32.mrf.mxu1 }
 0xad0   : > { %v2829_v42 = vsel %vm1144_vm6, %v2790_v52, -inf }
 0xad1   : > { %2830 = vmax.xlane.f32.xlu0 %v2829_v42  ;;  %v12217_v38 = vpop.f32.mrf.mxu1 }
 0xad2   : > { %v2838_v42 = vsel %vm1144_vm6, %v12217_v38, -inf }
 0xad3   : > { %v12219_v54 = vpop.f32.mrf.mxu1 }
 0xad4   : > { %v2835_v27 = vsel %vm1144_vm6, %v12219_v54, -inf }
 0xad5   : > { %v12221_v56 = vpop.f32.mrf.mxu1 }
 0xad6   : > { %v2844_v18 = vsel %vm1144_vm6, %v12221_v56, -inf }
 0xad7   : > { %v12223_v2 = vpop.f32.mrf.mxu1 }
 0xad8   : > { %v2841_v9 = vsel %vm1144_vm6, %v12223_v2, -inf }
 0xad9   : > { %v12227_v53 = vpop.f32.mrf.mxu1 }
 0xada   : > { %v2850_v0 = vsel %vm1144_vm6, %v12227_v53, -inf }
 0xadb   : > { %v12237_v48 = vpop.f32.mrf.mxu1 }
 0xae0   : > { %3095 = vrot.lane.b32.xlu1 %v11287_v8, %s10860_s21 }
 0xae7   : > { %3097 = vrot.lane.b32.xlu0 %v11274_v4, %s10860_s21 }
 0xb04   : > { %2845 = vmax.xlane.f32.xlu1 %v2844_v18  ;;  %v2847_v18 = vsel %vm1144_vm6, %v12237_v48, -inf }
 0xb06   : > { %2839 = vmax.xlane.f32.xlu0 %v2838_v42 }
 0xb08   : > { %2851 = vmax.xlane.f32.xlu1 %v2850_v0 }
 0xb0a   : > { %2836 = vmax.xlane.f32.xlu0 %v2835_v27  ;;  %v3104_v27 = vpop.permute.xlu1 %3103 }
 0xb0e   : > { %2842 = vmax.xlane.f32.xlu0 %v2841_v9  ;;  %v3102_v9 = vpop.permute.xlu1 %3101 }
 0xb12   : > { %2848 = vmax.xlane.f32.xlu0 %v2847_v18  ;;  %v3100_v0 = vpop.permute.xlu1 %3099 }
 0xb19   : > { %3091 = vrot.lane.b32.xlu1 %v11265_v60, %s10860_s21 }
 0xb1d   : > { %3077 = vrot.lane.b32.xlu1 %v11280_v6, %s10861_s15 }
 0xb21   : > { %3081 = vrot.lane.b32.xlu1 %v11274_v4, %s10861_s15 }
 0xb25   : > { %3085 = vrot.lane.b32.xlu1 %v11277_v5, %s10861_s15 }
 0xb28   : > { %3093 = vrot.lane.b32.xlu0 %v11280_v6, %s10860_s21  ;;  %s14807_s21 = sld [smem:[#allocation104_spill]] }
 0xb29   : > { %3089 = vrot.lane.b32.xlu1 %v11269_v1, %s10861_s15 }
 0xb2c   : > { %3075 = vrot.lane.b32.xlu0 %v11265_v60, %s10861_s15 }
 0xb2d   : > { %3518 = vrot.lane.b32.xlu1 %v11271_v3, %s10862_s22 }
 0xb30   : > { %3079 = vrot.lane.b32.xlu0 %v11287_v8, %s10861_s15 }
 0xb31   : > { %3516 = vrot.lane.b32.xlu1 %v11277_v5, %s10862_s22 }
 0xb34   : > { %3083 = vrot.lane.b32.xlu0 %v11283_v7, %s10861_s15 }
 0xb35   : > { %3514 = vrot.lane.b32.xlu1 %v11283_v7, %s10862_s22 }
 0xb38   : > { %3087 = vrot.lane.b32.xlu0 %v11271_v3, %s10861_s15  ;;  %s14390_s15 = scalar_lea.vmem [#allocation16], %s7907_s14  ;;  %s8366_s14 = sshll.u32 %s10987_s1, 10 }
 0xb39   : > { %s7740_s1 = scalar_lea.sflag [#allocation4], %s11156_s12 }
 0xb3c   : > { %3520 = vrot.lane.b32.xlu0 %v11269_v1, %s10862_s22 }
 0xb58   : > { %v2834_v42 = vpop.xlane.xlu1 %2833 }
 0xb59   : > { %v2854_v18 = vsub.f32 %v9231_v15, %v2834_v42 }
 0xb5a   : > { %v2831_v11 = vpop.xlane.xlu0 %2830 }
 0xb5b   : > { %v2853_v58 = vsub.f32 %v2790_v52, %v2831_v11  ;;  %v2863_v45 = vmul.f32 1.442695, %v2854_v18 }
 0xb5d   : > { %v2861_v62 = vmul.f32 1.442695, %v2853_v58  ;;  %v3096_v58 = vpop.permute.xlu1 %3095 }
 0xb5f   : > { %10228 = vpow2.f32 %v2861_v62  ;;  %v3098_v62 = vpop.permute.xlu0 %3097 }
 0xb60   : > { %10230 = vpow2.f32 %v2863_v45 }
 0xb6c   : > { %v12261_v13 = vpop.eup %10228 }
 0xb6d   : > { %v12263_v61 = vpop.eup %10230  ;;  %9257 = vmatprep.mubr.msk.f32.mxu0 %vm1144_vm6, %v12261_v13 }
 0xb6e   : > { %9258 = vmatmul.mubr.msk.f32.vlgmr.msra.gmra.mxu0 %vm1144_vm6, %v12263_v61 }
 0xb6f   : > { %9270 = vmatpush3.xpose.msk.msra.mxu0 %vm1006_vm1, %v12139_v40 }
 0xb70   : > { %9271 = vmatprep.subr.msk.mxu0 %vm1006_vm1, %v3104_v27 }
 0xb73   : > { %9272 = vmatpush3.xpose.msk.msra.mxu0 %vm1006_vm1, %v3104_v27 }
 0xb74   : > { %9273 = vmatprep.subr.msk.mxu0 %vm1006_vm1, %v3102_v9 }
 0xb77   : > { %9274 = vmatpush3.xpose.msk.msra.mxu0 %vm1006_vm1, %v3102_v9 }
 0xb78   : > { %9275 = vmatprep.subr.msk.mxu0 %vm1006_vm1, %v3100_v0 }
 0xb7b   : > { %9276 = vmatpush3.xpose.msk.msra.mxu0 %vm1006_vm1, %v3100_v0 }
 0xb7c   : > { %9277 = vmatprep.subr.msk.mxu0 %vm1006_vm1, %v3098_v62 }
 0xb7f   : > { %9278 = vmatpush3.xpose.msk.msra.mxu0 %vm1006_vm1, %v3098_v62 }
 0xb80   : > { %9279 = vmatprep.subr.msk.mxu0 %vm1006_vm1, %v3096_v58 }
 0xb83   : > { %9280 = vmatpush3.xpose.msk.msra.mxu0 %vm1006_vm1, %v3096_v58 }
 0xb8d   : > { %v2846_v40 = vpop.xlane.xlu1 %2845 }
 0xb8e   : > { %v2858_v27 = vsub.f32 %v12221_v56, %v2846_v40 }
 0xb8f   : > { %v2840_v45 = vpop.xlane.xlu0 %2839 }
 0xb90   : > { %v2856_v11 = vsub.f32 %v12217_v38, %v2840_v45  ;;  %v2871_v19 = vmul.f32 1.442695, %v2858_v27 }
 0xb91   : > { %v2852_v0 = vpop.xlane.xlu1 %2851 }
 0xb92   : > { %v2867_v9 = vmul.f32 1.442695, %v2856_v11  ;;  %v2860_v58 = vsub.f32 %v12227_v53, %v2852_v0 }
 0xb93   : > { %v2837_v15 = vpop.xlane.xlu0 %2836 }
 0xb94   : > { %v2855_v52 = vsub.f32 %v12219_v54, %v2837_v15  ;;  %v2875_v54 = vmul.f32 1.442695, %v2860_v58 }
 0xb96   : > { %v2865_v42 = vmul.f32 1.442695, %v2855_v52 }
 0xb97   : > { %v2843_v18 = vpop.xlane.xlu0 %2842 }
 0xb98   : > { %10232 = vpow2.f32 %v2865_v42  ;;  %v2857_v62 = vsub.f32 %v12223_v2, %v2843_v18  ;;  %v3092_v2 = vpop.permute.xlu1 %3091 }
 0xb99   : > { %10234 = vpow2.f32 %v2867_v9 }
 0xb9a   : > { %v2869_v20 = vmul.f32 1.442695, %v2857_v62 }
 0xb9b   : > { %v2849_v51 = vpop.xlane.xlu0 %2848 }
 0xb9c   : > { %10236 = vpow2.f32 %v2869_v20  ;;  %v2859_v38 = vsub.f32 %v12237_v48, %v2849_v51  ;;  %v3078_v52 = vpop.permute.xlu1 %3077 }
 0xb9d   : > { %10238 = vpow2.f32 %v2871_v19 }
 0xb9e   : > { %v2873_v45 = vmul.f32 1.442695, %v2859_v38 }
 0xb9f   : > { %v3094_v56 = vpop.permute.xlu0 %3093 }
 0xba0   : > { %10240 = vpow2.f32 %v2873_v45  ;;  %9281 = vmatprep.subr.msk.mxu0 %vm1006_vm1, %v3094_v56  ;;  %v3082_v42 = vpop.permute.xlu1 %3081 }
 0xba1   : > { %10242 = vpow2.f32 %v2875_v54  ;;  %9282 = vmatpush3.xpose.msk.msra.mxu0 %vm1006_vm1, %v3094_v56 }
 0xba2   : > { %9283 = vmatprep.subr.msk.mxu0 %vm1006_vm1, %v3092_v2 }
 0xba3   : > { %v3076_v20 = vpop.permute.xlu0 %3075 }
 0xba4   : > { %v3086_v62 = vpop.permute.xlu1 %3085 }
 0xba5   : > { %v12296_v19 = vpop.eup %10232  ;;  %9284 = vmatpush3.xpose.msk.msra.mxu0 %vm1006_vm1, %v3092_v2 }
 0xba6   : > { %v12299_v48 = vpop.eup %10234  ;;  %9260 = vmatprep.mubr.msk.f32.mxu0 %vm1144_vm6, %v12296_v19  ;;  %9353 = vmatprep.subr.msk.mxu0 %vm12292_vm8, %v11318_v17 }
 0xba7   : > { %14633 = vst [vmem:[#allocation66_spill] sm:$0xff] %v12299_v48  ;;  %v3080_v53 = vpop.permute.xlu0 %3079  ;;  %9261 = vmatmul.mubr.msk.f32.gmra.mxu0 %vm1144_vm6, %v12299_v48 }
 0xba8   : > { %v3090_v58 = vpop.permute.xlu1 %3089 }
 0xba9   : > { %v12308_v40 = vpop.eup %10236 }
 0xbaa   : > { %14634 = vst [vmem:[#allocation67_spill] sm:$0xff] %v12308_v40  ;;  %v12310_v11 = vpop.eup %10238  ;;  %9263 = vmatprep.mubr.msk.f32.mxu0 %vm1144_vm6, %v12308_v40 }
 0xbab   : > { %14635 = vst [vmem:[#allocation68_spill] sm:$0xff] %v12310_v11  ;;  %v3084_v15 = vpop.permute.xlu0 %3083  ;;  %9264 = vmatmul.mubr.msk.f32.gmra.mxu0 %vm1144_vm6, %v12310_v11 }
 0xbad   : > { %v12316_v27 = vpop.eup %10240 }
 0xbae   : > { %14636 = vst [vmem:[#allocation69_spill] sm:$0xff] %v12316_v27  ;;  %v12318_v9 = vpop.eup %10242  ;;  %9266 = vmatprep.mubr.msk.f32.mxu0 %vm1144_vm6, %v12316_v27 }
 0xbaf   : > { %14637 = vst [vmem:[#allocation70_spill] sm:$0xff] %v12318_v9  ;;  %v3088_v0 = vpop.permute.xlu0 %3087  ;;  %9267 = vmatmul.mubr.msk.f32.gmra.mxu0 %vm1144_vm6, %v12318_v9 }
 0xbb0   : > { %9285 = vmatprep.mubr.msk.f32.mxu0 %vm1006_vm1, %v3076_v20 }
 0xbb3   : > { %v12325_v18 = vpop.permute.xlu0 %3520  ;;  %9286 = vmatmul.mubr.msk.f32.vlgmr.msra.gmra.mxu0 %vm1006_vm1, %v3078_v52 }
 0xbb4   : > { %9354 = vmatpush3.msk.msra.mxu0 %vm12292_vm8, %v11318_v17  ;;  %9288 = vmatprep.mubr.msk.f32.mxu0 %vm1006_vm1, %v3080_v53 }
 0xbb5   : > { %9325 = vmatprep.subr.msk.mxu1 %vm1006_vm1, %v12325_v18  ;;  %9355 = vmatprep.subr.msk.mxu0 %vm12292_vm8, %v11365_v30 }
 0xbb6   : > { %9356 = vmatpush3.msk.msra.mxu0 %vm12292_vm8, %v11365_v30 }
 0xbb7   : > { %9357 = vmatprep.subr.msk.mxu0 %vm12292_vm8, %v11350_v26  ;;  %9289 = vmatmul.mubr.msk.f32.gmra.mxu0 %vm1006_vm1, %v3082_v42 }
 0xbb8   : > { %9358 = vmatpush3.msk.msra.mxu0 %vm12292_vm8, %v11350_v26  ;;  %9291 = vmatprep.mubr.msk.f32.mxu0 %vm1006_vm1, %v3084_v15 }
 0xbb9   : > { %9359 = vmatprep.subr.msk.mxu0 %vm12292_vm8, %v11367_v31 }
 0xbba   : > { %9360 = vmatpush3.msk.msra.mxu0 %vm12292_vm8, %v11367_v31 }
 0xbbb   : > { %9361 = vmatprep.subr.msk.mxu0 %vm12292_vm8, %v11331_v22  ;;  %9292 = vmatmul.mubr.msk.f32.gmra.mxu0 %vm1006_vm1, %v3086_v62 }
 0xbbc   : > { %9362 = vmatpush3.msk.msra.mxu0 %vm12292_vm8, %v11331_v22  ;;  %9294 = vmatprep.mubr.msk.f32.mxu0 %vm1006_vm1, %v3088_v0 }
 0xbbd   : > { %9363 = vmatprep.subr.msk.mxu0 %vm12292_vm8, %v11403_v32 }
 0xbbe   : > { %9364 = vmatpush3.msk.msra.mxu0 %vm12292_vm8, %v11403_v32 }
 0xbbf   : > { %9365 = vmatprep.subr.msk.mxu0 %vm12292_vm8, %v11337_v23  ;;  %9295 = vmatmul.mubr.msk.f32.gmra.mxu0 %vm1006_vm1, %v3090_v58 }
 0xbc0   : > { %9366 = vmatpush3.msk.msra.mxu0 %vm12292_vm8, %v11337_v23 }
 0xbc1   : > { %9367 = vmatprep.subr.msk.mxu0 %vm12292_vm8, %v11440_v33 }
 0xbc2   : > { %9368 = vmatpush3.msk.msra.mxu0 %vm12292_vm8, %v11440_v33 }
 0xc2e   : > { %v12381_v38 = vpop.f32.mrf.mxu0 }
 0xc2f   : > { %14638 = vst [vmem:[#allocation71_spill] sm:$0xff] %v12381_v38 }
 0xc30   : > { %v12383_v54 = vpop.f32.mrf.mxu0 }
 0xc31   : > { %14639 = vst [vmem:[#allocation72_spill] sm:$0xff] %v12383_v54 }
 0xc67   : > { %v12385_v45 = vpop.f32.mrf.mxu0 }
 0xc68   : > { %14640 = vst [vmem:[#allocation73_spill] sm:$0xff] %v12385_v45 }
 0xc69   : > { %v12387_v56 = vpop.f32.mrf.mxu0 }
 0xc6a   : > { %14641 = vst [vmem:[#allocation74_spill] sm:$0xff] %v12387_v56 }
 0xc6b   : > { %v12389_v2 = vpop.f32.mrf.mxu0 }
 0xc6c   : > { %14642 = vst [vmem:[#allocation75_spill] sm:$0xff] %v12389_v2 }
 0xc6d   : > { %v12391_v20 = vpop.f32.mrf.mxu0 }
 0xc6e   : > { %14643 = vst [vmem:[#allocation76_spill] sm:$0xff] %v12391_v20 }
 0xc6f   : > { %v12393_v53 = vpop.f32.mrf.mxu0 }
 0xc70   : > { %14644 = vst [vmem:[#allocation77_spill] sm:$0xff] %v12393_v53 }
 0xc71   : > { %v12395_v15 = vpop.f32.mrf.mxu0 }
 0xc72   : > { %14645 = vst [vmem:[#allocation78_spill] sm:$0xff] %v12395_v15 }
 0xc73   : > { %v9287_v52 = vpop.f32.mrf.mxu0 }
 0xc74   : > { %v3247_v51 = vsel %vm1144_vm6, %v9287_v52, -inf }
 0xc75   : > { %3248 = vmax.xlane.f32.xlu1 %v3247_v51  ;;  %v3205_v0 = vpop.f32.mrf.mxu0 }
 0xc76   : > { %v3244_v42 = vsel %vm1144_vm6, %v3205_v0, -inf }
 0xc77   : > { %3245 = vmax.xlane.f32.xlu0 %v3244_v42  ;;  %v12403_v62 = vpop.f32.mrf.mxu0 }
 0xc78   : > { %v3253_v42 = vsel %vm1144_vm6, %v12403_v62, -inf }
 0xc79   : > { %v12405_v58 = vpop.f32.mrf.mxu0 }
 0xc7a   : > { %v3250_v56 = vsel %vm1144_vm6, %v12405_v58, -inf }
 0xc7b   : > { %v12407_v53 = vpop.f32.mrf.mxu0 }
 0xc7c   : > { %v3259_v51 = vsel %vm1144_vm6, %v12407_v53, -inf }
 0xc7d   : > { %v12409_v15 = vpop.f32.mrf.mxu0 }
 0xc7e   : > { %v3256_v45 = vsel %vm1144_vm6, %v12409_v15, -inf }
 0xc7f   : > { %v12413_v20 = vpop.f32.mrf.mxu0 }
 0xc80   : > { %v3265_v2 = vsel %vm1144_vm6, %v12413_v20, -inf }
 0xc81   : > { %v12423_v38 = vpop.f32.mrf.mxu0 }
 0xc86   : > { %3510 = vrot.lane.b32.xlu1 %v11287_v8, %s10862_s22 }
 0xc8d   : > { %3512 = vrot.lane.b32.xlu0 %v11274_v4, %s10862_s22 }
 0xcaa   : > { %3260 = vmax.xlane.f32.xlu1 %v3259_v51  ;;  %v3262_v51 = vsel %vm1144_vm6, %v12423_v38, -inf }
 0xcac   : > { %3254 = vmax.xlane.f32.xlu0 %v3253_v42 }
 0xcae   : > { %3266 = vmax.xlane.f32.xlu1 %v3265_v2 }
 0xcb0   : > { %3251 = vmax.xlane.f32.xlu0 %v3250_v56 }
 0xcb4   : > { %3257 = vmax.xlane.f32.xlu0 %v3256_v45  ;;  %v3519_v45 = vpop.permute.xlu1 %3518 }
 0xcb8   : > { %3263 = vmax.xlane.f32.xlu0 %v3262_v51  ;;  %v3517_v56 = vpop.permute.xlu1 %3516 }
 0xcbc   : > { %v3515_v2 = vpop.permute.xlu1 %3514 }
 0xcbf   : > { %3506 = vrot.lane.b32.xlu1 %v11265_v60, %s10862_s22 }
 0xcc3   : > { %3492 = vrot.lane.b32.xlu1 %v11280_v6, %s10863_s11 }
 0xcc7   : > { %3496 = vrot.lane.b32.xlu1 %v11274_v4, %s10863_s11 }
 0xccb   : > { %3500 = vrot.lane.b32.xlu1 %v11277_v5, %s10863_s11 }
 0xcce   : > { %3508 = vrot.lane.b32.xlu0 %v11280_v6, %s10862_s22  ;;  %s7753_s22 = sshll.u32 %s14390_s15, 4  ;;  %s14423_s22 = int_to_ptr.vmem [resolvable:$true] %s7753_s22 }
 0xccf   : > { %3504 = vrot.lane.b32.xlu1 %v11269_v1, %s10863_s11  ;;  %p10765_p1 = scmp.lt.s32.totalorder %s14423_s22, %s10763_s20 }
 0xcd2   : > { %3490 = vrot.lane.b32.xlu0 %v11265_v60, %s10863_s11 }
 0xcd3   : > { %3933 = vrot.lane.b32.xlu1 %v11271_v3, %s10864_s8 }
 0xcd6   : > { %3494 = vrot.lane.b32.xlu0 %v11287_v8, %s10863_s11 }
 0xcd7   : > { %3931 = vrot.lane.b32.xlu1 %v11277_v5, %s10864_s8 }
 0xcda   : > { %3498 = vrot.lane.b32.xlu0 %v11283_v7, %s10863_s11 }
 0xcdb   : > { %3929 = vrot.lane.b32.xlu1 %v11283_v7, %s10864_s8 }
 0xcde   : > { %3502 = vrot.lane.b32.xlu0 %v11271_v3, %s10863_s11  ;;  %s14777_s11 = sld [smem:[#allocation99_spill]] }
 0xce2   : > { %3935 = vrot.lane.b32.xlu0 %v11269_v1, %s10864_s8 }
 0xcfe   : > { %v3249_v42 = vpop.xlane.xlu1 %3248 }
 0xcff   : > { %v3269_v51 = vsub.f32 %v9287_v52, %v3249_v42 }
 0xd00   : > { %v3246_v54 = vpop.xlane.xlu0 %3245 }
 0xd01   : > { %v3268_v9 = vsub.f32 %v3205_v0, %v3246_v54  ;;  %v3278_v27 = vmul.f32 1.442695, %v3269_v51 }
 0xd03   : > { %v3276_v11 = vmul.f32 1.442695, %v3268_v9 }
 0xd05   : > { %10244 = vpow2.f32 %v3276_v11  ;;  %v3513_v11 = vpop.permute.xlu0 %3512 }
 0xd06   : > { %10246 = vpow2.f32 %v3278_v27  ;;  %v3511_v27 = vpop.permute.xlu1 %3510 }
 0xd12   : > { %v12447_v40 = vpop.eup %10244 }
 0xd13   : > { %v12449_v50 = vpop.eup %10246  ;;  %9313 = vmatprep.mubr.msk.f32.mxu1 %vm1144_vm6, %v12447_v40 }
 0xd14   : > { %9314 = vmatmul.mubr.msk.f32.vlgmr.msra.gmra.mxu1 %vm1144_vm6, %v12449_v50 }
 0xd15   : > { %9326 = vmatpush3.xpose.msk.msra.mxu1 %vm1006_vm1, %v12325_v18 }
 0xd16   : > { %9327 = vmatprep.subr.msk.mxu1 %vm1006_vm1, %v3519_v45 }
 0xd19   : > { %9328 = vmatpush3.xpose.msk.msra.mxu1 %vm1006_vm1, %v3519_v45 }
 0xd1a   : > { %9329 = vmatprep.subr.msk.mxu1 %vm1006_vm1, %v3517_v56 }
 0xd1d   : > { %9330 = vmatpush3.xpose.msk.msra.mxu1 %vm1006_vm1, %v3517_v56 }
 0xd1e   : > { %9331 = vmatprep.subr.msk.mxu1 %vm1006_vm1, %v3515_v2 }
 0xd21   : > { %9332 = vmatpush3.xpose.msk.msra.mxu1 %vm1006_vm1, %v3515_v2 }
 0xd22   : > { %9333 = vmatprep.subr.msk.mxu1 %vm1006_vm1, %v3513_v11 }
 0xd25   : > { %9334 = vmatpush3.xpose.msk.msra.mxu1 %vm1006_vm1, %v3513_v11 }
 0xd26   : > { %9335 = vmatprep.subr.msk.mxu1 %vm1006_vm1, %v3511_v27 }
 0xd29   : > { %9336 = vmatpush3.xpose.msk.msra.mxu1 %vm1006_vm1, %v3511_v27 }
 0xd33   : > { %v3261_v18 = vpop.xlane.xlu1 %3260 }
 0xd34   : > { %v3273_v45 = vsub.f32 %v12407_v53, %v3261_v18 }
 0xd35   : > { %v3255_v9 = vpop.xlane.xlu0 %3254 }
 0xd36   : > { %v3271_v54 = vsub.f32 %v12403_v62, %v3255_v9  ;;  %v3286_v48 = vmul.f32 1.442695, %v3273_v45 }
 0xd37   : > { %v3267_v2 = vpop.xlane.xlu1 %3266 }
 0xd38   : > { %v3282_v56 = vmul.f32 1.442695, %v3271_v54  ;;  %v3275_v27 = vsub.f32 %v12413_v20, %v3267_v2 }
 0xd39   : > { %v3252_v52 = vpop.xlane.xlu0 %3251 }
 0xd3a   : > { %v3270_v0 = vsub.f32 %v12405_v58, %v3252_v52  ;;  %v3290_v58 = vmul.f32 1.442695, %v3275_v27 }
 0xd3c   : > { %v3280_v42 = vmul.f32 1.442695, %v3270_v0 }
 0xd3d   : > { %v3258_v51 = vpop.xlane.xlu0 %3257 }
 0xd3e   : > { %10248 = vpow2.f32 %v3280_v42  ;;  %v3272_v11 = vsub.f32 %v12409_v15, %v3258_v51  ;;  %v3507_v15 = vpop.permute.xlu1 %3506 }
 0xd3f   : > { %10250 = vpow2.f32 %v3282_v56 }
 0xd40   : > { %v3284_v59 = vmul.f32 1.442695, %v3272_v11 }
 0xd41   : > { %v3264_v10 = vpop.xlane.xlu0 %3263 }
 0xd42   : > { %10252 = vpow2.f32 %v3284_v59  ;;  %v3274_v62 = vsub.f32 %v12423_v38, %v3264_v10  ;;  %v3493_v52 = vpop.permute.xlu1 %3492 }
 0xd43   : > { %10254 = vpow2.f32 %v3286_v48 }
 0xd44   : > { %v3288_v9 = vmul.f32 1.442695, %v3274_v62 }
 0xd45   : > { %v3509_v53 = vpop.permute.xlu0 %3508 }
 0xd46   : > { %10256 = vpow2.f32 %v3288_v9  ;;  %9337 = vmatprep.subr.msk.mxu1 %vm1006_vm1, %v3509_v53  ;;  %v3497_v2 = vpop.permute.xlu1 %3496 }
 0xd47   : > { %10258 = vpow2.f32 %v3290_v58  ;;  %9338 = vmatpush3.xpose.msk.msra.mxu1 %vm1006_vm1, %v3509_v53 }
 0xd48   : > { %9339 = vmatprep.subr.msk.mxu1 %vm1006_vm1, %v3507_v15 }
 0xd49   : > { %v3491_v59 = vpop.permute.xlu0 %3490 }
 0xd4a   : > { %v3501_v51 = vpop.permute.xlu1 %3500 }
 0xd4b   : > { %v12482_v48 = vpop.eup %10248  ;;  %9340 = vmatpush3.xpose.msk.msra.mxu1 %vm1006_vm1, %v3507_v15 }
 0xd4c   : > { %v12485_v38 = vpop.eup %10250  ;;  %9316 = vmatprep.mubr.msk.f32.mxu1 %vm1144_vm6, %v12482_v48  ;;  %9409 = vmatprep.subr.msk.mxu1 %vm12478_vm11, %v11318_v17 }
 0xd4d   : > { %v3495_v14 = vpop.permute.xlu0 %3494  ;;  %9317 = vmatmul.mubr.msk.f32.gmra.mxu1 %vm1144_vm6, %v12485_v38 }
 0xd4e   : > { %v3505_v11 = vpop.permute.xlu1 %3504 }
 0xd4f   : > { %v12494_v20 = vpop.eup %10252 }
 0xd50   : > { %v12496_v18 = vpop.eup %10254  ;;  %9319 = vmatprep.mubr.msk.f32.mxu1 %vm1144_vm6, %v12494_v20 }
 0xd51   : > { %v3499_v54 = vpop.permute.xlu0 %3498  ;;  %9320 = vmatmul.mubr.msk.f32.gmra.mxu1 %vm1144_vm6, %v12496_v18 }
 0xd53   : > { %v12502_v0 = vpop.eup %10256 }
 0xd54   : > { %v12504_v45 = vpop.eup %10258  ;;  %9322 = vmatprep.mubr.msk.f32.mxu1 %vm1144_vm6, %v12502_v0 }
 0xd55   : > { %v3503_v56 = vpop.permute.xlu0 %3502  ;;  %9323 = vmatmul.mubr.msk.f32.gmra.mxu1 %vm1144_vm6, %v12504_v45 }
 0xd56   : > { %9341 = vmatprep.mubr.msk.f32.mxu1 %vm1006_vm1, %v3491_v59 }
 0xd59   : > { %v12511_v42 = vpop.permute.xlu0 %3935  ;;  %9342 = vmatmul.mubr.msk.f32.vlgmr.msra.gmra.mxu1 %vm1006_vm1, %v3493_v52 }
 0xd5a   : > { %9410 = vmatpush3.msk.msra.mxu1 %vm12478_vm11, %v11318_v17  ;;  %9344 = vmatprep.mubr.msk.f32.mxu1 %vm1006_vm1, %v3495_v14 }
 0xd5b   : > { %9381 = vmatprep.subr.msk.mxu0 %vm1006_vm1, %v12511_v42  ;;  %9411 = vmatprep.subr.msk.mxu1 %vm12478_vm11, %v11365_v30 }
 0xd5c   : > { %9412 = vmatpush3.msk.msra.mxu1 %vm12478_vm11, %v11365_v30 }
 0xd5d   : > { %9413 = vmatprep.subr.msk.mxu1 %vm12478_vm11, %v11350_v26  ;;  %9345 = vmatmul.mubr.msk.f32.gmra.mxu1 %vm1006_vm1, %v3497_v2 }
 0xd5e   : > { %9414 = vmatpush3.msk.msra.mxu1 %vm12478_vm11, %v11350_v26  ;;  %9347 = vmatprep.mubr.msk.f32.mxu1 %vm1006_vm1, %v3499_v54 }
 0xd5f   : > { %9415 = vmatprep.subr.msk.mxu1 %vm12478_vm11, %v11367_v31 }
 0xd60   : > { %9416 = vmatpush3.msk.msra.mxu1 %vm12478_vm11, %v11367_v31 }
 0xd61   : > { %9417 = vmatprep.subr.msk.mxu1 %vm12478_vm11, %v11331_v22  ;;  %9348 = vmatmul.mubr.msk.f32.gmra.mxu1 %vm1006_vm1, %v3501_v51 }
 0xd62   : > { %9418 = vmatpush3.msk.msra.mxu1 %vm12478_vm11, %v11331_v22  ;;  %9350 = vmatprep.mubr.msk.f32.mxu1 %vm1006_vm1, %v3503_v56 }
 0xd63   : > { %9419 = vmatprep.subr.msk.mxu1 %vm12478_vm11, %v11403_v32 }
 0xd64   : > { %9420 = vmatpush3.msk.msra.mxu1 %vm12478_vm11, %v11403_v32 }
 0xd65   : > { %9421 = vmatprep.subr.msk.mxu1 %vm12478_vm11, %v11337_v23  ;;  %9351 = vmatmul.mubr.msk.f32.gmra.mxu1 %vm1006_vm1, %v3505_v11 }
 0xd66   : > { %9422 = vmatpush3.msk.msra.mxu1 %vm12478_vm11, %v11337_v23 }
 0xd67   : > { %9423 = vmatprep.subr.msk.mxu1 %vm12478_vm11, %v11440_v33 }
 0xd68   : > { %9424 = vmatpush3.msk.msra.mxu1 %vm12478_vm11, %v11440_v33 }
 0xd69   : > { %9437 = vmatprep.subr.mxu1 %v11318_v17 }
 0xdd4   : > { %v12568_v27 = vpop.f32.mrf.mxu1 }
 0xdd5   : > { %14648 = vst [vmem:[#allocation79_spill] sm:$0xff] %v12568_v27 }
 0xdd6   : > { %v12570_v62 = vpop.f32.mrf.mxu1 }
 0xdd7   : > { %14649 = vst [vmem:[#allocation80_spill] sm:$0xff] %v12570_v62 }
 0xe0d   : > { %v12572_v58 = vpop.f32.mrf.mxu1 }
 0xe0e   : > { %14650 = vst [vmem:[#allocation81_spill] sm:$0xff] %v12572_v58 }
 0xe0f   : > { %v12574_v9 = vpop.f32.mrf.mxu1 }
 0xe10   : > { %14651 = vst [vmem:[#allocation82_spill] sm:$0xff] %v12574_v9 }
 0xe11   : > { %v12576_v53 = vpop.f32.mrf.mxu1 }
 0xe12   : > { %14652 = vst [vmem:[#allocation83_spill] sm:$0xff] %v12576_v53 }
 0xe13   : > { %v12578_v15 = vpop.f32.mrf.mxu1 }
 0xe14   : > { %14653 = vst [vmem:[#allocation84_spill] sm:$0xff] %v12578_v15 }
 0xe15   : > { %v12580_v59 = vpop.f32.mrf.mxu1 }
 0xe16   : > { %14654 = vst [vmem:[#allocation85_spill] sm:$0xff] %v12580_v59 }
 0xe17   : > { %v12582_v14 = vpop.f32.mrf.mxu1 }
 0xe18   : > { %14655 = vst [vmem:[#allocation86_spill] sm:$0xff] %v12582_v14 }
 0xe19   : > { %v9343_v10 = vpop.f32.mrf.mxu1 }
 0xe1a   : > { %v3662_v54 = vsel %vm1144_vm6, %v9343_v10, -inf }
 0xe1b   : > { %3663 = vmax.xlane.f32.xlu1 %v3662_v54  ;;  %v3620_v52 = vpop.f32.mrf.mxu1 }
 0xe1c   : > { %v3659_v56 = vsel %vm1144_vm6, %v3620_v52, -inf }
 0xe1d   : > { %3660 = vmax.xlane.f32.xlu0 %v3659_v56  ;;  %v12590_v2 = vpop.f32.mrf.mxu1 }
 0xe1e   : > { %v3668_v56 = vsel %vm1144_vm6, %v12590_v2, -inf }
 0xe1f   : > { %v12592_v51 = vpop.f32.mrf.mxu1 }
 0xe20   : > { %v3665_v53 = vsel %vm1144_vm6, %v12592_v51, -inf }
 0xe21   : > { %v12594_v11 = vpop.f32.mrf.mxu1 }
 0xe22   : > { %v3674_v54 = vsel %vm1144_vm6, %v12594_v11, -inf }
 0xe23   : > { %v12596_v59 = vpop.f32.mrf.mxu1 }
 0xe24   : > { %v3671_v9 = vsel %vm1144_vm6, %v12596_v59, -inf }
 0xe25   : > { %v12600_v14 = vpop.f32.mrf.mxu1 }
 0xe26   : > { %v3680_v15 = vsel %vm1144_vm6, %v12600_v14, -inf }
 0xe27   : > { %v12610_v58 = vpop.f32.mrf.mxu1 }
 0xe2c   : > { %3925 = vrot.lane.b32.xlu1 %v11287_v8, %s10864_s8 }
 0xe33   : > { %3927 = vrot.lane.b32.xlu0 %v11274_v4, %s10864_s8 }
 0xe50   : > { %3675 = vmax.xlane.f32.xlu1 %v3674_v54  ;;  %v3677_v54 = vsel %vm1144_vm6, %v12610_v58, -inf }
 0xe52   : > { %3669 = vmax.xlane.f32.xlu0 %v3668_v56 }
 0xe54   : > { %3681 = vmax.xlane.f32.xlu1 %v3680_v15 }
 0xe56   : > { %3666 = vmax.xlane.f32.xlu0 %v3665_v53 }
 0xe5a   : > { %3672 = vmax.xlane.f32.xlu0 %v3671_v9  ;;  %v3934_v9 = vpop.permute.xlu1 %3933 }
 0xe5e   : > { %3678 = vmax.xlane.f32.xlu0 %v3677_v54  ;;  %v3932_v53 = vpop.permute.xlu1 %3931 }
 0xe62   : > { %v3930_v15 = vpop.permute.xlu1 %3929 }
 0xe65   : > { %3921 = vrot.lane.b32.xlu1 %v11265_v60, %s10864_s8 }
 0xe69   : > { %3907 = vrot.lane.b32.xlu1 %v11280_v6, %s10865_s13 }
 0xe6d   : > { %3911 = vrot.lane.b32.xlu1 %v11274_v4, %s10865_s13 }
 0xe71   : > { %3915 = vrot.lane.b32.xlu1 %v11277_v5, %s10865_s13 }
 0xe74   : > { %3923 = vrot.lane.b32.xlu0 %v11280_v6, %s10864_s8 }
 0xe75   : > { %3919 = vrot.lane.b32.xlu1 %v11269_v1, %s10865_s13 }
 0xe78   : > { %3905 = vrot.lane.b32.xlu0 %v11265_v60, %s10865_s13 }
 0xe7c   : > { %3909 = vrot.lane.b32.xlu0 %v11287_v8, %s10865_s13 }
 0xe80   : > { %3913 = vrot.lane.b32.xlu0 %v11283_v7, %s10865_s13 }
 0xe84   : > { %3917 = vrot.lane.b32.xlu0 %v11271_v3, %s10865_s13  ;;  %s14823_s13 = sld [smem:[#allocation105_spill]] }
 0xea4   : > { %v3664_v56 = vpop.xlane.xlu1 %3663 }
 0xea5   : > { %v3684_v4 = vsub.f32 %v9343_v10, %v3664_v56 }
 0xea6   : > { %v3661_v54 = vpop.xlane.xlu0 %3660 }
 0xea7   : > { %v3683_v5 = vsub.f32 %v3620_v52, %v3661_v54  ;;  %v3693_v27 = vmul.f32 1.442695, %v3684_v4 }
 0xea8   : > { %v3926_v6 = vpop.permute.xlu1 %3925 }
 0xea9   : > { %v3691_v62 = vmul.f32 1.442695, %v3683_v5 }
 0xeaa   : > { %v3928_v3 = vpop.permute.xlu0 %3927 }
 0xeab   : > { %10260 = vpow2.f32 %v3691_v62 }
 0xeac   : > { %10262 = vpow2.f32 %v3693_v27 }
 0xeb8   : > { %v12626_v1 = vpop.eup %10260 }
 0xeb9   : > { %v12628_v60 = vpop.eup %10262  ;;  %9369 = vmatprep.mubr.msk.f32.mxu0 %vm1144_vm6, %v12626_v1 }
 0xeba   : > { %9370 = vmatmul.mubr.msk.f32.vlgmr.msra.gmra.mxu0 %vm1144_vm6, %v12628_v60 }
 0xebb   : > { %9382 = vmatpush3.xpose.msk.msra.mxu0 %vm1006_vm1, %v12511_v42 }
 0xebc   : > { %9383 = vmatprep.subr.msk.mxu0 %vm1006_vm1, %v3934_v9 }
 0xebf   : > { %9384 = vmatpush3.xpose.msk.msra.mxu0 %vm1006_vm1, %v3934_v9 }
 0xec0   : > { %9385 = vmatprep.subr.msk.mxu0 %vm1006_vm1, %v3932_v53 }
 0xec3   : > { %9386 = vmatpush3.xpose.msk.msra.mxu0 %vm1006_vm1, %v3932_v53 }
 0xec4   : > { %9387 = vmatprep.subr.msk.mxu0 %vm1006_vm1, %v3930_v15 }
 0xec7   : > { %9388 = vmatpush3.xpose.msk.msra.mxu0 %vm1006_vm1, %v3930_v15 }
 0xec8   : > { %9389 = vmatprep.subr.msk.mxu0 %vm1006_vm1, %v3928_v3 }
 0xecb   : > { %9390 = vmatpush3.xpose.msk.msra.mxu0 %vm1006_vm1, %v3928_v3 }
 0xecc   : > { %9391 = vmatprep.subr.msk.mxu0 %vm1006_vm1, %v3926_v6 }
 0xecf   : > { %9392 = vmatpush3.xpose.msk.msra.mxu0 %vm1006_vm1, %v3926_v6 }
 0xed9   : > { %v3676_v8 = vpop.xlane.xlu1 %3675 }
 0xeda   : > { %v3688_v10 = vsub.f32 %v12594_v11, %v3676_v8 }
 0xedb   : > { %v3670_v7 = vpop.xlane.xlu0 %3669 }
 0xedc   : > { %v3686_v42 = vsub.f32 %v12590_v2, %v3670_v7  ;;  %v3701_v4 = vmul.f32 1.442695, %v3688_v10 }
 0xedd   : > { %v3682_v9 = vpop.xlane.xlu1 %3681 }
 0xede   : > { %v3697_v52 = vmul.f32 1.442695, %v3686_v42  ;;  %v3690_v54 = vsub.f32 %v12600_v14, %v3682_v9 }
 0xedf   : > { %v3667_v27 = vpop.xlane.xlu0 %3666 }
 0xee0   : > { %v3685_v62 = vsub.f32 %v12592_v51, %v3667_v27  ;;  %v3705_v51 = vmul.f32 1.442695, %v3690_v54 }
 0xee1   : > { %v3922_v7 = vpop.permute.xlu1 %3921 }
 0xee2   : > { %v3695_v53 = vmul.f32 1.442695, %v3685_v62 }
 0xee3   : > { %v3673_v15 = vpop.xlane.xlu0 %3672 }
 0xee4   : > { %10264 = vpow2.f32 %v3695_v53  ;;  %v3687_v56 = vsub.f32 %v12596_v59, %v3673_v15 }
 0xee5   : > { %10266 = vpow2.f32 %v3697_v52  ;;  %v3908_v27 = vpop.permute.xlu1 %3907 }
 0xee6   : > { %v3699_v5 = vmul.f32 1.442695, %v3687_v56 }
 0xee7   : > { %v3679_v3 = vpop.xlane.xlu0 %3678 }
 0xee8   : > { %10268 = vpow2.f32 %v3699_v5  ;;  %v3689_v2 = vsub.f32 %v12610_v58, %v3679_v3  ;;  %v4474_v5 = vld [vmem:[#allocation5 + $0x48] sm:$0xff]  ;;  %v4475_v3 = vld [vmem:[#allocation5 + $0x50] sm:$0xff] }
 0xee9   : > { %10270 = vpow2.f32 %v3701_v4  ;;  %v3912_v9 = vpop.permute.xlu1 %3911  ;;  %v4473_v4 = vld [vmem:[#allocation5 + $0x40] sm:$0xff] }
 0xeea   : > { %v3703_v6 = vmul.f32 1.442695, %v3689_v2  ;;  %v4476_v2 = vld [vmem:[#allocation5 + $0x58] sm:$0xff] }
 0xeeb   : > { %v3924_v11 = vpop.permute.xlu0 %3923 }
 0xeec   : > { %10272 = vpow2.f32 %v3703_v6  ;;  %9393 = vmatprep.subr.msk.mxu0 %vm1006_vm1, %v3924_v11  ;;  %v4478_v6 = vld [vmem:[#allocation5 + $0x68] sm:$0xff] }
 0xeed   : > { %10274 = vpow2.f32 %v3705_v51  ;;  %9394 = vmatpush3.xpose.msk.msra.mxu0 %vm1006_vm1, %v3924_v11  ;;  %v3916_v15 = vpop.permute.xlu1 %3915  ;;  %v4477_v51 = vld [vmem:[#allocation5 + $0x60] sm:$0xff]  ;;  %v4479_v11 = vld [vmem:[#allocation5 + $0x70] sm:$0xff] }
 0xeee   : > { %9395 = vmatprep.subr.msk.mxu0 %vm1006_vm1, %v3922_v7 }
 0xeef   : > { %v3906_v8 = vpop.permute.xlu0 %3905 }
 0xef1   : > { %v12655_v59 = vpop.eup %10264  ;;  %9396 = vmatpush3.xpose.msk.msra.mxu0 %vm1006_vm1, %v3922_v7  ;;  %v3920_v54 = vpop.permute.xlu1 %3919  ;;  %v4480_v7 = vld [vmem:[#allocation5 + $0x78] sm:$0xff] }
 0xef2   : > { %v12658_v14 = vpop.eup %10266  ;;  %9372 = vmatprep.mubr.msk.f32.mxu0 %vm1144_vm6, %v12655_v59  ;;  %9465 = vmatprep.subr.mxu0 %v11318_v17 }
 0xef3   : > { %9373 = vmatmul.mubr.msk.f32.gmra.mxu0 %vm1144_vm6, %v12658_v14  ;;  %v3910_v52 = vpop.permute.xlu0 %3909 }
 0xef5   : > { %v12665_v58 = vpop.eup %10268 }
 0xef6   : > { %v12667_v42 = vpop.eup %10270  ;;  %9375 = vmatprep.mubr.msk.f32.mxu0 %vm1144_vm6, %v12665_v58 }
 0xef7   : > { %9376 = vmatmul.mubr.msk.f32.gmra.mxu0 %vm1144_vm6, %v12667_v42  ;;  %v3914_v53 = vpop.permute.xlu0 %3913 }
 0xef9   : > { %v12673_v62 = vpop.eup %10272 }
 0xefa   : > { %v12675_v10 = vpop.eup %10274  ;;  %9378 = vmatprep.mubr.msk.f32.mxu0 %vm1144_vm6, %v12673_v62 }
 0xefb   : > { %9379 = vmatmul.mubr.msk.f32.gmra.mxu0 %vm1144_vm6, %v12675_v10  ;;  %v3918_v56 = vpop.permute.xlu0 %3917 }
 0xefc   : > { %9397 = vmatprep.mubr.msk.f32.mxu0 %vm1006_vm1, %v3906_v8  ;;  %v4789_v8 = vld [vmem:[#allocation5 + $0xc0] sm:$0xff] }
 0xeff   : > { %9398 = vmatmul.mubr.msk.f32.vlgmr.msra.gmra.mxu0 %vm1006_vm1, %v3908_v27  ;;  %v4790_v27 = vld [vmem:[#allocation5 + $0xc8] sm:$0xff] }
 0xf00   : > { %9466 = vmatpush3.msra.mxu0 %v11318_v17  ;;  %9400 = vmatprep.mubr.msk.f32.mxu0 %vm1006_vm1, %v3910_v52  ;;  %v4791_v52 = vld [vmem:[#allocation5 + $0xd0] sm:$0xff] }
 0xf01   : > { %9467 = vmatprep.subr.mxu0 %v11365_v30 }
 0xf02   : > { %9468 = vmatpush3.msra.mxu0 %v11365_v30 }
 0xf03   : > { %9469 = vmatprep.subr.mxu0 %v11350_v26  ;;  %9401 = vmatmul.mubr.msk.f32.gmra.mxu0 %vm1006_vm1, %v3912_v9  ;;  %v4792_v9 = vld [vmem:[#allocation5 + $0xd8] sm:$0xff] }
 0xf04   : > { %9470 = vmatpush3.msra.mxu0 %v11350_v26  ;;  %9403 = vmatprep.mubr.msk.f32.mxu0 %vm1006_vm1, %v3914_v53  ;;  %v4793_v53 = vld [vmem:[#allocation5 + $0xe0] sm:$0xff] }
 0xf05   : > { %9471 = vmatprep.subr.mxu0 %v11367_v31 }
 0xf06   : > { %9472 = vmatpush3.msra.mxu0 %v11367_v31 }
 0xf07   : > { %9473 = vmatprep.subr.mxu0 %v11331_v22  ;;  %9404 = vmatmul.mubr.msk.f32.gmra.mxu0 %vm1006_vm1, %v3916_v15  ;;  %v4794_v15 = vld [vmem:[#allocation5 + $0xe8] sm:$0xff] }
 0xf08   : > { %9474 = vmatpush3.msra.mxu0 %v11331_v22  ;;  %9406 = vmatprep.mubr.msk.f32.mxu0 %vm1006_vm1, %v3918_v56  ;;  %v4795_v56 = vld [vmem:[#allocation5 + $0xf0] sm:$0xff] }
 0xf09   : > { %9475 = vmatprep.subr.mxu0 %v11403_v32 }
 0xf0a   : > { %9476 = vmatpush3.msra.mxu0 %v11403_v32 }
 0xf0b   : > { %9477 = vmatprep.subr.mxu0 %v11337_v23  ;;  %9407 = vmatmul.mubr.msk.f32.gmra.mxu0 %vm1006_vm1, %v3920_v54  ;;  %v5105_v54 = vld [vmem:[#allocation5 + $0x140] sm:$0xff] }
 0xf0c   : > { %9478 = vmatpush3.msra.mxu0 %v11337_v23  ;;  %9481 = vmatprep.mubr.msk.f32.mxu0 %vm1144_vm6, %v4473_v4  ;;  %v4796_v4 = vld [vmem:[#allocation5 + $0xf8] sm:$0xff] }
 0xf0d   : > { %9479 = vmatprep.subr.mxu0 %v11440_v33 }
 0xf0e   : > { %9480 = vmatpush3.msra.mxu0 %v11440_v33 }
 0xf0f   : > { %9521 = vmatprep.subr.mxu0 %v11318_v17  ;;  %9482 = vmatmul.mubr.msk.f32.vlgmr.msra.gmra.mxu0 %vm1144_vm6, %v4474_v5  ;;  %v5106_v5 = vld [vmem:[#allocation5 + $0x148] sm:$0xff] }
 0xf10   : > { %9522 = vmatpush3.msra.mxu0 %v11318_v17  ;;  %9484 = vmatprep.mubr.msk.f32.mxu0 %vm1144_vm6, %v4475_v3 }
 0xf11   : > { %9523 = vmatprep.subr.mxu0 %v11365_v30 }
 0xf12   : > { %9524 = vmatpush3.msra.mxu0 %v11365_v30 }
 0xf13   : > { %9525 = vmatprep.subr.mxu0 %v11350_v26  ;;  %9485 = vmatmul.mubr.msk.f32.gmra.mxu0 %vm1144_vm6, %v4476_v2 }
 0xf14   : > { %9526 = vmatpush3.msra.mxu0 %v11350_v26  ;;  %9487 = vmatprep.mubr.msk.f32.mxu0 %vm1144_vm6, %v4477_v51 }
 0xf15   : > { %9527 = vmatprep.subr.mxu0 %v11367_v31 }
 0xf16   : > { %9528 = vmatpush3.msra.mxu0 %v11367_v31 }
 0xf17   : > { %9529 = vmatprep.subr.mxu0 %v11331_v22  ;;  %9488 = vmatmul.mubr.msk.f32.gmra.mxu0 %vm1144_vm6, %v4478_v6 }
 0xf18   : > { %9530 = vmatpush3.msra.mxu0 %v11331_v22  ;;  %9490 = vmatprep.mubr.msk.f32.mxu0 %vm1144_vm6, %v4479_v11 }
 0xf19   : > { %9531 = vmatprep.subr.mxu0 %v11403_v32 }
 0xf1a   : > { %9532 = vmatpush3.msra.mxu0 %v11403_v32 }
 0xf1b   : > { %9533 = vmatprep.subr.mxu0 %v11337_v23  ;;  %9491 = vmatmul.mubr.msk.f32.gmra.mxu0 %vm1144_vm6, %v4480_v7 }
 0xf1c   : > { %9534 = vmatpush3.msra.mxu0 %v11337_v23  ;;  %9537 = vmatprep.mubr.msk.f32.mxu0 %vm1144_vm6, %v4789_v8 }
 0xf1d   : > { %9535 = vmatprep.subr.mxu0 %v11440_v33 }
 0xf1e   : > { %9536 = vmatpush3.msra.mxu0 %v11440_v33 }
 0xf1f   : > { %9577 = vmatprep.subr.mxu0 %v11318_v17  ;;  %9538 = vmatmul.mubr.msk.f32.vlgmr.msra.gmra.mxu0 %vm1144_vm6, %v4790_v27 }
 0xf20   : > { %9578 = vmatpush3.msra.mxu0 %v11318_v17  ;;  %9540 = vmatprep.mubr.msk.f32.mxu0 %vm1144_vm6, %v4791_v52 }
 0xf21   : > { %9579 = vmatprep.subr.mxu0 %v11365_v30 }
 0xf22   : > { %9580 = vmatpush3.msra.mxu0 %v11365_v30 }
 0xf23   : > { %9581 = vmatprep.subr.mxu0 %v11350_v26  ;;  %9541 = vmatmul.mubr.msk.f32.gmra.mxu0 %vm1144_vm6, %v4792_v9 }
 0xf24   : > { %9582 = vmatpush3.msra.mxu0 %v11350_v26  ;;  %9543 = vmatprep.mubr.msk.f32.mxu0 %vm1144_vm6, %v4793_v53 }
 0xf25   : > { %9583 = vmatprep.subr.mxu0 %v11367_v31 }
 0xf26   : > { %9584 = vmatpush3.msra.mxu0 %v11367_v31 }
 0xf27   : > { %9585 = vmatprep.subr.mxu0 %v11331_v22  ;;  %9544 = vmatmul.mubr.msk.f32.gmra.mxu0 %vm1144_vm6, %v4794_v15 }
 0xf28   : > { %9586 = vmatpush3.msra.mxu0 %v11331_v22  ;;  %9546 = vmatprep.mubr.msk.f32.mxu0 %vm1144_vm6, %v4795_v56 }
 0xf29   : > { %9587 = vmatprep.subr.mxu0 %v11403_v32 }
 0xf2a   : > { %9588 = vmatpush3.msra.mxu0 %v11403_v32 }
 0xf2b   : > { %9589 = vmatprep.subr.mxu0 %v11337_v23  ;;  %9547 = vmatmul.mubr.msk.f32.gmra.mxu0 %vm1144_vm6, %v4796_v4 }
 0xf2c   : > { %9590 = vmatpush3.msra.mxu0 %v11337_v23  ;;  %9593 = vmatprep.mubr.msk.f32.mxu0 %vm1144_vm6, %v5105_v54 }
 0xf2d   : > { %9591 = vmatprep.subr.mxu0 %v11440_v33 }
 0xf2e   : > { %9592 = vmatpush3.msra.mxu0 %v11440_v33 }
 0xf2f   : > { %9633 = vmatprep.subr.mxu0 %v11318_v17  ;;  %9594 = vmatmul.mubr.msk.f32.vlgmr.msra.gmra.mxu0 %vm1144_vm6, %v5106_v5 }
 0xf30   : > { %9634 = vmatpush3.msra.mxu0 %v11318_v17 }
 0xf31   : > { %9635 = vmatprep.subr.mxu0 %v11365_v30 }
 0xf32   : > { %9636 = vmatpush3.msra.mxu0 %v11365_v30 }
 0xf33   : > { %9637 = vmatprep.subr.mxu0 %v11350_v26 }
 0xf34   : > { %9638 = vmatpush3.msra.mxu0 %v11350_v26 }
 0xf35   : > { %9639 = vmatprep.subr.mxu0 %v11367_v31 }
 0xf36   : > { %9640 = vmatpush3.msra.mxu0 %v11367_v31 }
 0xf37   : > { %9641 = vmatprep.subr.mxu0 %v11331_v22 }
 0xf38   : > { %9642 = vmatpush3.msra.mxu0 %v11331_v22 }
 0xf39   : > { %9643 = vmatprep.subr.mxu0 %v11403_v32 }
 0xf3a   : > { %9644 = vmatpush3.msra.mxu0 %v11403_v32 }
 0xf3b   : > { %9645 = vmatprep.subr.mxu0 %v11337_v23 }
 0xf3c   : > { %9646 = vmatpush3.msra.mxu0 %v11337_v23 }
 0xf3d   : > { %9647 = vmatprep.subr.mxu0 %v11440_v33 }
 0xf3e   : > { %9648 = vmatpush3.msra.mxu0 %v11440_v33 }
 0xf7a   : > { %v12770_v3 = vpop.f32.mrf.mxu0 }
 0xf7c   : > { %v12772_v2 = vpop.f32.mrf.mxu0 }
 0xfb3   : > { %v12774_v51 = vpop.f32.mrf.mxu0 }
 0xfb4   : > { %14656 = vst [vmem:[#allocation87_spill] sm:$0xff] %v12774_v51  ;;  %v2050_v51 = vsel %vm1144_vm6, %v11891_v55, 0.0  ;;  %v1199_v55 = vsel %vm1144_vm6, %v11546_v24, 0.0  ;;  %v2880_v24 = vsel %vm1144_vm6, %v12263_v61, 0.0  ;;  %v1205_v61 = vsel %vm1144_vm6, %v11562_v35, 0.0 }
 0xfb5   : > { %v12776_v6 = vpop.f32.mrf.mxu0  ;;  %v2883_v35 = vsel %vm1144_vm6, %v12296_v19, 0.0  ;;  %v3707_v19 = vsel %vm1144_vm6, %v12626_v1, 0.0 }
 0xfb6   : > { %14657 = vst [vmem:[#allocation88_spill] sm:$0xff] %v12776_v6 }
 0xfb7   : > { %v12778_v11 = vpop.f32.mrf.mxu0 }
 0xfb8   : > { %14658 = vst [vmem:[#allocation89_spill] sm:$0xff] %v12778_v11 }
 0xfb9   : > { %v12780_v7 = vpop.f32.mrf.mxu0 }
 0xfba   : > { %14659 = vst [vmem:[#allocation90_spill] sm:$0xff] %v12780_v7 }
 0xfbb   : > { %v12782_v8 = vpop.f32.mrf.mxu0 }
 0xfbc   : > { %14660 = vst [vmem:[#allocation91_spill] sm:$0xff] %v12782_v8 }
 0xfbd   : > { %v12784_v27 = vpop.f32.mrf.mxu0 }
 0xfbe   : > { %14661 = vst [vmem:[#allocation92_spill] sm:$0xff] %v12784_v27 }
 0xfbf   : > { %v12786_v52 = vpop.f32.mrf.mxu0 }
 0xfc0   : > { %v4077_v9 = vsel %vm1144_vm6, %v12786_v52, -inf }
 0xfc1   : > { %4078 = vmax.xlane.f32.xlu1 %v4077_v9  ;;  %v12790_v53 = vpop.f32.mrf.mxu0 }
 0xfc2   : > { %v4074_v15 = vsel %vm1144_vm6, %v12790_v53, -inf }
 0xfc3   : > { %4075 = vmax.xlane.f32.xlu0 %v4074_v15  ;;  %v12794_v56 = vpop.f32.mrf.mxu0 }
 0xfc4   : > { %v4083_v54 = vsel %vm1144_vm6, %v12794_v56, -inf }
 0xfc5   : > { %v12796_v4 = vpop.f32.mrf.mxu0 }
 0xfc6   : > { %v4080_v27 = vsel %vm1144_vm6, %v12796_v4, -inf }
 0xfc7   : > { %4084 = vmax.xlane.f32.xlu0 %v4083_v54  ;;  %v12800_v5 = vpop.f32.mrf.mxu0 }
 0xfc8   : > { %v4089_v8 = vsel %vm1144_vm6, %v12800_v5, -inf }
 0xfc9   : > { %4090 = vmax.xlane.f32.xlu1 %v4089_v8  ;;  %v12804_v9 = vpop.f32.mrf.mxu0  ;;  %v1632_v8 = vsel %vm1144_vm6, %v11703_v21, 0.0  ;;  %v1196_v21 = vsel %vm1144_vm6, %v11517_v39, 0.0  ;;  %v2465_v39 = vsel %vm1144_vm6, %v12077_v29, 0.0  ;;  %v2053_v29 = vsel %vm1144_vm6, %v11924_v36, 0.0 }
 0xfca   : > { %v4086_v54 = vsel %vm1144_vm6, %v12804_v9, -inf  ;;  %v1647_v36 = vsel %vm1144_vm6, %v11752_v47, 0.0  ;;  %v2471_v47 = vsel %vm1144_vm6, %v12113_v25, 0.0 }
 0xfcb   : > { %4081 = vmax.xlane.f32.xlu0 %v4080_v27  ;;  %v12808_v15 = vpop.f32.mrf.mxu0  ;;  %v1635_v27 = vsel %vm1144_vm6, %v11705_v28, 0.0  ;;  %v2047_v28 = vsel %vm1144_vm6, %v11889_v41, 0.0  ;;  %v2877_v41 = vsel %vm1144_vm6, %v12261_v13, 0.0  ;;  %v2056_v13 = vsel %vm1144_vm6, %v11927_v49, 0.0 }
 0xfcc   : > { %v4095_v7 = vsel %vm1144_vm6, %v12808_v15, -inf  ;;  %v3295_v49 = vsel %vm1144_vm6, %v12449_v50, 0.0 }
 0xfcd   : > { %4096 = vmax.xlane.f32.xlu1 %v4095_v7  ;;  %v12814_v11 = vpop.f32.mrf.mxu0  ;;  %v1193_v7 = vsel %vm1144_vm6, %v11515_v57, 0.0  ;;  %v1202_v57 = vsel %vm1144_vm6, %v11554_v34, 0.0  ;;  %v1641_v34 = vsel %vm1144_vm6, %v11741_v44, 0.0  ;;  %v3292_v44 = vsel %vm1144_vm6, %v12447_v40, 0.0 }
 0xfce   : > { %v4092_v6 = vsel %vm1144_vm6, %v12814_v11, -inf  ;;  %v1208_v40 = vsel %vm1144_vm6, %v11566_v37, 0.0  ;;  %v3710_v37 = vsel %vm1144_vm6, %v12628_v60, 0.0 }
 0xfcf   : > { %4087 = vmax.xlane.f32.xlu0 %v4086_v54  ;;  %v1638_v54 = vsel %vm1144_vm6, %v11738_v43, 0.0  ;;  %v2462_v43 = vsel %vm1144_vm6, %v12075_v12, 0.0  ;;  %v1644_v12 = vsel %vm1144_vm6, %v11750_v46, 0.0  ;;  %v2468_v46 = vsel %vm1144_vm6, %v12110_v16, 0.0 }
 0xfd0   : > { %v2062_v16 = vsel %vm1144_vm6, %v11938_v63, 0.0 }
 0xfd1   : > { %1633 = vadd.xlane.f32.xlu1 %v1632_v8  ;;  %v14664_v8 = vld [vmem:[#allocation66_spill] sm:$0xff] }
 0xfd2   : > { %v2886_v63 = vsel %vm1144_vm6, %v14664_v8, 0.0  ;;  %v5425_v8 = vld [vmem:[#allocation5 + $0x1e0] sm:$0xff] }
 0xfd3   : > { %4093 = vmax.xlane.f32.xlu0 %v4092_v6  ;;  %v14663_v6 = vld [vmem:[#allocation33_spill] sm:$0xff] }
 0xfd4   : > { %v1650_v25 = vsel %vm1144_vm6, %v14663_v6, 0.0 }
 0xfd5   : > { %1636 = vadd.xlane.f32.xlu1 %v1635_v27  ;;  %v3298_v27 = vsel %vm1144_vm6, %v12482_v48, 0.0 }
 0xfd7   : > { %1194 = vadd.xlane.f32.xlu0 %v1193_v7  ;;  %v14665_v7 = vld [vmem:[#allocation23_spill] sm:$0xff] }
 0xfd8   : > { %v1211_v60 = vsel %vm1144_vm6, %v14665_v7, 0.0  ;;  %v3307_v7 = vsel %vm1144_vm6, %v12496_v18, 0.0  ;;  %v3310_v18 = vsel %vm1144_vm6, %v12502_v0, 0.0 }
 0xfd9   : > { %2051 = vadd.xlane.f32.xlu1 %v2050_v51  ;;  %v14662_v51 = vld [vmem:[#allocation43_spill] sm:$0xff] }
 0xfda   : > { %v2059_v50 = vsel %vm1144_vm6, %v14662_v51, 0.0  ;;  %v3304_v51 = vsel %vm1144_vm6, %v12494_v20, 0.0 }
 0xfdb   : > { %1197 = vadd.xlane.f32.xlu0 %v1196_v21  ;;  %v14666_v21 = vld [vmem:[#allocation24_spill] sm:$0xff] }
 0xfdc   : > { %v1214_v1 = vsel %vm1144_vm6, %v14666_v21, 0.0  ;;  %v5428_v21 = vld [vmem:[#allocation5 + $0x1f8] sm:$0xff] }
 0xfdd   : > { %1639 = vadd.xlane.f32.xlu1 %v1638_v54  ;;  %v14667_v54 = vld [vmem:[#allocation54_spill] sm:$0xff] }
 0xfdf   : > { %2048 = vadd.xlane.f32.xlu0 %v2047_v28  ;;  %v2474_v28 = vsel %vm1144_vm6, %v14667_v54, 0.0  ;;  %v14676_v54 = vld [vmem:[#allocation69_spill] sm:$0xff] }
 0xfe1   : > { %1203 = vadd.xlane.f32.xlu1 %v1202_v57  ;;  %v14668_v57 = vld [vmem:[#allocation55_spill] sm:$0xff] }
 0xfe3   : > { %1200 = vadd.xlane.f32.xlu0 %v1199_v55  ;;  %v2477_v55 = vsel %vm1144_vm6, %v14668_v57, 0.0 }
 0xfe5   : > { %2466 = vadd.xlane.f32.xlu1 %v2465_v39  ;;  %v14669_v39 = vld [vmem:[#allocation34_spill] sm:$0xff] }
 0xfe6   : > { %v1653_v48 = vsel %vm1144_vm6, %v14669_v39, 0.0 }
 0xfe7   : > { %2463 = vadd.xlane.f32.xlu0 %v2462_v43  ;;  %v5107_v43 = vld [vmem:[#allocation5 + $0x150] sm:$0xff] }
 0xfe8   : > { %9596 = vmatprep.mubr.msk.f32.mxu0 %vm1144_vm6, %v5107_v43 }
 0xfe9   : > { %2878 = vadd.xlane.f32.xlu1 %v2877_v41  ;;  %v5108_v41 = vld [vmem:[#allocation5 + $0x158] sm:$0xff] }
 0xfea   : > { %9597 = vmatmul.mubr.msk.f32.gmra.mxu0 %vm1144_vm6, %v5108_v41 }
 0xfeb   : > { %1642 = vadd.xlane.f32.xlu0 %v1641_v34  ;;  %v14670_v34 = vld [vmem:[#allocation67_spill] sm:$0xff] }
 0xfed   : > { %2881 = vadd.xlane.f32.xlu1 %v2880_v24  ;;  %v2889_v24 = vsel %vm1144_vm6, %v14670_v34, 0.0 }
 0xfef   : > { %2054 = vadd.xlane.f32.xlu0 %v2053_v29  ;;  %v3301_v29 = vsel %vm1144_vm6, %v12485_v38, 0.0  ;;  %v3716_v38 = vsel %vm1144_vm6, %v12658_v14, 0.0 }
 0xff1   : > { %1645 = vadd.xlane.f32.xlu1 %v1644_v12  ;;  %v5109_v12 = vld [vmem:[#allocation5 + $0x160] sm:$0xff] }
 0xff2   : > { %9599 = vmatprep.mubr.msk.f32.mxu0 %vm1144_vm6, %v5109_v12 }
 0xff3   : > { %2057 = vadd.xlane.f32.xlu0 %v2056_v13  ;;  %v5110_v13 = vld [vmem:[#allocation5 + $0x168] sm:$0xff] }
 0xff4   : > { %9600 = vmatmul.mubr.msk.f32.gmra.mxu0 %vm1144_vm6, %v5110_v13 }
 0xff5   : > { %3293 = vadd.xlane.f32.xlu1 %v3292_v44  ;;  %v14671_v44 = vld [vmem:[#allocation45_spill] sm:$0xff] }
 0xff7   : > { %1206 = vadd.xlane.f32.xlu0 %v1205_v61  ;;  %v2068_v61 = vsel %vm1144_vm6, %v14671_v44, 0.0 }
 0xff9   : > { %1648 = vadd.xlane.f32.xlu1 %v1647_v36  ;;  %v14672_v36 = vld [vmem:[#allocation44_spill] sm:$0xff] }
 0xffb   : > { %2469 = vadd.xlane.f32.xlu0 %v2468_v46  ;;  %v2065_v46 = vsel %vm1144_vm6, %v14672_v36, 0.0 }
 0xffd   : > { %3296 = vadd.xlane.f32.xlu1 %v3295_v49  ;;  %v5111_v49 = vld [vmem:[#allocation5 + $0x170] sm:$0xff] }
 0xffe   : > { %9602 = vmatprep.mubr.msk.f32.mxu0 %vm1144_vm6, %v5111_v49 }
 0xfff   : > { %1209 = vadd.xlane.f32.xlu0 %v1208_v40  ;;  %v5112_v40 = vld [vmem:[#allocation5 + $0x178] sm:$0xff] }
0x1000   : > { %9603 = vmatmul.mubr.msk.f32.gmra.mxu0 %vm1144_vm6, %v5112_v40 }
0x1001   : > { %2884 = vadd.xlane.f32.xlu1 %v2883_v35  ;;  %v3713_v35 = vsel %vm1144_vm6, %v12655_v59, 0.0  ;;  %v14674_v59 = vld [vmem:[#allocation57_spill] sm:$0xff] }
0x1002   : > { %v2483_v6 = vsel %vm1144_vm6, %v14674_v59, 0.0 }
0x1003   : > { %2472 = vadd.xlane.f32.xlu0 %v2471_v47  ;;  %v5421_v47 = vld [vmem:[#allocation5 + $0x1c0] sm:$0xff] }
0x1004   : > { %9649 = vmatprep.mubr.msk.f32.mxu0 %vm1144_vm6, %v5421_v47 }
0x1005   : > { %2063 = vadd.xlane.f32.xlu1 %v2062_v16  ;;  %v5422_v16 = vld [vmem:[#allocation5 + $0x1c8] sm:$0xff] }
0x1006   : > { %9650 = vmatmul.mubr.msk.f32.vlgmr.msra.gmra.mxu0 %vm1144_vm6, %v5422_v16 }
0x1007   : > { %2060 = vadd.xlane.f32.xlu0 %v2059_v50  ;;  %v14673_v50 = vld [vmem:[#allocation68_spill] sm:$0xff] }
0x1008   : > { %v2892_v14 = vsel %vm1144_vm6, %v14673_v50, 0.0 }
0x1009   : > { %3711 = vadd.xlane.f32.xlu1 %v3710_v37  ;;  %v5423_v37 = vld [vmem:[#allocation5 + $0x1d0] sm:$0xff] }
0x100a   : > { %9652 = vmatprep.mubr.msk.f32.mxu0 %vm1144_vm6, %v5423_v37 }
0x100b   : > { %3708 = vadd.xlane.f32.xlu0 %v3707_v19  ;;  %v5424_v19 = vld [vmem:[#allocation5 + $0x1d8] sm:$0xff] }
0x100c   : > { %9653 = vmatmul.mubr.msk.f32.gmra.mxu0 %vm1144_vm6, %v5424_v19 }
0x100d   : > { %1651 = vadd.xlane.f32.xlu1 %v1650_v25  ;;  %v14675_v25 = vld [vmem:[#allocation56_spill] sm:$0xff]  ;;  %9655 = vmatprep.mubr.msk.f32.mxu0 %vm1144_vm6, %v5425_v8 }
0x100e   : > { %v2480_v20 = vsel %vm1144_vm6, %v14675_v25, 0.0 }
0x100f   : > { %2887 = vadd.xlane.f32.xlu0 %v2886_v63  ;;  %v5426_v63 = vld [vmem:[#allocation5 + $0x1e8] sm:$0xff] }
0x1010   : > { %9656 = vmatmul.mubr.msk.f32.gmra.mxu0 %vm1144_vm6, %v5426_v63 }
0x1011   : > { %3299 = vadd.xlane.f32.xlu1 %v3298_v27  ;;  %v3719_v27 = vsel %vm1144_vm6, %v12665_v58, 0.0  ;;  %v2895_v58 = vsel %vm1144_vm6, %v14676_v54, 0.0 }
0x1013   : > { %1212 = vadd.xlane.f32.xlu0 %v1211_v60  ;;  %v5427_v60 = vld [vmem:[#allocation5 + $0x1f0] sm:$0xff] }
0x1014   : > { %9658 = vmatprep.mubr.msk.f32.mxu0 %vm1144_vm6, %v5427_v60  ;;  %v3725_v60 = vsel %vm1144_vm6, %v12673_v62, 0.0 }
0x1015   : > { %1215 = vadd.xlane.f32.xlu1 %v1214_v1  ;;  %v3722_v1 = vsel %vm1144_vm6, %v12667_v42, 0.0  ;;  %9659 = vmatmul.mubr.msk.f32.gmra.mxu0 %vm1144_vm6, %v5428_v21 }
0x1017   : > { %2475 = vadd.xlane.f32.xlu0 %v2474_v28  ;;  %v14677_v28 = vld [vmem:[#allocation70_spill] sm:$0xff] }
0x1018   : > { %v2898_v57 = vsel %vm1144_vm6, %v14677_v28, 0.0 }
0x1019   : > { %2478 = vadd.xlane.f32.xlu1 %v2477_v55  ;;  %v3313_v55 = vsel %vm1144_vm6, %v12504_v45, 0.0 }
0x101b   : > { %1654 = vadd.xlane.f32.xlu0 %v1653_v48 }
0x101d   : > { %2890 = vadd.xlane.f32.xlu1 %v2889_v24 }
0x101f   : > { %3302 = vadd.xlane.f32.xlu0 %v3301_v29 }
0x1021   : > { %2069 = vadd.xlane.f32.xlu1 %v2068_v61 }
0x1023   : > { %2066 = vadd.xlane.f32.xlu0 %v2065_v46 }
0x1025   : > { %3717 = vadd.xlane.f32.xlu1 %v3716_v38 }
0x1027   : > { %3714 = vadd.xlane.f32.xlu0 %v3713_v35 }
0x1029   : > { %3305 = vadd.xlane.f32.xlu1 %v3304_v51 }
0x102b   : > { %2893 = vadd.xlane.f32.xlu0 %v2892_v14 }
0x102d   : > { %2484 = vadd.xlane.f32.xlu1 %v2483_v6 }
0x102f   : > { %2481 = vadd.xlane.f32.xlu0 %v2480_v20 }
0x1031   : > { %3720 = vadd.xlane.f32.xlu1 %v3719_v27 }
0x1033   : > { %3308 = vadd.xlane.f32.xlu0 %v3307_v7 }
0x1035   : > { %3723 = vadd.xlane.f32.xlu1 %v3722_v1 }
0x1037   : > { %2896 = vadd.xlane.f32.xlu0 %v2895_v58 }
0x103b   : > { %2899 = vadd.xlane.f32.xlu0 %v2898_v57 }
0x103f   : > { %3311 = vadd.xlane.f32.xlu0 %v3310_v18 }
0x1043   : > { %3314 = vadd.xlane.f32.xlu0 %v3313_v55  ;;  %v4323_v55 = vld [vmem:[#allocation5] sm:$0xff] }
0x104a   : > { %v4079_v42 = vpop.xlane.xlu1 %4078 }
0x104b   : > { %v4099_v39 = vsub.f32 %v12786_v52, %v4079_v42 }
0x104c   : > { %v4076_v48 = vpop.xlane.xlu0 %4075 }
0x104d   : > { %v4108_v43 = vmul.f32 1.442695, %v4099_v39  ;;  %v4098_v41 = vsub.f32 %v12790_v53, %v4076_v48  ;;  %v14678_v39 = vld [vmem:[#allocation36_spill] sm:$0xff] }
0x104f   : > { %10276 = vpow2.f32 %v4108_v43  ;;  %v4106_v34 = vmul.f32 1.442695, %v4098_v41  ;;  %v14679_v43 = vld [vmem:[#allocation26_spill] sm:$0xff] }
0x1050   : > { %v4085_v24 = vpop.xlane.xlu0 %4084 }
0x1051   : > { %10278 = vpow2.f32 %v4106_v34  ;;  %v4101_v29 = vsub.f32 %v12794_v56, %v4085_v24 }
0x1052   : > { %v4091_v12 = vpop.xlane.xlu1 %4090 }
0x1053   : > { %v4112_v0 = vmul.f32 1.442695, %v4101_v29  ;;  %v4103_v13 = vsub.f32 %v12800_v5, %v4091_v12  ;;  %v3728_v29 = vsel %vm1144_vm6, %v12675_v10, 0.0 }
0x1054   : > { %v4082_v44 = vpop.xlane.xlu0 %4081 }
0x1055   : > { %10280 = vpow2.f32 %v4112_v0  ;;  %v4116_v45 = vmul.f32 1.442695, %v4103_v13  ;;  %v4100_v61 = vsub.f32 %v12796_v4, %v4082_v44  ;;  %v4324_v13 = vld [vmem:[#allocation5 + $0x8] sm:$0xff] }
0x1056   : > { %v4097_v52 = vpop.xlane.xlu1 %4096 }
0x1057   : > { %v4110_v36 = vmul.f32 1.442695, %v4100_v61  ;;  %v4105_v46 = vsub.f32 %v12808_v15, %v4097_v52  ;;  %10282 = vpow2.f32 %v4116_v45  ;;  %v14680_v45 = vld [vmem:[#allocation35_spill] sm:$0xff]  ;;  %v14681_v52 = vld [vmem:[#allocation25_spill] sm:$0xff] }
0x1058   : > { %v4088_v53 = vpop.xlane.xlu0 %4087 }
0x1059   : > { %10284 = vpow2.f32 %v4110_v36  ;;  %v4102_v49 = vsub.f32 %v12804_v9, %v4088_v53  ;;  %v4120_v56 = vmul.f32 1.442695, %v4105_v46  ;;  %v4325_v53 = vld [vmem:[#allocation5 + $0x10] sm:$0xff] }
0x105a   : > { %v1634_v40 = vpop.xlane.xlu1 %1633 }
0x105b   : > { %v4114_v38 = vmul.f32 1.442695, %v4102_v49 }
0x105c   : > { %v10277_v35 = vpop.eup %10276  ;;  %v4094_v47 = vpop.xlane.xlu0 %4093 }
0x105d   : > { %10286 = vpow2.f32 %v4114_v38  ;;  %v4104_v5 = vsub.f32 %v12814_v11, %v4094_v47  ;;  %v4125_v16 = vsel %vm1144_vm6, %v10277_v35, 0.0  ;;  %v4326_v47 = vld [vmem:[#allocation5 + $0x18] sm:$0xff] }
0x105e   : > { %v10279_v4 = vpop.eup %10278  ;;  %4126 = vadd.xlane.f32.xlu1 %v4125_v16  ;;  %v1637_v51 = vpop.xlane.xlu1 %1636  ;;  %10288 = vpow2.f32 %v4120_v56 }
0x105f   : > { %v4118_v15 = vmul.f32 1.442695, %v4104_v5  ;;  %9425 = vmatprep.mubr.msk.f32.mxu1 %vm1144_vm6, %v10279_v4  ;;  %v4122_v50 = vsel %vm1144_vm6, %v10279_v4, 0.0  ;;  %10290 = vrcp.f32 %v1634_v40  ;;  %v14682_v40 = vld [vmem:[#allocation46_spill] sm:$0xff]  ;;  %v14683_v4 = vld [vmem:[#allocation47_spill] sm:$0xff] }
0x1060   : > { %4123 = vadd.xlane.f32.xlu0 %v4122_v50  ;;  %v1195_v9 = vpop.xlane.xlu0 %1194  ;;  %9426 = vmatmul.mubr.msk.f32.vlgmr.msra.gmra.mxu1 %vm1144_vm6, %v10277_v35  ;;  %v4327_v5 = vld [vmem:[#allocation5 + $0x20] sm:$0xff] }
0x1061   : > { %10292 = vpow2.f32 %v4118_v15  ;;  %9438 = vmatpush3.msra.mxu1 %v11318_v17 }
0x1062   : > { %v10281_v11 = vpop.eup %10280  ;;  %10294 = vrcp.f32 %v1195_v9  ;;  %9439 = vmatprep.subr.mxu1 %v11365_v30  ;;  %v2052_v14 = vpop.xlane.xlu1 %2051 }
0x1063   : > { %10296 = vrcp.f32 %v1637_v51  ;;  %9440 = vmatpush3.msra.mxu1 %v11365_v30  ;;  %v4131_v37 = vsel %vm1144_vm6, %v10281_v11, 0.0 }
0x1064   : > { %10298 = vrcp.f32 %v2052_v14  ;;  %9441 = vmatprep.subr.mxu1 %v11350_v26  ;;  %v1198_v19 = vpop.xlane.xlu0 %1197  ;;  %4132 = vadd.xlane.f32.xlu1 %v4131_v37  ;;  %v10283_v59 = vpop.eup %10282  ;;  %v4328_v37 = vld [vmem:[#allocation5 + $0x28] sm:$0xff] }
0x1065   : > { %10300 = vrcp.f32 %v1198_v19  ;;  %9442 = vmatpush3.msra.mxu1 %v11350_v26  ;;  %v4137_v63 = vsel %vm1144_vm6, %v10283_v59, 0.0  ;;  %v14684_v19 = vld [vmem:[#allocation38_spill] sm:$0xff] }
0x1066   : > { %v10285_v6 = vpop.eup %10284  ;;  %9443 = vmatprep.subr.mxu1 %v11367_v31  ;;  %v1640_v25 = vpop.xlane.xlu1 %1639 }
0x1067   : > { %9444 = vmatpush3.msra.mxu1 %v11367_v31  ;;  %9428 = vmatprep.mubr.msk.f32.mxu1 %vm1144_vm6, %v10285_v6  ;;  %v4128_v20 = vsel %vm1144_vm6, %v10285_v6, 0.0  ;;  %v14685_v6 = vld [vmem:[#allocation28_spill] sm:$0xff] }
0x1068   : > { %9445 = vmatprep.subr.mxu1 %v11331_v22  ;;  %4129 = vadd.xlane.f32.xlu0 %v4128_v20  ;;  %v2049_v8 = vpop.xlane.xlu0 %2048  ;;  %v4329_v20 = vld [vmem:[#allocation5 + $0x30] sm:$0xff] }
0x1069   : > { %10302 = vrcp.f32 %v2049_v8  ;;  %9429 = vmatmul.mubr.msk.f32.gmra.mxu1 %vm1144_vm6, %v10281_v11  ;;  %4138 = vadd.xlane.f32.xlu1 %v4137_v63 }
0x106a   : > { %v10287_v27 = vpop.eup %10286  ;;  %9446 = vmatpush3.msra.mxu1 %v11331_v22  ;;  %v1204_v7 = vpop.xlane.xlu1 %1203  ;;  %10304 = vrcp.f32 %v1640_v25 }
0x106b   : > { %9447 = vmatprep.subr.mxu1 %v11403_v32  ;;  %9431 = vmatprep.mubr.msk.f32.mxu1 %vm1144_vm6, %v10287_v27  ;;  %v4134_v21 = vsel %vm1144_vm6, %v10287_v27, 0.0  ;;  %v10289_v1 = vpop.eup %10288  ;;  %v14686_v27 = vld [vmem:[#allocation58_spill] sm:$0xff] }
0x106c   : > { %9448 = vmatpush3.msra.mxu1 %v11403_v32  ;;  %3726 = vadd.xlane.f32.xlu0 %v3725_v60  ;;  %v1201_v54 = vpop.xlane.xlu0 %1200  ;;  %v10291_v58 = vpop.eup %10290  ;;  %v4143_v10 = vsel %vm1144_vm6, %v10289_v1, 0.0 }
0x106d   : > { %9449 = vmatprep.subr.mxu1 %v11337_v23  ;;  %10306 = vrcp.f32 %v1201_v54  ;;  %9432 = vmatmul.mubr.msk.f32.gmra.mxu1 %vm1144_vm6, %v10283_v59  ;;  %v1814_v48 = vmul.f32 %v10291_v58, %v14678_v39  ;;  %v4330_v54 = vld [vmem:[#allocation5 + $0x38] sm:$0xff] }
0x106e   : > { %v10293_v28 = vpop.eup %10292  ;;  %9450 = vmatpush3.msra.mxu1 %v11337_v23  ;;  %4135 = vadd.xlane.f32.xlu1 %v4134_v21  ;;  %v2467_v57 = vpop.xlane.xlu1 %2466 }
0x106f   : > { %v10295_v18 = vpop.eup %10294  ;;  %9451 = vmatprep.subr.mxu1 %v11440_v33  ;;  %10308 = vrcp.f32 %v2467_v57  ;;  %9434 = vmatprep.mubr.msk.f32.mxu1 %vm1144_vm6, %v10293_v28  ;;  %v4140_v62 = vsel %vm1144_vm6, %v10293_v28, 0.0  ;;  %v4631_v28 = vld [vmem:[#allocation5 + $0x80] sm:$0xff] }
0x1070   : > { %v10297_v42 = vpop.eup %10296  ;;  %v1399_v41 = vmul.f32 %v10295_v18, %v14679_v43  ;;  %9452 = vmatpush3.msra.mxu1 %v11440_v33  ;;  %4141 = vadd.xlane.f32.xlu0 %v4140_v62  ;;  %v2464_v34 = vpop.xlane.xlu0 %2463  ;;  %v14687_v18 = vld [vmem:[#allocation59_spill] sm:$0xff] }
0x1071   : > { %v10299_v24 = vpop.eup %10298  ;;  %9493 = vmatprep.subr.mxu1 %v11318_v17  ;;  %10310 = vrcp.f32 %v2464_v34  ;;  %9435 = vmatmul.mubr.msk.f32.gmra.mxu1 %vm1144_vm6, %v10289_v1  ;;  %v1815_v61 = vmul.f32 %v10297_v42, %v14680_v45 }
0x1072   : > { %v10301_v12 = vpop.eup %10300  ;;  %10312 = vrcp.f32 %v1204_v7  ;;  %3729 = vadd.xlane.f32.xlu1 %v3728_v29  ;;  %v2879_v0 = vpop.xlane.xlu1 %2878  ;;  %9453 = vmatprep.mubr.msk.f32.mxu1 %vm1144_vm6, %v4323_v55  ;;  %v1822_v44 = vadd.f32 %v1814_v48, %v1399_v41  ;;  %v2230_v56 = vmul.f32 %v10299_v24, %v14682_v40  ;;  %v14688_v48 = vld [vmem:[#allocation72_spill] sm:$0xff]  ;;  %v14689_v29 = vld [vmem:[#allocation27_spill] sm:$0xff]  ;;  %v4634_v40 = vld [vmem:[#allocation5 + $0x98] sm:$0xff] }
0x1073   : > { %v1400_v36 = vmul.f32 %v10301_v12, %v14681_v52  ;;  %10314 = vrcp.f32 %v2879_v0  ;;  %v4632_v24 = vld [vmem:[#allocation5 + $0x88] sm:$0xff]  ;;  %v14690_v0 = vld [vmem:[#allocation37_spill] sm:$0xff] }
0x1074   : > { %v1643_v46 = vpop.xlane.xlu0 %1642 }
0x1075   : > { %10316 = vrcp.f32 %v1643_v46  ;;  %9454 = vmatmul.mubr.msk.f32.vlgmr.msra.gmra.mxu1 %vm1144_vm6, %v4324_v13  ;;  %v1823_v49 = vadd.f32 %v1815_v61, %v1400_v36  ;;  %v14691_v36 = vld [vmem:[#allocation71_spill] sm:$0xff] }
0x1076   : > { %v10303_v38 = vpop.eup %10302  ;;  %9494 = vmatpush3.msra.mxu1 %v11318_v17  ;;  %4144 = vadd.xlane.f32.xlu1 %v4143_v10  ;;  %v2882_v35 = vpop.xlane.xlu1 %2881 }
0x1077   : > { %9495 = vmatprep.subr.mxu1 %v11365_v30  ;;  %10318 = vrcp.f32 %v2882_v35  ;;  %9456 = vmatprep.mubr.msk.f32.mxu1 %vm1144_vm6, %v4325_v53  ;;  %v2238_v16 = vadd.f32 %v2230_v56, %v1823_v49  ;;  %v2229_v51 = vmul.f32 %v10303_v38, %v14683_v4  ;;  %v10305_v15 = vpop.eup %10304  ;;  %v4635_v56 = vld [vmem:[#allocation5 + $0xa0] sm:$0xff]  ;;  %v14692_v35 = vld [vmem:[#allocation49_spill] sm:$0xff] }
0x1078   : > { %9496 = vmatpush3.msra.mxu1 %v11365_v30  ;;  %v2055_v50 = vpop.xlane.xlu0 %2054  ;;  %v1816_v59 = vmul.f32 %v10305_v15, %v14684_v19  ;;  %v14694_v19 = vld [vmem:[#allocation80_spill] sm:$0xff] }
0x1079   : > { %9497 = vmatprep.subr.mxu1 %v11350_v26  ;;  %10320 = vrcp.f32 %v2055_v50  ;;  %9457 = vmatmul.mubr.msk.f32.gmra.mxu1 %vm1144_vm6, %v4326_v47  ;;  %v2237_v9 = vadd.f32 %v2229_v51, %v1822_v44  ;;  %v4633_v44 = vld [vmem:[#allocation5 + $0x90] sm:$0xff]  ;;  %v4636_v51 = vld [vmem:[#allocation5 + $0xa8] sm:$0xff] }
0x107a   : > { %v10307_v11 = vpop.eup %10306  ;;  %9498 = vmatpush3.msra.mxu1 %v11350_v26  ;;  %v1646_v14 = vpop.xlane.xlu1 %1645  ;;  %9459 = vmatprep.mubr.msk.f32.mxu1 %vm1144_vm6, %v4327_v5  ;;  %v4637_v50 = vld [vmem:[#allocation5 + $0xb0] sm:$0xff] }
0x107b   : > { %v1401_v25 = vmul.f32 %v10307_v11, %v14685_v6  ;;  %9499 = vmatprep.subr.mxu1 %v11367_v31 }
0x107c   : > { %v10309_v8 = vpop.eup %10308  ;;  %9500 = vmatpush3.msra.mxu1 %v11367_v31  ;;  %v2058_v63 = vpop.xlane.xlu0 %2057 }
0x107d   : > { %9501 = vmatprep.subr.mxu1 %v11331_v22  ;;  %10322 = vrcp.f32 %v2058_v63  ;;  %9460 = vmatmul.mubr.msk.f32.gmra.mxu1 %vm1144_vm6, %v4328_v37  ;;  %v2645_v7 = vmul.f32 %v10309_v8, %v14686_v27  ;;  %v1824_v60 = vadd.f32 %v1816_v59, %v1401_v25  ;;  %v14695_v8 = vld [vmem:[#allocation40_spill] sm:$0xff]  ;;  %v14696_v27 = vld [vmem:[#allocation30_spill] sm:$0xff] }
0x107e   : > { %v10311_v21 = vpop.eup %10310  ;;  %10324 = vrcp.f32 %v1646_v14  ;;  %9502 = vmatpush3.msra.mxu1 %v11331_v22  ;;  %v3294_v1 = vpop.xlane.xlu1 %3293  ;;  %9462 = vmatprep.mubr.msk.f32.mxu1 %vm1144_vm6, %v4329_v20  ;;  %v4638_v20 = vld [vmem:[#allocation5 + $0xb8] sm:$0xff] }
0x107f   : > { %v10313_v58 = vpop.eup %10312  ;;  %9503 = vmatprep.subr.mxu1 %v11403_v32  ;;  %10326 = vrcp.f32 %v3294_v1  ;;  %v2653_v57 = vadd.f32 %v2645_v7, %v2238_v16  ;;  %v2644_v62 = vmul.f32 %v10311_v21, %v14687_v18  ;;  %v14697_v18 = vld [vmem:[#allocation61_spill] sm:$0xff] }
0x1080   : > { %v10315_v55 = vpop.eup %10314  ;;  %9504 = vmatpush3.msra.mxu1 %v11403_v32  ;;  %v1207_v42 = vpop.xlane.xlu0 %1206  ;;  %v1402_v12 = vmul.f32 %v10313_v58, %v14689_v29  ;;  %v4948_v58 = vld [vmem:[#allocation5 + $0x108] sm:$0xff]  ;;  %v14700_v29 = vld [vmem:[#allocation29_spill] sm:$0xff] }
0x1081   : > { %9505 = vmatprep.subr.mxu1 %v11337_v23  ;;  %10328 = vrcp.f32 %v1207_v42  ;;  %9463 = vmatmul.mubr.msk.f32.gmra.mxu1 %vm1144_vm6, %v4330_v54  ;;  %v2652_v39 = vadd.f32 %v2644_v62, %v2237_v9  ;;  %v3059_v43 = vmul.f32 %v10315_v55, %v14688_v48  ;;  %v14693_v9 = vld [vmem:[#allocation48_spill] sm:$0xff]  ;;  %v14698_v42 = vld [vmem:[#allocation79_spill] sm:$0xff] }
0x1082   : > { %v10317_v41 = vpop.eup %10316  ;;  %9506 = vmatpush3.msra.mxu1 %v11337_v23  ;;  %v1649_v34 = vpop.xlane.xlu1 %1648  ;;  %9509 = vmatprep.mubr.msk.f32.mxu1 %vm1144_vm6, %v4631_v28 }
0x1083   : > { %v1817_v13 = vmul.f32 %v10317_v41, %v14690_v0  ;;  %9507 = vmatprep.subr.mxu1 %v11440_v33  ;;  %v3067_v45 = vadd.f32 %v3059_v43, %v2652_v39  ;;  %v4950_v41 = vld [vmem:[#allocation5 + $0x118] sm:$0xff]  ;;  %v4951_v0 = vld [vmem:[#allocation5 + $0x120] sm:$0xff] }
0x1084   : > { %v10319_v61 = vpop.eup %10318  ;;  %9508 = vmatpush3.msra.mxu1 %v11440_v33  ;;  %v2470_v52 = vpop.xlane.xlu0 %2469 }
0x1085   : > { %9549 = vmatprep.subr.mxu1 %v11318_v17  ;;  %10330 = vrcp.f32 %v2470_v52  ;;  %9510 = vmatmul.mubr.msk.f32.vlgmr.msra.gmra.mxu1 %vm1144_vm6, %v4632_v24  ;;  %v3060_v46 = vmul.f32 %v10319_v61, %v14691_v36  ;;  %v1825_v53 = vadd.f32 %v1817_v13, %v1402_v12  ;;  %v4952_v61 = vld [vmem:[#allocation5 + $0x128] sm:$0xff]  ;;  %v4953_v52 = vld [vmem:[#allocation5 + $0x130] sm:$0xff] }
0x1086   : > { %v10321_v10 = vpop.eup %10320  ;;  %10332 = vrcp.f32 %v1649_v34  ;;  %9550 = vmatpush3.msra.mxu1 %v11318_v17  ;;  %v3297_v49 = vpop.xlane.xlu1 %3296  ;;  %9512 = vmatprep.mubr.msk.f32.mxu1 %vm1144_vm6, %v4633_v44  ;;  %v14699_v34 = vld [vmem:[#allocation39_spill] sm:$0xff]  ;;  %v14701_v36 = vld [vmem:[#allocation60_spill] sm:$0xff] }
0x1087   : > { %9551 = vmatprep.subr.mxu1 %v11365_v30  ;;  %10334 = vrcp.f32 %v3297_v49  ;;  %v3068_v38 = vadd.f32 %v3060_v46, %v2653_v57  ;;  %v2231_v47 = vmul.f32 %v10321_v10, %v14692_v35  ;;  %v4949_v57 = vld [vmem:[#allocation5 + $0x110] sm:$0xff]  ;;  %v4954_v10 = vld [vmem:[#allocation5 + $0x138] sm:$0xff]  ;;  %v5263_v49 = vld [vmem:[#allocation5 + $0x180] sm:$0xff] }
0x1088   : > { %9552 = vmatpush3.msra.mxu1 %v11365_v30  ;;  %v1210_v5 = vpop.xlane.xlu0 %1209  ;;  %v5267_v35 = vld [vmem:[#allocation5 + $0x1a0] sm:$0xff] }
0x1089   : > { %9553 = vmatprep.subr.mxu1 %v11350_v26  ;;  %10336 = vrcp.f32 %v1210_v5  ;;  %9513 = vmatmul.mubr.msk.f32.gmra.mxu1 %vm1144_vm6, %v4634_v40  ;;  %v2239_v16 = vadd.f32 %v2231_v47, %v1824_v60  ;;  %v4947_v60 = vld [vmem:[#allocation5 + $0x100] sm:$0xff]  ;;  %v5264_v40 = vld [vmem:[#allocation5 + $0x188] sm:$0xff] }
0x108a   : > { %v10323_v4 = vpop.eup %10322  ;;  %9554 = vmatpush3.msra.mxu1 %v11350_v26  ;;  %9515 = vmatprep.mubr.msk.f32.mxu1 %vm1144_vm6, %v4635_v56  ;;  %v5265_v56 = vld [vmem:[#allocation5 + $0x190] sm:$0xff]  ;;  %v5268_v47 = vld [vmem:[#allocation5 + $0x1a8] sm:$0xff] }
0x108b   : > { %v10325_v15 = vpop.eup %10324  ;;  %9555 = vmatprep.subr.mxu1 %v11367_v31  ;;  %v2232_v11 = vmul.f32 %v10323_v4, %v14693_v9 }
0x108c   : > { %v10327_v14 = vpop.eup %10326  ;;  %9556 = vmatpush3.msra.mxu1 %v11367_v31  ;;  %v2473_v37 = vpop.xlane.xlu0 %2472  ;;  %v1818_v63 = vmul.f32 %v10325_v15, %v14695_v8 }
0x108d   : > { %9557 = vmatprep.subr.mxu1 %v11331_v22  ;;  %10338 = vrcp.f32 %v2473_v37  ;;  %9516 = vmatmul.mubr.msk.f32.gmra.mxu1 %vm1144_vm6, %v4636_v51  ;;  %v3474_v59 = vmul.f32 %v10327_v14, %v14694_v19  ;;  %v2240_v6 = vadd.f32 %v2232_v11, %v1825_v53  ;;  %v5585_v51 = vld [vmem:[#allocation5 + $0x230] sm:$0xff]  ;;  %v2885_v15 = vpop.xlane.xlu1 %2884 }
0x108e   : > { %v10329_v25 = vpop.eup %10328  ;;  %9558 = vmatpush3.msra.mxu1 %v11331_v22  ;;  %9518 = vmatprep.mubr.msk.f32.mxu1 %vm1144_vm6, %v4637_v50  ;;  %v5586_v50 = vld [vmem:[#allocation5 + $0x238] sm:$0xff]  ;;  %10340 = vrcp.f32 %v2885_v15 }
0x108f   : > { %v1403_v7 = vmul.f32 %v10329_v25, %v14696_v27  ;;  %9559 = vmatprep.subr.mxu1 %v11403_v32  ;;  %v13044_v21 = vadd.f32 %v3474_v59, %v3067_v45 }
0x1090   : > { %9560 = vmatpush3.msra.mxu1 %v11403_v32  ;;  %v13115_v5 = vpop.xlane.xlu0 %2060 }
0x1091   : > { %9561 = vmatprep.subr.mxu1 %v11337_v23  ;;  %9519 = vmatmul.mubr.msk.f32.gmra.mxu1 %vm1144_vm6, %v4638_v20  ;;  %v13049_v1 = vadd.f32 %v1818_v63, %v1403_v7  ;;  %v2064_v9 = vpop.xlane.xlu1 %2063 }
0x1092   : > { %v10331_v54 = vpop.eup %10330  ;;  %9562 = vmatpush3.msra.mxu1 %v11337_v23  ;;  %9565 = vmatprep.mubr.msk.f32.mxu1 %vm1144_vm6, %v4947_v60  ;;  %10342 = vrcp.f32 %v2064_v9 }
0x1093   : > { %v10333_v28 = vpop.eup %10332  ;;  %9563 = vmatprep.subr.mxu1 %v11440_v33  ;;  %v2646_v62 = vmul.f32 %v10331_v54, %v14697_v18  ;;  %10344 = vrcp.f32 %v13115_v5 }
0x1094   : > { %v10335_v55 = vpop.eup %10334  ;;  %9564 = vmatpush3.msra.mxu1 %v11440_v33  ;;  %v1819_v24 = vmul.f32 %v10333_v28, %v14699_v34  ;;  %v3709_v4 = vpop.xlane.xlu0 %3708  ;;  %v5759_v34 = vld [vmem:[#allocation10 + $0x8] sm:$0xff] }
0x1095   : > { %9605 = vmatprep.subr.mxu1 %v11318_v17  ;;  %9566 = vmatmul.mubr.msk.f32.vlgmr.msra.gmra.mxu1 %vm1144_vm6, %v4948_v58  ;;  %v3475_v39 = vmul.f32 %v10335_v55, %v14698_v42  ;;  %v13059_v48 = vadd.f32 %v2646_v62, %v2239_v16  ;;  %v5583_v16 = vld [vmem:[#allocation5 + $0x220] sm:$0xff]  ;;  %v3712_v14 = vpop.xlane.xlu1 %3711  ;;  %v5762_v62 = vld [vmem:[#allocation10 + $0x20] sm:$0xff]  ;;  %v5761_v42 = vld [vmem:[#allocation10 + $0x18] sm:$0xff] }
0x1096   : > { %v10337_v43 = vpop.eup %10336  ;;  %9606 = vmatpush3.msra.mxu1 %v11318_v17  ;;  %9568 = vmatprep.mubr.msk.f32.mxu1 %vm1144_vm6, %v4949_v57  ;;  %v5763_v57 = vld [vmem:[#allocation10 + $0x28] sm:$0xff]  ;;  %10346 = vrcp.f32 %v3712_v14 }
0x1097   : > { %v1404_v12 = vmul.f32 %v10337_v43, %v14700_v29  ;;  %9607 = vmatprep.subr.mxu1 %v11365_v30  ;;  %v13066_v13 = vadd.f32 %v3475_v39, %v3068_v38  ;;  %v5266_v38 = vld [vmem:[#allocation5 + $0x198] sm:$0xff]  ;;  %9689 = vmatprep.subr.mxu0 %v5763_v57  ;;  %v13141_v39 = vpop.f32.mrf.mxu0  ;;  %v5760_v43 = vld [vmem:[#allocation10 + $0x10] sm:$0xff]  ;;  %10348 = vrcp.f32 %v3709_v4 }
0x1098   : > { %9608 = vmatpush3.msra.mxu1 %v11365_v30  ;;  %9690 = vmatpush3.msra.mxu0 %v5763_v57 }
0x1099   : > { %9609 = vmatprep.subr.mxu1 %v11350_v26  ;;  %9569 = vmatmul.mubr.msk.f32.gmra.mxu1 %vm1144_vm6, %v4950_v41  ;;  %v13071_v44 = vadd.f32 %v1819_v24, %v1404_v12  ;;  %v13127_v19 = vpop.xlane.xlu1 %1651  ;;  %v13145_v24 = vpop.f32.mrf.mxu0  ;;  %v5758_v12 = vld [vmem:[#allocation10] sm:$0xff] }
0x109a   : > { %v10339_v45 = vpop.eup %10338  ;;  %9610 = vmatpush3.msra.mxu1 %v11350_v26  ;;  %9571 = vmatprep.mubr.msk.f32.mxu1 %vm1144_vm6, %v4951_v0 }
0x109b   : > { %9611 = vmatprep.subr.mxu1 %v11367_v31  ;;  %v2647_v46 = vmul.f32 %v10339_v45, %v14701_v36  ;;  %9691 = vmatprep.subr.mxu0 %v5762_v62  ;;  %v13151_v45 = vpop.f32.mrf.mxu0 }
0x109c   : > { %9612 = vmatpush3.msra.mxu1 %v11367_v31  ;;  %9692 = vmatpush3.msra.mxu0 %v5762_v62 }
0x109d   : > { %9613 = vmatprep.subr.mxu1 %v11331_v22  ;;  %9572 = vmatmul.mubr.msk.f32.gmra.mxu1 %vm1144_vm6, %v4952_v61  ;;  %v13080_v53 = vadd.f32 %v2647_v46, %v2240_v6  ;;  %v3300_v6 = vpop.xlane.xlu1 %3299 }
0x109e   : > { %9614 = vmatpush3.msra.mxu1 %v11331_v22  ;;  %9574 = vmatprep.mubr.msk.f32.mxu1 %vm1144_vm6, %v4953_v52  ;;  %v13153_v52 = vpop.f32.mrf.mxu0 }
0x109f   : > { %9615 = vmatprep.subr.mxu1 %v11403_v32  ;;  %9693 = vmatprep.subr.mxu0 %v5761_v42 }
0x10a0   : > { %9616 = vmatpush3.msra.mxu1 %v11403_v32  ;;  %9694 = vmatpush3.msra.mxu0 %v5761_v42  ;;  %v13158_v46 = vpop.f32.mrf.mxu0 }
0x10a1   : > { %9617 = vmatprep.subr.mxu1 %v11337_v23  ;;  %9575 = vmatmul.mubr.msk.f32.gmra.mxu1 %vm1144_vm6, %v4954_v10  ;;  %v13131_v20 = vpop.xlane.xlu1 %1215 }
0x10a2   : > { %9618 = vmatpush3.msra.mxu1 %v11337_v23  ;;  %9621 = vmatprep.mubr.msk.f32.mxu1 %vm1144_vm6, %v5263_v49 }
0x10a3   : > { %9619 = vmatprep.subr.mxu1 %v11440_v33  ;;  %9695 = vmatprep.subr.mxu0 %v5760_v43 }
0x10a4   : > { %9620 = vmatpush3.msra.mxu1 %v11440_v33  ;;  %9696 = vmatpush3.msra.mxu0 %v5760_v43 }
0x10a5   : > { %9661 = vmatprep.subr.mxu1 %v11318_v17  ;;  %9622 = vmatmul.mubr.msk.f32.vlgmr.msra.gmra.mxu1 %vm1144_vm6, %v5264_v40  ;;  %v2479_v63 = vpop.xlane.xlu1 %2478  ;;  %v13162_v40 = vpop.f32.mrf.mxu0 }
0x10a6   : > { %9662 = vmatpush3.msra.mxu1 %v11318_v17  ;;  %9624 = vmatprep.mubr.msk.f32.mxu1 %vm1144_vm6, %v5265_v56  ;;  %v5269_v17 = vld [vmem:[#allocation5 + $0x1b0] sm:$0xff] }
0x10a7   : > { %9663 = vmatprep.subr.mxu1 %v11365_v30  ;;  %9697 = vmatprep.subr.mxu0 %v5759_v34 }
0x10a8   : > { %9664 = vmatpush3.msra.mxu1 %v11365_v30  ;;  %v5270_v30 = vld [vmem:[#allocation5 + $0x1b8] sm:$0xff]  ;;  %9698 = vmatpush3.msra.mxu0 %v5759_v34 }
0x10a9   : > { %9665 = vmatprep.subr.mxu1 %v11350_v26  ;;  %9625 = vmatmul.mubr.msk.f32.gmra.mxu1 %vm1144_vm6, %v5266_v38  ;;  %v2891_v7 = vpop.xlane.xlu1 %2890  ;;  %v14704_v34 = vld [vmem:[#allocation74_spill] sm:$0xff] }
0x10aa   : > { %9666 = vmatpush3.msra.mxu1 %v11350_v26  ;;  %9627 = vmatprep.mubr.msk.f32.mxu1 %vm1144_vm6, %v5267_v35  ;;  %v5579_v26 = vld [vmem:[#allocation5 + $0x200] sm:$0xff]  ;;  %v13164_v35 = vpop.f32.mrf.mxu0 }
0x10ab   : > { %9667 = vmatprep.subr.mxu1 %v11367_v31  ;;  %9699 = vmatprep.subr.mxu0 %v5758_v12 }
0x10ac   : > { %9668 = vmatpush3.msra.mxu1 %v11367_v31  ;;  %v5580_v31 = vld [vmem:[#allocation5 + $0x208] sm:$0xff]  ;;  %9700 = vmatpush3.msra.mxu0 %v5758_v12 }
0x10ad   : > { %9669 = vmatprep.subr.mxu1 %v11331_v22  ;;  %9628 = vmatmul.mubr.msk.f32.gmra.mxu1 %vm1144_vm6, %v5268_v47  ;;  %v13137_v54 = vpop.xlane.xlu1 %2069 }
0x10ae   : > { %9670 = vmatpush3.msra.mxu1 %v11331_v22  ;;  %9630 = vmatprep.mubr.msk.f32.mxu1 %vm1144_vm6, %v5269_v17  ;;  %v5581_v22 = vld [vmem:[#allocation5 + $0x210] sm:$0xff]  ;;  %v10341_v17 = vpop.eup %10340 }
0x10af   : > { %9671 = vmatprep.subr.mxu1 %v11403_v32  ;;  %v3061_v12 = vmul.f32 %v10341_v17, %v14704_v34 }
0x10b0   : > { %9672 = vmatpush3.msra.mxu1 %v11403_v32  ;;  %v5582_v32 = vld [vmem:[#allocation5 + $0x218] sm:$0xff] }
0x10b1   : > { %9673 = vmatprep.subr.mxu1 %v11337_v23  ;;  %9631 = vmatmul.mubr.msk.f32.gmra.mxu1 %vm1144_vm6, %v5270_v30  ;;  %v3718_v28 = vpop.xlane.xlu1 %3717  ;;  %v10343_v30 = vpop.eup %10342 }
0x10b2   : > { %9674 = vmatpush3.msra.mxu1 %v11337_v23  ;;  %9677 = vmatprep.mubr.msk.f32.mxu1 %vm1144_vm6, %v5579_v26  ;;  %v5584_v23 = vld [vmem:[#allocation5 + $0x228] sm:$0xff]  ;;  %v13166_v26 = vpop.f32.mrf.mxu0 }
0x10b3   : > { %9675 = vmatprep.subr.mxu1 %v11440_v33 }
0x10b4   : > { %9676 = vmatpush3.msra.mxu1 %v11440_v33  ;;  %v2888_v33 = vpop.xlane.xlu0 %2887  ;;  %v13169_v5 = vpop.f32.mrf.mxu0 }
0x10b5   : > { %9678 = vmatmul.mubr.msk.f32.vlgmr.msra.gmra.mxu1 %vm1144_vm6, %v5580_v31  ;;  %v3306_v55 = vpop.xlane.xlu1 %3305  ;;  %10350 = vrcp.f32 %v2888_v33  ;;  %v10345_v31 = vpop.eup %10344 }
0x10b6   : > { %9680 = vmatprep.mubr.msk.f32.mxu1 %vm1144_vm6, %v5581_v22  ;;  %10352 = vrcp.f32 %v3300_v6  ;;  %v10347_v22 = vpop.eup %10346 }
0x10b7   : > { %v3890_v9 = vmul.f32 %v10347_v22, %v12770_v3 }
0x10b8   : > { %v13125_v11 = vpop.xlane.xlu0 %1212 }
0x10b9   : > { %9681 = vmatmul.mubr.msk.f32.gmra.mxu1 %vm1144_vm6, %v5582_v32  ;;  %v13147_v29 = vpop.xlane.xlu1 %2484  ;;  %v10349_v32 = vpop.eup %10348 }
0x10ba   : > { %9683 = vmatprep.mubr.msk.f32.mxu1 %vm1144_vm6, %v5583_v16 }
0x10bc   : > { %v2476_v37 = vpop.xlane.xlu0 %2475 }
0x10bd   : > { %9684 = vmatmul.mubr.msk.f32.gmra.mxu1 %vm1144_vm6, %v5584_v23  ;;  %v3721_v61 = vpop.xlane.xlu1 %3720  ;;  %10354 = vrcp.f32 %v2476_v37 }
0x10be   : > { %9686 = vmatprep.mubr.msk.f32.mxu1 %vm1144_vm6, %v5585_v51  ;;  %10356 = vrcp.f32 %v2479_v63 }
0x10c0   : > { %v13129_v59 = vpop.xlane.xlu0 %1654 }
0x10c1   : > { %9687 = vmatmul.mubr.msk.f32.gmra.mxu1 %vm1144_vm6, %v5586_v50  ;;  %v3724_v10 = vpop.xlane.xlu1 %3723  ;;  %v13171_v50 = vpop.f32.mrf.mxu0 }
0x10c2   : > { %v10351_v4 = vpop.eup %10350 }
0x10c3   : > { %v10353_v23 = vpop.eup %10352 }
0x10c4   : > { %v3303_v25 = vpop.xlane.xlu0 %3302 }
0x10c5   : > { %10358 = vrcp.f32 %v3303_v25  ;;  %v3889_v25 = vmul.f32 %v10349_v32, %v12772_v2  ;;  %v14708_v32 = vld [vmem:[#allocation81_spill] sm:$0xff] }
0x10c6   : > { %10360 = vrcp.f32 %v3718_v28  ;;  %v14703_v28 = vld [vmem:[#allocation50_spill] sm:$0xff] }
0x10c7   : > { %v2234_v57 = vmul.f32 %v10343_v30, %v14703_v28  ;;  %v3897_v30 = vadd.f32 %v3889_v25, %v13044_v21  ;;  %v14713_v21 = vld [vmem:[#allocation63_spill] sm:$0xff] }
0x10c8   : > { %v13133_v8 = vpop.xlane.xlu0 %2066 }
0x10ca   : > { %v10355_v15 = vpop.eup %10354 }
0x10cb   : > { %v10357_v33 = vpop.eup %10356  ;;  %v2648_v25 = vmul.f32 %v10355_v15, %v14713_v21 }
0x10cc   : > { %v13135_v27 = vpop.xlane.xlu0 %3714 }
0x10d0   : > { %v2894_v60 = vpop.xlane.xlu0 %2893 }
0x10d2   : > { %v10359_v14 = vpop.eup %10358 }
0x10d3   : > { %v10361_v37 = vpop.eup %10360 }
0x10d4   : > { %v13139_v58 = vpop.xlane.xlu0 %2481 }
0x10d8   : > { %v3309_v18 = vpop.xlane.xlu0 %3308 }
0x10dc   : > { %v13143_v41 = vpop.xlane.xlu0 %2896 }
0x10e0   : > { %v13149_v0 = vpop.xlane.xlu0 %2899 }
0x10e4   : > { %v13155_v36 = vpop.xlane.xlu0 %3311 }
0x10e7   : > { %v4127_v56 = vpop.xlane.xlu1 %4126 }
0x10e8   : > { %v13160_v49 = vpop.xlane.xlu0 %3314  ;;  %10362 = vrcp.f32 %v4127_v56 }
0x10e9   : > { %10364 = vrcp.f32 %v2894_v60 }
0x10ec   : > { %v4124_v38 = vpop.xlane.xlu0 %4123 }
0x10ed   : > { %v4133_v47 = vpop.xlane.xlu1 %4132  ;;  %10366 = vrcp.f32 %v4124_v38 }
0x10ee   : > { %10368 = vrcp.f32 %v3309_v18  ;;  %v13177_v18 = vpop.f32.mrf.mxu0 }
0x10ef   : > { %10370 = vrcp.f32 %v2891_v7  ;;  %v14702_v7 = vld [vmem:[#allocation73_spill] sm:$0xff] }
0x10f0   : > { %10372 = vrcp.f32 %v13135_v27  ;;  %v3062_v60 = vmul.f32 %v10351_v4, %v14702_v7  ;;  %v13190_v17 = vpop.f32.mrf.mxu0  ;;  %v14712_v7 = vld [vmem:[#allocation82_spill] sm:$0xff] }
0x10f1   : > { %10374 = vrcp.f32 %v3306_v55  ;;  %v4130_v51 = vpop.xlane.xlu0 %4129  ;;  %v3898_v55 = vadd.f32 %v3890_v9, %v13066_v13  ;;  %v14709_v9 = vld [vmem:[#allocation75_spill] sm:$0xff]  ;;  %v3476_v28 = vmul.f32 %v10353_v23, %v14712_v7 }
0x10f2   : > { %v4139_v16 = vpop.xlane.xlu1 %4138  ;;  %10376 = vrcp.f32 %v3724_v10  ;;  %v14706_v10 = vld [vmem:[#allocation51_spill] sm:$0xff]  ;;  %v3070_v13 = vadd.f32 %v3062_v60, %v13080_v53 }
0x10f3   : > { %10378 = vrcp.f32 %v3721_v61  ;;  %v14705_v61 = vld [vmem:[#allocation62_spill] sm:$0xff]  ;;  %v2233_v56 = vmul.f32 %v10345_v31, %v14706_v10  ;;  %v14711_v31 = vld [vmem:[#allocation87_spill] sm:$0xff] }
0x10f4   : > { %10380 = vrcp.f32 %v4133_v47  ;;  %v2649_v2 = vmul.f32 %v10357_v33, %v14705_v61  ;;  %v14716_v61 = vld [vmem:[#allocation88_spill] sm:$0xff] }
0x10f5   : > { %10382 = vrcp.f32 %v4130_v51  ;;  %v10363_v63 = vpop.eup %10362  ;;  %v2242_v51 = vadd.f32 %v2234_v57, %v13071_v44  ;;  %v3069_v44 = vadd.f32 %v3061_v12, %v13059_v48  ;;  %v2241_v57 = vadd.f32 %v2233_v56, %v13049_v1  ;;  %v14718_v48 = vld [vmem:[#allocation84_spill] sm:$0xff] }
0x10f6   : > { %10384 = vrcp.f32 %v4139_v16  ;;  %v10365_v62 = vpop.eup %10364  ;;  %v3477_v16 = vmul.f32 %v10359_v14, %v14708_v32 }
0x10f7   : > { %v4136_v6 = vpop.xlane.xlu1 %4135  ;;  %v2657_v14 = vadd.f32 %v2649_v2, %v2242_v51  ;;  %v3484_v2 = vadd.f32 %v3476_v28, %v3069_v44  ;;  %v2656_v32 = vadd.f32 %v2648_v25, %v2241_v57 }
0x10f8   : > { %10386 = vrcp.f32 %v4136_v6  ;;  %v3064_v6 = vmul.f32 %v10365_v62, %v14709_v9  ;;  %v3485_v60 = vadd.f32 %v3477_v16, %v3070_v13  ;;  %v14715_v62 = vld [vmem:[#allocation76_spill] sm:$0xff]  ;;  %v14717_v16 = vld [vmem:[#allocation89_spill] sm:$0xff] }
0x10f9   : > { %10388 = vrcp.f32 %v13127_v19 }
0x10fa   : > { %v10367_v3 = vpop.eup %10366  ;;  %10390 = vrcp.f32 %v13125_v11 }
0x10fb   : > { %v10369_v38 = vpop.eup %10368  ;;  %10392 = vrcp.f32 %v13129_v59 }
0x10fc   : > { %v10371_v4 = vpop.eup %10370  ;;  %10394 = vrcp.f32 %v13131_v20 }
0x10fd   : > { %v10373_v33 = vpop.eup %10372  ;;  %10396 = vrcp.f32 %v13137_v54  ;;  %v14727_v54 = vlaneseq }
0x10fe   : > { %v3891_v10 = vmul.f32 %v10373_v33, %v14716_v61  ;;  %10398 = vrcp.f32 %v13133_v8 }
0x10ff   : > { %10400 = vrcp.f32 %v13147_v29 }
0x1100   : > { %v3899_v33 = vadd.f32 %v3891_v10, %v3484_v2  ;;  %10402 = vrcp.f32 %v13139_v58 }
0x1101   : > { %10404 = vrcp.f32 %v13143_v41 }
0x1120   : > { %v9427_v27 = vpop.f32.mrf.mxu1 }
0x1121   : > { %v4305_v42 = vmul.f32 %v10363_v63, %v9427_v27  ;;  %v3892_v27 = vmul.f32 %v10361_v37, %v14711_v31  ;;  %v3072_v37 = vadd.f32 %v3064_v6, %v2657_v14  ;;  %v14720_v31 = vld [vmem:[#allocation90_spill] sm:$0xff] }
0x1122   : > { %v4265_v43 = vpop.f32.mrf.mxu1 }
0x1123   : > { %v13183_v47 = vadd.f32 %v4305_v42, %v3898_v55  ;;  %v4304_v22 = vmul.f32 %v10367_v3, %v4265_v43  ;;  %v10375_v55 = vpop.eup %10374  ;;  %v14714_v42 = vld [vmem:[#allocation83_spill] sm:$0xff]  ;;  %v3063_v43 = vmul.f32 %v10371_v4, %v14715_v62  ;;  %v3900_v15 = vadd.f32 %v3892_v27, %v3485_v60 }
0x1124   : > { %v3479_v3 = vmul.f32 %v10369_v38, %v14714_v42  ;;  %v10377_v53 = vpop.eup %10376  ;;  %v3478_v12 = vmul.f32 %v10375_v55, %v14718_v48  ;;  %10406 = vrcp.f32 %v13149_v0 }
0x1125   : > { %14707 = vst [vmem:[#allocation43_spill] sm:$0xff] %v13183_v47  ;;  %v13192_v63 = vadd.f32 %v4304_v22, %v3897_v30  ;;  %v10379_v34 = vpop.eup %10378  ;;  %v13202_v30 = vpop.f32.mrf.mxu0  ;;  %v3894_v13 = vmul.f32 %v10377_v53, %v14717_v16  ;;  %v3071_v4 = vadd.f32 %v3063_v43, %v2656_v32  ;;  %10408 = vrcp.f32 %v13155_v36 }
0x1126   : > { %v10381_v23 = vpop.eup %10380  ;;  %v3487_v51 = vadd.f32 %v3479_v3, %v3072_v37  ;;  %v3893_v7 = vmul.f32 %v10379_v34, %v14720_v31  ;;  %10410 = vrcp.f32 %v13160_v49 }
0x1127   : > { %14710 = vst [vmem:[#allocation33_spill] sm:$0xff] %v13192_v63  ;;  %v10383_v1 = vpop.eup %10382  ;;  %v13209_v21 = vpop.f32.mrf.mxu0  ;;  %v3486_v3 = vadd.f32 %v3478_v12, %v3071_v4  ;;  %v13271_v4 = vshrl.u32 %v14727_v54, 7 }
0x1128   : > { %v10385_v27 = vpop.eup %10384  ;;  %v3902_v14 = vadd.f32 %v3894_v13, %v3487_v51 }
0x1129   : > { %v9430_v22 = vpop.f32.mrf.mxu1  ;;  %v10387_v53 = vpop.eup %10386  ;;  %v3901_v44 = vadd.f32 %v3893_v7, %v3486_v3  ;;  %14728 = vst [vmem:[#allocation45_spill] sm:$0xff] %v13271_v4  ;;  %v14732_v3 = vld [vmem:[#allocation41_spill] sm:$0xff] }
0x112a   : > { %v4307_v38 = vmul.f32 %v10381_v23, %v9430_v22  ;;  %v13215_v62 = vpop.f32.mrf.mxu0 }
0x112b   : > { %v4275_v56 = vpop.f32.mrf.mxu1 }
0x112c   : > { %v13206_v9 = vadd.f32 %v4307_v38, %v3900_v15  ;;  %v4306_v6 = vmul.f32 %v10383_v1, %v4275_v56  ;;  %v13223_v10 = vpop.f32.mrf.mxu0 }
0x112d   : > { %v9433_v28 = vpop.f32.mrf.mxu1 }
0x112e   : > { %14719 = vst [vmem:[#allocation66_spill] sm:$0xff] %v13206_v9  ;;  %v13211_v25 = vadd.f32 %v4306_v6, %v3899_v33  ;;  %v4309_v42 = vmul.f32 %v10385_v27, %v9433_v28  ;;  %v13229_v15 = vpop.f32.mrf.mxu0  ;;  %v10389_v33 = vpop.eup %10388 }
0x112f   : > { %v4285_v55 = vpop.f32.mrf.mxu1  ;;  %v10391_v6 = vpop.eup %10390 }
0x1130   : > { %14721 = vst [vmem:[#allocation23_spill] sm:$0xff] %v13211_v25  ;;  %v13213_v60 = vadd.f32 %v4309_v42, %v3902_v14  ;;  %v4308_v57 = vmul.f32 %v10387_v53, %v4285_v55  ;;  %v13235_v32 = vpop.f32.mrf.mxu0  ;;  %v10393_v31 = vpop.eup %10392  ;;  %v13286_v14 = vld [vmem:[%s14477_s6] sm:$0xff] }
0x1131   : > { %v13217_v43 = vpop.f32.mrf.mxu1  ;;  %v10395_v7 = vpop.eup %10394  ;;  %v1821_v53 = vmul.f32 %v10393_v31, %v14732_v3  ;;  %v14738_v3 = vld [vmem:[#allocation42_spill] sm:$0xff] }
0x1132   : > { %14722 = vst [vmem:[#allocation24_spill] sm:$0xff] %v13213_v60  ;;  %14723 = vst [vmem:[#allocation54_spill] sm:$0xff] %v13217_v43  ;;  %v13219_v34 = vadd.f32 %v4308_v57, %v3901_v44  ;;  %v13241_v16 = vpop.f32.mrf.mxu0  ;;  %v10397_v28 = vpop.eup %10396  ;;  %v14734_v44 = vld [vmem:[#allocation32_spill] sm:$0xff]  ;;  %v14735_v60 = vld [vmem:[#allocation31_spill] sm:$0xff]  ;;  %v1820_v63 = vmul.f32 %v10389_v33, %v14738_v3 }
0x1133   : > { %v13221_v61 = vpop.f32.mrf.mxu1  ;;  %v10399_v42 = vpop.eup %10398  ;;  %v1405_v0 = vmul.f32 %v10391_v6, %v14734_v44  ;;  %v14736_v43 = vld [vmem:[#allocation52_spill] sm:$0xff]  ;;  %v14515_v44 = vsub.s32 3, %v13271_v4 }
0x1134   : > { %14724 = vst [vmem:[#allocation55_spill] sm:$0xff] %v13219_v34  ;;  %14725 = vst [vmem:[#allocation34_spill] sm:$0xff] %v13221_v61  ;;  %v13251_v12 = vpop.f32.mrf.mxu0  ;;  %v10401_v41 = vpop.eup %10400  ;;  %v1406_v34 = vmul.f32 %v10395_v7, %v14735_v60  ;;  %v2236_v9 = vmul.f32 %v10397_v28, %v14736_v43  ;;  %v14737_v61 = vsub.s32 1, %v13271_v4  ;;  %v14740_v60 = vld [vmem:[#allocation64_spill] sm:$0xff]  ;;  %v14741_v28 = vsub.s32 0, %v13271_v4 }
0x1135   : > { %v13225_v37 = vpop.f32.mrf.mxu1  ;;  %v10403_v31 = vpop.eup %10402  ;;  %v2651_v7 = vmul.f32 %v10401_v41, %v14740_v60  ;;  %v1828_v43 = vadd.f32 %v1820_v63, %v1405_v0  ;;  %v4929_v0 = vrot.slane %v13286_v14, %v14515_v44  ;;  %v14516_v60 = vsub.s32 5, %v13271_v4 }
0x1136   : > { %v13260_v19 = vpop.f32.mrf.mxu0  ;;  %v4613_v25 = vrot.slane %v13286_v14, %v14737_v61  ;;  %v1829_v57 = vadd.f32 %v1821_v53, %v1406_v34  ;;  %v13311_v61 = vrot.slane %v13286_v14, %v14741_v28  ;;  %v14743_v28 = vld [vmem:[#allocation78_spill] sm:$0xff] }
0x1137   : > { %v13227_v23 = vpop.f32.mrf.mxu1  ;;  %v13369_v36 = vmul.f32 %v13177_v18, %v4929_v0  ;;  %v13388_v18 = vmul.f32 %v13215_v62, %v4929_v0 }
0x1138   : > { %v13268_v20 = vpop.f32.mrf.mxu0  ;;  %v2244_v33 = vadd.f32 %v2236_v9, %v1829_v57  ;;  %v4615_v34 = vmul.f32 %v13141_v39, %v4613_v25  ;;  %v4614_v53 = vmul.f32 %v4613_v25, %v13145_v24  ;;  %v13322_v63 = vmul.f32 %v13151_v45, %v4613_v25 }
0x1139   : > { %v13231_v22 = vpop.f32.mrf.mxu1  ;;  %v13330_v57 = vmul.f32 %v4613_v25, %v13153_v52  ;;  %v13333_v39 = vmul.f32 %v13158_v46, %v4613_v25  ;;  %v13336_v24 = vmul.f32 %v4613_v25, %v13162_v40  ;;  %v4465_v44 = vmul.f32 %v13225_v37, %v13311_v61 }
0x113a   : > { %v13278_v58 = vpop.f32.mrf.mxu0  ;;  %v13340_v45 = vadd.f32 %v2651_v7, %v2244_v33  ;;  %v5245_v33 = vrot.slane %v13286_v14, %v14516_v60  ;;  %v13391_v60 = vmul.f32 %v4929_v0, %v13223_v10  ;;  %v4464_v62 = vmul.f32 %v13311_v61, %v13227_v23 }
0x113b   : > { %v13233_v2 = vpop.f32.mrf.mxu1 }
0x113c   : > { %v13293_v54 = vpop.f32.mrf.mxu0  ;;  %14744 = vst [vmem:[#allocation69_spill] sm:$0xff] %v13340_v45  ;;  %v13426_v23 = vmul.f32 %v5245_v33, %v13268_v20 }
0x113d   : > { %v13237_v38 = vpop.f32.mrf.mxu1 }
0x113f   : > { %v13239_v51 = vpop.f32.mrf.mxu1 }
0x1141   : > { %v13244_v13 = vpop.f32.mrf.mxu1 }
0x1143   : > { %v13248_v48 = vpop.f32.mrf.mxu1 }
0x1144   : > { %14726 = vst [vmem:[#allocation67_spill] sm:$0xff] %v13248_v48  ;;  %v14518_v48 = vsub.s32 2, %v13271_v4 }
0x1145   : > { %v13254_v1 = vpop.f32.mrf.mxu1 }
0x1146   : > { %v13351_v52 = vrot.slane %v13286_v14, %v14518_v48  ;;  %v13420_v48 = vmul.f32 %v5245_v33, %v13251_v12 }
0x1147   : > { %v13257_v56 = vpop.f32.mrf.mxu1 }
0x1148   : > { %v4773_v10 = vmul.f32 %v13254_v1, %v13351_v52  ;;  %v4623_v1 = vadd.f32 %v4615_v34, %v4465_v44 }
0x1149   : > { %v13263_v11 = vpop.f32.mrf.mxu1 }
0x114a   : > { %v4775_v34 = vmul.f32 %v13263_v11, %v13351_v52 }
0x114b   : > { %v13266_v59 = vpop.f32.mrf.mxu1 }
0x114d   : > { %v13273_v8 = vpop.f32.mrf.mxu1 }
0x114e   : > { %14729 = vst [vmem:[#allocation44_spill] sm:$0xff] %v13273_v8  ;;  %v13314_v8 = vpop.f32.mrf.mxu0 }
0x114f   : > { %v13275_v29 = vpop.f32.mrf.mxu1 }
0x1150   : > { %14730 = vst [vmem:[#allocation68_spill] sm:$0xff] %v13275_v29  ;;  %v10405_v29 = vpop.eup %10404  ;;  %v5519_v46 = vpop.f32.mrf.mxu0 }
0x1151   : > { %v13281_v27 = vpop.f32.mrf.mxu1  ;;  %v3065_v9 = vmul.f32 %v10405_v29, %v14743_v28  ;;  %v10407_v29 = vpop.eup %10406 }
0x1152   : > { %14731 = vst [vmem:[#allocation57_spill] sm:$0xff] %v13281_v27 }
0x1153   : > { %v13289_v55 = vpop.f32.mrf.mxu1 }
0x1154   : > { %14733 = vst [vmem:[#allocation56_spill] sm:$0xff] %v13289_v55  ;;  %v14739_v55 = vld [vmem:[#allocation53_spill] sm:$0xff] }
0x1155   : > { %v13300_v47 = vpop.f32.mrf.mxu1  ;;  %v2235_v6 = vmul.f32 %v10399_v42, %v14739_v55  ;;  %v14742_v42 = vld [vmem:[#allocation65_spill] sm:$0xff] }
0x1156   : > { %v2650_v55 = vmul.f32 %v10403_v31, %v14742_v42  ;;  %v14517_v42 = vsub.s32 4, %v13271_v4 }
0x1157   : > { %v13305_v27 = vpop.f32.mrf.mxu1  ;;  %v2243_v41 = vadd.f32 %v2235_v6, %v1828_v43  ;;  %v13343_v6 = vmul.f32 %v13164_v35, %v4613_v25  ;;  %v13346_v43 = vmul.f32 %v4613_v25, %v13166_v26  ;;  %v14519_v35 = vsub.s32 7, %v13271_v4 }
0x1158   : > { %v4931_v26 = vmul.f32 %v13169_v5, %v4929_v0  ;;  %v13361_v25 = vmul.f32 %v4929_v0, %v13171_v50  ;;  %v14746_v5 = vld [vmem:[#allocation77_spill] sm:$0xff] }
0x1159   : > { %v13319_v3 = vpop.f32.mrf.mxu1  ;;  %v2658_v40 = vadd.f32 %v2650_v55, %v2243_v41  ;;  %v13372_v55 = vmul.f32 %v4929_v0, %v13190_v17  ;;  %v13375_v41 = vmul.f32 %v13202_v30, %v4929_v0  ;;  %v13380_v50 = vmul.f32 %v10407_v29, %v14746_v5  ;;  %v3727_v17 = vpop.xlane.xlu0 %3726 }
0x115a   : > { %v13396_v30 = vrot.slane %v13286_v14, %v14517_v42  ;;  %v13414_v5 = vmul.f32 %v5245_v33, %v13235_v32  ;;  %v13417_v42 = vmul.f32 %v13241_v16, %v5245_v33  ;;  %v4772_v32 = vmul.f32 %v13351_v52, %v13257_v56 }
0x115b   : > { %v13338_v31 = vpop.f32.mrf.mxu1  ;;  %v13366_v28 = vadd.f32 %v3065_v9, %v2658_v40  ;;  %14747 = vst [vmem:[#allocation36_spill] sm:$0xff] %v13380_v50  ;;  %v13385_v9 = vmul.f32 %v4929_v0, %v13209_v21  ;;  %v9654_v40 = vpop.f32.mrf.mxu0  ;;  %v13404_v21 = vrot.slane %v13286_v14, %v14519_v35  ;;  %v13411_v0 = vmul.f32 %v13229_v15, %v5245_v33 }
0x115c   : > { %v13423_v35 = vmul.f32 %v13260_v19, %v5245_v33  ;;  %v4467_v15 = vmul.f32 %v13231_v22, %v13311_v61  ;;  %v13435_v16 = vmul.f32 %v13278_v58, %v5245_v33  ;;  %v4466_v19 = vmul.f32 %v13311_v61, %v13233_v2 }
0x115d   : > { %v13355_v7 = vpop.f32.mrf.mxu1  ;;  %14745 = vst [vmem:[#allocation70_spill] sm:$0xff] %v13366_v28  ;;  %v5529_v12 = vpop.f32.mrf.mxu0  ;;  %v13440_v28 = vmul.f32 %v5245_v33, %v13293_v54  ;;  %v14748_v50 = vsub.s32 6, %v13271_v4  ;;  %v13449_v22 = vmul.f32 %v13314_v8, %v13404_v21  ;;  %v4622_v56 = vadd.f32 %v4614_v53, %v4464_v62 }
0x115e   : > { %v4781_v58 = vadd.f32 %v4773_v10, %v4623_v1  ;;  %v13454_v2 = vmul.f32 %v13404_v21, %v5519_v46  ;;  %v4142_v54 = vpop.xlane.xlu0 %4141  ;;  %v4469_v33 = vmul.f32 %v13237_v38, %v13311_v61  ;;  %v13461_v4 = vmul.f32 %v9654_v40, %v13404_v21  ;;  %v14749_v40 = vld [vmem:[#allocation44_spill] sm:$0xff] }
0x115f   : > { %v13377_v49 = vpop.f32.mrf.mxu1  ;;  %v13445_v44 = vrot.slane %v13286_v14, %v14748_v50  ;;  %v4774_v14 = vmul.f32 %v13351_v52, %v13266_v59  ;;  %v13464_v8 = vmul.f32 %v13404_v21, %v5529_v12  ;;  %10412 = vrcp.f32 %v3727_v17  ;;  %v13476_v12 = vpop.eup %10408 }
0x1160   : > { %v4625_v11 = vadd.f32 %v13322_v63, %v4467_v15  ;;  %v4780_v53 = vadd.f32 %v4772_v32, %v4622_v56  ;;  %v5089_v46 = vmul.f32 %v13300_v47, %v13396_v30  ;;  %v4624_v62 = vadd.f32 %v13330_v57, %v4466_v19  ;;  %v13480_v15 = vpop.eup %10410  ;;  %v3730_v57 = vpop.xlane.xlu1 %3729  ;;  %v14750_v32 = vld [vmem:[#allocation67_spill] sm:$0xff]  ;;  %v14751_v56 = vld [vmem:[#allocation68_spill] sm:$0xff] }
0x1161   : > { %v13398_v29 = vpop.f32.mrf.mxu1  ;;  %v4468_v38 = vmul.f32 %v13311_v61, %v13239_v51  ;;  %v4471_v59 = vmul.f32 %v13244_v13, %v13311_v61  ;;  %v4777_v10 = vmul.f32 %v14749_v40, %v13351_v52  ;;  %10414 = vrcp.f32 %v4142_v54 }
0x1162   : > { %v4939_v63 = vadd.f32 %v4931_v26, %v4781_v58  ;;  %v4783_v17 = vadd.f32 %v4775_v34, %v4625_v11  ;;  %v5088_v47 = vmul.f32 %v13396_v30, %v13305_v27  ;;  %v4627_v51 = vadd.f32 %v13333_v39, %v4469_v33  ;;  %v14752_v26 = vld [vmem:[#allocation57_spill] sm:$0xff] }
0x1163   : > { %v13428_v37 = vpop.f32.mrf.mxu1  ;;  %v4470_v13 = vmul.f32 %v13311_v61, %v14750_v32  ;;  %v4782_v19 = vadd.f32 %v4774_v14, %v4624_v62  ;;  %v4776_v40 = vmul.f32 %v13351_v52, %v14751_v56  ;;  %v4938_v54 = vadd.f32 %v13361_v25, %v4780_v53  ;;  %v14753_v32 = vld [vmem:[#allocation56_spill] sm:$0xff] }
0x1164   : > { %v4779_v58 = vmul.f32 %v14752_v26, %v13351_v52  ;;  %v5097_v34 = vadd.f32 %v5089_v46, %v4939_v63  ;;  %v5091_v27 = vmul.f32 %v13319_v3, %v13396_v30  ;;  %v4626_v11 = vadd.f32 %v13336_v24, %v4468_v38 }
0x1165   : > { %v9623_v20 = vpop.f32.mrf.mxu1  ;;  %v4629_v39 = vadd.f32 %v13343_v6, %v4471_v59  ;;  %v4785_v33 = vadd.f32 %v4777_v10, %v4627_v51  ;;  %v5090_v61 = vmul.f32 %v13396_v30, %v13338_v31  ;;  %v4941_v62 = vadd.f32 %v13369_v36, %v4783_v17  ;;  %v9657_v17 = vpop.f32.mrf.mxu0 }
0x1166   : > { %v4778_v25 = vmul.f32 %v13351_v52, %v14753_v32  ;;  %v5096_v53 = vadd.f32 %v5088_v47, %v4938_v54  ;;  %v5405_v46 = vmul.f32 %v9623_v20, %v13445_v44  ;;  %v4628_v63 = vadd.f32 %v13346_v43, %v4470_v13  ;;  %v4145_v52 = vpop.xlane.xlu1 %4144 }
0x1167   : > { %v5361_v50 = vpop.f32.mrf.mxu1  ;;  %v4940_v3 = vadd.f32 %v13372_v55, %v4782_v19  ;;  %v4784_v24 = vadd.f32 %v4776_v40, %v4626_v11  ;;  %v5093_v6 = vmul.f32 %v13355_v7, %v13396_v30  ;;  %v4787_v59 = vadd.f32 %v4779_v58, %v4629_v39  ;;  %v5539_v54 = vpop.f32.mrf.mxu0 }
0x1168   : > { %v5255_v31 = vadd.f32 %v13411_v0, %v5097_v34  ;;  %v5099_v10 = vadd.f32 %v5091_v27, %v4941_v62  ;;  %v5404_v36 = vmul.f32 %v13445_v44, %v5361_v50  ;;  %10416 = vrcp.f32 %v3730_v57 }
0x1169   : > { %v9626_v1 = vpop.f32.mrf.mxu1  ;;  %v4943_v20 = vadd.f32 %v13375_v41, %v4785_v33  ;;  %v5098_v47 = vadd.f32 %v5090_v61, %v4940_v3  ;;  %v5092_v43 = vmul.f32 %v13396_v30, %v13377_v49  ;;  %v4786_v51 = vadd.f32 %v4778_v25, %v4628_v63  ;;  %v13518_v49 = vld [vmem:[%s14477_s6 + $0x8] ss:$0 sm:$0xff] }
0x116a   : > { %v5254_v7 = vadd.f32 %v13414_v5, %v5096_v53  ;;  %v5413_v13 = vadd.f32 %v5405_v46, %v5255_v31  ;;  %v5407_v19 = vmul.f32 %v9626_v1, %v13445_v44  ;;  %v4942_v0 = vadd.f32 %v13385_v9, %v4784_v24 }
0x116b   : > { %v5371_v45 = vpop.f32.mrf.mxu1  ;;  %v5101_v56 = vadd.f32 %v5093_v6, %v4943_v20  ;;  %v5095_v50 = vmul.f32 %v13398_v29, %v13396_v30  ;;  %10418 = vrcp.f32 %v4145_v52  ;;  %v4945_v5 = vadd.f32 %v13388_v18, %v4787_v59 }
0x116c   : > { %v5406_v57 = vmul.f32 %v13445_v44, %v5371_v45  ;;  %v5257_v40 = vadd.f32 %v13417_v42, %v5099_v10  ;;  %v5412_v1 = vadd.f32 %v5404_v36, %v5254_v7  ;;  %v13522_v9 = vpop.eup %10412  ;;  %v5256_v26 = vadd.f32 %v13420_v48, %v5098_v47 }
0x116d   : > { %v9629_v14 = vpop.f32.mrf.mxu1  ;;  %v5100_v29 = vadd.f32 %v5092_v43, %v4942_v0  ;;  %v5094_v45 = vmul.f32 %v13396_v30, %v13428_v37  ;;  %v4944_v27 = vadd.f32 %v13391_v60, %v4786_v51  ;;  %v5571_v11 = vadd.f32 %v13449_v22, %v5413_v13  ;;  %v13537_v60 = vld [vmem:[#allocation8] ss:$0 sm:$0xff]  ;;  %v14754_v43 = vld [vmem:[#allocation86_spill] sm:$0xff]  ;;  %v14755_v0 = vld [vmem:[#allocation33_spill] sm:$0xff] }
0x116e   : > { %v5409_v58 = vmul.f32 %v9629_v14, %v13445_v44  ;;  %v5415_v18 = vadd.f32 %v5407_v19, %v5257_v40  ;;  %v13531_v39 = vpop.eup %10414  ;;  %v5259_v33 = vadd.f32 %v13423_v35, %v5101_v56  ;;  %v5103_v61 = vadd.f32 %v5095_v50, %v4945_v5  ;;  %v9660_v14 = vpop.f32.mrf.mxu0  ;;  %v14756_v5 = vld [vmem:[#allocation43_spill] sm:$0xff] }
0x116f   : > { %v5381_v38 = vpop.f32.mrf.mxu1  ;;  %v5414_v48 = vadd.f32 %v5406_v57, %v5256_v26  ;;  %v5570_v30 = vadd.f32 %v13454_v2, %v5412_v1  ;;  %v5567_v37 = vmul.f32 %v9657_v17, %v13404_v21  ;;  %v5258_v53 = vadd.f32 %v13426_v23, %v5100_v29 }
0x1170   : > { %v5408_v62 = vmul.f32 %v13445_v44, %v5381_v38  ;;  %v5102_v46 = vadd.f32 %v5094_v45, %v4944_v27  ;;  %v5417_v63 = vadd.f32 %v5409_v58, %v5259_v33  ;;  %v5566_v35 = vmul.f32 %v13404_v21, %v5539_v54  ;;  %v5549_v52 = vpop.f32.mrf.mxu0  ;;  %v14757_v58 = vld [vmem:[#allocation69_spill] sm:$0xff]  ;;  %v14761_v33 = vld [vmem:[#allocation92_spill] sm:$0xff] }
0x1171   : > { %v9632_v55 = vpop.f32.mrf.mxu1  ;;  %v5573_v24 = vadd.f32 %v13461_v4, %v5415_v18  ;;  %v5261_v59 = vadd.f32 %v13435_v16, %v5103_v61  ;;  %v5572_v31 = vadd.f32 %v13464_v8, %v5414_v48  ;;  %v5569_v8 = vmul.f32 %v9660_v14, %v13404_v21  ;;  %v14760_v18 = vld [vmem:[#allocation70_spill] sm:$0xff] }
0x1172   : > { %v5411_v6 = vmul.f32 %v9632_v55, %v13445_v44  ;;  %v5416_v10 = vadd.f32 %v5408_v62, %v5258_v53  ;;  %v3480_v55 = vmul.f32 %v13476_v12, %v14754_v43  ;;  %v5260_v51 = vadd.f32 %v13440_v28, %v5102_v46  ;;  %v14764_v53 = vld [vmem:[#allocation34_spill] sm:$0xff] }
0x1173   : > { %v5391_v41 = vpop.f32.mrf.mxu1  ;;  %v5575_v16 = vadd.f32 %v5567_v37, %v5417_v63  ;;  %v3895_v61 = vmul.f32 %v13522_v9, %v14761_v33  ;;  %v4310_v46 = vmul.f32 %v13531_v39, %v14764_v53  ;;  %v14767_v39 = vld [vmem:[#allocation55_spill] sm:$0xff]  ;;  %v10476_v53 = vld [vmem:[%s11162_s2 + $0x30] sm:$0xff] }
0x1174   : > { %v5410_v17 = vmul.f32 %v13445_v44, %v5391_v41  ;;  %v5419_v19 = vadd.f32 %v5411_v6, %v5261_v59  ;;  %v5574_v57 = vadd.f32 %v5566_v35, %v5416_v10  ;;  %v5568_v41 = vmul.f32 %v13404_v21, %v5549_v52  ;;  %v14766_v59 = vld [vmem:[#allocation54_spill] sm:$0xff]  ;;  %v14768_v52 = vld [vmem:[#allocation24_spill] sm:$0xff] }
0x1175   : > { %v9679_v34 = vpop.f32.mrf.mxu1  ;;  %v10417_v13 = vpop.eup %10416 }
0x1176   : > { %v5721_v42 = vmul.f32 %v9679_v34, %v13518_v49  ;;  %v5418_v28 = vadd.f32 %v5410_v17, %v5260_v51  ;;  %v14758_v34 = vld [vmem:[#allocation36_spill] sm:$0xff]  ;;  %v5577_v62 = vadd.f32 %v5569_v8, %v5419_v19 }
0x1177   : > { %v5677_v32 = vpop.f32.mrf.mxu1  ;;  %v3074_v27 = vadd.f32 %v14758_v34, %v14757_v58  ;;  %v10469_v19 = vld [vmem:[%s11162_s2 + $0x8] sm:$0xff] }
0x1178   : > { %v5729_v22 = vadd.f32 %v5721_v42, %v5571_v11  ;;  %v5720_v25 = vmul.f32 %v13518_v49, %v5677_v32  ;;  %v10419_v45 = vpop.eup %10418  ;;  %v14759_v11 = vld [vmem:[#allocation85_spill] sm:$0xff]  ;;  %v3488_v42 = vadd.f32 %v3480_v55, %v14760_v18  ;;  %v14762_v32 = vld [vmem:[#allocation23_spill] sm:$0xff]  ;;  %v5576_v9 = vadd.f32 %v5568_v41, %v5418_v28 }
0x1179   : > { %v9682_v3 = vpop.f32.mrf.mxu1  ;;  %v3481_v21 = vmul.f32 %v13480_v15, %v14759_v11  ;;  %v14765_v15 = vld [vmem:[#allocation66_spill] sm:$0xff]  ;;  %v10473_v11 = vld [vmem:[%s11162_s2 + $0x28] sm:$0xff] }
0x117a   : > { %v5728_v2 = vadd.f32 %v5720_v25, %v5570_v30  ;;  %v5723_v38 = vmul.f32 %v9682_v3, %v13518_v49  ;;  %v5743_v36 = vadd.f32 %v13537_v60, %v5729_v22  ;;  %v14763_v22 = vld [vmem:[#allocation91_spill] sm:$0xff]  ;;  %v3903_v10 = vadd.f32 %v3895_v61, %v3488_v42 }
0x117b   : > { %v5687_v23 = vpop.f32.mrf.mxu1  ;;  %v3896_v25 = vmul.f32 %v10417_v13, %v14763_v22  ;;  %v10474_v61 = vld [vmem:[%s11162_s2 + $0x20] sm:$0xff] }
0x117c   : > { %v5742_v20 = vadd.f32 %v13537_v60, %v5728_v2  ;;  %v5731_v47 = vadd.f32 %v5723_v38, %v5573_v24  ;;  %v5722_v4 = vmul.f32 %v13518_v49, %v5687_v23  ;;  %v5751_v40 = vadd.f32 %v5743_v36, %v14756_v5 }
0x117d   : > { %v9685_v7 = vpop.f32.mrf.mxu1  ;;  %v3489_v38 = vadd.f32 %v3481_v21, %v3074_v27 }
0x117e   : > { %v5750_v56 = vadd.f32 %v5742_v20, %v14755_v0  ;;  %v5730_v44 = vadd.f32 %v5722_v4, %v5572_v31  ;;  %v5725_v50 = vmul.f32 %v9685_v7, %v13518_v49  ;;  %v5745_v12 = vadd.f32 %v13537_v60, %v5731_v47 }
0x117f   : > { %v5697_v1 = vpop.f32.mrf.mxu1  ;;  %v4311_v31 = vmul.f32 %v10419_v45, %v14766_v59  ;;  %v3904_v17 = vadd.f32 %v3896_v25, %v3489_v38  ;;  %v4318_v4 = vadd.f32 %v4310_v46, %v3903_v10 }
0x1180   : > { %v5744_v54 = vadd.f32 %v13537_v60, %v5730_v44  ;;  %v5733_v26 = vadd.f32 %v5725_v50, %v5575_v16  ;;  %v5724_v29 = vmul.f32 %v13518_v49, %v5697_v1  ;;  %9701 = vmatprep.mubr.msk.f32.mxu0 %vm704_vm0, %v5750_v56  ;;  %v5753_v63 = vadd.f32 %v5745_v12, %v14765_v15  ;;  %v10468_v16 = vld [vmem:[#allocation5] sm:$0xff]  ;;  %v10471_v12 = vld [vmem:[%s11162_s2 + $0x18] sm:$0xff] }
0x1181   : > { %v9688_v48 = vpop.f32.mrf.mxu1  ;;  %9702 = vmatmul.mubr.msk.f32.vlgmr.msra.gmra.mxu0 %vm704_vm0, %v5751_v40  ;;  %v4319_v43 = vadd.f32 %v4311_v31, %v3904_v17  ;;  %v10470_v50 = vld [vmem:[%s11162_s2] sm:$0xff] }
0x1182   : > { %v5752_v30 = vadd.f32 %v5744_v54, %v14762_v32  ;;  %v5732_v37 = vadd.f32 %v5724_v29, %v5574_v57  ;;  %v5727_v14 = vmul.f32 %v9688_v48, %v13518_v49  ;;  %v5747_v35 = vadd.f32 %v13537_v60, %v5733_v26  ;;  %v10472_v29 = vld [vmem:[%s11162_s2 + $0x10] sm:$0xff] }
0x1183   : > { %v5707_v3 = vpop.f32.mrf.mxu1 }
0x1184   : > { %v5746_v24 = vadd.f32 %v13537_v60, %v5732_v37  ;;  %v5735_v6 = vadd.f32 %v5727_v14, %v5577_v62  ;;  %v5726_v2 = vmul.f32 %v13518_v49, %v5707_v3  ;;  %9704 = vmatprep.mubr.msk.f32.mxu0 %vm704_vm0, %v5752_v30  ;;  %v5755_v20 = vadd.f32 %v5747_v35, %v14768_v52  ;;  %v10475_v37 = vld [vmem:[%s11162_s2 + $0x38] sm:$0xff] }
0x1185   : > { %9705 = vmatmul.mubr.msk.f32.gmra.mxu0 %vm704_vm0, %v5753_v63 }
0x1186   : > { %v5754_v36 = vadd.f32 %v5746_v24, %v14767_v39  ;;  %v5734_v23 = vadd.f32 %v5726_v2, %v5576_v9  ;;  %v5749_v47 = vadd.f32 %v13537_v60, %v5735_v6 }
0x1188   : > { %v5748_v49 = vadd.f32 %v13537_v60, %v5734_v23  ;;  %9707 = vmatprep.mubr.msk.f32.mxu0 %vm704_vm0, %v5754_v36  ;;  %v5757_v51 = vadd.f32 %v5749_v47, %v4319_v43  ;;  %v8257_v60 = vld [vmem:[%s14480_s9] ss:$0 sm:$0xff] }
0x1189   : > { %9708 = vmatmul.mubr.msk.f32.gmra.mxu0 %vm704_vm0, %v5755_v20 }
0x118a   : > { %v5756_v55 = vadd.f32 %v5748_v49, %v4318_v4 }
0x118c   : > { %9710 = vmatprep.mubr.msk.f32.mxu0 %vm704_vm0, %v5756_v55 }
0x118d   : > { %9711 = vmatmul.mubr.msk.f32.gmra.mxu0 %vm704_vm0, %v5757_v51 }
0x118e   : > { %9753 = vmatprep.mubr.msk.f32.mxu0 %vm1144_vm6, %v10468_v16 }
0x1241   : > { %v9703_v8 = vpop.f32.mrf.mxu0 }
0x1242   : > { %v5867_v7 = vadd.f32 %v9703_v8, %v8257_v60 }
0x1243   : > { %v5861_v13 = vpop.f32.mrf.mxu0 }
0x1244   : > { %v13596_v0 = vadd.f32 %v10469_v19, %v5867_v7  ;;  %v5862_v56 = vadd.f32 %v8257_v60, %v5861_v13 }
0x1245   : > { %v9706_v44 = vpop.f32.mrf.mxu0 }
0x1246   : > { %14769 = vst [vmem:[#allocation26_spill] sm:$0xff] %v13596_v0  ;;  %v13599_v57 = vadd.f32 %v10470_v50, %v5862_v56  ;;  %v5877_v41 = vadd.f32 %v9706_v44, %v8257_v60  ;;  %v5913_v5 = vsel %vm704_vm0, %v13596_v0, 0.0 }
0x1247   : > { %5914 = vadd.xlane.f32.xlu1 %v5913_v5  ;;  %v5871_v40 = vpop.f32.mrf.mxu0 }
0x1248   : > { %14770 = vst [vmem:[#allocation35_spill] sm:$0xff] %v13599_v57  ;;  %v13604_v1 = vadd.f32 %v10471_v12, %v5877_v41  ;;  %v5872_v28 = vadd.f32 %v8257_v60, %v5871_v40  ;;  %v5910_v54 = vsel %vm704_vm0, %v13599_v57, 0.0 }
0x1249   : > { %5911 = vadd.xlane.f32.xlu0 %v5910_v54  ;;  %v9709_v26 = vpop.f32.mrf.mxu0 }
0x124a   : > { %14771 = vst [vmem:[#allocation25_spill] sm:$0xff] %v13604_v1  ;;  %v13609_v45 = vadd.f32 %v10472_v29, %v5872_v28  ;;  %v5887_v58 = vadd.f32 %v9709_v26, %v8257_v60  ;;  %v5919_v34 = vsel %vm704_vm0, %v13604_v1, 0.0 }
0x124b   : > { %5920 = vadd.xlane.f32.xlu1 %v5919_v34  ;;  %v5881_v27 = vpop.f32.mrf.mxu0  ;;  %v6047_v34 = vld [vmem:[#allocation11 + $0x28] sm:$0xff] }
0x124c   : > { %14772 = vst [vmem:[#allocation46_spill] sm:$0xff] %v13609_v45  ;;  %v13614_v21 = vadd.f32 %v10473_v11, %v5887_v58  ;;  %v5882_v18 = vadd.f32 %v8257_v60, %v5881_v27  ;;  %v5916_v42 = vsel %vm704_vm0, %v13609_v45, 0.0  ;;  %9713 = vmatprep.subr.mxu1 %v6047_v34  ;;  %v6046_v27 = vld [vmem:[#allocation11 + $0x20] sm:$0xff]  ;;  %v6045_v11 = vld [vmem:[#allocation11 + $0x18] sm:$0xff] }
0x124d   : > { %5917 = vadd.xlane.f32.xlu0 %v5916_v42  ;;  %v9712_v33 = vpop.f32.mrf.mxu0  ;;  %9714 = vmatpush3.msra.mxu1 %v6047_v34  ;;  %v6043_v42 = vld [vmem:[#allocation11 + $0x8] sm:$0xff] }
0x124e   : > { %14773 = vst [vmem:[#allocation47_spill] sm:$0xff] %v13614_v21  ;;  %v13619_v48 = vadd.f32 %v10474_v61, %v5882_v18  ;;  %v5897_v62 = vadd.f32 %v9712_v33, %v8257_v60  ;;  %v5925_v32 = vsel %vm704_vm0, %v13614_v21, 0.0  ;;  %9715 = vmatprep.subr.mxu1 %v6046_v27  ;;  %v6044_v18 = vld [vmem:[#allocation11 + $0x10] sm:$0xff]  ;;  %v6042_v33 = vld [vmem:[#allocation11] sm:$0xff] }
0x124f   : > { %5926 = vadd.xlane.f32.xlu1 %v5925_v32  ;;  %v5891_v30 = vpop.f32.mrf.mxu0  ;;  %9716 = vmatpush3.msra.mxu1 %v6046_v27 }
0x1250   : > { %14774 = vst [vmem:[#allocation38_spill] sm:$0xff] %v13619_v48  ;;  %v13624_v14 = vadd.f32 %v10475_v37, %v5897_v62  ;;  %v5892_v22 = vadd.f32 %v8257_v60, %v5891_v30  ;;  %v5922_v25 = vsel %vm704_vm0, %v13619_v48, 0.0  ;;  %9717 = vmatprep.subr.mxu1 %v6045_v11 }
0x1251   : > { %5923 = vadd.xlane.f32.xlu0 %v5922_v25  ;;  %9718 = vmatpush3.msra.mxu1 %v6045_v11 }
0x1252   : > { %14775 = vst [vmem:[#allocation28_spill] sm:$0xff] %v13624_v14  ;;  %v13629_v46 = vadd.f32 %v10476_v53, %v5892_v22  ;;  %v5931_v15 = vsel %vm704_vm0, %v13624_v14, 0.0  ;;  %9719 = vmatprep.subr.mxu1 %v6044_v18 }
0x1253   : > { %5932 = vadd.xlane.f32.xlu1 %v5931_v15  ;;  %9720 = vmatpush3.msra.mxu1 %v6044_v18 }
0x1254   : > { %14776 = vst [vmem:[#allocation58_spill] sm:$0xff] %v13629_v46  ;;  %v5928_v63 = vsel %vm704_vm0, %v13629_v46, 0.0  ;;  %9721 = vmatprep.subr.mxu1 %v6043_v42 }
0x1255   : > { %5929 = vadd.xlane.f32.xlu0 %v5928_v63  ;;  %9722 = vmatpush3.msra.mxu1 %v6043_v42 }
0x1256   : > { %9723 = vmatprep.subr.mxu1 %v6042_v33 }
0x1257   : > { %9724 = vmatpush3.msra.mxu1 %v6042_v33 }
0x12d0   : > { %v5915_v35 = vpop.xlane.xlu1 %5914 }
0x12d1   : > { %v5935_v3 = vmul.f32 0.020833334, %v5915_v35 }
0x12d2   : > { %v5912_v9 = vpop.xlane.xlu0 %5911 }
0x12d3   : > { %v13636_v24 = vsub.f32 %v13596_v0, %v5935_v3  ;;  %v5934_v6 = vmul.f32 0.020833334, %v5912_v9 }
0x12d4   : > { %v5921_v2 = vpop.xlane.xlu1 %5920 }
0x12d5   : > { %v13639_v38 = vsub.f32 %v13599_v57, %v5934_v6  ;;  %v5937_v59 = vmul.f32 0.020833334, %v5921_v2  ;;  %v5951_v31 = vmul.f32 %v13636_v24, %v13636_v24 }
0x12d6   : > { %v5918_v10 = vpop.xlane.xlu0 %5917 }
0x12d7   : > { %v13644_v39 = vsub.f32 %v13604_v1, %v5937_v59  ;;  %v5936_v36 = vmul.f32 0.020833334, %v5918_v10  ;;  %v5961_v23 = vsel %vm704_vm0, %v5951_v31, 0.0  ;;  %v5950_v17 = vmul.f32 %v13639_v38, %v13639_v38 }
0x12d8   : > { %5962 = vadd.xlane.f32.xlu1 %v5961_v23  ;;  %v5927_v52 = vpop.xlane.xlu1 %5926 }
0x12d9   : > { %v13650_v20 = vsub.f32 %v13609_v45, %v5936_v36  ;;  %v5939_v47 = vmul.f32 0.020833334, %v5927_v52  ;;  %v5958_v4 = vsel %vm704_vm0, %v5950_v17, 0.0  ;;  %v5953_v49 = vmul.f32 %v13644_v39, %v13644_v39 }
0x12da   : > { %v5924_v43 = vpop.xlane.xlu0 %5923  ;;  %5959 = vadd.xlane.f32.xlu0 %v5958_v4 }
0x12db   : > { %v13656_v55 = vsub.f32 %v13614_v21, %v5939_v47  ;;  %v5938_v51 = vmul.f32 0.020833334, %v5924_v43  ;;  %v5967_v16 = vsel %vm704_vm0, %v5953_v49, 0.0  ;;  %v5952_v60 = vmul.f32 %v13650_v20, %v13650_v20  ;;  %v8266_v43 = vld [vmem:[%s14481_s10] ss:$0 sm:$0xff] }
0x12dc   : > { %5968 = vadd.xlane.f32.xlu1 %v5967_v16  ;;  %v5933_v8 = vpop.xlane.xlu1 %5932 }
0x12dd   : > { %v13662_v7 = vsub.f32 %v13619_v48, %v5938_v51  ;;  %v5941_v13 = vmul.f32 0.020833334, %v5933_v8  ;;  %v5964_v19 = vsel %vm704_vm0, %v5952_v60, 0.0  ;;  %v5955_v56 = vmul.f32 %v13656_v55, %v13656_v55 }
0x12de   : > { %5965 = vadd.xlane.f32.xlu0 %v5964_v19  ;;  %v5930_v44 = vpop.xlane.xlu0 %5929  ;;  %v8267_v19 = vld [vmem:[%s14777_s11] ss:$0 sm:$0xff] }
0x12df   : > { %v13668_v50 = vsub.f32 %v13624_v14, %v5941_v13  ;;  %v5940_v41 = vmul.f32 0.020833334, %v5930_v44  ;;  %v5973_v5 = vsel %vm704_vm0, %v5955_v56, 0.0  ;;  %v5954_v40 = vmul.f32 %v13662_v7, %v13662_v7 }
0x12e0   : > { %5974 = vadd.xlane.f32.xlu1 %v5973_v5 }
0x12e1   : > { %v13674_v12 = vsub.f32 %v13629_v46, %v5940_v41  ;;  %v5970_v28 = vsel %vm704_vm0, %v5954_v40, 0.0  ;;  %v5957_v54 = vmul.f32 %v13668_v50, %v13668_v50 }
0x12e2   : > { %5971 = vadd.xlane.f32.xlu0 %v5970_v28 }
0x12e3   : > { %v5979_v26 = vsel %vm704_vm0, %v5957_v54, 0.0  ;;  %v5956_v29 = vmul.f32 %v13674_v12, %v13674_v12 }
0x12e4   : > { %5980 = vadd.xlane.f32.xlu1 %v5979_v26 }
0x12e5   : > { %v5976_v58 = vsel %vm704_vm0, %v5956_v29, 0.0 }
0x12e6   : > { %5977 = vadd.xlane.f32.xlu0 %v5976_v58 }
0x1361   : > { %v5963_v61 = vpop.xlane.xlu1 %5962 }
0x1362   : > { %v5983_v62 = vmul.f32 0.020833334, %v5963_v61 }
0x1363   : > { %v5960_v32 = vpop.xlane.xlu0 %5959 }
0x1364   : > { %v5991_v30 = vadd.f32 1e-05, %v5983_v62  ;;  %v5982_v37 = vmul.f32 0.020833334, %v5960_v32 }
0x1365   : > { %v5969_v22 = vpop.xlane.xlu1 %5968 }
0x1366   : > { %10420 = vrsqrt.f32 %v5991_v30  ;;  %v5990_v25 = vadd.f32 1e-05, %v5982_v37  ;;  %v5985_v53 = vmul.f32 0.020833334, %v5969_v22  ;;  %v8268_v30 = vld [vmem:[%s14786_s17] ss:$0 sm:$0xff]  ;;  %s14421_s17 = scalar_lea.hbm %s14823_s13, %s8366_s14 }
0x1367   : > { %v5966_v15 = vpop.xlane.xlu0 %5965 }
0x1368   : > { %10422 = vrsqrt.f32 %v5990_v25  ;;  %v5993_v63 = vadd.f32 1e-05, %v5985_v53  ;;  %v5984_v35 = vmul.f32 0.020833334, %v5966_v15 }
0x1369   : > { %v5975_v3 = vpop.xlane.xlu1 %5974 }
0x136a   : > { %10424 = vrsqrt.f32 %v5993_v63  ;;  %v5992_v9 = vadd.f32 1e-05, %v5984_v35  ;;  %v5987_v6 = vmul.f32 0.020833334, %v5975_v3 }
0x136b   : > { %v5972_v2 = vpop.xlane.xlu0 %5971 }
0x136c   : > { %10426 = vrsqrt.f32 %v5992_v9  ;;  %v5995_v59 = vadd.f32 1e-05, %v5987_v6  ;;  %v5986_v31 = vmul.f32 0.020833334, %v5972_v2 }
0x136d   : > { %v5981_v10 = vpop.xlane.xlu1 %5980 }
0x136e   : > { %10428 = vrsqrt.f32 %v5995_v59  ;;  %v5994_v36 = vadd.f32 1e-05, %v5986_v31  ;;  %v5989_v23 = vmul.f32 0.020833334, %v5981_v10 }
0x136f   : > { %v5978_v17 = vpop.xlane.xlu0 %5977 }
0x1370   : > { %10430 = vrsqrt.f32 %v5994_v36  ;;  %v5997_v52 = vadd.f32 1e-05, %v5989_v23  ;;  %v5988_v47 = vmul.f32 0.020833334, %v5978_v17  ;;  %v10478_v17 = vld [vmem:[#allocation5 + $0x8] sm:$0xff] }
0x1372   : > { %10432 = vrsqrt.f32 %v5997_v52  ;;  %v5996_v4 = vadd.f32 1e-05, %v5988_v47  ;;  %v10479_v52 = vld [vmem:[#allocation5 + $0x48] sm:$0xff]  ;;  %v10480_v47 = vld [vmem:[#allocation5 + $0x10] sm:$0xff] }
0x1373   : > { %v10421_v49 = vpop.eup %10420 }
0x1374   : > { %v6007_v51 = vmul.f32 %v10421_v49, %v13636_v24  ;;  %10434 = vrsqrt.f32 %v5996_v4  ;;  %v10481_v4 = vld [vmem:[#allocation5 + $0x50] sm:$0xff]  ;;  %v10482_v49 = vld [vmem:[#allocation5 + $0x18] sm:$0xff] }
0x1375   : > { %v10423_v16 = vpop.eup %10422 }
0x1376   : > { %v6006_v60 = vmul.f32 %v10423_v16, %v13639_v38  ;;  %v6021_v13 = vmul.f32 %v8266_v43, %v6007_v51  ;;  %v10484_v51 = vld [vmem:[#allocation5 + $0x20] sm:$0xff] }
0x1377   : > { %v10425_v8 = vpop.eup %10424  ;;  %v10485_v16 = vld [vmem:[#allocation5 + $0x60] sm:$0xff] }
0x1378   : > { %v6020_v56 = vmul.f32 %v8266_v43, %v6006_v60  ;;  %v6009_v44 = vmul.f32 %v10425_v8, %v13644_v39  ;;  %v13695_v24 = vadd.f32 %v8267_v19, %v6021_v13  ;;  %v10486_v60 = vld [vmem:[#allocation5 + $0x28] sm:$0xff]  ;;  %v10488_v13 = vld [vmem:[#allocation5 + $0x30] sm:$0xff] }
0x1379   : > { %v10427_v41 = vpop.eup %10426  ;;  %v10487_v8 = vld [vmem:[#allocation5 + $0x68] sm:$0xff] }
0x137a   : > { %v13692_v5 = vadd.f32 %v8267_v19, %v6020_v56  ;;  %v6008_v40 = vmul.f32 %v10427_v41, %v13650_v20  ;;  %14779 = vst [vmem:[#allocation72_spill] sm:$0xff] %v13695_v24  ;;  %v6023_v54 = vmul.f32 %v8266_v43, %v6009_v44  ;;  %v10490_v56 = vld [vmem:[#allocation5 + $0x38] sm:$0xff]  ;;  %v10492_v41 = vld [vmem:[#allocation5 + $0x80] sm:$0xff] }
0x137b   : > { %v10429_v28 = vpop.eup %10428  ;;  %v10491_v44 = vld [vmem:[#allocation5 + $0x78] sm:$0xff] }
0x137c   : > { %14778 = vst [vmem:[#allocation59_spill] sm:$0xff] %v13692_v5  ;;  %9725 = vmatprep.mubr.msk.f32.mxu1 %vm704_vm0, %v13692_v5  ;;  %v6022_v38 = vmul.f32 %v8266_v43, %v6008_v40  ;;  %v6011_v26 = vmul.f32 %v10429_v28, %v13656_v55  ;;  %v13705_v20 = vadd.f32 %v8267_v19, %v6023_v54  ;;  %v10493_v40 = vld [vmem:[#allocation5 + $0x88] sm:$0xff]  ;;  %v10494_v28 = vld [vmem:[#allocation5 + $0xc0] sm:$0xff] }
0x137d   : > { %v10431_v29 = vpop.eup %10430  ;;  %9726 = vmatmul.mubr.msk.f32.vlgmr.msra.gmra.mxu1 %vm704_vm0, %v13695_v24  ;;  %v10495_v54 = vld [vmem:[#allocation5 + $0xc8] sm:$0xff] }
0x137e   : > { %v13702_v39 = vadd.f32 %v8267_v19, %v6022_v38  ;;  %v6010_v58 = vmul.f32 %v10431_v29, %v13662_v7  ;;  %14781 = vst [vmem:[#allocation37_spill] sm:$0xff] %v13705_v20  ;;  %v6025_v27 = vmul.f32 %v8266_v43, %v6011_v26  ;;  %v10496_v38 = vld [vmem:[#allocation5 + $0x90] sm:$0xff]  ;;  %v10497_v26 = vld [vmem:[#allocation5 + $0x98] sm:$0xff] }
0x137f   : > { %v10433_v34 = vpop.eup %10432  ;;  %v10498_v29 = vld [vmem:[#allocation5 + $0xd0] sm:$0xff] }
0x1380   : > { %14780 = vst [vmem:[#allocation27_spill] sm:$0xff] %v13702_v39  ;;  %9728 = vmatprep.mubr.msk.f32.mxu1 %vm704_vm0, %v13702_v39  ;;  %v6024_v11 = vmul.f32 %v8266_v43, %v6010_v58  ;;  %v6013_v18 = vmul.f32 %v10433_v34, %v13668_v50  ;;  %v13715_v61 = vadd.f32 %v8267_v19, %v6025_v27  ;;  %v10499_v58 = vld [vmem:[#allocation5 + $0xd8] sm:$0xff]  ;;  %v10500_v34 = vld [vmem:[#allocation5 + $0xa0] sm:$0xff]  ;;  %v10501_v27 = vld [vmem:[#allocation5 + $0xa8] sm:$0xff] }
0x1381   : > { %v10435_v42 = vpop.eup %10434  ;;  %9729 = vmatmul.mubr.msk.f32.gmra.mxu1 %vm704_vm0, %v13705_v20 }
0x1382   : > { %v13712_v55 = vadd.f32 %v8267_v19, %v6024_v11  ;;  %v6012_v33 = vmul.f32 %v10435_v42, %v13674_v12  ;;  %14783 = vst [vmem:[#allocation49_spill] sm:$0xff] %v13715_v61  ;;  %v6027_v7 = vmul.f32 %v8266_v43, %v6013_v18  ;;  %v10477_v12 = vld [vmem:[#allocation5 + $0x40] sm:$0xff]  ;;  %v10503_v18 = vld [vmem:[#allocation5 + $0xe8] sm:$0xff]  ;;  %v10504_v42 = vld [vmem:[#allocation5 + $0xb0] sm:$0xff] }
0x1383   : > { %v10502_v11 = vld [vmem:[#allocation5 + $0xe0] sm:$0xff] }
0x1384   : > { %14782 = vst [vmem:[#allocation71_spill] sm:$0xff] %v13712_v55  ;;  %9731 = vmatprep.mubr.msk.f32.mxu1 %vm704_vm0, %v13712_v55  ;;  %v6026_v62 = vmul.f32 %v8266_v43, %v6012_v33  ;;  %v13723_v50 = vadd.f32 %v8267_v19, %v6027_v7  ;;  %v10483_v43 = vld [vmem:[#allocation5 + $0x58] sm:$0xff]  ;;  %v10506_v7 = vld [vmem:[#allocation5 + $0xf0] sm:$0xff] }
0x1385   : > { %9732 = vmatmul.mubr.msk.f32.gmra.mxu1 %vm704_vm0, %v13715_v61  ;;  %v10505_v33 = vld [vmem:[#allocation5 + $0xb8] sm:$0xff] }
0x1386   : > { %v13721_v32 = vadd.f32 %v8267_v19, %v6026_v62  ;;  %14785 = vst [vmem:[#allocation80_spill] sm:$0xff] %v13723_v50  ;;  %v10489_v19 = vld [vmem:[#allocation5 + $0x70] sm:$0xff]  ;;  %v10507_v62 = vld [vmem:[#allocation5 + $0xf8] sm:$0xff] }
0x1388   : > { %14784 = vst [vmem:[#allocation48_spill] sm:$0xff] %v13721_v32  ;;  %9734 = vmatprep.mubr.msk.f32.mxu1 %vm704_vm0, %v13721_v32 }
0x1389   : > { %9735 = vmatmul.mubr.msk.f32.gmra.mxu1 %vm704_vm0, %v13723_v50 }
0x138a   : > { %9781 = vmatprep.mubr.msk.f32.mxu1 %vm1144_vm6, %v10477_v12  ;;  %v10508_v12 = vld [vmem:[#allocation5 + $0x100] sm:$0xff] }
0x143d   : > { %v9727_v37 = vpop.f32.mrf.mxu1 }
0x143e   : > { %v13733_v22 = vadd.f32 %v9727_v37, %v8268_v30  ;;  %v10510_v37 = vld [vmem:[#allocation5 + $0x140] sm:$0xff] }
0x143f   : > { %v6145_v25 = vpop.f32.mrf.mxu1 }
0x1440   : > { %v13735_v53 = vadd.f32 %v8268_v30, %v6145_v25  ;;  %7544 = vrot.lane.b32.xlu1 %v13733_v22, %s10866_s4  ;;  %v10511_v25 = vld [vmem:[#allocation5 + $0x148] sm:$0xff] }
0x1441   : > { %v9730_v15 = vpop.f32.mrf.mxu1 }
0x1442   : > { %7542 = vrot.lane.b32.xlu0 %v13735_v53, %s10866_s4  ;;  %v13745_v6 = vadd.f32 %v9730_v15, %v8268_v30  ;;  %v10512_v15 = vld [vmem:[#allocation5 + $0x110] sm:$0xff] }
0x1443   : > { %v6155_v63 = vpop.f32.mrf.mxu1 }
0x1444   : > { %v13741_v35 = vadd.f32 %v8268_v30, %v6155_v63  ;;  %v10513_v63 = vld [vmem:[#allocation5 + $0x118] sm:$0xff] }
0x1445   : > { %v9733_v3 = vpop.f32.mrf.mxu1 }
0x1446   : > { %7546 = vrot.lane.b32.xlu1 %v13741_v35, %s10866_s4  ;;  %v13755_v36 = vadd.f32 %v9733_v3, %v8268_v30  ;;  %v10514_v3 = vld [vmem:[#allocation5 + $0x150] sm:$0xff] }
0x1447   : > { %v6165_v9 = vpop.f32.mrf.mxu1 }
0x1448   : > { %v13747_v2 = vadd.f32 %v8268_v30, %v6165_v9  ;;  %v10515_v9 = vld [vmem:[#allocation5 + $0x158] sm:$0xff] }
0x1449   : > { %v9736_v59 = vpop.f32.mrf.mxu1 }
0x144a   : > { %v13749_v31 = vadd.f32 %v9736_v59, %v8268_v30  ;;  %7548 = vrot.lane.b32.xlu1 %v13745_v6, %s10866_s4  ;;  %7550 = vrot.lane.b32.xlu0 %v13747_v2, %s10866_s4  ;;  %v10516_v59 = vld [vmem:[#allocation5 + $0x120] sm:$0xff] }
0x144b   : > { %v6175_v10 = vpop.f32.mrf.mxu1 }
0x144c   : > { %v13757_v23 = vadd.f32 %v8268_v30, %v6175_v10  ;;  %9737 = vmatprep.subr.mxu0 %v13749_v31  ;;  %9765 = vmatprep.subr.mxu1 %v13749_v31  ;;  %v10509_v30 = vld [vmem:[#allocation5 + $0x108] sm:$0xff] }
0x144d   : > { %9738 = vmatpush3.msra.mxu0 %v13749_v31  ;;  %9766 = vmatpush3.msra.mxu1 %v13749_v31  ;;  %v10517_v10 = vld [vmem:[#allocation5 + $0x128] sm:$0xff] }
0x144e   : > { %7552 = vrot.lane.b32.xlu1 %v13755_v36, %s10866_s4  ;;  %7554 = vrot.lane.b32.xlu0 %v13757_v23, %s10866_s4 }
0x144f   : > { %9739 = vmatprep.subr.mxu0 %v13757_v23  ;;  %9767 = vmatprep.subr.mxu1 %v13757_v23 }
0x1450   : > { %9740 = vmatpush3.msra.mxu0 %v13757_v23  ;;  %9768 = vmatpush3.msra.mxu1 %v13757_v23 }
0x1451   : > { %9741 = vmatprep.subr.mxu0 %v13755_v36  ;;  %9769 = vmatprep.subr.mxu1 %v13755_v36 }
0x1452   : > { %9742 = vmatpush3.msra.mxu0 %v13755_v36  ;;  %9770 = vmatpush3.msra.mxu1 %v13755_v36 }
0x1453   : > { %7556 = vrot.lane.b32.xlu1 %v13749_v31, %s10866_s4  ;;  %9743 = vmatprep.subr.mxu0 %v13747_v2  ;;  %s10758_s4 = scalar_lea.vmem %s14423_s22, 1024 }
0x1454   : > { %9771 = vmatprep.subr.mxu1 %v13747_v2  ;;  %9744 = vmatpush3.msra.mxu0 %v13747_v2  ;;  %p10759_p10 = scmp.ne.s32.totalorder %s14423_s22, %s10758_s4 }
0x1455   : > { %9772 = vmatpush3.msra.mxu1 %v13747_v2  ;;  %9745 = vmatprep.subr.mxu0 %v13745_v6 }
0x1456   : > { %9773 = vmatprep.subr.mxu1 %v13745_v6  ;;  %9746 = vmatpush3.msra.mxu0 %v13745_v6  ;;  %p10760_p12 = pnand %p10759_p10, %p14825_p8 }
0x1457   : > { %9774 = vmatpush3.msra.mxu1 %v13745_v6  ;;  %9747 = vmatprep.subr.mxu0 %v13741_v35 }
0x1458   : > { %9775 = vmatprep.subr.mxu1 %v13741_v35  ;;  %9748 = vmatpush3.msra.mxu0 %v13741_v35  ;;  %p10761_p13 = pneg %p10760_p12 }
0x1459   : > { %9776 = vmatpush3.msra.mxu1 %v13741_v35  ;;  %9749 = vmatprep.subr.mxu0 %v13733_v22 }
0x145a   : > { %9777 = vmatprep.subr.mxu1 %v13733_v22  ;;  %9750 = vmatpush3.msra.mxu0 %v13733_v22 }
0x145b   : > { %9778 = vmatpush3.msra.mxu1 %v13733_v22  ;;  %9751 = vmatprep.subr.mxu0 %v13735_v53 }
0x145c   : > { %9779 = vmatprep.subr.mxu1 %v13735_v53  ;;  %9752 = vmatpush3.msra.mxu0 %v13735_v53 }
0x145d   : > { %9780 = vmatpush3.msra.mxu1 %v13735_v53  ;;  %9754 = vmatmul.mubr.msk.f32.vlgmr.msra.gmra.mxu0 %vm1144_vm6, %v10478_v17  ;;  %v10518_v17 = vld [vmem:[#allocation5 + $0x160] sm:$0xff] }
0x145e   : > { %9782 = vmatmul.mubr.msk.f32.vlgmr.msra.gmra.mxu1 %vm1144_vm6, %v10479_v52  ;;  %9793 = vmatprep.subr.mxu0 %v13749_v31  ;;  %v10519_v52 = vld [vmem:[#allocation5 + $0x168] sm:$0xff] }
0x145f   : > { %9821 = vmatprep.subr.mxu1 %v13749_v31  ;;  %9794 = vmatpush3.msra.mxu0 %v13749_v31 }
0x1460   : > { %9822 = vmatpush3.msra.mxu1 %v13749_v31  ;;  %9795 = vmatprep.subr.mxu0 %v13757_v23 }
0x1461   : > { %9823 = vmatprep.subr.mxu1 %v13757_v23  ;;  %9756 = vmatprep.mubr.msk.f32.mxu0 %vm1144_vm6, %v10480_v47  ;;  %v10520_v47 = vld [vmem:[#allocation5 + $0x130] sm:$0xff] }
0x1462   : > { %9784 = vmatprep.mubr.msk.f32.mxu1 %vm1144_vm6, %v10481_v4  ;;  %9796 = vmatpush3.msra.mxu0 %v13757_v23  ;;  %v10521_v4 = vld [vmem:[#allocation5 + $0x138] sm:$0xff] }
0x1463   : > { %9824 = vmatpush3.msra.mxu1 %v13757_v23  ;;  %9757 = vmatmul.mubr.msk.f32.gmra.mxu0 %vm1144_vm6, %v10482_v49  ;;  %v10522_v49 = vld [vmem:[#allocation5 + $0x170] sm:$0xff] }
0x1464   : > { %9785 = vmatmul.mubr.msk.f32.gmra.mxu1 %vm1144_vm6, %v10483_v43  ;;  %9797 = vmatprep.subr.mxu0 %v13755_v36  ;;  %v10523_v43 = vld [vmem:[#allocation5 + $0x178] sm:$0xff] }
0x1465   : > { %9825 = vmatprep.subr.mxu1 %v13755_v36  ;;  %9798 = vmatpush3.msra.mxu0 %v13755_v36 }
0x1466   : > { %9826 = vmatpush3.msra.mxu1 %v13755_v36  ;;  %9799 = vmatprep.subr.mxu0 %v13747_v2 }
0x1467   : > { %9827 = vmatprep.subr.mxu1 %v13747_v2  ;;  %9759 = vmatprep.mubr.msk.f32.mxu0 %vm1144_vm6, %v10484_v51  ;;  %v10524_v51 = vld [vmem:[#allocation5 + $0x180] sm:$0xff] }
0x1468   : > { %9787 = vmatprep.mubr.msk.f32.mxu1 %vm1144_vm6, %v10485_v16  ;;  %9800 = vmatpush3.msra.mxu0 %v13747_v2  ;;  %v10525_v16 = vld [vmem:[#allocation5 + $0x188] sm:$0xff] }
0x1469   : > { %9828 = vmatpush3.msra.mxu1 %v13747_v2  ;;  %9760 = vmatmul.mubr.msk.f32.gmra.mxu0 %vm1144_vm6, %v10486_v60  ;;  %v10526_v60 = vld [vmem:[#allocation5 + $0x1c0] sm:$0xff] }
0x146a   : > { %9788 = vmatmul.mubr.msk.f32.gmra.mxu1 %vm1144_vm6, %v10487_v8  ;;  %9801 = vmatprep.subr.mxu0 %v13745_v6  ;;  %v10527_v8 = vld [vmem:[#allocation5 + $0x1c8] sm:$0xff] }
0x146b   : > { %9829 = vmatprep.subr.mxu1 %v13745_v6  ;;  %9802 = vmatpush3.msra.mxu0 %v13745_v6 }
0x146c   : > { %9830 = vmatpush3.msra.mxu1 %v13745_v6  ;;  %9803 = vmatprep.subr.mxu0 %v13741_v35 }
0x146d   : > { %9831 = vmatprep.subr.mxu1 %v13741_v35  ;;  %9762 = vmatprep.mubr.msk.f32.mxu0 %vm1144_vm6, %v10488_v13  ;;  %v10528_v13 = vld [vmem:[#allocation5 + $0x190] sm:$0xff] }
0x146e   : > { %9790 = vmatprep.mubr.msk.f32.mxu1 %vm1144_vm6, %v10489_v19  ;;  %9804 = vmatpush3.msra.mxu0 %v13741_v35  ;;  %v10529_v19 = vld [vmem:[#allocation5 + $0x198] sm:$0xff] }
0x146f   : > { %9832 = vmatpush3.msra.mxu1 %v13741_v35  ;;  %9763 = vmatmul.mubr.msk.f32.gmra.mxu0 %vm1144_vm6, %v10490_v56  ;;  %v10530_v56 = vld [vmem:[#allocation5 + $0x1d0] sm:$0xff] }
0x1470   : > { %9791 = vmatmul.mubr.msk.f32.gmra.mxu1 %vm1144_vm6, %v10491_v44  ;;  %9805 = vmatprep.subr.mxu0 %v13733_v22  ;;  %v10532_v44 = vld [vmem:[#allocation5 + $0x1a0] sm:$0xff] }
0x1471   : > { %9833 = vmatprep.subr.mxu1 %v13733_v22  ;;  %9806 = vmatpush3.msra.mxu0 %v13733_v22 }
0x1472   : > { %9834 = vmatpush3.msra.mxu1 %v13733_v22  ;;  %9807 = vmatprep.subr.mxu0 %v13735_v53 }
0x1473   : > { %9835 = vmatprep.subr.mxu1 %v13735_v53  ;;  %9808 = vmatpush3.msra.mxu0 %v13735_v53 }
0x1474   : > { %9809 = vmatprep.mubr.msk.f32.mxu0 %vm1144_vm6, %v10492_v41  ;;  %9836 = vmatpush3.msra.mxu1 %v13735_v53  ;;  %v10534_v41 = vld [vmem:[#allocation5 + $0x1e0] sm:$0xff] }
0x1475   : > { %9810 = vmatmul.mubr.msk.f32.vlgmr.msra.gmra.mxu0 %vm1144_vm6, %v10493_v40  ;;  %9837 = vmatprep.mubr.msk.f32.mxu1 %vm1144_vm6, %v10494_v28  ;;  %v10536_v40 = vld [vmem:[#allocation5 + $0x1b0] sm:$0xff] }
0x1476   : > { %9849 = vmatprep.subr.mxu0 %v13749_v31  ;;  %9877 = vmatprep.subr.mxu1 %v13749_v31  ;;  %v10538_v28 = vld [vmem:[#allocation5 + $0x1f0] sm:$0xff] }
0x1477   : > { %9838 = vmatmul.mubr.msk.f32.vlgmr.msra.gmra.mxu1 %vm1144_vm6, %v10495_v54  ;;  %9850 = vmatpush3.msra.mxu0 %v13749_v31  ;;  %v10540_v54 = vld [vmem:[#allocation5 + $0x200] sm:$0xff] }
0x1478   : > { %9878 = vmatpush3.msra.mxu1 %v13749_v31  ;;  %9851 = vmatprep.subr.mxu0 %v13757_v23 }
0x1479   : > { %9879 = vmatprep.subr.mxu1 %v13757_v23  ;;  %9812 = vmatprep.mubr.msk.f32.mxu0 %vm1144_vm6, %v10496_v38  ;;  %v10542_v38 = vld [vmem:[#allocation5 + $0x210] sm:$0xff] }
0x147a   : > { %9852 = vmatpush3.msra.mxu0 %v13757_v23  ;;  %9880 = vmatpush3.msra.mxu1 %v13757_v23 }
0x147b   : > { %9813 = vmatmul.mubr.msk.f32.gmra.mxu0 %vm1144_vm6, %v10497_v26  ;;  %9840 = vmatprep.mubr.msk.f32.mxu1 %vm1144_vm6, %v10498_v29  ;;  %v10543_v26 = vld [vmem:[#allocation5 + $0x218] sm:$0xff]  ;;  %v10545_v29 = vld [vmem:[#allocation5 + $0x228] sm:$0xff] }
0x147c   : > { %9853 = vmatprep.subr.mxu0 %v13755_v36  ;;  %9881 = vmatprep.subr.mxu1 %v13755_v36 }
0x147d   : > { %9841 = vmatmul.mubr.msk.f32.gmra.mxu1 %vm1144_vm6, %v10499_v58  ;;  %9854 = vmatpush3.msra.mxu0 %v13755_v36  ;;  %v10546_v58 = vld [vmem:[#allocation5 + $0x230] sm:$0xff] }
0x147e   : > { %9882 = vmatpush3.msra.mxu1 %v13755_v36  ;;  %9855 = vmatprep.subr.mxu0 %v13747_v2 }
0x147f   : > { %9883 = vmatprep.subr.mxu1 %v13747_v2  ;;  %9815 = vmatprep.mubr.msk.f32.mxu0 %vm1144_vm6, %v10500_v34 }
0x1480   : > { %9856 = vmatpush3.msra.mxu0 %v13747_v2  ;;  %9884 = vmatpush3.msra.mxu1 %v13747_v2 }
0x1481   : > { %9816 = vmatmul.mubr.msk.f32.gmra.mxu0 %vm1144_vm6, %v10501_v27  ;;  %9843 = vmatprep.mubr.msk.f32.mxu1 %vm1144_vm6, %v10502_v11 }
0x1482   : > { %9857 = vmatprep.subr.mxu0 %v13745_v6  ;;  %9885 = vmatprep.subr.mxu1 %v13745_v6 }
0x1483   : > { %9844 = vmatmul.mubr.msk.f32.gmra.mxu1 %vm1144_vm6, %v10503_v18  ;;  %9858 = vmatpush3.msra.mxu0 %v13745_v6 }
0x1484   : > { %9886 = vmatpush3.msra.mxu1 %v13745_v6  ;;  %9859 = vmatprep.subr.mxu0 %v13741_v35 }
0x1485   : > { %9887 = vmatprep.subr.mxu1 %v13741_v35  ;;  %9818 = vmatprep.mubr.msk.f32.mxu0 %vm1144_vm6, %v10504_v42 }
0x1486   : > { %9860 = vmatpush3.msra.mxu0 %v13741_v35  ;;  %9888 = vmatpush3.msra.mxu1 %v13741_v35 }
0x1487   : > { %9819 = vmatmul.mubr.msk.f32.gmra.mxu0 %vm1144_vm6, %v10505_v33  ;;  %9846 = vmatprep.mubr.msk.f32.mxu1 %vm1144_vm6, %v10506_v7 }
0x1488   : > { %9861 = vmatprep.subr.mxu0 %v13733_v22  ;;  %9889 = vmatprep.subr.mxu1 %v13733_v22 }
0x1489   : > { %9847 = vmatmul.mubr.msk.f32.gmra.mxu1 %vm1144_vm6, %v10507_v62  ;;  %9862 = vmatpush3.msra.mxu0 %v13733_v22 }
0x148a   : > { %9890 = vmatpush3.msra.mxu1 %v13733_v22  ;;  %9863 = vmatprep.subr.mxu0 %v13735_v53 }
0x148b   : > { %9891 = vmatprep.subr.mxu1 %v13735_v53  ;;  %9864 = vmatpush3.msra.mxu0 %v13735_v53 }
0x148c   : > { %9865 = vmatprep.mubr.msk.f32.mxu0 %vm1144_vm6, %v10508_v12  ;;  %9892 = vmatpush3.msra.mxu1 %v13735_v53 }
0x148d   : > { %9866 = vmatmul.mubr.msk.f32.vlgmr.msra.gmra.mxu0 %vm1144_vm6, %v10509_v30  ;;  %9893 = vmatprep.mubr.msk.f32.mxu1 %vm1144_vm6, %v10510_v37 }
0x148e   : > { %9905 = vmatprep.subr.mxu0 %v13749_v31  ;;  %9933 = vmatprep.subr.mxu1 %v13749_v31 }
0x148f   : > { %9894 = vmatmul.mubr.msk.f32.vlgmr.msra.gmra.mxu1 %vm1144_vm6, %v10511_v25  ;;  %9906 = vmatpush3.msra.mxu0 %v13749_v31 }
0x1490   : > { %9934 = vmatpush3.msra.mxu1 %v13749_v31  ;;  %9907 = vmatprep.subr.mxu0 %v13757_v23 }
0x1491   : > { %9935 = vmatprep.subr.mxu1 %v13757_v23  ;;  %9868 = vmatprep.mubr.msk.f32.mxu0 %vm1144_vm6, %v10512_v15 }
0x1492   : > { %9908 = vmatpush3.msra.mxu0 %v13757_v23  ;;  %9936 = vmatpush3.msra.mxu1 %v13757_v23 }
0x1493   : > { %9869 = vmatmul.mubr.msk.f32.gmra.mxu0 %vm1144_vm6, %v10513_v63  ;;  %9909 = vmatprep.subr.mxu0 %v13755_v36 }
0x1494   : > { %9937 = vmatprep.subr.mxu1 %v13755_v36  ;;  %9896 = vmatprep.mubr.msk.f32.mxu1 %vm1144_vm6, %v10514_v3 }
0x1495   : > { %9910 = vmatpush3.msra.mxu0 %v13755_v36  ;;  %9938 = vmatpush3.msra.mxu1 %v13755_v36 }
0x1496   : > { %9897 = vmatmul.mubr.msk.f32.gmra.mxu1 %vm1144_vm6, %v10515_v9  ;;  %9911 = vmatprep.subr.mxu0 %v13747_v2 }
0x1497   : > { %9939 = vmatprep.subr.mxu1 %v13747_v2  ;;  %9871 = vmatprep.mubr.msk.f32.mxu0 %vm1144_vm6, %v10516_v59 }
0x1498   : > { %9912 = vmatpush3.msra.mxu0 %v13747_v2  ;;  %9940 = vmatpush3.msra.mxu1 %v13747_v2 }
0x1499   : > { %9872 = vmatmul.mubr.msk.f32.gmra.mxu0 %vm1144_vm6, %v10517_v10  ;;  %9913 = vmatprep.subr.mxu0 %v13745_v6  ;;  %v7577_v10 = vld [vmem:[#allocation14 + $0x18] sm:$0xff] }
0x149a   : > { %9941 = vmatprep.subr.mxu1 %v13745_v6  ;;  %9899 = vmatprep.mubr.msk.f32.mxu1 %vm1144_vm6, %v10518_v17 }
0x149b   : > { %9914 = vmatpush3.msra.mxu0 %v13745_v6  ;;  %9942 = vmatpush3.msra.mxu1 %v13745_v6 }
0x149c   : > { %9900 = vmatmul.mubr.msk.f32.gmra.mxu1 %vm1144_vm6, %v10519_v52  ;;  %9915 = vmatprep.subr.mxu0 %v13741_v35 }
0x149d   : > { %9943 = vmatprep.subr.mxu1 %v13741_v35  ;;  %9874 = vmatprep.mubr.msk.f32.mxu0 %vm1144_vm6, %v10520_v47  ;;  %v7576_v47 = vld [vmem:[#allocation14 + $0x10] sm:$0xff] }
0x149e   : > { %9916 = vmatpush3.msra.mxu0 %v13741_v35  ;;  %9944 = vmatpush3.msra.mxu1 %v13741_v35 }
0x149f   : > { %9875 = vmatmul.mubr.msk.f32.gmra.mxu0 %vm1144_vm6, %v10521_v4  ;;  %9917 = vmatprep.subr.mxu0 %v13733_v22 }
0x14a0   : > { %9945 = vmatprep.subr.mxu1 %v13733_v22  ;;  %9902 = vmatprep.mubr.msk.f32.mxu1 %vm1144_vm6, %v10522_v49  ;;  %v7575_v49 = vld [vmem:[#allocation14 + $0x8] sm:$0xff] }
0x14a1   : > { %9918 = vmatpush3.msra.mxu0 %v13733_v22  ;;  %9946 = vmatpush3.msra.mxu1 %v13733_v22 }
0x14a2   : > { %9903 = vmatmul.mubr.msk.f32.gmra.mxu1 %vm1144_vm6, %v10523_v43  ;;  %9919 = vmatprep.subr.mxu0 %v13735_v53 }
0x14a3   : > { %9947 = vmatprep.subr.mxu1 %v13735_v53  ;;  %9920 = vmatpush3.msra.mxu0 %v13735_v53 }
0x14a4   : > { %9921 = vmatprep.mubr.msk.f32.mxu0 %vm1144_vm6, %v10524_v51  ;;  %9948 = vmatpush3.msra.mxu1 %v13735_v53  ;;  %v7574_v51 = vld [vmem:[#allocation14] sm:$0xff] }
0x14a5   : > { %9922 = vmatmul.mubr.msk.f32.vlgmr.msra.gmra.mxu0 %vm1144_vm6, %v10525_v16  ;;  %9961 = vmatprep.subr.mxu0 %v13749_v31 }
0x14a6   : > { %9949 = vmatprep.mubr.msk.f32.mxu1 %vm1144_vm6, %v10526_v60  ;;  %9962 = vmatpush3.msra.mxu0 %v13749_v31  ;;  %v10531_v31 = vld [vmem:[#allocation5 + $0x1d8] sm:$0xff] }
0x14a7   : > { %9950 = vmatmul.mubr.msk.f32.vlgmr.msra.gmra.mxu1 %vm1144_vm6, %v10527_v8  ;;  %9963 = vmatprep.subr.mxu0 %v13757_v23 }
0x14a8   : > { %9924 = vmatprep.mubr.msk.f32.mxu0 %vm1144_vm6, %v10528_v13  ;;  %9964 = vmatpush3.msra.mxu0 %v13757_v23  ;;  %v10533_v23 = vld [vmem:[#allocation5 + $0x1a8] sm:$0xff] }
0x14a9   : > { %9925 = vmatmul.mubr.msk.f32.gmra.mxu0 %vm1144_vm6, %v10529_v19  ;;  %9965 = vmatprep.subr.mxu0 %v13755_v36 }
0x14aa   : > { %9952 = vmatprep.mubr.msk.f32.mxu1 %vm1144_vm6, %v10530_v56  ;;  %9966 = vmatpush3.msra.mxu0 %v13755_v36  ;;  %v10535_v36 = vld [vmem:[#allocation5 + $0x1e8] sm:$0xff] }
0x14ab   : > { %9953 = vmatmul.mubr.msk.f32.gmra.mxu1 %vm1144_vm6, %v10531_v31  ;;  %9967 = vmatprep.subr.mxu0 %v13747_v2 }
0x14ac   : > { %9927 = vmatprep.mubr.msk.f32.mxu0 %vm1144_vm6, %v10532_v44  ;;  %9968 = vmatpush3.msra.mxu0 %v13747_v2  ;;  %v10537_v2 = vld [vmem:[#allocation5 + $0x1b8] sm:$0xff] }
0x14ad   : > { %9928 = vmatmul.mubr.msk.f32.gmra.mxu0 %vm1144_vm6, %v10533_v23  ;;  %9969 = vmatprep.subr.mxu0 %v13745_v6 }
0x14ae   : > { %9955 = vmatprep.mubr.msk.f32.mxu1 %vm1144_vm6, %v10534_v41  ;;  %9970 = vmatpush3.msra.mxu0 %v13745_v6  ;;  %v10539_v6 = vld [vmem:[#allocation5 + $0x1f8] sm:$0xff] }
0x14af   : > { %9956 = vmatmul.mubr.msk.f32.gmra.mxu1 %vm1144_vm6, %v10535_v36  ;;  %9971 = vmatprep.subr.mxu0 %v13741_v35 }
0x14b0   : > { %9930 = vmatprep.mubr.msk.f32.mxu0 %vm1144_vm6, %v10536_v40  ;;  %9972 = vmatpush3.msra.mxu0 %v13741_v35  ;;  %v10541_v35 = vld [vmem:[#allocation5 + $0x208] sm:$0xff] }
0x14b1   : > { %9931 = vmatmul.mubr.msk.f32.gmra.mxu0 %vm1144_vm6, %v10537_v2  ;;  %9973 = vmatprep.subr.mxu0 %v13733_v22 }
0x14b2   : > { %9958 = vmatprep.mubr.msk.f32.mxu1 %vm1144_vm6, %v10538_v28  ;;  %9974 = vmatpush3.msra.mxu0 %v13733_v22  ;;  %v10544_v22 = vld [vmem:[#allocation5 + $0x220] sm:$0xff] }
0x14b3   : > { %9959 = vmatmul.mubr.msk.f32.gmra.mxu1 %vm1144_vm6, %v10539_v6  ;;  %9975 = vmatprep.subr.mxu0 %v13735_v53 }
0x14b4   : > { %9976 = vmatpush3.msra.mxu0 %v13735_v53  ;;  %9977 = vmatprep.mubr.msk.f32.mxu0 %vm1144_vm6, %v10540_v54  ;;  %v10547_v53 = vld [vmem:[#allocation5 + $0x238] sm:$0xff] }
0x14b5   : > { %9978 = vmatmul.mubr.msk.f32.vlgmr.msra.gmra.mxu0 %vm1144_vm6, %v10541_v35  ;;  %9989 = vmatprep.subr.mxu1 %v7577_v10 }
0x14b6   : > { %9980 = vmatprep.mubr.msk.f32.mxu0 %vm1144_vm6, %v10542_v38  ;;  %9990 = vmatpush3.msra.mxu1 %v7577_v10 }
0x14b7   : > { %9991 = vmatprep.subr.mxu1 %v7576_v47 }
0x14b8   : > { %9992 = vmatpush3.msra.mxu1 %v7576_v47 }
0x14b9   : > { %9981 = vmatmul.mubr.msk.f32.gmra.mxu0 %vm1144_vm6, %v10543_v26  ;;  %9993 = vmatprep.subr.mxu1 %v7575_v49 }
0x14ba   : > { %9983 = vmatprep.mubr.msk.f32.mxu0 %vm1144_vm6, %v10544_v22  ;;  %9994 = vmatpush3.msra.mxu1 %v7575_v49  ;;  %v6184_v22 = vld [vmem:[#allocation13] sm:$0xff] }
0x14bb   : > { %9995 = vmatprep.subr.mxu1 %v7574_v51 }
0x14bc   : > { %9996 = vmatpush3.msra.mxu1 %v7574_v51 }
0x14bd   : > { %9984 = vmatmul.mubr.msk.f32.gmra.mxu0 %vm1144_vm6, %v10545_v29 }
0x14be   : > { %9986 = vmatprep.mubr.msk.f32.mxu0 %vm1144_vm6, %v10546_v58 }
0x14c1   : > { %9987 = vmatmul.mubr.msk.f32.gmra.mxu0 %vm1144_vm6, %v10547_v53  ;;  %v14787_v53 = vld [vmem:[#allocation45_spill] sm:$0xff] }
0x14c2   : > { %v14788_v10 = vsub.s32 0, %v14787_v53  ;;  %v14789_v49 = vsub.s32 1, %v14787_v53  ;;  %v14791_v32 = vsub.s32 2, %v14787_v53  ;;  %v14793_v39 = vsub.s32 3, %v14787_v53 }
0x14c3   : > { %v14795_v57 = vsub.s32 4, %v14787_v53 }
0x14c4   : > { %v6295_v47 = vrot.slane %v6184_v22, %v14788_v10  ;;  %v6412_v51 = vrot.slane %v6184_v22, %v14789_v49  ;;  %v14053_v14 = vrot.slane %v6184_v22, %v14791_v32  ;;  %v14061_v10 = vrot.slane %v6184_v22, %v14793_v39 }
0x14c5   : > { %v14070_v5 = vrot.slane %v6184_v22, %v14795_v57  ;;  %v14797_v39 = vsub.s32 5, %v14787_v53 }
0x151d   : > { %v9755_v34 = vpop.f32.mrf.mxu0 }
0x151e   : > { %v9783_v27 = vpop.f32.mrf.mxu1  ;;  %v6297_v55 = vmul.f32 %v9755_v34, %v6295_v47 }
0x151f   : > { %v6253_v11 = vpop.f32.mrf.mxu0  ;;  %v6414_v21 = vmul.f32 %v9783_v27, %v6412_v51 }
0x1520   : > { %v6370_v18 = vpop.f32.mrf.mxu1  ;;  %v6296_v61 = vmul.f32 %v6295_v47, %v6253_v11 }
0x1521   : > { %v6413_v45 = vmul.f32 %v6412_v51, %v6370_v18  ;;  %v14078_v18 = vrot.slane %v6184_v22, %v14797_v39 }
0x1523   : > { %v13979_v42 = vpop.f32.mrf.mxu0 }
0x1524   : > { %v13981_v33 = vpop.f32.mrf.mxu1  ;;  %v6299_v49 = vmul.f32 %v13979_v42, %v6295_v47  ;;  %v14798_v42 = vsub.s32 6, %v14787_v53 }
0x1525   : > { %v13983_v7 = vpop.f32.mrf.mxu0  ;;  %v6416_v20 = vmul.f32 %v13981_v33, %v6412_v51  ;;  %v6422_v33 = vadd.f32 %v6414_v21, %v6297_v55 }
0x1526   : > { %v13985_v62 = vpop.f32.mrf.mxu1  ;;  %v6298_v27 = vmul.f32 %v6295_v47, %v13983_v7  ;;  %v14082_v0 = vrot.slane %v6184_v22, %v14798_v42  ;;  %v6421_v7 = vadd.f32 %v6413_v45, %v6296_v61 }
0x1527   : > { %v6415_v11 = vmul.f32 %v6412_v51, %v13985_v62  ;;  %v6424_v42 = vadd.f32 %v6416_v20, %v6299_v49 }
0x1529   : > { %v13987_v12 = vpop.f32.mrf.mxu0 }
0x152a   : > { %v13989_v30 = vpop.f32.mrf.mxu1 }
0x152b   : > { %v13991_v37 = vpop.f32.mrf.mxu0  ;;  %v6418_v57 = vmul.f32 %v13989_v30, %v6412_v51  ;;  %v6423_v30 = vadd.f32 %v6415_v11, %v6298_v27 }
0x152c   : > { %v13993_v25 = vpop.f32.mrf.mxu1  ;;  %v6300_v62 = vmul.f32 %v6295_v47, %v13991_v37 }
0x152f   : > { %v13995_v15 = vpop.f32.mrf.mxu0 }
0x1530   : > { %v13997_v63 = vpop.f32.mrf.mxu1 }
0x1531   : > { %v13999_v3 = vpop.f32.mrf.mxu0  ;;  %v6420_v45 = vmul.f32 %v13997_v63, %v6412_v51 }
0x1532   : > { %v14001_v9 = vpop.f32.mrf.mxu1 }
0x1535   : > { %v9811_v59 = vpop.f32.mrf.mxu0 }
0x1536   : > { %v6539_v32 = vmul.f32 %v9811_v59, %v14053_v14  ;;  %v6301_v59 = vmul.f32 %v13987_v12, %v6295_v47 }
0x1537   : > { %v6495_v17 = vpop.f32.mrf.mxu0  ;;  %v14003_v52 = vpop.f32.mrf.mxu1 }
0x1538   : > { %v6538_v24 = vmul.f32 %v14053_v14, %v6495_v17  ;;  %v6547_v21 = vadd.f32 %v6539_v32, %v6422_v33  ;;  %v6664_v55 = vmul.f32 %v14003_v52, %v14061_v10  ;;  %v6303_v17 = vmul.f32 %v13995_v15, %v6295_v47 }
0x1539   : > { %v14005_v4 = vpop.f32.mrf.mxu1  ;;  %v6302_v52 = vmul.f32 %v6295_v47, %v13999_v3 }
0x153a   : > { %v6672_v49 = vadd.f32 %v6664_v55, %v6547_v21 }
0x153b   : > { %v9814_v43 = vpop.f32.mrf.mxu0 }
0x153c   : > { %v6541_v12 = vmul.f32 %v9814_v43, %v14053_v14  ;;  %v6419_v43 = vmul.f32 %v6412_v51, %v14001_v9 }
0x153d   : > { %v6505_v16 = vpop.f32.mrf.mxu0  ;;  %v14007_v60 = vpop.f32.mrf.mxu1 }
0x153e   : > { %v6540_v61 = vmul.f32 %v14053_v14, %v6505_v16  ;;  %v6549_v16 = vadd.f32 %v6541_v12, %v6424_v42  ;;  %v6666_v32 = vmul.f32 %v14007_v60, %v14061_v10  ;;  %v6427_v11 = vadd.f32 %v6419_v43, %v6302_v52 }
0x153f   : > { %v14009_v8 = vpop.f32.mrf.mxu1 }
0x1540   : > { %v6548_v27 = vadd.f32 %v6540_v61, %v6423_v30 }
0x1541   : > { %v14011_v13 = vpop.f32.mrf.mxu0 }
0x1542   : > { %v6543_v15 = vmul.f32 %v14011_v13, %v14053_v14 }
0x1543   : > { %v14013_v19 = vpop.f32.mrf.mxu0  ;;  %v14015_v56 = vpop.f32.mrf.mxu1 }
0x1544   : > { %v6542_v3 = vmul.f32 %v14053_v14, %v14013_v19  ;;  %v6668_v33 = vmul.f32 %v14015_v56, %v14061_v10  ;;  %v6674_v19 = vadd.f32 %v6666_v32, %v6549_v16 }
0x1545   : > { %v14017_v31 = vpop.f32.mrf.mxu1 }
0x1547   : > { %v14019_v44 = vpop.f32.mrf.mxu0 }
0x1549   : > { %v14021_v23 = vpop.f32.mrf.mxu0  ;;  %v14023_v41 = vpop.f32.mrf.mxu1 }
0x154b   : > { %v14025_v36 = vpop.f32.mrf.mxu1 }
0x154d   : > { %v9867_v40 = vpop.f32.mrf.mxu0 }
0x154e   : > { %v6789_v20 = vmul.f32 %v9867_v40, %v14070_v5 }
0x154f   : > { %v14027_v2 = vpop.f32.mrf.mxu0  ;;  %v14029_v28 = vpop.f32.mrf.mxu1 }
0x1550   : > { %v6797_v47 = vadd.f32 %v6789_v20, %v6672_v49 }
0x1551   : > { %v14031_v6 = vpop.f32.mrf.mxu1 }
0x1553   : > { %v14033_v54 = vpop.f32.mrf.mxu0 }
0x1554   : > { %v6791_v60 = vmul.f32 %v14033_v54, %v14070_v5  ;;  %v6544_v54 = vmul.f32 %v14053_v14, %v14021_v23 }
0x1555   : > { %v14035_v35 = vpop.f32.mrf.mxu0 }
0x1556   : > { %v14037_v38 = vpop.f32.mrf.mxu1  ;;  %v6790_v56 = vmul.f32 %v14070_v5, %v14035_v35  ;;  %v6799_v55 = vadd.f32 %v6791_v60, %v6674_v19 }
0x1557   : > { %v6916_v12 = vmul.f32 %v14037_v38, %v14078_v18  ;;  %v6669_v38 = vmul.f32 %v14061_v10, %v14025_v36 }
0x1558   : > { %v14039_v26 = vpop.f32.mrf.mxu1 }
0x1559   : > { %v14041_v29 = vpop.f32.mrf.mxu0  ;;  %v6915_v20 = vmul.f32 %v14078_v18, %v14039_v26  ;;  %v6924_v52 = vadd.f32 %v6916_v12, %v6799_v55 }
0x155a   : > { %v6793_v43 = vmul.f32 %v14041_v29, %v14070_v5 }
0x155b   : > { %v14043_v58 = vpop.f32.mrf.mxu0 }
0x155c   : > { %v14049_v46 = vpop.f32.mrf.mxu1  ;;  %v6792_v36 = vmul.f32 %v14070_v5, %v14043_v58  ;;  %v14169_v58 = vld [vmem:[%s14802_s0] ss:$0 sm:$0xff]  ;;  %s10764_s0 = scalar_lea.vmem %s10763_s20, 2048 }
0x155d   : > { %14790 = vst [vmem:[#allocation40_spill] sm:$0xff] %v14049_v46  ;;  %v14800_v46 = vsub.s32 7, %v14787_v53  ;;  %v6546_v53 = vadd.f32 %v6538_v24, %v6421_v7  ;;  %v6788_v24 = vmul.f32 %v14070_v5, %v14027_v2  ;;  %v6913_v7 = vmul.f32 %v14078_v18, %v14031_v6  ;;  %p10766_p3 = scmp.lt.s32.totalorder %s10764_s0, %s10758_s4 }
0x155e   : > { %v14055_v50 = vpop.f32.mrf.mxu1 }
0x155f   : > { %14792 = vst [vmem:[#allocation30_spill] sm:$0xff] %v14055_v50  ;;  %v14057_v48 = vpop.f32.mrf.mxu0  ;;  %v6417_v50 = vmul.f32 %v6412_v51, %v13993_v25  ;;  %v6914_v51 = vmul.f32 %v14029_v28, %v14078_v18  ;;  %p10767_p4 = por %p10766_p3, %p10765_p1 }
0x1560   : > { %v6795_v29 = vmul.f32 %v14057_v48, %v14070_v5 }
0x1561   : > { %v14063_v1 = vpop.f32.mrf.mxu0  ;;  %p10768_p9 = pnand %p10767_p4, %p10761_p13 }
0x1562   : > { %14794 = vst [vmem:[#allocation61_spill] sm:$0xff] %v14063_v1  ;;  %v14072_v34 = vpop.f32.mrf.mxu1  ;;  %v14093_v1 = vrot.slane %v6184_v22, %v14800_v46  ;;  %v6663_v46 = vmul.f32 %v14061_v10, %v14005_v4  ;;  %v6425_v22 = vadd.f32 %v6417_v50, %v6300_v62  ;;  %v6428_v4 = vadd.f32 %v6420_v45, %v6303_v17 }
0x1563   : > { %14796 = vst [vmem:[#allocation79_spill] sm:$0xff] %v14072_v34  ;;  %v6665_v50 = vmul.f32 %v14061_v10, %v14009_v8  ;;  %v6545_v8 = vmul.f32 %v14019_v44, %v14053_v14  ;;  %v6922_v44 = vadd.f32 %v6914_v51, %v6797_v47  ;;  %v6667_v17 = vmul.f32 %v14061_v10, %v14017_v31 }
0x1564   : > { %v14087_v34 = vpop.f32.mrf.mxu1  ;;  %v6671_v13 = vadd.f32 %v6663_v46, %v6546_v53  ;;  %v6550_v42 = vadd.f32 %v6542_v3, %v6425_v22  ;;  %v6670_v14 = vmul.f32 %v14023_v41, %v14061_v10  ;;  %v6552_v46 = vadd.f32 %v6544_v54, %v6427_v11  ;;  %v14152_v41 = vld [vmem:[#allocation13 + $0x8] ss:$0 sm:$0xff] }
0x1565   : > { %14799 = vst [vmem:[#allocation39_spill] sm:$0xff] %v14087_v34  ;;  %v9923_v39 = vpop.f32.mrf.mxu0  ;;  %v6426_v34 = vadd.f32 %v6418_v57, %v6301_v59  ;;  %v6673_v62 = vadd.f32 %v6665_v50, %v6548_v27 }
0x1566   : > { %v6796_v57 = vadd.f32 %v6788_v24, %v6671_v13  ;;  %v7039_v28 = vmul.f32 %v9923_v39, %v14082_v0  ;;  %v6553_v39 = vadd.f32 %v6545_v8, %v6428_v4  ;;  %v6677_v27 = vadd.f32 %v6669_v38, %v6552_v46  ;;  %v14804_v54 = vld [vmem:[#allocation30_spill] sm:$0xff] }
0x1567   : > { %v6995_v37 = vpop.f32.mrf.mxu0  ;;  %v9951_v25 = vpop.f32.mrf.mxu1  ;;  %v6551_v2 = vadd.f32 %v6543_v15, %v6426_v34 }
0x1568   : > { %v7038_v6 = vmul.f32 %v14082_v0, %v6995_v37  ;;  %v6921_v35 = vadd.f32 %v6913_v7, %v6796_v57  ;;  %v7047_v45 = vadd.f32 %v7039_v28, %v6922_v44  ;;  %v7164_v61 = vmul.f32 %v9951_v25, %v14093_v1 }
0x1569   : > { %v9926_v63 = vpop.f32.mrf.mxu0  ;;  %v7120_v9 = vpop.f32.mrf.mxu1  ;;  %v6676_v30 = vadd.f32 %v6668_v33, %v6551_v2  ;;  %v6798_v37 = vadd.f32 %v6790_v56, %v6673_v62  ;;  %v6678_v49 = vadd.f32 %v6670_v14, %v6553_v39  ;;  %v14801_v3 = vld [vmem:[#allocation61_spill] sm:$0xff]  ;;  %v14803_v33 = vld [vmem:[#allocation40_spill] sm:$0xff]  ;;  %v6917_v56 = vmul.f32 %v14078_v18, %v14804_v54 }
0x156a   : > { %v7041_v53 = vmul.f32 %v9926_v63, %v14082_v0  ;;  %v7046_v25 = vadd.f32 %v7038_v6, %v6921_v35  ;;  %v7163_v15 = vmul.f32 %v14093_v1, %v7120_v9  ;;  %v6675_v63 = vadd.f32 %v6667_v17, %v6550_v42  ;;  %v14805_v44 = vld [vmem:[#allocation79_spill] sm:$0xff] }
0x156b   : > { %v7005_v40 = vpop.f32.mrf.mxu0  ;;  %v9954_v34 = vpop.f32.mrf.mxu1  ;;  %v7172_v16 = vadd.f32 %v7164_v61, %v7047_v45  ;;  %v6923_v50 = vadd.f32 %v6915_v20, %v6798_v37  ;;  %v6794_v9 = vmul.f32 %v14070_v5, %v14801_v3  ;;  %v6801_v47 = vadd.f32 %v6793_v43, %v6676_v30 }
0x156c   : > { %v7040_v10 = vmul.f32 %v14082_v0, %v7005_v40  ;;  %v7049_v32 = vadd.f32 %v7041_v53, %v6924_v52  ;;  %v7166_v24 = vmul.f32 %v9954_v34, %v14093_v1  ;;  %v7171_v51 = vadd.f32 %v7163_v15, %v7046_v25  ;;  %v14806_v30 = vld [vmem:[#allocation39_spill] sm:$0xff] }
0x156d   : > { %v14124_v59 = vpop.f32.mrf.mxu0  ;;  %v7130_v31 = vpop.f32.mrf.mxu1  ;;  %v6800_v2 = vadd.f32 %v6792_v36, %v6675_v63  ;;  %v6918_v8 = vmul.f32 %v14803_v33, %v14078_v18  ;;  %v6803_v42 = vadd.f32 %v6795_v29, %v6678_v49  ;;  %v6802_v34 = vadd.f32 %v6794_v9, %v6677_v27 }
0x156e   : > { %v7048_v48 = vadd.f32 %v7040_v10, %v6923_v50  ;;  %v7165_v19 = vmul.f32 %v14093_v1, %v7130_v31  ;;  %v7174_v57 = vadd.f32 %v7166_v24, %v7049_v32  ;;  %v6920_v55 = vmul.f32 %v14805_v44, %v14078_v18 }
0x156f   : > { %v14133_v21 = vpop.f32.mrf.mxu0  ;;  %v9957_v13 = vpop.f32.mrf.mxu1  ;;  %v6919_v39 = vmul.f32 %v14078_v18, %v14806_v30  ;;  %v7043_v45 = vmul.f32 %v14124_v59, %v14082_v0  ;;  %v6926_v38 = vadd.f32 %v6918_v8, %v6801_v47  ;;  %v6925_v31 = vadd.f32 %v6917_v56, %v6800_v2 }
0x1570   : > { %v7173_v61 = vadd.f32 %v7165_v19, %v7048_v48  ;;  %v7042_v37 = vmul.f32 %v14082_v0, %v14133_v21  ;;  %v6928_v52 = vadd.f32 %v6920_v55, %v6803_v42 }
0x1571   : > { %v14142_v23 = vpop.f32.mrf.mxu0  ;;  %v7140_v12 = vpop.f32.mrf.mxu1  ;;  %v6927_v63 = vadd.f32 %v6919_v39, %v6802_v34  ;;  %v7051_v10 = vadd.f32 %v7043_v45, %v6926_v38 }
0x1572   : > { %v7045_v49 = vmul.f32 %v14142_v23, %v14082_v0  ;;  %v7050_v24 = vadd.f32 %v7042_v37, %v6925_v31  ;;  %v7167_v23 = vmul.f32 %v14093_v1, %v7140_v12 }
0x1573   : > { %v14150_v22 = vpop.f32.mrf.mxu0  ;;  %v9960_v43 = vpop.f32.mrf.mxu1 }
0x1574   : > { %v7053_v47 = vadd.f32 %v7045_v49, %v6928_v52 }
0x1575   : > { %v9979_v26 = vpop.f32.mrf.mxu0  ;;  %v7150_v29 = vpop.f32.mrf.mxu1 }
0x1576   : > { %v7289_v4 = vmul.f32 %v9979_v26, %v14152_v41  ;;  %v7168_v26 = vmul.f32 %v9957_v13, %v14093_v1  ;;  %v7169_v2 = vmul.f32 %v14093_v1, %v7150_v29  ;;  %v10867_v29 = vmov -1.0  }
0x1577   : > { %v7245_v40 = vpop.f32.mrf.mxu0 }
0x1578   : > { %v7297_v60 = vadd.f32 %v7289_v4, %v7172_v16  ;;  %v7288_v11 = vmul.f32 %v14152_v41, %v7245_v40  ;;  %v7044_v4 = vmul.f32 %v14082_v0, %v14150_v22 }
0x1579   : > { %v9982_v5 = vpop.f32.mrf.mxu0 }
0x157a   : > { %v14176_v7 = vadd.f32 %v14169_v58, %v7297_v60  ;;  %v7296_v28 = vadd.f32 %v7288_v11, %v7171_v51  ;;  %v7291_v62 = vmul.f32 %v9982_v5, %v14152_v41  ;;  %v7170_v51 = vmul.f32 %v9960_v43, %v14093_v1 }
0x157b   : > { %v7255_v6 = vpop.f32.mrf.mxu0  ;;  %v7176_v11 = vadd.f32 %v7168_v26, %v7051_v10  ;;  %v7052_v22 = vadd.f32 %v7044_v4, %v6927_v63  ;;  %v7175_v5 = vadd.f32 %v7167_v23, %v7050_v24 }
0x157c   : > { %v14186_v17 = vmul.f32 0.70710677, %v14176_v7  ;;  %v14189_v14 = vadd.f32 %v14169_v58, %v7296_v28  ;;  %v7299_v35 = vadd.f32 %v7291_v62, %v7174_v57  ;;  %v7290_v53 = vmul.f32 %v14152_v41, %v7255_v6 }
0x157d   : > { %v9985_v46 = vpop.f32.mrf.mxu0  ;;  %v7178_v57 = vadd.f32 %v7170_v51, %v7053_v47  ;;  %v7177_v34 = vadd.f32 %v7169_v2, %v7052_v22 }
0x157e   : > { %v7351_v18 = vand.u32 2147483647, %v14186_v17  ;;  %v14198_v20 = vmul.f32 0.70710677, %v14189_v14  ;;  %v14201_v25 = vadd.f32 %v14169_v58, %v7299_v35  ;;  %v7298_v59 = vadd.f32 %v7290_v53, %v7173_v61 }
0x157f   : > { %v7265_v15 = vpop.f32.mrf.mxu0  ;;  %v7293_v13 = vmul.f32 %v9985_v46, %v14152_v41  ;;  %vm7335_vm1 = vcmp.ge.f32.partialorder %v14186_v17, 0.0 }
0x1580   : > { %v7359_v36 = vmul.f32 0.3275911, %v7351_v18  ;;  %v7350_v21 = vand.u32 2147483647, %v14198_v20  ;;  %v14208_v16 = vmul.f32 0.70710677, %v14201_v25  ;;  %v14211_v32 = vadd.f32 %v14169_v58, %v7298_v59 }
0x1581   : > { %v9988_v40 = vpop.f32.mrf.mxu0  ;;  %v7301_v48 = vadd.f32 %v7293_v13, %v7176_v11  ;;  %v7292_v62 = vmul.f32 %v14152_v41, %v7265_v15  ;;  %v7463_v42 = vsub.f32 0.0, %v7351_v18  ;;  %v14253_v15 = vmul.f32 0.5, %v14176_v7 }
0x1582   : > { %v7367_v27 = vadd.f32 1.0, %v7359_v36  ;;  %v7358_v50 = vmul.f32 0.3275911, %v7350_v21  ;;  %v7353_v3 = vand.u32 2147483647, %v14208_v16  ;;  %v7295_v56 = vmul.f32 %v9988_v40, %v14152_v41 }
0x1583   : > { %v14218_v9 = vmul.f32 0.70710677, %v14211_v32  ;;  %v7275_v19 = vpop.f32.mrf.mxu0  ;;  %v14226_v54 = vadd.f32 %v14169_v58, %v7301_v48  ;;  %v7300_v44 = vadd.f32 %v7292_v62, %v7175_v5  ;;  %v7462_v12 = vsub.f32 0.0, %v7350_v21 }
0x1584   : > { %10436 = vrcp.f32 %v7367_v27  ;;  %v7366_v60 = vadd.f32 1.0, %v7358_v50  ;;  %v7361_v0 = vmul.f32 0.3275911, %v7353_v3  ;;  %v7294_v55 = vmul.f32 %v14152_v41, %v7275_v19 }
0x1585   : > { %v7352_v33 = vand.u32 2147483647, %v14218_v9  ;;  %v14231_v6 = vmul.f32 0.70710677, %v14226_v54  ;;  %v7303_v30 = vadd.f32 %v7295_v56, %v7178_v57  ;;  %v14234_v39 = vadd.f32 %v14169_v58, %v7300_v44 }
0x1586   : > { %10438 = vrcp.f32 %v7366_v60  ;;  %v7369_v8 = vadd.f32 1.0, %v7361_v0  ;;  %v7302_v35 = vadd.f32 %v7294_v55, %v7177_v34  ;;  %v7471_v45 = vmul.f32 %v7463_v42, %v7351_v18 }
0x1587   : > { %v7360_v28 = vmul.f32 0.3275911, %v7352_v33  ;;  %v7355_v61 = vand.u32 2147483647, %v14231_v6  ;;  %v14238_v53 = vadd.f32 %v14169_v58, %v7303_v30  ;;  %v7465_v46 = vsub.f32 0.0, %v7353_v3 }
0x1588   : > { %10440 = vrcp.f32 %v7369_v8  ;;  %v14241_v38 = vmul.f32 0.70710677, %v14234_v39  ;;  %v7470_v41 = vmul.f32 %v7462_v12, %v7350_v21  ;;  %v7464_v52 = vsub.f32 0.0, %v7352_v33 }
0x1589   : > { %v7368_v1 = vadd.f32 1.0, %v7360_v28  ;;  %v7363_v37 = vmul.f32 0.3275911, %v7355_v61  ;;  %v14244_v31 = vmul.f32 0.70710677, %v14238_v53  ;;  %v14248_v59 = vadd.f32 %v14169_v58, %v7302_v35 }
0x158a   : > { %v7354_v43 = vand.u32 2147483647, %v14241_v38  ;;  %v7480_v63 = vmul.f32 1.442695, %v7471_v45  ;;  %v14258_v21 = vmul.f32 0.5, %v14189_v14  ;;  %v7473_v10 = vmul.f32 %v7465_v46, %v7353_v3 }
0x158b   : > { %10442 = vrcp.f32 %v7368_v1  ;;  %v7371_v49 = vadd.f32 1.0, %v7363_v37  ;;  %vm7334_vm6 = vcmp.ge.f32.partialorder %v14198_v20, 0.0  ;;  %v7478_v58 = vmul.f32 1.442695, %v7470_v41 }
0x158c   : > { %v7362_v26 = vmul.f32 0.3275911, %v7354_v43  ;;  %v14262_v24 = vand.u32 2147483647, %v14244_v31  ;;  %v7472_v27 = vmul.f32 %v7464_v52, %v7352_v33  ;;  %v14267_v23 = vmul.f32 0.70710677, %v14248_v59 }
0x158d   : > { %10444 = vrcp.f32 %v7371_v49  ;;  %v14272_v14 = vsel %vm7335_vm1, 1.0, %v10867_v29  ;;  %v14282_v51 = vsel %vm7334_vm6, 1.0, %v10867_v29  ;;  %v7484_v60 = vmul.f32 1.442695, %v7473_v10 }
0x158e   : > { %v7370_v50 = vadd.f32 1.0, %v7362_v26  ;;  %10446 = vpow2.f32 %v7480_v63  ;;  %v7365_v13 = vmul.f32 0.3275911, %v14262_v24  ;;  %v7467_v0 = vsub.f32 0.0, %v7355_v61 }
0x158f   : > { %v7482_v33 = vmul.f32 1.442695, %v7472_v27  ;;  %v14286_v8 = vand.u32 2147483647, %v14267_v23  ;;  %v7466_v5 = vsub.f32 0.0, %v7354_v43  ;;  %v14293_v28 = vmul.f32 0.5, %v14201_v25 }
0x1590   : > { %10448 = vrcp.f32 %v7370_v50  ;;  %v7373_v22 = vadd.f32 1.0, %v7365_v13  ;;  %v7475_v1 = vmul.f32 %v7467_v0, %v7355_v61  ;;  %vm7337_vm12 = vcmp.ge.f32.partialorder %v14208_v16, 0.0 }
0x1591   : > { %v14250_v18 = vpop.eup %10436  ;;  %10450 = vpow2.f32 %v7478_v58  ;;  %v7364_v42 = vmul.f32 0.3275911, %v14286_v8  ;;  %v7474_v25 = vmul.f32 %v7466_v5, %v7354_v43  ;;  %v7469_v41 = vsub.f32 0.0, %v14262_v24 }
0x1592   : > { %v7391_v36 = vmul.f32 1.0614054, %v14250_v18  ;;  %10452 = vrcp.f32 %v7373_v22  ;;  %vm7336_vm13 = vcmp.ge.f32.partialorder %v14218_v9, 0.0  ;;  %v7488_v52 = vmul.f32 1.442695, %v7475_v1 }
0x1593   : > { %v14264_v7 = vpop.eup %10438  ;;  %10454 = vpow2.f32 %v7484_v60  ;;  %v7372_v12 = vadd.f32 1.0, %v7364_v42  ;;  %v7345_v43 = vsel %vm7337_vm12, 1.0, %v10867_v29  ;;  %v7486_v27 = vmul.f32 1.442695, %v7474_v25 }
0x1594   : > { %v7399_v4 = vadd.f32 -1.4531521, %v7391_v36  ;;  %v7390_v3 = vmul.f32 1.0614054, %v14264_v7  ;;  %10456 = vpow2.f32 %v7482_v33  ;;  %v14311_v36 = vmul.f32 0.5, %v14211_v32 }
0x1595   : > { %v14276_v40 = vpop.eup %10440  ;;  %10458 = vrcp.f32 %v7372_v12  ;;  %v7477_v16 = vmul.f32 %v7469_v41, %v14262_v24  ;;  %vm7339_vm15 = vcmp.ge.f32.partialorder %v14231_v6, 0.0  ;;  %vm7338_vm2 = vcmp.ge.f32.partialorder %v14241_v38, 0.0 }
0x1596   : > { %v7407_v47 = vmul.f32 %v14250_v18, %v7399_v4  ;;  %v7398_v11 = vadd.f32 -1.4531521, %v7390_v3  ;;  %v7393_v17 = vmul.f32 1.0614054, %v14276_v40  ;;  %v14317_v3 = vsel %vm7336_vm13, 1.0, %v10867_v29 }
0x1597   : > { %10460 = vpow2.f32 %v7488_v52  ;;  %v7492_v42 = vmul.f32 1.442695, %v7477_v16  ;;  %vm7341_vm3 = vcmp.ge.f32.partialorder %v14244_v31, 0.0  ;;  %vm7340_vm4 = vcmp.ge.f32.partialorder %v14267_v23, 0.0 }
0x1598   : > { %v7415_v2 = vadd.f32 1.4214138, %v7407_v47  ;;  %v14288_v48 = vpop.eup %10442  ;;  %v7406_v19 = vmul.f32 %v14264_v7, %v7398_v11  ;;  %v7401_v20 = vadd.f32 -1.4531521, %v7393_v17  ;;  %10462 = vpow2.f32 %v7486_v27 }
0x1599   : > { %v7392_v62 = vmul.f32 1.0614054, %v14288_v48  ;;  %10464 = vpow2.f32 %v7492_v42 }
0x159a   : > { %v7423_v57 = vmul.f32 %v14250_v18, %v7415_v2  ;;  %v7414_v56 = vadd.f32 1.4214138, %v7406_v19  ;;  %v7409_v34 = vmul.f32 %v14276_v40, %v7401_v20  ;;  %v14305_v63 = vpop.eup %10444 }
0x159b   : > { %v7400_v55 = vadd.f32 -1.4531521, %v7392_v62  ;;  %v7395_v4 = vmul.f32 1.0614054, %v14305_v63  ;;  %v10447_v50 = vpop.eup %10446 }
0x159c   : > { %v7431_v44 = vadd.f32 -0.28449672, %v7423_v57  ;;  %v7422_v30 = vmul.f32 %v14264_v7, %v7414_v56  ;;  %v7417_v35 = vadd.f32 1.4214138, %v7409_v34 }
0x159d   : > { %v7408_v46 = vmul.f32 %v14288_v48, %v7400_v55  ;;  %v14321_v47 = vpop.eup %10448  ;;  %v7403_v11 = vadd.f32 -1.4531521, %v7395_v4 }
0x159e   : > { %v7439_v45 = vmul.f32 %v14250_v18, %v7431_v44  ;;  %v7430_v37 = vadd.f32 -0.28449672, %v7422_v30  ;;  %v7425_v61 = vmul.f32 %v14276_v40, %v7417_v35  ;;  %v7394_v22 = vmul.f32 1.0614054, %v14321_v47  ;;  %v10451_v2 = vpop.eup %10450 }
0x159f   : > { %v7416_v10 = vadd.f32 1.4214138, %v7408_v46  ;;  %v7411_v20 = vmul.f32 %v14305_v63, %v7403_v11  ;;  %v14328_v24 = vpop.eup %10452 }
0x15a0   : > { %v7447_v49 = vadd.f32 0.2548296, %v7439_v45  ;;  %v7438_v26 = vmul.f32 %v14264_v7, %v7430_v37  ;;  %v7433_v58 = vadd.f32 -0.28449672, %v7425_v61  ;;  %v7402_v62 = vadd.f32 -1.4531521, %v7394_v22  ;;  %v10455_v55 = vpop.eup %10454 }
0x15a1   : > { %v7424_v13 = vmul.f32 %v14288_v48, %v7416_v10  ;;  %v7419_v1 = vadd.f32 1.4214138, %v7411_v20  ;;  %v7397_v44 = vmul.f32 1.0614054, %v14328_v24  ;;  %v10457_v37 = vpop.eup %10456 }
0x15a2   : > { %v7455_v9 = vmul.f32 %v14250_v18, %v7447_v49  ;;  %v7446_v32 = vadd.f32 0.2548296, %v7438_v26  ;;  %v7441_v60 = vmul.f32 %v14276_v40, %v7433_v58  ;;  %v7468_v18 = vsub.f32 0.0, %v14286_v8  ;;  %v14338_v49 = vpop.eup %10458  ;;  %v7545_v58 = vpop.permute.xlu1 %7544 }
0x15a3   : > { %v7432_v0 = vadd.f32 -0.28449672, %v7424_v13  ;;  %v7410_v30 = vmul.f32 %v14321_v47, %v7402_v62  ;;  %v7427_v46 = vmul.f32 %v14305_v63, %v7419_v1  ;;  %v7405_v41 = vadd.f32 -1.4531521, %v7397_v44 }
0x15a4   : > { %v7495_v17 = vmul.f32 %v10447_v50, %v7455_v9  ;;  %v7454_v33 = vmul.f32 %v14264_v7, %v7446_v32  ;;  %v7449_v19 = vadd.f32 0.2548296, %v7441_v60  ;;  %v7476_v35 = vmul.f32 %v7468_v18, %v14286_v8 }
0x15a5   : > { %v7440_v57 = vmul.f32 %v14288_v48, %v7432_v0  ;;  %v7418_v52 = vadd.f32 1.4214138, %v7410_v30  ;;  %v7435_v26 = vadd.f32 -0.28449672, %v7427_v46  ;;  %v7413_v8 = vmul.f32 %v14328_v24, %v7405_v41 }
0x15a6   : > { %v7503_v5 = vsub.f32 1.0, %v7495_v17  ;;  %v7494_v56 = vmul.f32 %v10451_v2, %v7454_v33  ;;  %v7457_v34 = vmul.f32 %v14276_v40, %v7449_v19  ;;  %v7396_v50 = vmul.f32 1.0614054, %v14338_v49  ;;  %v10461_v33 = vpop.eup %10460  ;;  %v7543_v19 = vpop.permute.xlu0 %7542 }
0x15a7   : > { %v7448_v12 = vadd.f32 0.2548296, %v7440_v57  ;;  %v7426_v27 = vmul.f32 %v14321_v47, %v7418_v52  ;;  %v7490_v9 = vmul.f32 1.442695, %v7476_v35  ;;  %v7421_v32 = vadd.f32 1.4214138, %v7413_v8  ;;  %v7547_v20 = vpop.permute.xlu1 %7546  ;;  %v10463_v42 = vpop.eup %10462 }
0x15a8   : > { %v7511_v7 = vmul.f32 %v7503_v5, %v14272_v14  ;;  %v7502_v25 = vsub.f32 1.0, %v7494_v56  ;;  %v7497_v45 = vmul.f32 %v10455_v55, %v7457_v34  ;;  %v7404_v17 = vadd.f32 -1.4531521, %v7396_v50 }
0x15a9   : > { %v7456_v40 = vmul.f32 %v14288_v48, %v7448_v12  ;;  %v7443_v48 = vmul.f32 %v14305_v63, %v7435_v26  ;;  %v7429_v2 = vmul.f32 %v14328_v24, %v7421_v32  ;;  %10466 = vpow2.f32 %v7490_v9 }
0x15aa   : > { %v7519_v61 = vadd.f32 1.0, %v7511_v7  ;;  %v7510_v14 = vmul.f32 %v7502_v25, %v14282_v51  ;;  %v7505_v10 = vsub.f32 1.0, %v7497_v45  ;;  %v7434_v51 = vadd.f32 -0.28449672, %v7426_v27 }
0x15ab   : > { %v7496_v4 = vmul.f32 %v10457_v37, %v7456_v40  ;;  %v7451_v18 = vadd.f32 0.2548296, %v7443_v48  ;;  %v7412_v57 = vmul.f32 %v14338_v49, %v7404_v17  ;;  %v7437_v62 = vadd.f32 -0.28449672, %v7429_v2 }
0x15ac   : > { %v7518_v13 = vadd.f32 1.0, %v7510_v14  ;;  %v7513_v16 = vmul.f32 %v7505_v10, %v7345_v43  ;;  %v7527_v60 = vmul.f32 %v7519_v61, %v14253_v15  ;;  %v7442_v43 = vmul.f32 %v14321_v47, %v7434_v51  ;;  %v10465_v61 = vpop.eup %10464 }
0x15ad   : > { %v7504_v11 = vsub.f32 1.0, %v7496_v4  ;;  %v7459_v15 = vmul.f32 %v14305_v63, %v7451_v18  ;;  %v7420_v44 = vadd.f32 1.4214138, %v7412_v57  ;;  %v7347_v35 = vsel %vm7339_vm15, 1.0, %v10867_v29 }
0x15ae   : > { %v7526_v0 = vmul.f32 %v7518_v13, %v14258_v21  ;;  %v7521_v22 = vadd.f32 1.0, %v7513_v16  ;;  %v7567_v56 = vmul.f32 %v7545_v58, %v7527_v60  ;;  %v7450_v1 = vadd.f32 0.2548296, %v7442_v43  ;;  %v7551_v60 = vpop.permute.xlu0 %7550 }
0x15af   : > { %v7512_v5 = vmul.f32 %v7504_v11, %v14317_v3  ;;  %v7499_v7 = vmul.f32 %v10461_v33, %v7459_v15  ;;  %v7445_v3 = vmul.f32 %v14328_v24, %v7437_v62  ;;  %v7428_v63 = vmul.f32 %v14338_v49, %v7420_v44 }
0x15b0   : > { %v7566_v21 = vmul.f32 %v7543_v19, %v7526_v0  ;;  %v7529_v55 = vmul.f32 %v7521_v22, %v14293_v28  ;;  %v7458_v30 = vmul.f32 %v14321_v47, %v7450_v1  ;;  %v7549_v28 = vpop.permute.xlu1 %7548  ;;  %v7346_v10 = vsel %vm7338_vm2, 1.0, %v10867_v29 }
0x15b1   : > { %v7520_v34 = vadd.f32 1.0, %v7512_v5  ;;  %v7507_v25 = vsub.f32 1.0, %v7499_v7  ;;  %v7453_v45 = vadd.f32 0.2548296, %v7445_v3  ;;  %v7436_v41 = vadd.f32 -0.28449672, %v7428_v63 }
0x15b2   : > { %9997 = vmatprep.mubr.msk.f32.mxu1 %vm7585_vm14, %v7566_v21  ;;  %v7498_v46 = vmul.f32 %v10463_v42, %v7458_v30  ;;  %v7323_v58 = vmul.f32 0.5, %v14226_v54  ;;  %v7349_v50 = vsel %vm7341_vm3, 1.0, %v10867_v29  ;;  %v7324_v18 = vmul.f32 0.5, %v14248_v59  ;;  %v7555_v19 = vpop.permute.xlu0 %7554  ;;  %v14808_v59 = vld [vmem:[#allocation72_spill] sm:$0xff]  ;;  %v14809_v42 = vld [vmem:[#allocation26_spill] sm:$0xff]  ;;  %v14811_v7 = vld [vmem:[#allocation35_spill] sm:$0xff] }
0x15b3   : > { %v7528_v12 = vmul.f32 %v7520_v34, %v14311_v36  ;;  %9998 = vmatmul.mubr.msk.f32.vlgmr.msra.gmra.mxu1 %vm7585_vm14, %v7567_v56  ;;  %v7569_v36 = vmul.f32 %v7549_v28, %v7529_v55  ;;  %v7515_v40 = vmul.f32 %v7507_v25, %v7347_v35  ;;  %v7461_v47 = vmul.f32 %v14328_v24, %v7453_v45  ;;  %v14810_v34 = vld [vmem:[#allocation59_spill] sm:$0xff]  ;;  %v14812_v30 = vld [vmem:[#allocation37_spill] sm:$0xff] }
0x15b4   : > { %v7506_v52 = vsub.f32 1.0, %v7498_v46  ;;  %v7444_v14 = vmul.f32 %v14338_v49, %v7436_v41  ;;  %v7322_v24 = vmul.f32 0.5, %v14234_v39  ;;  %v7553_v11 = vpop.permute.xlu1 %7552  ;;  %v7348_v39 = vsel %vm7340_vm4, 1.0, %v10867_v29  ;;  %v14813_v25 = vld [vmem:[#allocation25_spill] sm:$0xff]  ;;  %v14814_v28 = vld [vmem:[#allocation27_spill] sm:$0xff]  ;;  %v14815_v41 = vld [vmem:[#allocation46_spill] sm:$0xff] }
0x15b5   : > { %v7568_v37 = vmul.f32 %v7547_v20, %v7528_v12  ;;  %v7523_v6 = vadd.f32 1.0, %v7515_v40  ;;  %v7501_v26 = vmul.f32 %v10465_v61, %v7461_v47  ;;  %v14816_v47 = vld [vmem:[#allocation49_spill] sm:$0xff] }
0x15b6   : > { %v7514_v38 = vmul.f32 %v7506_v52, %v7346_v10  ;;  %v7452_v8 = vadd.f32 0.2548296, %v7444_v14  ;;  %v10467_v13 = vpop.eup %10466 }
0x15b7   : > { %10000 = vmatprep.mubr.msk.f32.mxu1 %vm7585_vm14, %v7568_v37  ;;  %v7509_v4 = vsub.f32 1.0, %v7501_v26  ;;  %v7531_v16 = vmul.f32 %v7523_v6, %v7323_v58  ;;  %v14817_v6 = vld [vmem:[#allocation47_spill] sm:$0xff] }
0x15b8   : > { %10001 = vmatmul.mubr.msk.f32.gmra.mxu1 %vm7585_vm14, %v7569_v36  ;;  %v7522_v27 = vadd.f32 1.0, %v7514_v38  ;;  %v7460_v9 = vmul.f32 %v14338_v49, %v7452_v8  ;;  %v7325_v49 = vmul.f32 0.5, %v14238_v53  ;;  %v7557_v20 = vpop.permute.xlu1 %7556  ;;  %v8351_v53 = vld [vmem:[%s14807_s21] ss:$0 sm:$0xff]  ;;  %v14818_v26 = vld [vmem:[#allocation71_spill] sm:$0xff] }
0x15b9   : > { %v7517_v48 = vmul.f32 %v7509_v4, %v7349_v50  ;;  %v7571_v54 = vmul.f32 %v7553_v11, %v7531_v16  ;;  %v14819_v8 = vld [vmem:[#allocation38_spill] sm:$0xff]  ;;  %v14820_v50 = vld [vmem:[#allocation80_spill] sm:$0xff] }
0x15ba   : > { %v7530_v32 = vmul.f32 %v7522_v27, %v7322_v24  ;;  %v7500_v31 = vmul.f32 %v10467_v13, %v7460_v9  ;;  %v14821_v16 = vld [vmem:[#allocation28_spill] sm:$0xff] }
0x15bb   : > { %v7525_v0 = vadd.f32 1.0, %v7517_v48 }
0x15bc   : > { %v7508_v51 = vsub.f32 1.0, %v7500_v31  ;;  %v7570_v17 = vmul.f32 %v7551_v60, %v7530_v32  ;;  %v14822_v32 = vld [vmem:[#allocation48_spill] sm:$0xff]  ;;  %v14824_v60 = vld [vmem:[#allocation58_spill] sm:$0xff] }
0x15bd   : > { %v7533_v23 = vmul.f32 %v7525_v0, %v7325_v49 }
0x15be   : > { %v7516_v22 = vmul.f32 %v7508_v51, %v7348_v39  ;;  %10003 = vmatprep.mubr.msk.f32.mxu1 %vm7585_vm14, %v7570_v17 }
0x15bf   : > { %10004 = vmatmul.mubr.msk.f32.gmra.mxu1 %vm7585_vm14, %v7571_v54  ;;  %v7573_v43 = vmul.f32 %v7557_v20, %v7533_v23 }
0x15c0   : > { %v7524_v2 = vadd.f32 1.0, %v7516_v22 }
0x15c2   : > { %v7532_v33 = vmul.f32 %v7524_v2, %v7324_v18 }
0x15c4   : > { %v7572_v5 = vmul.f32 %v7555_v19, %v7532_v33 }
0x15c6   : > { %10006 = vmatprep.mubr.msk.f32.mxu1 %vm7585_vm14, %v7572_v5 }
0x15c7   : > { %10007 = vmatmul.mubr.msk.f32.gmra.mxu1 %vm7585_vm14, %v7573_v43 }
0x1673   : > { %v9999_v29 = vpop.f32.mrf.mxu1 }
0x1674   : > { %v7682_v57 = vadd.f32 %v9999_v29, %v8351_v53 }
0x1675   : > { %v7676_v15 = vpop.f32.mrf.mxu1 }
0x1676   : > { %v7716_v62 = vadd.f32 %v7682_v57, %v14808_v59  ;;  %v7677_v21 = vadd.f32 %v8351_v53, %v7676_v15 }
0x1678   : > { %v7724_v56 = vadd.f32 %v7716_v62, %v14809_v42  ;;  %v7715_v1 = vadd.f32 %v7677_v21, %v14810_v34  ;;  %v10002_v44 = vpop.f32.mrf.mxu1 }
0x1679   : > { %v7692_v55 = vadd.f32 %v10002_v44, %v8351_v53 }
0x167a   : > { %7732 = vst.msk [vmem:[%s14390_s15 + $0x8] sm:$0xff] %vm704_vm0, %v7724_v56  ;;  %v7723_v3 = vadd.f32 %v7715_v1, %v14811_v7  ;;  %v7686_v12 = vpop.f32.mrf.mxu1 }
0x167b   : > { %v7718_v63 = vadd.f32 %v7692_v55, %v14812_v30  ;;  %v7687_v35 = vadd.f32 %v8351_v53, %v7686_v12 }
0x167c   : > { %7731 = vst.msk [vmem:[%s14390_s15] sm:$0xff] %vm704_vm0, %v7723_v3 }
0x167d   : > { %v7726_v45 = vadd.f32 %v7718_v63, %v14813_v25  ;;  %v7717_v46 = vadd.f32 %v7687_v35, %v14814_v28 }
0x167f   : > { %7734 = vst.msk [vmem:[%s14390_s15 + $0x18] sm:$0xff] %vm704_vm0, %v7726_v45  ;;  %v7725_v37 = vadd.f32 %v7717_v46, %v14815_v41  ;;  %v10005_v61 = vpop.f32.mrf.mxu1 }
0x1680   : > { %v7702_v36 = vadd.f32 %v10005_v61, %v8351_v53 }
0x1681   : > { %7733 = vst.msk [vmem:[%s14390_s15 + $0x10] sm:$0xff] %vm704_vm0, %v7725_v37  ;;  %v7696_v40 = vpop.f32.mrf.mxu1 }
0x1682   : > { %v7720_v52 = vadd.f32 %v7702_v36, %v14816_v47  ;;  %v7697_v14 = vadd.f32 %v8351_v53, %v7696_v40 }
0x1684   : > { %v7728_v10 = vadd.f32 %v7720_v52, %v14817_v6  ;;  %v7719_v38 = vadd.f32 %v7697_v14, %v14818_v26 }
0x1686   : > { %7736 = vst.msk [vmem:[%s14390_s15 + $0x28] sm:$0xff] %vm704_vm0, %v7728_v10  ;;  %v7727_v58 = vadd.f32 %v7719_v38, %v14819_v8 }
0x1687   : > { %v10008_v4 = vpop.f32.mrf.mxu1 }
0x1688   : > { %7735 = vst.msk [vmem:[%s14390_s15 + $0x20] sm:$0xff] %vm704_vm0, %v7727_v58  ;;  %v7712_v24 = vadd.f32 %v10008_v4, %v8351_v53 }
0x1689   : > { %v7706_v27 = vpop.f32.mrf.mxu1 }
0x168a   : > { %v7722_v9 = vadd.f32 %v7712_v24, %v14820_v50  ;;  %v7707_v13 = vadd.f32 %v8351_v53, %v7706_v27 }
0x168c   : > { %v7730_v48 = vadd.f32 %v7722_v9, %v14821_v16  ;;  %v7721_v31 = vadd.f32 %v7707_v13, %v14822_v32 }
0x168e   : > { %7738 = vst.msk [vmem:[%s14390_s15 + $0x38] sm:$0xff] %vm704_vm0, %v7730_v48  ;;  %v7729_v11 = vadd.f32 %v7721_v31, %v14824_v60 }
0x1690   : > { %7737 = vst.msk [vmem:[%s14390_s15 + $0x30] sm:$0xff] %vm704_vm0, %v7729_v11 }
0x1691   : > { %10771 = shalt.err (!%p10768_p9)
}
0x1692   : > { %s10772_s24 = scalar_lea.hbm %s14421_s17, 1024  ;;  %s10776_s15 = scalar_lea.hbm %s14823_s13, 2048 }
0x1693   : > { %p10773_p6 = scmp.ne.s32.totalorder %s14421_s17, %s10772_s24  ;;  %p10777_p0 = scmp.lt.s32.totalorder %s14421_s17, %s14823_s13 }
0x1694   : > { %p10778_p2 = scmp.lt.s32.totalorder %s10776_s15, %s10772_s24 }
0x1695   : > { %p10774_p11 = pnand %p10773_p6, %p14825_p8 }
0x1696   : > { %p10779_p5 = por %p10778_p2, %p10777_p0 }
0x1697   : > { %p10775_p7 = pneg %p10774_p11 }
0x1699   : > { %p10780_p10 = pnand %p10779_p5, %p10775_p7 }
0x169b   : > { %10783 = shalt.err (!%p10780_p10)
}
0x169c   : > { %s10869_s8 = smov 128   ;;  %s10870_s4 = smov 8  }
0x169d   : > { %10039 = dma.vmem_to_hbm [thread:$0]  (%p14825_p8), %s14423_s22, 1024, %s14421_s17, %s7740_s1, %s10869_s8, %s10869_s8, %s10870_s4  }
0x169e PF: > { %s7768_s7 = sand.u32 1, %s10826_s27   ;;  %p14826_p12 = scmp.ne.s32.totalorder %s14562_s26, 0 }
0x169f   : > { %p14827_p13 = scmp.ge.s32.totalorder %s10838_s30, 2  ;;  %s7769_s20 = scalar_lea.sflag [#allocation4], %s7768_s7 }
0x16a1   : > { %p10068_p1 = pnand %p14827_p13, %p14826_p12 }
0x16a3   : > { %p10069_p3 = pneg %p10068_p1 }
0x16a5   : > { %10821 = dma.done.wait (%p10069_p3), %s7769_s20, 1024  }
0x16a6   : > { %10823 = vsyncadd (%p10069_p3), %s7769_s20, 4294966272  ;;  %p35_p4 = scmp.ge.s32.totalorder %s11087_s25, 4   ;;  %s14828_s27 = smov %s10830_s28 }
0x16a7   : > { %s14829_s28 = smov %s10834_s29  ;;  %s14830_s29 = smov %s11099_s19 }
0x16a8   : > { %s14831_s30 = smov %s11087_s25  ;;  %37 = sbr.rel (!%p35_p4) target bundleno = 23 (0x17), region = 173 }
0x16ad   :  { %7774 = vsyncpa [#allocation3], 1 }
0x16ae   :  { %7776 = vsyncpa [#allocation3 + $0x1], 1 }
0x16af   :  { %7777 = vsyncpa [#allocation6], 1 }
0x16b0   :  { %7778 = vsyncpa [#allocation9], 1 }
0x16b1   :  { %7779 = vsyncpa [#allocation12], 1 }
0x16b2   :  { %7780 = vsyncpa [#allocation15], 1 }
0x16b3   :  { %7781 = vsyncpa [#allocation4], 1 }
0x16b4   :  { %7783 = vsyncpa [#allocation4 + $0x1], 1 }

</bundles_post_ra>
